<compile_context>
chip_gen: v7x
topology: tpu7x:2x2x1
jax: 0.10.0
libtpu: 0.0.40
codegen_flags: <defaults>
</compile_context>

<pallas_src>
import jax
import jax.numpy as jnp
from jax import lax
from jax.experimental import pallas as pl
from jax.experimental.pallas import tpu as pltpu


def _default_vmem_limit():
    try:
        cap = pltpu.get_tpu_info().vmem_capacity_bytes
        return int(cap * 3 // 4)          # ~96 MiB on v5e/v6e, ~48 MiB on v7x
    except Exception:
        return 32 * 1024 * 1024


_VMEM_LIMIT = _default_vmem_limit()


# ----------------------------------------------------------------- conv -----
def conv3x3_bn_stats(xp, w, stride, Do, Ho, Wo):
    """3x3x3 conv (input already zero-padded) + per-block BN partial stats.

    xp : [N, Dp, Hp, Wp, Cin]  bf16 padded input (NDHWC)
    w  : [3, 3, 3, Cin, Cout]  bf16 weights (DHWIO)
    returns y    [N, Do, Ho*Wo, Cout] f32     (conv output, pre-BN)
            psum [N, Do, 1, Cout]     f32     (per-(n,do) partial sum of y)
            psq  [N, Do, 1, Cout]     f32     (per-(n,do) partial sum of y*y)
    """
    N, Dp, Hp, Wp, Cin = xp.shape
    Cout = w.shape[-1]

    def kernel(x0_ref, x1_ref, x2_ref, w_ref, y_ref, sum_ref, sq_ref):
        slabs = (x0_ref, x1_ref, x2_ref)
        acc = jnp.zeros((Ho * Wo, Cout), jnp.float32)
        for kd in range(3):
            slab = slabs[kd][0, 0]                       # (Hp, Wp, Cin) bf16
            for kh in range(3):
                for kw in range(3):
                    if stride == 1:
                        patch = slab[kh:kh + Ho, kw:kw + Wo, :]
                    else:
                        # TODO(synk): stride>1 relies on strided in-kernel
                        # slicing; correct by lax.slice semantics but
                        # unexercised by the demo below (stride=1).
                        patch = lax.slice(
                            slab, (kh, kw, 0),
                            (kh + (Ho - 1) * stride + 1,
                             kw + (Wo - 1) * stride + 1, Cin),
                            (stride, stride, 1))
                    patch = patch.reshape(Ho * Wo, Cin)
                    acc = acc + jnp.dot(patch, w_ref[kd, kh, kw],
                                        preferred_element_type=jnp.float32)
        y_ref[0, 0] = acc
        sum_ref[0, 0] = jnp.sum(acc, axis=0, keepdims=True)
        sq_ref[0, 0] = jnp.sum(acc * acc, axis=0, keepdims=True)

    in_specs = [
        pl.BlockSpec((1, 1, Hp, Wp, Cin),
                     (lambda n, do, kd=kd: (n, do * stride + kd, 0, 0, 0)))
        for kd in range(3)
    ] + [pl.BlockSpec((3, 3, 3, Cin, Cout), lambda n, do: (0, 0, 0, 0, 0))]

    out_specs = (
        pl.BlockSpec((1, 1, Ho * Wo, Cout), lambda n, do: (n, do, 0, 0)),
        pl.BlockSpec((1, 1, 1, Cout), lambda n, do: (n, do, 0, 0)),
        pl.BlockSpec((1, 1, 1, Cout), lambda n, do: (n, do, 0, 0)),
    )

    return pl.pallas_call(
        kernel,
        out_shape=(jax.ShapeDtypeStruct((N, Do, Ho * Wo, Cout), jnp.float32),
                   jax.ShapeDtypeStruct((N, Do, 1, Cout), jnp.float32),
                   jax.ShapeDtypeStruct((N, Do, 1, Cout), jnp.float32)),
        grid_spec=pltpu.PrefetchScalarGridSpec(
            num_scalar_prefetch=0, grid=(N, Do),
            in_specs=in_specs, out_specs=out_specs),
        compiler_params=pltpu.CompilerParams(
            dimension_semantics=("parallel", "parallel"),
            vmem_limit_bytes=_VMEM_LIMIT),
    )(xp, xp, xp, w)


# ------------------------------------------------------- BN + ReLU pass -----
def _bn_relu_call(y, scale, shift, tm, out_dtype):
    M, C = y.shape
    tm = min(tm, M)
    grid = pl.cdiv(M, tm)

    def kernel(y_ref, s_ref, b_ref, o_ref):
        o_ref[...] = jnp.maximum(y_ref[...] * s_ref[...] + b_ref[...],
                                 0.0).astype(o_ref.dtype)

    return pl.pallas_call(
        kernel,
        out_shape=jax.ShapeDtypeStruct((M, C), out_dtype),
        grid_spec=pltpu.PrefetchScalarGridSpec(
            num_scalar_prefetch=0, grid=(grid,),
            in_specs=[pl.BlockSpec((tm, C), lambda i: (i, 0)),
                      pl.BlockSpec((1, C), lambda i: (0, 0)),
                      pl.BlockSpec((1, C), lambda i: (0, 0))],
            out_specs=pl.BlockSpec((tm, C), lambda i: (i, 0))),
        compiler_params=pltpu.CompilerParams(
            dimension_semantics=("parallel",),
            vmem_limit_bytes=_VMEM_LIMIT),
    )(y, scale, shift)


def bn_relu(y, scale, shift, tm=1024, out_dtype=jnp.float32):
    """relu(y*scale + shift); lane-dense folded layout when C < 128."""
    M, C = y.shape
    if C < 128 and 128 % C == 0 and M % (128 // C) == 0:
        f = 128 // C
        out = _bn_relu_call(y.reshape(M // f, f * C),
                            jnp.tile(scale, (1, f)), jnp.tile(shift, (1, f)),
                            tm, out_dtype)
        return out.reshape(M, C)
    return _bn_relu_call(y, scale, shift, tm, out_dtype)


# -------------------------------------------- downsample (1x1x1) BN stats ---
def ds_matmul_stats(xs, wd, tm=512):
    """Per-channel sum / sum-of-squares of (xs @ wd) without writing it."""
    M, Cin = xs.shape
    Cout = wd.shape[1]
    tm = min(tm, M)
    grid = pl.cdiv(M, tm)
    needs_mask = (M % tm) != 0

    def kernel(x_ref, w_ref, s_ref, q_ref):
        y = jnp.dot(x_ref[...], w_ref[...], preferred_element_type=jnp.float32)
        if needs_mask:
            row = lax.broadcasted_iota(jnp.int32, (tm, 1), 0) + pl.program_id(0) * tm
            y = jnp.where(row < M, y, 0.0)
        s_ref[0] = jnp.sum(y, axis=0, keepdims=True)
        q_ref[0] = jnp.sum(y * y, axis=0, keepdims=True)

    psum, psq = pl.pallas_call(
        kernel,
        out_shape=(jax.ShapeDtypeStruct((grid, 1, Cout), jnp.float32),
                   jax.ShapeDtypeStruct((grid, 1, Cout), jnp.float32)),
        grid_spec=pltpu.PrefetchScalarGridSpec(
            num_scalar_prefetch=0, grid=(grid,),
            in_specs=[pl.BlockSpec((tm, Cin), lambda i: (i, 0)),
                      pl.BlockSpec((Cin, Cout), lambda i: (0, 0))],
            out_specs=(pl.BlockSpec((1, 1, Cout), lambda i: (i, 0, 0)),
                       pl.BlockSpec((1, 1, Cout), lambda i: (i, 0, 0)))),
        compiler_params=pltpu.CompilerParams(
            dimension_semantics=("parallel",),
            vmem_limit_bytes=_VMEM_LIMIT),
    )(xs, wd)
    return psum.sum(axis=(0, 1)), psq.sum(axis=(0, 1))


# --------------------- fused epilogue: bn2(y2) + bn_d(xs @ wd), then ReLU ----
def bn_add_downsample_relu(y2, s2, b2, xs, wd, sd, bd, tm=512):
    M, Cout = y2.shape
    Cin = xs.shape[1]
    tm = min(tm, M)
    grid = pl.cdiv(M, tm)

    def kernel(y_ref, s2_ref, b2_ref, x_ref, w_ref, sd_ref, bd_ref, o_ref):
        main = y_ref[...] * s2_ref[...] + b2_ref[...]
        yd = jnp.dot(x_ref[...], w_ref[...], preferred_element_type=jnp.float32)
        iden = yd * sd_ref[...] + bd_ref[...]
        o_ref[...] = jnp.maximum(main + iden, 0.0)

    return pl.pallas_call(
        kernel,
        out_shape=jax.ShapeDtypeStruct((M, Cout), jnp.float32),
        grid_spec=pltpu.PrefetchScalarGridSpec(
            num_scalar_prefetch=0, grid=(grid,),
            in_specs=[pl.BlockSpec((tm, Cout), lambda i: (i, 0)),
                      pl.BlockSpec((1, Cout), lambda i: (0, 0)),
                      pl.BlockSpec((1, Cout), lambda i: (0, 0)),
                      pl.BlockSpec((tm, Cin), lambda i: (i, 0)),
                      pl.BlockSpec((Cin, Cout), lambda i: (0, 0)),
                      pl.BlockSpec((1, Cout), lambda i: (0, 0)),
                      pl.BlockSpec((1, Cout), lambda i: (0, 0))],
            out_specs=pl.BlockSpec((tm, Cout), lambda i: (i, 0))),
        compiler_params=pltpu.CompilerParams(
            dimension_semantics=("parallel",),
            vmem_limit_bytes=_VMEM_LIMIT),
    )(y2, s2, b2, xs, wd, sd, bd)


# -------------------------------------------------------------------- glue --
def bn_scale_shift(ssum, ssq, count, gamma, beta, eps=1e-5):
    mean = ssum / count
    var = jnp.maximum(ssq / count - mean * mean, 0.0)  # biased var (training BN)
    scale = gamma / jnp.sqrt(var + eps)
    shift = beta - mean * scale
    return scale.reshape(1, -1), shift.reshape(1, -1)


def residual_block_forward(x_ncdhw, params, stride=1, eps=1e-5):
    x = jnp.transpose(x_ncdhw, (0, 2, 3, 4, 1)).astype(jnp.float32)   # NDHWC
    N, D, H, W, Cin = x.shape
    Cout = params["w1"].shape[-1]
    Do = (D + 2 - 3) // stride + 1
    Ho = (H + 2 - 3) // stride + 1
    Wo = (W + 2 - 3) // stride + 1
    M = N * Do * Ho * Wo

    # conv1 (3x3x3, stride, pad=1) + BN1 batch stats  (bias folded into BN)
    xp1 = jnp.pad(x, ((0, 0), (1, 1), (1, 1), (1, 1), (0, 0))).astype(jnp.bfloat16)
    y1, p1s, p1q = conv3x3_bn_stats(xp1, params["w1"].astype(jnp.bfloat16),
                                    stride, Do, Ho, Wo)
    sc1, sh1 = bn_scale_shift(p1s.sum(axis=(0, 1, 2)), p1q.sum(axis=(0, 1, 2)),
                              M, params["g1"], params["be1"], eps)

    # BN1 + ReLU (lane-dense elementwise pass); emit bf16 for the next MXU pass
    h1 = bn_relu(y1.reshape(M, Cout), sc1, sh1, out_dtype=jnp.bfloat16)

    # conv2 (3x3x3, stride=1, pad=1) + BN2 batch stats
    h1p = jnp.pad(h1.reshape(N, Do, Ho, Wo, Cout),
                  ((0, 0), (1, 1), (1, 1), (1, 1), (0, 0)))
    y2, p2s, p2q = conv3x3_bn_stats(h1p, params["w2"].astype(jnp.bfloat16),
                                    1, Do, Ho, Wo)
    sc2, sh2 = bn_scale_shift(p2s.sum(axis=(0, 1, 2)), p2q.sum(axis=(0, 1, 2)),
                              M, params["g2"], params["be2"], eps)

    # downsample branch: 1x1x1 conv BN stats (yd never materialized in HBM)
    xs = x[:, ::stride, ::stride, ::stride, :].reshape(M, Cin).astype(jnp.bfloat16)
    wd = params["wd"].reshape(Cin, Cout).astype(jnp.bfloat16)
    dsum, dsq = ds_matmul_stats(xs, wd)
    scd, shd = bn_scale_shift(dsum, dsq, M, params["gd"], params["bed"], eps)

    # fused epilogue: relu( bn2(y2) + bn_d(xs @ wd) )
    out = bn_add_downsample_relu(y2.reshape(M, Cout), sc2, sh2, xs, wd, scd, shd)
    out = out.reshape(N, Do, Ho, Wo, Cout)
    return jnp.transpose(out, (0, 4, 1, 2, 3))                        # NCDHW


# ---------------------------------------------------------- pure-JAX check --
def reference_forward(x_ncdhw, params, stride=1, eps=1e-5):
    x = jnp.transpose(x_ncdhw, (0, 2, 3, 4, 1)).astype(jnp.float32)
    dn = ("NDHWC", "DHWIO", "NDHWC")

    def conv(a, w, b, s, pad):
        y = lax.conv_general_dilated(
            a.astype(jnp.bfloat16), w.astype(jnp.bfloat16), (s, s, s),
            [(pad, pad)] * 3, dimension_numbers=dn,
            preferred_element_type=jnp.float32)
        return y + b.reshape(1, 1, 1, 1, -1)   # bias kept here (no-op thru BN)

    def bn(y, g, be):
        m = jnp.mean(y, axis=(0, 1, 2, 3))
        v = jnp.mean((y - m) ** 2, axis=(0, 1, 2, 3))
        return (y - m) * (g / jnp.sqrt(v + eps)) + be

    h = jax.nn.relu(bn(conv(x, params["w1"], params["b1"], stride, 1),
                       params["g1"], params["be1"]))
    h2 = bn(conv(h, params["w2"], params["b2"], 1, 1),
            params["g2"], params["be2"])
    idn = bn(conv(x, params["wd"], params["bd"], stride, 0),
             params["gd"], params["bed"])
    out = jax.nn.relu(h2 + idn)
    return jnp.transpose(out, (0, 4, 1, 2, 3))


# -------------------------------------------------------------------- main --
if __name__ == "__main__":
    key = jax.random.PRNGKey(0)
    N, Cin, Cout, D, H, W, stride = 2, 4, 8, 8, 8, 8, 1
    ks = jax.random.split(key, 10)

    params = {
        # conv1: 3x3x3, Cin -> Cout (DHWIO)
        "w1": 0.1 * jax.random.normal(ks[0], (3, 3, 3, Cin, Cout), jnp.float32),
        "b1": 0.05 * jax.random.normal(ks[1], (1, Cout), jnp.float32),
        "g1": 1.0 + 0.1 * jax.random.normal(ks[2], (Cout,), jnp.float32),
        "be1": 0.1 * jax.random.normal(ks[3], (Cout,), jnp.float32),
        # conv2: 3x3x3, Cout -> Cout
        "w2": 0.1 * jax.random.normal(ks[4], (3, 3, 3, Cout, Cout), jnp.float32),
        "b2": 0.05 * jax.random.normal(ks[5], (1, Cout), jnp.float32),
        "g2": 1.0 + 0.1 * jax.random.normal(ks[6], (Cout,), jnp.float32),
        "be2": 0.1 * jax.random.normal(ks[7], (Cout,), jnp.float32),
        # downsample: 1x1x1, Cin -> Cout
        "wd": 0.1 * jax.random.normal(ks[8], (1, 1, 1, Cin, Cout), jnp.float32),
        "bd": jnp.zeros((1, Cout), jnp.float32),
        "gd": jnp.ones((Cout,), jnp.float32),
        "bed": jnp.zeros((Cout,), jnp.float32),
    }

    # PyTorch-convention NCDHW input
    x = jax.random.normal(ks[9], (N, Cin, D, H, W), jnp.float32)

    forward = jax.jit(residual_block_forward, static_argnames=("stride",))
    out = forward(x, params, stride=stride)
    out = jax.block_until_ready(out)

    ref = reference_forward(x, params, stride=stride)
    assert out.shape == (N, Cout, D, H, W)
    err = float(jnp.max(jnp.abs(out - ref)))
    assert jnp.allclose(out, ref, atol=5e-3, rtol=5e-3), f"max abs diff {err}"

    print("KERNEL_OK")
</pallas_src>

<mosaic_0001>
module attributes {stable_mosaic.version = 11 : i64} {
  func.func @kernel(%arg0: i32, %arg1: i32, %arg2: memref<1x1x10x10x4xbf16, #tpu.memory_space<vmem>>, %arg3: memref<1x1x10x10x4xbf16, #tpu.memory_space<vmem>>, %arg4: memref<1x1x10x10x4xbf16, #tpu.memory_space<vmem>>, %arg5: memref<3x3x3x4x8xbf16, #tpu.memory_space<vmem>>, %arg6: memref<1x1x64x8xf32, #tpu.memory_space<vmem>>, %arg7: memref<1x1x1x8xf32, #tpu.memory_space<vmem>>, %arg8: memref<1x1x1x8xf32, #tpu.memory_space<vmem>>) attributes {dimension_semantics = [#tpu.dimension_semantics<parallel>, #tpu.dimension_semantics<parallel>], iteration_bounds = array<i64: 2, 8>, scalar_prefetch = 0 : i64, scratch_operands = 0 : i64, tpu.core_type = #tpu.core_type<tc>, window_params = [{transform_indices = @transform_0, window_bounds = array<i64: 1, 1, 10, 10, 4>}, {transform_indices = @transform_1, window_bounds = array<i64: 1, 1, 10, 10, 4>}, {transform_indices = @transform_2, window_bounds = array<i64: 1, 1, 10, 10, 4>}, {pipeline_mode = #tpu.pipeline_mode<synchronous>, transform_indices = @transform_3, window_bounds = array<i64: 3, 3, 3, 4, 8>}, {transform_indices = @transform_4, window_bounds = array<i64: 1, 1, 64, 8>}, {transform_indices = @transform_5, window_bounds = array<i64: 1, 1, 1, 8>}, {transform_indices = @transform_6, window_bounds = array<i64: 1, 1, 1, 8>}]} {
    %cst = arith.constant 0.000000e+00 : f32
    %0 = vector.broadcast %cst : f32 to vector<64x8xf32>
    %c0 = arith.constant 0 : index
    %c0_0 = arith.constant 0 : index
    %c0_1 = arith.constant 0 : index
    %c0_2 = arith.constant 0 : index
    %c0_3 = arith.constant 0 : index
    %1 = vector.load %arg2[%c0, %c0_0, %c0_1, %c0_2, %c0_3] : memref<1x1x10x10x4xbf16, #tpu.memory_space<vmem>>, vector<1x1x10x10x4xbf16>
    %2 = vector.shape_cast %1 : vector<1x1x10x10x4xbf16> to vector<10x10x4xbf16>
    %3 = vector.extract_strided_slice %2 {offsets = [0, 0, 0], sizes = [8, 8, 4], strides = [1, 1, 1]} : vector<10x10x4xbf16> to vector<8x8x4xbf16>
    %4 = vector.shape_cast %3 : vector<8x8x4xbf16> to vector<64x4xbf16>
    %c0_4 = arith.constant 0 : index
    %c0_5 = arith.constant 0 : index
    %c0_6 = arith.constant 0 : index
    %c0_7 = arith.constant 0 : index
    %c0_8 = arith.constant 0 : index
    %5 = vector.load %arg5[%c0_4, %c0_5, %c0_6, %c0_7, %c0_8] : memref<3x3x3x4x8xbf16, #tpu.memory_space<vmem>>, vector<1x1x1x4x8xbf16>
    %6 = vector.shape_cast %5 : vector<1x1x1x4x8xbf16> to vector<4x8xbf16>
    %cst_9 = arith.constant dense<0.000000e+00> : vector<64x8xf32>
    %7 = tpu.matmul %4, %6, %cst_9 {dimension_numbers = #tpu.dot_dimension_numbers<[1], [0], [0], [1], [0, 0, 1, 1], [], []>} : vector<64x4xbf16>, vector<4x8xbf16>, vector<64x8xf32> -> vector<64x8xf32>
    %8 = arith.addf %0, %7 : vector<64x8xf32>
    %9 = vector.extract_strided_slice %2 {offsets = [0, 1, 0], sizes = [8, 8, 4], strides = [1, 1, 1]} : vector<10x10x4xbf16> to vector<8x8x4xbf16>
    %10 = vector.shape_cast %9 : vector<8x8x4xbf16> to vector<64x4xbf16>
    %c0_10 = arith.constant 0 : index
    %c0_11 = arith.constant 0 : index
    %c1 = arith.constant 1 : index
    %c0_12 = arith.constant 0 : index
    %c0_13 = arith.constant 0 : index
    %11 = vector.load %arg5[%c0_10, %c0_11, %c1, %c0_12, %c0_13] : memref<3x3x3x4x8xbf16, #tpu.memory_space<vmem>>, vector<1x1x1x4x8xbf16>
    %12 = vector.shape_cast %11 : vector<1x1x1x4x8xbf16> to vector<4x8xbf16>
    %cst_14 = arith.constant dense<0.000000e+00> : vector<64x8xf32>
    %13 = tpu.matmul %10, %12, %cst_14 {dimension_numbers = #tpu.dot_dimension_numbers<[1], [0], [0], [1], [0, 0, 1, 1], [], []>} : vector<64x4xbf16>, vector<4x8xbf16>, vector<64x8xf32> -> vector<64x8xf32>
    %14 = arith.addf %8, %13 : vector<64x8xf32>
    %15 = vector.extract_strided_slice %2 {offsets = [0, 2, 0], sizes = [8, 8, 4], strides = [1, 1, 1]} : vector<10x10x4xbf16> to vector<8x8x4xbf16>
    %16 = vector.shape_cast %15 : vector<8x8x4xbf16> to vector<64x4xbf16>
    %c0_15 = arith.constant 0 : index
    %c0_16 = arith.constant 0 : index
    %c2 = arith.constant 2 : index
    %c0_17 = arith.constant 0 : index
    %c0_18 = arith.constant 0 : index
    %17 = vector.load %arg5[%c0_15, %c0_16, %c2, %c0_17, %c0_18] : memref<3x3x3x4x8xbf16, #tpu.memory_space<vmem>>, vector<1x1x1x4x8xbf16>
    %18 = vector.shape_cast %17 : vector<1x1x1x4x8xbf16> to vector<4x8xbf16>
    %cst_19 = arith.constant dense<0.000000e+00> : vector<64x8xf32>
    %19 = tpu.matmul %16, %18, %cst_19 {dimension_numbers = #tpu.dot_dimension_numbers<[1], [0], [0], [1], [0, 0, 1, 1], [], []>} : vector<64x4xbf16>, vector<4x8xbf16>, vector<64x8xf32> -> vector<64x8xf32>
    %20 = arith.addf %14, %19 : vector<64x8xf32>
    %21 = vector.extract_strided_slice %2 {offsets = [1, 0, 0], sizes = [8, 8, 4], strides = [1, 1, 1]} : vector<10x10x4xbf16> to vector<8x8x4xbf16>
    %22 = vector.shape_cast %21 : vector<8x8x4xbf16> to vector<64x4xbf16>
    %c0_20 = arith.constant 0 : index
    %c1_21 = arith.constant 1 : index
    %c0_22 = arith.constant 0 : index
    %c0_23 = arith.constant 0 : index
    %c0_24 = arith.constant 0 : index
    %23 = vector.load %arg5[%c0_20, %c1_21, %c0_22, %c0_23, %c0_24] : memref<3x3x3x4x8xbf16, #tpu.memory_space<vmem>>, vector<1x1x1x4x8xbf16>
    %24 = vector.shape_cast %23 : vector<1x1x1x4x8xbf16> to vector<4x8xbf16>
    %cst_25 = arith.constant dense<0.000000e+00> : vector<64x8xf32>
    %25 = tpu.matmul %22, %24, %cst_25 {dimension_numbers = #tpu.dot_dimension_numbers<[1], [0], [0], [1], [0, 0, 1, 1], [], []>} : vector<64x4xbf16>, vector<4x8xbf16>, vector<64x8xf32> -> vector<64x8xf32>
    %26 = arith.addf %20, %25 : vector<64x8xf32>
    %27 = vector.extract_strided_slice %2 {offsets = [1, 1, 0], sizes = [8, 8, 4], strides = [1, 1, 1]} : vector<10x10x4xbf16> to vector<8x8x4xbf16>
    %28 = vector.shape_cast %27 : vector<8x8x4xbf16> to vector<64x4xbf16>
    %c0_26 = arith.constant 0 : index
    %c1_27 = arith.constant 1 : index
    %c1_28 = arith.constant 1 : index
    %c0_29 = arith.constant 0 : index
    %c0_30 = arith.constant 0 : index
    %29 = vector.load %arg5[%c0_26, %c1_27, %c1_28, %c0_29, %c0_30] : memref<3x3x3x4x8xbf16, #tpu.memory_space<vmem>>, vector<1x1x1x4x8xbf16>
    %30 = vector.shape_cast %29 : vector<1x1x1x4x8xbf16> to vector<4x8xbf16>
    %cst_31 = arith.constant dense<0.000000e+00> : vector<64x8xf32>
    %31 = tpu.matmul %28, %30, %cst_31 {dimension_numbers = #tpu.dot_dimension_numbers<[1], [0], [0], [1], [0, 0, 1, 1], [], []>} : vector<64x4xbf16>, vector<4x8xbf16>, vector<64x8xf32> -> vector<64x8xf32>
    %32 = arith.addf %26, %31 : vector<64x8xf32>
    %33 = vector.extract_strided_slice %2 {offsets = [1, 2, 0], sizes = [8, 8, 4], strides = [1, 1, 1]} : vector<10x10x4xbf16> to vector<8x8x4xbf16>
    %34 = vector.shape_cast %33 : vector<8x8x4xbf16> to vector<64x4xbf16>
    %c0_32 = arith.constant 0 : index
    %c1_33 = arith.constant 1 : index
    %c2_34 = arith.constant 2 : index
    %c0_35 = arith.constant 0 : index
    %c0_36 = arith.constant 0 : index
    %35 = vector.load %arg5[%c0_32, %c1_33, %c2_34, %c0_35, %c0_36] : memref<3x3x3x4x8xbf16, #tpu.memory_space<vmem>>, vector<1x1x1x4x8xbf16>
    %36 = vector.shape_cast %35 : vector<1x1x1x4x8xbf16> to vector<4x8xbf16>
    %cst_37 = arith.constant dense<0.000000e+00> : vector<64x8xf32>
    %37 = tpu.matmul %34, %36, %cst_37 {dimension_numbers = #tpu.dot_dimension_numbers<[1], [0], [0], [1], [0, 0, 1, 1], [], []>} : vector<64x4xbf16>, vector<4x8xbf16>, vector<64x8xf32> -> vector<64x8xf32>
    %38 = arith.addf %32, %37 : vector<64x8xf32>
    %39 = vector.extract_strided_slice %2 {offsets = [2, 0, 0], sizes = [8, 8, 4], strides = [1, 1, 1]} : vector<10x10x4xbf16> to vector<8x8x4xbf16>
    %40 = vector.shape_cast %39 : vector<8x8x4xbf16> to vector<64x4xbf16>
    %c0_38 = arith.constant 0 : index
    %c2_39 = arith.constant 2 : index
    %c0_40 = arith.constant 0 : index
    %c0_41 = arith.constant 0 : index
    %c0_42 = arith.constant 0 : index
    %41 = vector.load %arg5[%c0_38, %c2_39, %c0_40, %c0_41, %c0_42] : memref<3x3x3x4x8xbf16, #tpu.memory_space<vmem>>, vector<1x1x1x4x8xbf16>
    %42 = vector.shape_cast %41 : vector<1x1x1x4x8xbf16> to vector<4x8xbf16>
    %cst_43 = arith.constant dense<0.000000e+00> : vector<64x8xf32>
    %43 = tpu.matmul %40, %42, %cst_43 {dimension_numbers = #tpu.dot_dimension_numbers<[1], [0], [0], [1], [0, 0, 1, 1], [], []>} : vector<64x4xbf16>, vector<4x8xbf16>, vector<64x8xf32> -> vector<64x8xf32>
    %44 = arith.addf %38, %43 : vector<64x8xf32>
    %45 = vector.extract_strided_slice %2 {offsets = [2, 1, 0], sizes = [8, 8, 4], strides = [1, 1, 1]} : vector<10x10x4xbf16> to vector<8x8x4xbf16>
    %46 = vector.shape_cast %45 : vector<8x8x4xbf16> to vector<64x4xbf16>
    %c0_44 = arith.constant 0 : index
    %c2_45 = arith.constant 2 : index
    %c1_46 = arith.constant 1 : index
    %c0_47 = arith.constant 0 : index
    %c0_48 = arith.constant 0 : index
    %47 = vector.load %arg5[%c0_44, %c2_45, %c1_46, %c0_47, %c0_48] : memref<3x3x3x4x8xbf16, #tpu.memory_space<vmem>>, vector<1x1x1x4x8xbf16>
    %48 = vector.shape_cast %47 : vector<1x1x1x4x8xbf16> to vector<4x8xbf16>
    %cst_49 = arith.constant dense<0.000000e+00> : vector<64x8xf32>
    %49 = tpu.matmul %46, %48, %cst_49 {dimension_numbers = #tpu.dot_dimension_numbers<[1], [0], [0], [1], [0, 0, 1, 1], [], []>} : vector<64x4xbf16>, vector<4x8xbf16>, vector<64x8xf32> -> vector<64x8xf32>
    %50 = arith.addf %44, %49 : vector<64x8xf32>
    %51 = vector.extract_strided_slice %2 {offsets = [2, 2, 0], sizes = [8, 8, 4], strides = [1, 1, 1]} : vector<10x10x4xbf16> to vector<8x8x4xbf16>
    %52 = vector.shape_cast %51 : vector<8x8x4xbf16> to vector<64x4xbf16>
    %c0_50 = arith.constant 0 : index
    %c2_51 = arith.constant 2 : index
    %c2_52 = arith.constant 2 : index
    %c0_53 = arith.constant 0 : index
    %c0_54 = arith.constant 0 : index
    %53 = vector.load %arg5[%c0_50, %c2_51, %c2_52, %c0_53, %c0_54] : memref<3x3x3x4x8xbf16, #tpu.memory_space<vmem>>, vector<1x1x1x4x8xbf16>
    %54 = vector.shape_cast %53 : vector<1x1x1x4x8xbf16> to vector<4x8xbf16>
    %cst_55 = arith.constant dense<0.000000e+00> : vector<64x8xf32>
    %55 = tpu.matmul %52, %54, %cst_55 {dimension_numbers = #tpu.dot_dimension_numbers<[1], [0], [0], [1], [0, 0, 1, 1], [], []>} : vector<64x4xbf16>, vector<4x8xbf16>, vector<64x8xf32> -> vector<64x8xf32>
    %56 = arith.addf %50, %55 : vector<64x8xf32>
    %c0_56 = arith.constant 0 : index
    %c0_57 = arith.constant 0 : index
    %c0_58 = arith.constant 0 : index
    %c0_59 = arith.constant 0 : index
    %c0_60 = arith.constant 0 : index
    %57 = vector.load %arg3[%c0_56, %c0_57, %c0_58, %c0_59, %c0_60] : memref<1x1x10x10x4xbf16, #tpu.memory_space<vmem>>, vector<1x1x10x10x4xbf16>
    %58 = vector.shape_cast %57 : vector<1x1x10x10x4xbf16> to vector<10x10x4xbf16>
    %59 = vector.extract_strided_slice %58 {offsets = [0, 0, 0], sizes = [8, 8, 4], strides = [1, 1, 1]} : vector<10x10x4xbf16> to vector<8x8x4xbf16>
    %60 = vector.shape_cast %59 : vector<8x8x4xbf16> to vector<64x4xbf16>
    %c1_61 = arith.constant 1 : index
    %c0_62 = arith.constant 0 : index
    %c0_63 = arith.constant 0 : index
    %c0_64 = arith.constant 0 : index
    %c0_65 = arith.constant 0 : index
    %61 = vector.load %arg5[%c1_61, %c0_62, %c0_63, %c0_64, %c0_65] : memref<3x3x3x4x8xbf16, #tpu.memory_space<vmem>>, vector<1x1x1x4x8xbf16>
    %62 = vector.shape_cast %61 : vector<1x1x1x4x8xbf16> to vector<4x8xbf16>
    %cst_66 = arith.constant dense<0.000000e+00> : vector<64x8xf32>
    %63 = tpu.matmul %60, %62, %cst_66 {dimension_numbers = #tpu.dot_dimension_numbers<[1], [0], [0], [1], [0, 0, 1, 1], [], []>} : vector<64x4xbf16>, vector<4x8xbf16>, vector<64x8xf32> -> vector<64x8xf32>
    %64 = arith.addf %56, %63 : vector<64x8xf32>
    %65 = vector.extract_strided_slice %58 {offsets = [0, 1, 0], sizes = [8, 8, 4], strides = [1, 1, 1]} : vector<10x10x4xbf16> to vector<8x8x4xbf16>
    %66 = vector.shape_cast %65 : vector<8x8x4xbf16> to vector<64x4xbf16>
    %c1_67 = arith.constant 1 : index
    %c0_68 = arith.constant 0 : index
    %c1_69 = arith.constant 1 : index
    %c0_70 = arith.constant 0 : index
    %c0_71 = arith.constant 0 : index
    %67 = vector.load %arg5[%c1_67, %c0_68, %c1_69, %c0_70, %c0_71] : memref<3x3x3x4x8xbf16, #tpu.memory_space<vmem>>, vector<1x1x1x4x8xbf16>
    %68 = vector.shape_cast %67 : vector<1x1x1x4x8xbf16> to vector<4x8xbf16>
    %cst_72 = arith.constant dense<0.000000e+00> : vector<64x8xf32>
    %69 = tpu.matmul %66, %68, %cst_72 {dimension_numbers = #tpu.dot_dimension_numbers<[1], [0], [0], [1], [0, 0, 1, 1], [], []>} : vector<64x4xbf16>, vector<4x8xbf16>, vector<64x8xf32> -> vector<64x8xf32>
    %70 = arith.addf %64, %69 : vector<64x8xf32>
    %71 = vector.extract_strided_slice %58 {offsets = [0, 2, 0], sizes = [8, 8, 4], strides = [1, 1, 1]} : vector<10x10x4xbf16> to vector<8x8x4xbf16>
    %72 = vector.shape_cast %71 : vector<8x8x4xbf16> to vector<64x4xbf16>
    %c1_73 = arith.constant 1 : index
    %c0_74 = arith.constant 0 : index
    %c2_75 = arith.constant 2 : index
    %c0_76 = arith.constant 0 : index
    %c0_77 = arith.constant 0 : index
    %73 = vector.load %arg5[%c1_73, %c0_74, %c2_75, %c0_76, %c0_77] : memref<3x3x3x4x8xbf16, #tpu.memory_space<vmem>>, vector<1x1x1x4x8xbf16>
    %74 = vector.shape_cast %73 : vector<1x1x1x4x8xbf16> to vector<4x8xbf16>
    %cst_78 = arith.constant dense<0.000000e+00> : vector<64x8xf32>
    %75 = tpu.matmul %72, %74, %cst_78 {dimension_numbers = #tpu.dot_dimension_numbers<[1], [0], [0], [1], [0, 0, 1, 1], [], []>} : vector<64x4xbf16>, vector<4x8xbf16>, vector<64x8xf32> -> vector<64x8xf32>
    %76 = arith.addf %70, %75 : vector<64x8xf32>
    %77 = vector.extract_strided_slice %58 {offsets = [1, 0, 0], sizes = [8, 8, 4], strides = [1, 1, 1]} : vector<10x10x4xbf16> to vector<8x8x4xbf16>
    %78 = vector.shape_cast %77 : vector<8x8x4xbf16> to vector<64x4xbf16>
    %c1_79 = arith.constant 1 : index
    %c1_80 = arith.constant 1 : index
    %c0_81 = arith.constant 0 : index
    %c0_82 = arith.constant 0 : index
    %c0_83 = arith.constant 0 : index
    %79 = vector.load %arg5[%c1_79, %c1_80, %c0_81, %c0_82, %c0_83] : memref<3x3x3x4x8xbf16, #tpu.memory_space<vmem>>, vector<1x1x1x4x8xbf16>
    %80 = vector.shape_cast %79 : vector<1x1x1x4x8xbf16> to vector<4x8xbf16>
    %cst_84 = arith.constant dense<0.000000e+00> : vector<64x8xf32>
    %81 = tpu.matmul %78, %80, %cst_84 {dimension_numbers = #tpu.dot_dimension_numbers<[1], [0], [0], [1], [0, 0, 1, 1], [], []>} : vector<64x4xbf16>, vector<4x8xbf16>, vector<64x8xf32> -> vector<64x8xf32>
    %82 = arith.addf %76, %81 : vector<64x8xf32>
    %83 = vector.extract_strided_slice %58 {offsets = [1, 1, 0], sizes = [8, 8, 4], strides = [1, 1, 1]} : vector<10x10x4xbf16> to vector<8x8x4xbf16>
    %84 = vector.shape_cast %83 : vector<8x8x4xbf16> to vector<64x4xbf16>
    %c1_85 = arith.constant 1 : index
    %c1_86 = arith.constant 1 : index
    %c1_87 = arith.constant 1 : index
    %c0_88 = arith.constant 0 : index
    %c0_89 = arith.constant 0 : index
    %85 = vector.load %arg5[%c1_85, %c1_86, %c1_87, %c0_88, %c0_89] : memref<3x3x3x4x8xbf16, #tpu.memory_space<vmem>>, vector<1x1x1x4x8xbf16>
    %86 = vector.shape_cast %85 : vector<1x1x1x4x8xbf16> to vector<4x8xbf16>
    %cst_90 = arith.constant dense<0.000000e+00> : vector<64x8xf32>
    %87 = tpu.matmul %84, %86, %cst_90 {dimension_numbers = #tpu.dot_dimension_numbers<[1], [0], [0], [1], [0, 0, 1, 1], [], []>} : vector<64x4xbf16>, vector<4x8xbf16>, vector<64x8xf32> -> vector<64x8xf32>
    %88 = arith.addf %82, %87 : vector<64x8xf32>
    %89 = vector.extract_strided_slice %58 {offsets = [1, 2, 0], sizes = [8, 8, 4], strides = [1, 1, 1]} : vector<10x10x4xbf16> to vector<8x8x4xbf16>
    %90 = vector.shape_cast %89 : vector<8x8x4xbf16> to vector<64x4xbf16>
    %c1_91 = arith.constant 1 : index
    %c1_92 = arith.constant 1 : index
    %c2_93 = arith.constant 2 : index
    %c0_94 = arith.constant 0 : index
    %c0_95 = arith.constant 0 : index
    %91 = vector.load %arg5[%c1_91, %c1_92, %c2_93, %c0_94, %c0_95] : memref<3x3x3x4x8xbf16, #tpu.memory_space<vmem>>, vector<1x1x1x4x8xbf16>
    %92 = vector.shape_cast %91 : vector<1x1x1x4x8xbf16> to vector<4x8xbf16>
    %cst_96 = arith.constant dense<0.000000e+00> : vector<64x8xf32>
    %93 = tpu.matmul %90, %92, %cst_96 {dimension_numbers = #tpu.dot_dimension_numbers<[1], [0], [0], [1], [0, 0, 1, 1], [], []>} : vector<64x4xbf16>, vector<4x8xbf16>, vector<64x8xf32> -> vector<64x8xf32>
    %94 = arith.addf %88, %93 : vector<64x8xf32>
    %95 = vector.extract_strided_slice %58 {offsets = [2, 0, 0], sizes = [8, 8, 4], strides = [1, 1, 1]} : vector<10x10x4xbf16> to vector<8x8x4xbf16>
    %96 = vector.shape_cast %95 : vector<8x8x4xbf16> to vector<64x4xbf16>
    %c1_97 = arith.constant 1 : index
    %c2_98 = arith.constant 2 : index
    %c0_99 = arith.constant 0 : index
    %c0_100 = arith.constant 0 : index
    %c0_101 = arith.constant 0 : index
    %97 = vector.load %arg5[%c1_97, %c2_98, %c0_99, %c0_100, %c0_101] : memref<3x3x3x4x8xbf16, #tpu.memory_space<vmem>>, vector<1x1x1x4x8xbf16>
    %98 = vector.shape_cast %97 : vector<1x1x1x4x8xbf16> to vector<4x8xbf16>
    %cst_102 = arith.constant dense<0.000000e+00> : vector<64x8xf32>
    %99 = tpu.matmul %96, %98, %cst_102 {dimension_numbers = #tpu.dot_dimension_numbers<[1], [0], [0], [1], [0, 0, 1, 1], [], []>} : vector<64x4xbf16>, vector<4x8xbf16>, vector<64x8xf32> -> vector<64x8xf32>
    %100 = arith.addf %94, %99 : vector<64x8xf32>
    %101 = vector.extract_strided_slice %58 {offsets = [2, 1, 0], sizes = [8, 8, 4], strides = [1, 1, 1]} : vector<10x10x4xbf16> to vector<8x8x4xbf16>
    %102 = vector.shape_cast %101 : vector<8x8x4xbf16> to vector<64x4xbf16>
    %c1_103 = arith.constant 1 : index
    %c2_104 = arith.constant 2 : index
    %c1_105 = arith.constant 1 : index
    %c0_106 = arith.constant 0 : index
    %c0_107 = arith.constant 0 : index
    %103 = vector.load %arg5[%c1_103, %c2_104, %c1_105, %c0_106, %c0_107] : memref<3x3x3x4x8xbf16, #tpu.memory_space<vmem>>, vector<1x1x1x4x8xbf16>
    %104 = vector.shape_cast %103 : vector<1x1x1x4x8xbf16> to vector<4x8xbf16>
    %cst_108 = arith.constant dense<0.000000e+00> : vector<64x8xf32>
    %105 = tpu.matmul %102, %104, %cst_108 {dimension_numbers = #tpu.dot_dimension_numbers<[1], [0], [0], [1], [0, 0, 1, 1], [], []>} : vector<64x4xbf16>, vector<4x8xbf16>, vector<64x8xf32> -> vector<64x8xf32>
    %106 = arith.addf %100, %105 : vector<64x8xf32>
    %107 = vector.extract_strided_slice %58 {offsets = [2, 2, 0], sizes = [8, 8, 4], strides = [1, 1, 1]} : vector<10x10x4xbf16> to vector<8x8x4xbf16>
    %108 = vector.shape_cast %107 : vector<8x8x4xbf16> to vector<64x4xbf16>
    %c1_109 = arith.constant 1 : index
    %c2_110 = arith.constant 2 : index
    %c2_111 = arith.constant 2 : index
    %c0_112 = arith.constant 0 : index
    %c0_113 = arith.constant 0 : index
    %109 = vector.load %arg5[%c1_109, %c2_110, %c2_111, %c0_112, %c0_113] : memref<3x3x3x4x8xbf16, #tpu.memory_space<vmem>>, vector<1x1x1x4x8xbf16>
    %110 = vector.shape_cast %109 : vector<1x1x1x4x8xbf16> to vector<4x8xbf16>
    %cst_114 = arith.constant dense<0.000000e+00> : vector<64x8xf32>
    %111 = tpu.matmul %108, %110, %cst_114 {dimension_numbers = #tpu.dot_dimension_numbers<[1], [0], [0], [1], [0, 0, 1, 1], [], []>} : vector<64x4xbf16>, vector<4x8xbf16>, vector<64x8xf32> -> vector<64x8xf32>
    %112 = arith.addf %106, %111 : vector<64x8xf32>
    %c0_115 = arith.constant 0 : index
    %c0_116 = arith.constant 0 : index
    %c0_117 = arith.constant 0 : index
    %c0_118 = arith.constant 0 : index
    %c0_119 = arith.constant 0 : index
    %113 = vector.load %arg4[%c0_115, %c0_116, %c0_117, %c0_118, %c0_119] : memref<1x1x10x10x4xbf16, #tpu.memory_space<vmem>>, vector<1x1x10x10x4xbf16>
    %114 = vector.shape_cast %113 : vector<1x1x10x10x4xbf16> to vector<10x10x4xbf16>
    %115 = vector.extract_strided_slice %114 {offsets = [0, 0, 0], sizes = [8, 8, 4], strides = [1, 1, 1]} : vector<10x10x4xbf16> to vector<8x8x4xbf16>
    %116 = vector.shape_cast %115 : vector<8x8x4xbf16> to vector<64x4xbf16>
    %c2_120 = arith.constant 2 : index
    %c0_121 = arith.constant 0 : index
    %c0_122 = arith.constant 0 : index
    %c0_123 = arith.constant 0 : index
    %c0_124 = arith.constant 0 : index
    %117 = vector.load %arg5[%c2_120, %c0_121, %c0_122, %c0_123, %c0_124] : memref<3x3x3x4x8xbf16, #tpu.memory_space<vmem>>, vector<1x1x1x4x8xbf16>
    %118 = vector.shape_cast %117 : vector<1x1x1x4x8xbf16> to vector<4x8xbf16>
    %cst_125 = arith.constant dense<0.000000e+00> : vector<64x8xf32>
    %119 = tpu.matmul %116, %118, %cst_125 {dimension_numbers = #tpu.dot_dimension_numbers<[1], [0], [0], [1], [0, 0, 1, 1], [], []>} : vector<64x4xbf16>, vector<4x8xbf16>, vector<64x8xf32> -> vector<64x8xf32>
    %120 = arith.addf %112, %119 : vector<64x8xf32>
    %121 = vector.extract_strided_slice %114 {offsets = [0, 1, 0], sizes = [8, 8, 4], strides = [1, 1, 1]} : vector<10x10x4xbf16> to vector<8x8x4xbf16>
    %122 = vector.shape_cast %121 : vector<8x8x4xbf16> to vector<64x4xbf16>
    %c2_126 = arith.constant 2 : index
    %c0_127 = arith.constant 0 : index
    %c1_128 = arith.constant 1 : index
    %c0_129 = arith.constant 0 : index
    %c0_130 = arith.constant 0 : index
    %123 = vector.load %arg5[%c2_126, %c0_127, %c1_128, %c0_129, %c0_130] : memref<3x3x3x4x8xbf16, #tpu.memory_space<vmem>>, vector<1x1x1x4x8xbf16>
    %124 = vector.shape_cast %123 : vector<1x1x1x4x8xbf16> to vector<4x8xbf16>
    %cst_131 = arith.constant dense<0.000000e+00> : vector<64x8xf32>
    %125 = tpu.matmul %122, %124, %cst_131 {dimension_numbers = #tpu.dot_dimension_numbers<[1], [0], [0], [1], [0, 0, 1, 1], [], []>} : vector<64x4xbf16>, vector<4x8xbf16>, vector<64x8xf32> -> vector<64x8xf32>
    %126 = arith.addf %120, %125 : vector<64x8xf32>
    %127 = vector.extract_strided_slice %114 {offsets = [0, 2, 0], sizes = [8, 8, 4], strides = [1, 1, 1]} : vector<10x10x4xbf16> to vector<8x8x4xbf16>
    %128 = vector.shape_cast %127 : vector<8x8x4xbf16> to vector<64x4xbf16>
    %c2_132 = arith.constant 2 : index
    %c0_133 = arith.constant 0 : index
    %c2_134 = arith.constant 2 : index
    %c0_135 = arith.constant 0 : index
    %c0_136 = arith.constant 0 : index
    %129 = vector.load %arg5[%c2_132, %c0_133, %c2_134, %c0_135, %c0_136] : memref<3x3x3x4x8xbf16, #tpu.memory_space<vmem>>, vector<1x1x1x4x8xbf16>
    %130 = vector.shape_cast %129 : vector<1x1x1x4x8xbf16> to vector<4x8xbf16>
    %cst_137 = arith.constant dense<0.000000e+00> : vector<64x8xf32>
    %131 = tpu.matmul %128, %130, %cst_137 {dimension_numbers = #tpu.dot_dimension_numbers<[1], [0], [0], [1], [0, 0, 1, 1], [], []>} : vector<64x4xbf16>, vector<4x8xbf16>, vector<64x8xf32> -> vector<64x8xf32>
    %132 = arith.addf %126, %131 : vector<64x8xf32>
    %133 = vector.extract_strided_slice %114 {offsets = [1, 0, 0], sizes = [8, 8, 4], strides = [1, 1, 1]} : vector<10x10x4xbf16> to vector<8x8x4xbf16>
    %134 = vector.shape_cast %133 : vector<8x8x4xbf16> to vector<64x4xbf16>
    %c2_138 = arith.constant 2 : index
    %c1_139 = arith.constant 1 : index
    %c0_140 = arith.constant 0 : index
    %c0_141 = arith.constant 0 : index
    %c0_142 = arith.constant 0 : index
    %135 = vector.load %arg5[%c2_138, %c1_139, %c0_140, %c0_141, %c0_142] : memref<3x3x3x4x8xbf16, #tpu.memory_space<vmem>>, vector<1x1x1x4x8xbf16>
    %136 = vector.shape_cast %135 : vector<1x1x1x4x8xbf16> to vector<4x8xbf16>
    %cst_143 = arith.constant dense<0.000000e+00> : vector<64x8xf32>
    %137 = tpu.matmul %134, %136, %cst_143 {dimension_numbers = #tpu.dot_dimension_numbers<[1], [0], [0], [1], [0, 0, 1, 1], [], []>} : vector<64x4xbf16>, vector<4x8xbf16>, vector<64x8xf32> -> vector<64x8xf32>
    %138 = arith.addf %132, %137 : vector<64x8xf32>
    %139 = vector.extract_strided_slice %114 {offsets = [1, 1, 0], sizes = [8, 8, 4], strides = [1, 1, 1]} : vector<10x10x4xbf16> to vector<8x8x4xbf16>
    %140 = vector.shape_cast %139 : vector<8x8x4xbf16> to vector<64x4xbf16>
    %c2_144 = arith.constant 2 : index
    %c1_145 = arith.constant 1 : index
    %c1_146 = arith.constant 1 : index
    %c0_147 = arith.constant 0 : index
    %c0_148 = arith.constant 0 : index
    %141 = vector.load %arg5[%c2_144, %c1_145, %c1_146, %c0_147, %c0_148] : memref<3x3x3x4x8xbf16, #tpu.memory_space<vmem>>, vector<1x1x1x4x8xbf16>
    %142 = vector.shape_cast %141 : vector<1x1x1x4x8xbf16> to vector<4x8xbf16>
    %cst_149 = arith.constant dense<0.000000e+00> : vector<64x8xf32>
    %143 = tpu.matmul %140, %142, %cst_149 {dimension_numbers = #tpu.dot_dimension_numbers<[1], [0], [0], [1], [0, 0, 1, 1], [], []>} : vector<64x4xbf16>, vector<4x8xbf16>, vector<64x8xf32> -> vector<64x8xf32>
    %144 = arith.addf %138, %143 : vector<64x8xf32>
    %145 = vector.extract_strided_slice %114 {offsets = [1, 2, 0], sizes = [8, 8, 4], strides = [1, 1, 1]} : vector<10x10x4xbf16> to vector<8x8x4xbf16>
    %146 = vector.shape_cast %145 : vector<8x8x4xbf16> to vector<64x4xbf16>
    %c2_150 = arith.constant 2 : index
    %c1_151 = arith.constant 1 : index
    %c2_152 = arith.constant 2 : index
    %c0_153 = arith.constant 0 : index
    %c0_154 = arith.constant 0 : index
    %147 = vector.load %arg5[%c2_150, %c1_151, %c2_152, %c0_153, %c0_154] : memref<3x3x3x4x8xbf16, #tpu.memory_space<vmem>>, vector<1x1x1x4x8xbf16>
    %148 = vector.shape_cast %147 : vector<1x1x1x4x8xbf16> to vector<4x8xbf16>
    %cst_155 = arith.constant dense<0.000000e+00> : vector<64x8xf32>
    %149 = tpu.matmul %146, %148, %cst_155 {dimension_numbers = #tpu.dot_dimension_numbers<[1], [0], [0], [1], [0, 0, 1, 1], [], []>} : vector<64x4xbf16>, vector<4x8xbf16>, vector<64x8xf32> -> vector<64x8xf32>
    %150 = arith.addf %144, %149 : vector<64x8xf32>
    %151 = vector.extract_strided_slice %114 {offsets = [2, 0, 0], sizes = [8, 8, 4], strides = [1, 1, 1]} : vector<10x10x4xbf16> to vector<8x8x4xbf16>
    %152 = vector.shape_cast %151 : vector<8x8x4xbf16> to vector<64x4xbf16>
    %c2_156 = arith.constant 2 : index
    %c2_157 = arith.constant 2 : index
    %c0_158 = arith.constant 0 : index
    %c0_159 = arith.constant 0 : index
    %c0_160 = arith.constant 0 : index
    %153 = vector.load %arg5[%c2_156, %c2_157, %c0_158, %c0_159, %c0_160] : memref<3x3x3x4x8xbf16, #tpu.memory_space<vmem>>, vector<1x1x1x4x8xbf16>
    %154 = vector.shape_cast %153 : vector<1x1x1x4x8xbf16> to vector<4x8xbf16>
    %cst_161 = arith.constant dense<0.000000e+00> : vector<64x8xf32>
    %155 = tpu.matmul %152, %154, %cst_161 {dimension_numbers = #tpu.dot_dimension_numbers<[1], [0], [0], [1], [0, 0, 1, 1], [], []>} : vector<64x4xbf16>, vector<4x8xbf16>, vector<64x8xf32> -> vector<64x8xf32>
    %156 = arith.addf %150, %155 : vector<64x8xf32>
    %157 = vector.extract_strided_slice %114 {offsets = [2, 1, 0], sizes = [8, 8, 4], strides = [1, 1, 1]} : vector<10x10x4xbf16> to vector<8x8x4xbf16>
    %158 = vector.shape_cast %157 : vector<8x8x4xbf16> to vector<64x4xbf16>
    %c2_162 = arith.constant 2 : index
    %c2_163 = arith.constant 2 : index
    %c1_164 = arith.constant 1 : index
    %c0_165 = arith.constant 0 : index
    %c0_166 = arith.constant 0 : index
    %159 = vector.load %arg5[%c2_162, %c2_163, %c1_164, %c0_165, %c0_166] : memref<3x3x3x4x8xbf16, #tpu.memory_space<vmem>>, vector<1x1x1x4x8xbf16>
    %160 = vector.shape_cast %159 : vector<1x1x1x4x8xbf16> to vector<4x8xbf16>
    %cst_167 = arith.constant dense<0.000000e+00> : vector<64x8xf32>
    %161 = tpu.matmul %158, %160, %cst_167 {dimension_numbers = #tpu.dot_dimension_numbers<[1], [0], [0], [1], [0, 0, 1, 1], [], []>} : vector<64x4xbf16>, vector<4x8xbf16>, vector<64x8xf32> -> vector<64x8xf32>
    %162 = arith.addf %156, %161 : vector<64x8xf32>
    %163 = vector.extract_strided_slice %114 {offsets = [2, 2, 0], sizes = [8, 8, 4], strides = [1, 1, 1]} : vector<10x10x4xbf16> to vector<8x8x4xbf16>
    %164 = vector.shape_cast %163 : vector<8x8x4xbf16> to vector<64x4xbf16>
    %c2_168 = arith.constant 2 : index
    %c2_169 = arith.constant 2 : index
    %c2_170 = arith.constant 2 : index
    %c0_171 = arith.constant 0 : index
    %c0_172 = arith.constant 0 : index
    %165 = vector.load %arg5[%c2_168, %c2_169, %c2_170, %c0_171, %c0_172] : memref<3x3x3x4x8xbf16, #tpu.memory_space<vmem>>, vector<1x1x1x4x8xbf16>
    %166 = vector.shape_cast %165 : vector<1x1x1x4x8xbf16> to vector<4x8xbf16>
    %cst_173 = arith.constant dense<0.000000e+00> : vector<64x8xf32>
    %167 = tpu.matmul %164, %166, %cst_173 {dimension_numbers = #tpu.dot_dimension_numbers<[1], [0], [0], [1], [0, 0, 1, 1], [], []>} : vector<64x4xbf16>, vector<4x8xbf16>, vector<64x8xf32> -> vector<64x8xf32>
    %168 = arith.addf %162, %167 : vector<64x8xf32>
    %c0_174 = arith.constant 0 : index
    %c0_175 = arith.constant 0 : index
    %c0_176 = arith.constant 0 : index
    %c0_177 = arith.constant 0 : index
    %169 = vector.load %arg6[%c0_174, %c0_175, %c0_176, %c0_177] : memref<1x1x64x8xf32, #tpu.memory_space<vmem>>, vector<1x1x64x8xf32>
    %170 = vector.shape_cast %169 : vector<1x1x64x8xf32> to vector<64x8xf32>
    %171 = vector.shape_cast %168 : vector<64x8xf32> to vector<1x1x64x8xf32>
    tpu.vector_store %arg6[%c0_174, %c0_175, %c0_176, %c0_177], %171 {strides = array<i32>} : memref<1x1x64x8xf32, #tpu.memory_space<vmem>>, vector<1x1x64x8xf32>,
    %cst_178 = arith.constant dense<0.000000e+00> : vector<8xf32>
    %172 = vector.multi_reduction <add>, %168, %cst_178 [0] : vector<64x8xf32> to vector<8xf32>
    %173 = vector.shape_cast %172 : vector<8xf32> to vector<1x8xf32>
    %c0_179 = arith.constant 0 : index
    %c0_180 = arith.constant 0 : index
    %c0_181 = arith.constant 0 : index
    %c0_182 = arith.constant 0 : index
    %174 = vector.load %arg7[%c0_179, %c0_180, %c0_181, %c0_182] : memref<1x1x1x8xf32, #tpu.memory_space<vmem>>, vector<1x1x1x8xf32>
    %175 = vector.shape_cast %174 : vector<1x1x1x8xf32> to vector<1x8xf32>
    %176 = vector.shape_cast %173 : vector<1x8xf32> to vector<1x1x1x8xf32>
    tpu.vector_store %arg7[%c0_179, %c0_180, %c0_181, %c0_182], %176 {strides = array<i32>} : memref<1x1x1x8xf32, #tpu.memory_space<vmem>>, vector<1x1x1x8xf32>,
    %177 = arith.mulf %168, %168 : vector<64x8xf32>
    %cst_183 = arith.constant dense<0.000000e+00> : vector<8xf32>
    %178 = vector.multi_reduction <add>, %177, %cst_183 [0] : vector<64x8xf32> to vector<8xf32>
    %179 = vector.shape_cast %178 : vector<8xf32> to vector<1x8xf32>
    %c0_184 = arith.constant 0 : index
    %c0_185 = arith.constant 0 : index
    %c0_186 = arith.constant 0 : index
    %c0_187 = arith.constant 0 : index
    %180 = vector.load %arg8[%c0_184, %c0_185, %c0_186, %c0_187] : memref<1x1x1x8xf32, #tpu.memory_space<vmem>>, vector<1x1x1x8xf32>
    %181 = vector.shape_cast %180 : vector<1x1x1x8xf32> to vector<1x8xf32>
    %182 = vector.shape_cast %179 : vector<1x8xf32> to vector<1x1x1x8xf32>
    tpu.vector_store %arg8[%c0_184, %c0_185, %c0_186, %c0_187], %182 {strides = array<i32>} : memref<1x1x1x8xf32, #tpu.memory_space<vmem>>, vector<1x1x1x8xf32>,
    return
  }
  func.func @transform_0(%arg0: i32, %arg1: i32) -> (i32, i32, i32, i32, i32) {
    %c1_i32 = arith.constant 1 : i32
    %0 = arith.muli %arg1, %c1_i32 : i32
    %c0_i32 = arith.constant 0 : i32
    %1 = arith.addi %0, %c0_i32 : i32
    %c0_i32_0 = arith.constant 0 : i32
    %c0_i32_1 = arith.constant 0 : i32
    %c0_i32_2 = arith.constant 0 : i32
    %c0_i32_3 = arith.constant 0 : i32
    return %arg0, %1, %c0_i32_0, %c0_i32_1, %c0_i32_2 : i32, i32, i32, i32, i32
  }
  func.func @transform_1(%arg0: i32, %arg1: i32) -> (i32, i32, i32, i32, i32) {
    %c1_i32 = arith.constant 1 : i32
    %0 = arith.muli %arg1, %c1_i32 : i32
    %c1_i32_0 = arith.constant 1 : i32
    %1 = arith.addi %0, %c1_i32_0 : i32
    %c0_i32 = arith.constant 0 : i32
    %c0_i32_1 = arith.constant 0 : i32
    %c0_i32_2 = arith.constant 0 : i32
    %c0_i32_3 = arith.constant 0 : i32
    return %arg0, %1, %c0_i32, %c0_i32_1, %c0_i32_2 : i32, i32, i32, i32, i32
  }
  func.func @transform_2(%arg0: i32, %arg1: i32) -> (i32, i32, i32, i32, i32) {
    %c1_i32 = arith.constant 1 : i32
    %0 = arith.muli %arg1, %c1_i32 : i32
    %c2_i32 = arith.constant 2 : i32
    %1 = arith.addi %0, %c2_i32 : i32
    %c0_i32 = arith.constant 0 : i32
    %c0_i32_0 = arith.constant 0 : i32
    %c0_i32_1 = arith.constant 0 : i32
    %c0_i32_2 = arith.constant 0 : i32
    return %arg0, %1, %c0_i32, %c0_i32_0, %c0_i32_1 : i32, i32, i32, i32, i32
  }
  func.func @transform_3(%arg0: i32, %arg1: i32) -> (i32, i32, i32, i32, i32) {
    %c0_i32 = arith.constant 0 : i32
    %c0_i32_0 = arith.constant 0 : i32
    %c0_i32_1 = arith.constant 0 : i32
    %c0_i32_2 = arith.constant 0 : i32
    %c0_i32_3 = arith.constant 0 : i32
    %c0_i32_4 = arith.constant 0 : i32
    return %c0_i32, %c0_i32_0, %c0_i32_1, %c0_i32_2, %c0_i32_3 : i32, i32, i32, i32, i32
  }
  func.func @transform_4(%arg0: i32, %arg1: i32) -> (i32, i32, i32, i32) {
    %c0_i32 = arith.constant 0 : i32
    %c0_i32_0 = arith.constant 0 : i32
    %c0_i32_1 = arith.constant 0 : i32
    return %arg0, %arg1, %c0_i32, %c0_i32_0 : i32, i32, i32, i32
  }
  func.func @transform_5(%arg0: i32, %arg1: i32) -> (i32, i32, i32, i32) {
    %c0_i32 = arith.constant 0 : i32
    %c0_i32_0 = arith.constant 0 : i32
    %c0_i32_1 = arith.constant 0 : i32
    return %arg0, %arg1, %c0_i32, %c0_i32_0 : i32, i32, i32, i32
  }
  func.func @transform_6(%arg0: i32, %arg1: i32) -> (i32, i32, i32, i32) {
    %c0_i32 = arith.constant 0 : i32
    %c0_i32_0 = arith.constant 0 : i32
    %c0_i32_1 = arith.constant 0 : i32
    return %arg0, %arg1, %c0_i32, %c0_i32_0 : i32, i32, i32, i32
  }
}

module attributes {stable_mosaic.version = 11 : i64} {
  func.func @kernel(%arg0: i32, %arg1: memref<64x128xf32, #tpu.memory_space<vmem>>, %arg2: memref<1x128xf32, #tpu.memory_space<vmem>>, %arg3: memref<1x128xf32, #tpu.memory_space<vmem>>, %arg4: memref<64x128xbf16, #tpu.memory_space<vmem>>) attributes {dimension_semantics = [#tpu.dimension_semantics<parallel>], iteration_bounds = array<i64: 1>, scalar_prefetch = 0 : i64, scratch_operands = 0 : i64, tpu.core_type = #tpu.core_type<tc>, window_params = [{transform_indices = @transform_0, window_bounds = array<i64: 64, 128>}, {pipeline_mode = #tpu.pipeline_mode<synchronous>, transform_indices = @transform_1, window_bounds = array<i64: 1, 128>}, {pipeline_mode = #tpu.pipeline_mode<synchronous>, transform_indices = @transform_2, window_bounds = array<i64: 1, 128>}, {transform_indices = @transform_3, window_bounds = array<i64: 64, 128>}]} {
    %c0 = arith.constant 0 : index
    %c0_0 = arith.constant 0 : index
    %0 = vector.load %arg1[%c0, %c0_0] : memref<64x128xf32, #tpu.memory_space<vmem>>, vector<64x128xf32>
    %c0_1 = arith.constant 0 : index
    %c0_2 = arith.constant 0 : index
    %1 = vector.load %arg2[%c0_1, %c0_2] : memref<1x128xf32, #tpu.memory_space<vmem>>, vector<1x128xf32>
    %2 = vector.broadcast %1 : vector<1x128xf32> to vector<64x128xf32>
    %3 = arith.mulf %0, %2 : vector<64x128xf32>
    %c0_3 = arith.constant 0 : index
    %c0_4 = arith.constant 0 : index
    %4 = vector.load %arg3[%c0_3, %c0_4] : memref<1x128xf32, #tpu.memory_space<vmem>>, vector<1x128xf32>
    %5 = vector.broadcast %4 : vector<1x128xf32> to vector<64x128xf32>
    %6 = arith.addf %3, %5 : vector<64x128xf32>
    %cst = arith.constant 0.000000e+00 : f32
    %7 = vector.broadcast %cst : f32 to vector<64x128xf32>
    %8 = arith.maximumf %6, %7 : vector<64x128xf32>
    %9 = arith.truncf %8 : vector<64x128xf32> to vector<64x128xbf16>
    %c0_5 = arith.constant 0 : index
    %c0_6 = arith.constant 0 : index
    %10 = vector.load %arg4[%c0_5, %c0_6] : memref<64x128xbf16, #tpu.memory_space<vmem>>, vector<64x128xbf16>
    tpu.vector_store %arg4[%c0_5, %c0_6], %9 {strides = array<i32>} : memref<64x128xbf16, #tpu.memory_space<vmem>>, vector<64x128xbf16>,
    return
  }
  func.func @transform_0(%arg0: i32) -> (i32, i32) {
    %c0_i32 = arith.constant 0 : i32
    %c0_i32_0 = arith.constant 0 : i32
    return %arg0, %c0_i32 : i32, i32
  }
  func.func @transform_1(%arg0: i32) -> (i32, i32) {
    %c0_i32 = arith.constant 0 : i32
    %c0_i32_0 = arith.constant 0 : i32
    %c0_i32_1 = arith.constant 0 : i32
    return %c0_i32, %c0_i32_0 : i32, i32
  }
  func.func @transform_2(%arg0: i32) -> (i32, i32) {
    %c0_i32 = arith.constant 0 : i32
    %c0_i32_0 = arith.constant 0 : i32
    %c0_i32_1 = arith.constant 0 : i32
    return %c0_i32, %c0_i32_0 : i32, i32
  }
  func.func @transform_3(%arg0: i32) -> (i32, i32) {
    %c0_i32 = arith.constant 0 : i32
    %c0_i32_0 = arith.constant 0 : i32
    return %arg0, %c0_i32 : i32, i32
  }
}

module attributes {stable_mosaic.version = 11 : i64} {
  func.func @kernel(%arg0: i32, %arg1: i32, %arg2: memref<1x1x10x10x8xbf16, #tpu.memory_space<vmem>>, %arg3: memref<1x1x10x10x8xbf16, #tpu.memory_space<vmem>>, %arg4: memref<1x1x10x10x8xbf16, #tpu.memory_space<vmem>>, %arg5: memref<3x3x3x8x8xbf16, #tpu.memory_space<vmem>>, %arg6: memref<1x1x64x8xf32, #tpu.memory_space<vmem>>, %arg7: memref<1x1x1x8xf32, #tpu.memory_space<vmem>>, %arg8: memref<1x1x1x8xf32, #tpu.memory_space<vmem>>) attributes {dimension_semantics = [#tpu.dimension_semantics<parallel>, #tpu.dimension_semantics<parallel>], iteration_bounds = array<i64: 2, 8>, scalar_prefetch = 0 : i64, scratch_operands = 0 : i64, tpu.core_type = #tpu.core_type<tc>, window_params = [{transform_indices = @transform_0, window_bounds = array<i64: 1, 1, 10, 10, 8>}, {transform_indices = @transform_1, window_bounds = array<i64: 1, 1, 10, 10, 8>}, {transform_indices = @transform_2, window_bounds = array<i64: 1, 1, 10, 10, 8>}, {pipeline_mode = #tpu.pipeline_mode<synchronous>, transform_indices = @transform_3, window_bounds = array<i64: 3, 3, 3, 8, 8>}, {transform_indices = @transform_4, window_bounds = array<i64: 1, 1, 64, 8>}, {transform_indices = @transform_5, window_bounds = array<i64: 1, 1, 1, 8>}, {transform_indices = @transform_6, window_bounds = array<i64: 1, 1, 1, 8>}]} {
    %cst = arith.constant 0.000000e+00 : f32
    %0 = vector.broadcast %cst : f32 to vector<64x8xf32>
    %c0 = arith.constant 0 : index
    %c0_0 = arith.constant 0 : index
    %c0_1 = arith.constant 0 : index
    %c0_2 = arith.constant 0 : index
    %c0_3 = arith.constant 0 : index
    %1 = vector.load %arg2[%c0, %c0_0, %c0_1, %c0_2, %c0_3] : memref<1x1x10x10x8xbf16, #tpu.memory_space<vmem>>, vector<1x1x10x10x8xbf16>
    %2 = vector.shape_cast %1 : vector<1x1x10x10x8xbf16> to vector<10x10x8xbf16>
    %3 = vector.extract_strided_slice %2 {offsets = [0, 0, 0], sizes = [8, 8, 8], strides = [1, 1, 1]} : vector<10x10x8xbf16> to vector<8x8x8xbf16>
    %4 = vector.shape_cast %3 : vector<8x8x8xbf16> to vector<64x8xbf16>
    %c0_4 = arith.constant 0 : index
    %c0_5 = arith.constant 0 : index
    %c0_6 = arith.constant 0 : index
    %c0_7 = arith.constant 0 : index
    %c0_8 = arith.constant 0 : index
    %5 = vector.load %arg5[%c0_4, %c0_5, %c0_6, %c0_7, %c0_8] : memref<3x3x3x8x8xbf16, #tpu.memory_space<vmem>>, vector<1x1x1x8x8xbf16>
    %6 = vector.shape_cast %5 : vector<1x1x1x8x8xbf16> to vector<8x8xbf16>
    %cst_9 = arith.constant dense<0.000000e+00> : vector<64x8xf32>
    %7 = tpu.matmul %4, %6, %cst_9 {dimension_numbers = #tpu.dot_dimension_numbers<[1], [0], [0], [1], [0, 0, 1, 1], [], []>} : vector<64x8xbf16>, vector<8x8xbf16>, vector<64x8xf32> -> vector<64x8xf32>
    %8 = arith.addf %0, %7 : vector<64x8xf32>
    %9 = vector.extract_strided_slice %2 {offsets = [0, 1, 0], sizes = [8, 8, 8], strides = [1, 1, 1]} : vector<10x10x8xbf16> to vector<8x8x8xbf16>
    %10 = vector.shape_cast %9 : vector<8x8x8xbf16> to vector<64x8xbf16>
    %c0_10 = arith.constant 0 : index
    %c0_11 = arith.constant 0 : index
    %c1 = arith.constant 1 : index
    %c0_12 = arith.constant 0 : index
    %c0_13 = arith.constant 0 : index
    %11 = vector.load %arg5[%c0_10, %c0_11, %c1, %c0_12, %c0_13] : memref<3x3x3x8x8xbf16, #tpu.memory_space<vmem>>, vector<1x1x1x8x8xbf16>
    %12 = vector.shape_cast %11 : vector<1x1x1x8x8xbf16> to vector<8x8xbf16>
    %cst_14 = arith.constant dense<0.000000e+00> : vector<64x8xf32>
    %13 = tpu.matmul %10, %12, %cst_14 {dimension_numbers = #tpu.dot_dimension_numbers<[1], [0], [0], [1], [0, 0, 1, 1], [], []>} : vector<64x8xbf16>, vector<8x8xbf16>, vector<64x8xf32> -> vector<64x8xf32>
    %14 = arith.addf %8, %13 : vector<64x8xf32>
    %15 = vector.extract_strided_slice %2 {offsets = [0, 2, 0], sizes = [8, 8, 8], strides = [1, 1, 1]} : vector<10x10x8xbf16> to vector<8x8x8xbf16>
    %16 = vector.shape_cast %15 : vector<8x8x8xbf16> to vector<64x8xbf16>
    %c0_15 = arith.constant 0 : index
    %c0_16 = arith.constant 0 : index
    %c2 = arith.constant 2 : index
    %c0_17 = arith.constant 0 : index
    %c0_18 = arith.constant 0 : index
    %17 = vector.load %arg5[%c0_15, %c0_16, %c2, %c0_17, %c0_18] : memref<3x3x3x8x8xbf16, #tpu.memory_space<vmem>>, vector<1x1x1x8x8xbf16>
    %18 = vector.shape_cast %17 : vector<1x1x1x8x8xbf16> to vector<8x8xbf16>
    %cst_19 = arith.constant dense<0.000000e+00> : vector<64x8xf32>
    %19 = tpu.matmul %16, %18, %cst_19 {dimension_numbers = #tpu.dot_dimension_numbers<[1], [0], [0], [1], [0, 0, 1, 1], [], []>} : vector<64x8xbf16>, vector<8x8xbf16>, vector<64x8xf32> -> vector<64x8xf32>
    %20 = arith.addf %14, %19 : vector<64x8xf32>
    %21 = vector.extract_strided_slice %2 {offsets = [1, 0, 0], sizes = [8, 8, 8], strides = [1, 1, 1]} : vector<10x10x8xbf16> to vector<8x8x8xbf16>
    %22 = vector.shape_cast %21 : vector<8x8x8xbf16> to vector<64x8xbf16>
    %c0_20 = arith.constant 0 : index
    %c1_21 = arith.constant 1 : index
    %c0_22 = arith.constant 0 : index
    %c0_23 = arith.constant 0 : index
    %c0_24 = arith.constant 0 : index
    %23 = vector.load %arg5[%c0_20, %c1_21, %c0_22, %c0_23, %c0_24] : memref<3x3x3x8x8xbf16, #tpu.memory_space<vmem>>, vector<1x1x1x8x8xbf16>
    %24 = vector.shape_cast %23 : vector<1x1x1x8x8xbf16> to vector<8x8xbf16>
    %cst_25 = arith.constant dense<0.000000e+00> : vector<64x8xf32>
    %25 = tpu.matmul %22, %24, %cst_25 {dimension_numbers = #tpu.dot_dimension_numbers<[1], [0], [0], [1], [0, 0, 1, 1], [], []>} : vector<64x8xbf16>, vector<8x8xbf16>, vector<64x8xf32> -> vector<64x8xf32>
    %26 = arith.addf %20, %25 : vector<64x8xf32>
    %27 = vector.extract_strided_slice %2 {offsets = [1, 1, 0], sizes = [8, 8, 8], strides = [1, 1, 1]} : vector<10x10x8xbf16> to vector<8x8x8xbf16>
    %28 = vector.shape_cast %27 : vector<8x8x8xbf16> to vector<64x8xbf16>
    %c0_26 = arith.constant 0 : index
    %c1_27 = arith.constant 1 : index
    %c1_28 = arith.constant 1 : index
    %c0_29 = arith.constant 0 : index
    %c0_30 = arith.constant 0 : index
    %29 = vector.load %arg5[%c0_26, %c1_27, %c1_28, %c0_29, %c0_30] : memref<3x3x3x8x8xbf16, #tpu.memory_space<vmem>>, vector<1x1x1x8x8xbf16>
    %30 = vector.shape_cast %29 : vector<1x1x1x8x8xbf16> to vector<8x8xbf16>
    %cst_31 = arith.constant dense<0.000000e+00> : vector<64x8xf32>
    %31 = tpu.matmul %28, %30, %cst_31 {dimension_numbers = #tpu.dot_dimension_numbers<[1], [0], [0], [1], [0, 0, 1, 1], [], []>} : vector<64x8xbf16>, vector<8x8xbf16>, vector<64x8xf32> -> vector<64x8xf32>
    %32 = arith.addf %26, %31 : vector<64x8xf32>
    %33 = vector.extract_strided_slice %2 {offsets = [1, 2, 0], sizes = [8, 8, 8], strides = [1, 1, 1]} : vector<10x10x8xbf16> to vector<8x8x8xbf16>
    %34 = vector.shape_cast %33 : vector<8x8x8xbf16> to vector<64x8xbf16>
    %c0_32 = arith.constant 0 : index
    %c1_33 = arith.constant 1 : index
    %c2_34 = arith.constant 2 : index
    %c0_35 = arith.constant 0 : index
    %c0_36 = arith.constant 0 : index
    %35 = vector.load %arg5[%c0_32, %c1_33, %c2_34, %c0_35, %c0_36] : memref<3x3x3x8x8xbf16, #tpu.memory_space<vmem>>, vector<1x1x1x8x8xbf16>
    %36 = vector.shape_cast %35 : vector<1x1x1x8x8xbf16> to vector<8x8xbf16>
    %cst_37 = arith.constant dense<0.000000e+00> : vector<64x8xf32>
    %37 = tpu.matmul %34, %36, %cst_37 {dimension_numbers = #tpu.dot_dimension_numbers<[1], [0], [0], [1], [0, 0, 1, 1], [], []>} : vector<64x8xbf16>, vector<8x8xbf16>, vector<64x8xf32> -> vector<64x8xf32>
    %38 = arith.addf %32, %37 : vector<64x8xf32>
    %39 = vector.extract_strided_slice %2 {offsets = [2, 0, 0], sizes = [8, 8, 8], strides = [1, 1, 1]} : vector<10x10x8xbf16> to vector<8x8x8xbf16>
    %40 = vector.shape_cast %39 : vector<8x8x8xbf16> to vector<64x8xbf16>
    %c0_38 = arith.constant 0 : index
    %c2_39 = arith.constant 2 : index
    %c0_40 = arith.constant 0 : index
    %c0_41 = arith.constant 0 : index
    %c0_42 = arith.constant 0 : index
    %41 = vector.load %arg5[%c0_38, %c2_39, %c0_40, %c0_41, %c0_42] : memref<3x3x3x8x8xbf16, #tpu.memory_space<vmem>>, vector<1x1x1x8x8xbf16>
    %42 = vector.shape_cast %41 : vector<1x1x1x8x8xbf16> to vector<8x8xbf16>
    %cst_43 = arith.constant dense<0.000000e+00> : vector<64x8xf32>
    %43 = tpu.matmul %40, %42, %cst_43 {dimension_numbers = #tpu.dot_dimension_numbers<[1], [0], [0], [1], [0, 0, 1, 1], [], []>} : vector<64x8xbf16>, vector<8x8xbf16>, vector<64x8xf32> -> vector<64x8xf32>
    %44 = arith.addf %38, %43 : vector<64x8xf32>
    %45 = vector.extract_strided_slice %2 {offsets = [2, 1, 0], sizes = [8, 8, 8], strides = [1, 1, 1]} : vector<10x10x8xbf16> to vector<8x8x8xbf16>
    %46 = vector.shape_cast %45 : vector<8x8x8xbf16> to vector<64x8xbf16>
    %c0_44 = arith.constant 0 : index
    %c2_45 = arith.constant 2 : index
    %c1_46 = arith.constant 1 : index
    %c0_47 = arith.constant 0 : index
    %c0_48 = arith.constant 0 : index
    %47 = vector.load %arg5[%c0_44, %c2_45, %c1_46, %c0_47, %c0_48] : memref<3x3x3x8x8xbf16, #tpu.memory_space<vmem>>, vector<1x1x1x8x8xbf16>
    %48 = vector.shape_cast %47 : vector<1x1x1x8x8xbf16> to vector<8x8xbf16>
    %cst_49 = arith.constant dense<0.000000e+00> : vector<64x8xf32>
    %49 = tpu.matmul %46, %48, %cst_49 {dimension_numbers = #tpu.dot_dimension_numbers<[1], [0], [0], [1], [0, 0, 1, 1], [], []>} : vector<64x8xbf16>, vector<8x8xbf16>, vector<64x8xf32> -> vector<64x8xf32>
    %50 = arith.addf %44, %49 : vector<64x8xf32>
    %51 = vector.extract_strided_slice %2 {offsets = [2, 2, 0], sizes = [8, 8, 8], strides = [1, 1, 1]} : vector<10x10x8xbf16> to vector<8x8x8xbf16>
    %52 = vector.shape_cast %51 : vector<8x8x8xbf16> to vector<64x8xbf16>
    %c0_50 = arith.constant 0 : index
    %c2_51 = arith.constant 2 : index
    %c2_52 = arith.constant 2 : index
    %c0_53 = arith.constant 0 : index
    %c0_54 = arith.constant 0 : index
    %53 = vector.load %arg5[%c0_50, %c2_51, %c2_52, %c0_53, %c0_54] : memref<3x3x3x8x8xbf16, #tpu.memory_space<vmem>>, vector<1x1x1x8x8xbf16>
    %54 = vector.shape_cast %53 : vector<1x1x1x8x8xbf16> to vector<8x8xbf16>
    %cst_55 = arith.constant dense<0.000000e+00> : vector<64x8xf32>
    %55 = tpu.matmul %52, %54, %cst_55 {dimension_numbers = #tpu.dot_dimension_numbers<[1], [0], [0], [1], [0, 0, 1, 1], [], []>} : vector<64x8xbf16>, vector<8x8xbf16>, vector<64x8xf32> -> vector<64x8xf32>
    %56 = arith.addf %50, %55 : vector<64x8xf32>
    %c0_56 = arith.constant 0 : index
    %c0_57 = arith.constant 0 : index
    %c0_58 = arith.constant 0 : index
    %c0_59 = arith.constant 0 : index
    %c0_60 = arith.constant 0 : index
    %57 = vector.load %arg3[%c0_56, %c0_57, %c0_58, %c0_59, %c0_60] : memref<1x1x10x10x8xbf16, #tpu.memory_space<vmem>>, vector<1x1x10x10x8xbf16>
    %58 = vector.shape_cast %57 : vector<1x1x10x10x8xbf16> to vector<10x10x8xbf16>
    %59 = vector.extract_strided_slice %58 {offsets = [0, 0, 0], sizes = [8, 8, 8], strides = [1, 1, 1]} : vector<10x10x8xbf16> to vector<8x8x8xbf16>
    %60 = vector.shape_cast %59 : vector<8x8x8xbf16> to vector<64x8xbf16>
    %c1_61 = arith.constant 1 : index
    %c0_62 = arith.constant 0 : index
    %c0_63 = arith.constant 0 : index
    %c0_64 = arith.constant 0 : index
    %c0_65 = arith.constant 0 : index
    %61 = vector.load %arg5[%c1_61, %c0_62, %c0_63, %c0_64, %c0_65] : memref<3x3x3x8x8xbf16, #tpu.memory_space<vmem>>, vector<1x1x1x8x8xbf16>
    %62 = vector.shape_cast %61 : vector<1x1x1x8x8xbf16> to vector<8x8xbf16>
    %cst_66 = arith.constant dense<0.000000e+00> : vector<64x8xf32>
    %63 = tpu.matmul %60, %62, %cst_66 {dimension_numbers = #tpu.dot_dimension_numbers<[1], [0], [0], [1], [0, 0, 1, 1], [], []>} : vector<64x8xbf16>, vector<8x8xbf16>, vector<64x8xf32> -> vector<64x8xf32>
    %64 = arith.addf %56, %63 : vector<64x8xf32>
    %65 = vector.extract_strided_slice %58 {offsets = [0, 1, 0], sizes = [8, 8, 8], strides = [1, 1, 1]} : vector<10x10x8xbf16> to vector<8x8x8xbf16>
    %66 = vector.shape_cast %65 : vector<8x8x8xbf16> to vector<64x8xbf16>
    %c1_67 = arith.constant 1 : index
    %c0_68 = arith.constant 0 : index
    %c1_69 = arith.constant 1 : index
    %c0_70 = arith.constant 0 : index
    %c0_71 = arith.constant 0 : index
    %67 = vector.load %arg5[%c1_67, %c0_68, %c1_69, %c0_70, %c0_71] : memref<3x3x3x8x8xbf16, #tpu.memory_space<vmem>>, vector<1x1x1x8x8xbf16>
    %68 = vector.shape_cast %67 : vector<1x1x1x8x8xbf16> to vector<8x8xbf16>
    %cst_72 = arith.constant dense<0.000000e+00> : vector<64x8xf32>
    %69 = tpu.matmul %66, %68, %cst_72 {dimension_numbers = #tpu.dot_dimension_numbers<[1], [0], [0], [1], [0, 0, 1, 1], [], []>} : vector<64x8xbf16>, vector<8x8xbf16>, vector<64x8xf32> -> vector<64x8xf32>
    %70 = arith.addf %64, %69 : vector<64x8xf32>
    %71 = vector.extract_strided_slice %58 {offsets = [0, 2, 0], sizes = [8, 8, 8], strides = [1, 1, 1]} : vector<10x10x8xbf16> to vector<8x8x8xbf16>
    %72 = vector.shape_cast %71 : vector<8x8x8xbf16> to vector<64x8xbf16>
    %c1_73 = arith.constant 1 : index
    %c0_74 = arith.constant 0 : index
    %c2_75 = arith.constant 2 : index
    %c0_76 = arith.constant 0 : index
    %c0_77 = arith.constant 0 : index
    %73 = vector.load %arg5[%c1_73, %c0_74, %c2_75, %c0_76, %c0_77] : memref<3x3x3x8x8xbf16, #tpu.memory_space<vmem>>, vector<1x1x1x8x8xbf16>
    %74 = vector.shape_cast %73 : vector<1x1x1x8x8xbf16> to vector<8x8xbf16>
    %cst_78 = arith.constant dense<0.000000e+00> : vector<64x8xf32>
    %75 = tpu.matmul %72, %74, %cst_78 {dimension_numbers = #tpu.dot_dimension_numbers<[1], [0], [0], [1], [0, 0, 1, 1], [], []>} : vector<64x8xbf16>, vector<8x8xbf16>, vector<64x8xf32> -> vector<64x8xf32>
    %76 = arith.addf %70, %75 : vector<64x8xf32>
    %77 = vector.extract_strided_slice %58 {offsets = [1, 0, 0], sizes = [8, 8, 8], strides = [1, 1, 1]} : vector<10x10x8xbf16> to vector<8x8x8xbf16>
    %78 = vector.shape_cast %77 : vector<8x8x8xbf16> to vector<64x8xbf16>
    %c1_79 = arith.constant 1 : index
    %c1_80 = arith.constant 1 : index
    %c0_81 = arith.constant 0 : index
    %c0_82 = arith.constant 0 : index
    %c0_83 = arith.constant 0 : index
    %79 = vector.load %arg5[%c1_79, %c1_80, %c0_81, %c0_82, %c0_83] : memref<3x3x3x8x8xbf16, #tpu.memory_space<vmem>>, vector<1x1x1x8x8xbf16>
    %80 = vector.shape_cast %79 : vector<1x1x1x8x8xbf16> to vector<8x8xbf16>
    %cst_84 = arith.constant dense<0.000000e+00> : vector<64x8xf32>
    %81 = tpu.matmul %78, %80, %cst_84 {dimension_numbers = #tpu.dot_dimension_numbers<[1], [0], [0], [1], [0, 0, 1, 1], [], []>} : vector<64x8xbf16>, vector<8x8xbf16>, vector<64x8xf32> -> vector<64x8xf32>
    %82 = arith.addf %76, %81 : vector<64x8xf32>
    %83 = vector.extract_strided_slice %58 {offsets = [1, 1, 0], sizes = [8, 8, 8], strides = [1, 1, 1]} : vector<10x10x8xbf16> to vector<8x8x8xbf16>
    %84 = vector.shape_cast %83 : vector<8x8x8xbf16> to vector<64x8xbf16>
    %c1_85 = arith.constant 1 : index
    %c1_86 = arith.constant 1 : index
    %c1_87 = arith.constant 1 : index
    %c0_88 = arith.constant 0 : index
    %c0_89 = arith.constant 0 : index
    %85 = vector.load %arg5[%c1_85, %c1_86, %c1_87, %c0_88, %c0_89] : memref<3x3x3x8x8xbf16, #tpu.memory_space<vmem>>, vector<1x1x1x8x8xbf16>
    %86 = vector.shape_cast %85 : vector<1x1x1x8x8xbf16> to vector<8x8xbf16>
    %cst_90 = arith.constant dense<0.000000e+00> : vector<64x8xf32>
    %87 = tpu.matmul %84, %86, %cst_90 {dimension_numbers = #tpu.dot_dimension_numbers<[1], [0], [0], [1], [0, 0, 1, 1], [], []>} : vector<64x8xbf16>, vector<8x8xbf16>, vector<64x8xf32> -> vector<64x8xf32>
    %88 = arith.addf %82, %87 : vector<64x8xf32>
    %89 = vector.extract_strided_slice %58 {offsets = [1, 2, 0], sizes = [8, 8, 8], strides = [1, 1, 1]} : vector<10x10x8xbf16> to vector<8x8x8xbf16>
    %90 = vector.shape_cast %89 : vector<8x8x8xbf16> to vector<64x8xbf16>
    %c1_91 = arith.constant 1 : index
    %c1_92 = arith.constant 1 : index
    %c2_93 = arith.constant 2 : index
    %c0_94 = arith.constant 0 : index
    %c0_95 = arith.constant 0 : index
    %91 = vector.load %arg5[%c1_91, %c1_92, %c2_93, %c0_94, %c0_95] : memref<3x3x3x8x8xbf16, #tpu.memory_space<vmem>>, vector<1x1x1x8x8xbf16>
    %92 = vector.shape_cast %91 : vector<1x1x1x8x8xbf16> to vector<8x8xbf16>
    %cst_96 = arith.constant dense<0.000000e+00> : vector<64x8xf32>
    %93 = tpu.matmul %90, %92, %cst_96 {dimension_numbers = #tpu.dot_dimension_numbers<[1], [0], [0], [1], [0, 0, 1, 1], [], []>} : vector<64x8xbf16>, vector<8x8xbf16>, vector<64x8xf32> -> vector<64x8xf32>
    %94 = arith.addf %88, %93 : vector<64x8xf32>
    %95 = vector.extract_strided_slice %58 {offsets = [2, 0, 0], sizes = [8, 8, 8], strides = [1, 1, 1]} : vector<10x10x8xbf16> to vector<8x8x8xbf16>
    %96 = vector.shape_cast %95 : vector<8x8x8xbf16> to vector<64x8xbf16>
    %c1_97 = arith.constant 1 : index
    %c2_98 = arith.constant 2 : index
    %c0_99 = arith.constant 0 : index
    %c0_100 = arith.constant 0 : index
    %c0_101 = arith.constant 0 : index
    %97 = vector.load %arg5[%c1_97, %c2_98, %c0_99, %c0_100, %c0_101] : memref<3x3x3x8x8xbf16, #tpu.memory_space<vmem>>, vector<1x1x1x8x8xbf16>
    %98 = vector.shape_cast %97 : vector<1x1x1x8x8xbf16> to vector<8x8xbf16>
    %cst_102 = arith.constant dense<0.000000e+00> : vector<64x8xf32>
    %99 = tpu.matmul %96, %98, %cst_102 {dimension_numbers = #tpu.dot_dimension_numbers<[1], [0], [0], [1], [0, 0, 1, 1], [], []>} : vector<64x8xbf16>, vector<8x8xbf16>, vector<64x8xf32> -> vector<64x8xf32>
    %100 = arith.addf %94, %99 : vector<64x8xf32>
    %101 = vector.extract_strided_slice %58 {offsets = [2, 1, 0], sizes = [8, 8, 8], strides = [1, 1, 1]} : vector<10x10x8xbf16> to vector<8x8x8xbf16>
    %102 = vector.shape_cast %101 : vector<8x8x8xbf16> to vector<64x8xbf16>
    %c1_103 = arith.constant 1 : index
    %c2_104 = arith.constant 2 : index
    %c1_105 = arith.constant 1 : index
    %c0_106 = arith.constant 0 : index
    %c0_107 = arith.constant 0 : index
    %103 = vector.load %arg5[%c1_103, %c2_104, %c1_105, %c0_106, %c0_107] : memref<3x3x3x8x8xbf16, #tpu.memory_space<vmem>>, vector<1x1x1x8x8xbf16>
    %104 = vector.shape_cast %103 : vector<1x1x1x8x8xbf16> to vector<8x8xbf16>
    %cst_108 = arith.constant dense<0.000000e+00> : vector<64x8xf32>
    %105 = tpu.matmul %102, %104, %cst_108 {dimension_numbers = #tpu.dot_dimension_numbers<[1], [0], [0], [1], [0, 0, 1, 1], [], []>} : vector<64x8xbf16>, vector<8x8xbf16>, vector<64x8xf32> -> vector<64x8xf32>
    %106 = arith.addf %100, %105 : vector<64x8xf32>
    %107 = vector.extract_strided_slice %58 {offsets = [2, 2, 0], sizes = [8, 8, 8], strides = [1, 1, 1]} : vector<10x10x8xbf16> to vector<8x8x8xbf16>
    %108 = vector.shape_cast %107 : vector<8x8x8xbf16> to vector<64x8xbf16>
    %c1_109 = arith.constant 1 : index
    %c2_110 = arith.constant 2 : index
    %c2_111 = arith.constant 2 : index
    %c0_112 = arith.constant 0 : index
    %c0_113 = arith.constant 0 : index
    %109 = vector.load %arg5[%c1_109, %c2_110, %c2_111, %c0_112, %c0_113] : memref<3x3x3x8x8xbf16, #tpu.memory_space<vmem>>, vector<1x1x1x8x8xbf16>
    %110 = vector.shape_cast %109 : vector<1x1x1x8x8xbf16> to vector<8x8xbf16>
    %cst_114 = arith.constant dense<0.000000e+00> : vector<64x8xf32>
    %111 = tpu.matmul %108, %110, %cst_114 {dimension_numbers = #tpu.dot_dimension_numbers<[1], [0], [0], [1], [0, 0, 1, 1], [], []>} : vector<64x8xbf16>, vector<8x8xbf16>, vector<64x8xf32> -> vector<64x8xf32>
    %112 = arith.addf %106, %111 : vector<64x8xf32>
    %c0_115 = arith.constant 0 : index
    %c0_116 = arith.constant 0 : index
    %c0_117 = arith.constant 0 : index
    %c0_118 = arith.constant 0 : index
    %c0_119 = arith.constant 0 : index
    %113 = vector.load %arg4[%c0_115, %c0_116, %c0_117, %c0_118, %c0_119] : memref<1x1x10x10x8xbf16, #tpu.memory_space<vmem>>, vector<1x1x10x10x8xbf16>
    %114 = vector.shape_cast %113 : vector<1x1x10x10x8xbf16> to vector<10x10x8xbf16>
    %115 = vector.extract_strided_slice %114 {offsets = [0, 0, 0], sizes = [8, 8, 8], strides = [1, 1, 1]} : vector<10x10x8xbf16> to vector<8x8x8xbf16>
    %116 = vector.shape_cast %115 : vector<8x8x8xbf16> to vector<64x8xbf16>
    %c2_120 = arith.constant 2 : index
    %c0_121 = arith.constant 0 : index
    %c0_122 = arith.constant 0 : index
    %c0_123 = arith.constant 0 : index
    %c0_124 = arith.constant 0 : index
    %117 = vector.load %arg5[%c2_120, %c0_121, %c0_122, %c0_123, %c0_124] : memref<3x3x3x8x8xbf16, #tpu.memory_space<vmem>>, vector<1x1x1x8x8xbf16>
    %118 = vector.shape_cast %117 : vector<1x1x1x8x8xbf16> to vector<8x8xbf16>
    %cst_125 = arith.constant dense<0.000000e+00> : vector<64x8xf32>
    %119 = tpu.matmul %116, %118, %cst_125 {dimension_numbers = #tpu.dot_dimension_numbers<[1], [0], [0], [1], [0, 0, 1, 1], [], []>} : vector<64x8xbf16>, vector<8x8xbf16>, vector<64x8xf32> -> vector<64x8xf32>
    %120 = arith.addf %112, %119 : vector<64x8xf32>
    %121 = vector.extract_strided_slice %114 {offsets = [0, 1, 0], sizes = [8, 8, 8], strides = [1, 1, 1]} : vector<10x10x8xbf16> to vector<8x8x8xbf16>
    %122 = vector.shape_cast %121 : vector<8x8x8xbf16> to vector<64x8xbf16>
    %c2_126 = arith.constant 2 : index
    %c0_127 = arith.constant 0 : index
    %c1_128 = arith.constant 1 : index
    %c0_129 = arith.constant 0 : index
    %c0_130 = arith.constant 0 : index
    %123 = vector.load %arg5[%c2_126, %c0_127, %c1_128, %c0_129, %c0_130] : memref<3x3x3x8x8xbf16, #tpu.memory_space<vmem>>, vector<1x1x1x8x8xbf16>
    %124 = vector.shape_cast %123 : vector<1x1x1x8x8xbf16> to vector<8x8xbf16>
    %cst_131 = arith.constant dense<0.000000e+00> : vector<64x8xf32>
    %125 = tpu.matmul %122, %124, %cst_131 {dimension_numbers = #tpu.dot_dimension_numbers<[1], [0], [0], [1], [0, 0, 1, 1], [], []>} : vector<64x8xbf16>, vector<8x8xbf16>, vector<64x8xf32> -> vector<64x8xf32>
    %126 = arith.addf %120, %125 : vector<64x8xf32>
    %127 = vector.extract_strided_slice %114 {offsets = [0, 2, 0], sizes = [8, 8, 8], strides = [1, 1, 1]} : vector<10x10x8xbf16> to vector<8x8x8xbf16>
    %128 = vector.shape_cast %127 : vector<8x8x8xbf16> to vector<64x8xbf16>
    %c2_132 = arith.constant 2 : index
    %c0_133 = arith.constant 0 : index
    %c2_134 = arith.constant 2 : index
    %c0_135 = arith.constant 0 : index
    %c0_136 = arith.constant 0 : index
    %129 = vector.load %arg5[%c2_132, %c0_133, %c2_134, %c0_135, %c0_136] : memref<3x3x3x8x8xbf16, #tpu.memory_space<vmem>>, vector<1x1x1x8x8xbf16>
    %130 = vector.shape_cast %129 : vector<1x1x1x8x8xbf16> to vector<8x8xbf16>
    %cst_137 = arith.constant dense<0.000000e+00> : vector<64x8xf32>
    %131 = tpu.matmul %128, %130, %cst_137 {dimension_numbers = #tpu.dot_dimension_numbers<[1], [0], [0], [1], [0, 0, 1, 1], [], []>} : vector<64x8xbf16>, vector<8x8xbf16>, vector<64x8xf32> -> vector<64x8xf32>
    %132 = arith.addf %126, %131 : vector<64x8xf32>
    %133 = vector.extract_strided_slice %114 {offsets = [1, 0, 0], sizes = [8, 8, 8], strides = [1, 1, 1]} : vector<10x10x8xbf16> to vector<8x8x8xbf16>
    %134 = vector.shape_cast %133 : vector<8x8x8xbf16> to vector<64x8xbf16>
    %c2_138 = arith.constant 2 : index
    %c1_139 = arith.constant 1 : index
    %c0_140 = arith.constant 0 : index
    %c0_141 = arith.constant 0 : index
    %c0_142 = arith.constant 0 : index
    %135 = vector.load %arg5[%c2_138, %c1_139, %c0_140, %c0_141, %c0_142] : memref<3x3x3x8x8xbf16, #tpu.memory_space<vmem>>, vector<1x1x1x8x8xbf16>
    %136 = vector.shape_cast %135 : vector<1x1x1x8x8xbf16> to vector<8x8xbf16>
    %cst_143 = arith.constant dense<0.000000e+00> : vector<64x8xf32>
    %137 = tpu.matmul %134, %136, %cst_143 {dimension_numbers = #tpu.dot_dimension_numbers<[1], [0], [0], [1], [0, 0, 1, 1], [], []>} : vector<64x8xbf16>, vector<8x8xbf16>, vector<64x8xf32> -> vector<64x8xf32>
    %138 = arith.addf %132, %137 : vector<64x8xf32>
    %139 = vector.extract_strided_slice %114 {offsets = [1, 1, 0], sizes = [8, 8, 8], strides = [1, 1, 1]} : vector<10x10x8xbf16> to vector<8x8x8xbf16>
    %140 = vector.shape_cast %139 : vector<8x8x8xbf16> to vector<64x8xbf16>
    %c2_144 = arith.constant 2 : index
    %c1_145 = arith.constant 1 : index
    %c1_146 = arith.constant 1 : index
    %c0_147 = arith.constant 0 : index
    %c0_148 = arith.constant 0 : index
    %141 = vector.load %arg5[%c2_144, %c1_145, %c1_146, %c0_147, %c0_148] : memref<3x3x3x8x8xbf16, #tpu.memory_space<vmem>>, vector<1x1x1x8x8xbf16>
    %142 = vector.shape_cast %141 : vector<1x1x1x8x8xbf16> to vector<8x8xbf16>
    %cst_149 = arith.constant dense<0.000000e+00> : vector<64x8xf32>
    %143 = tpu.matmul %140, %142, %cst_149 {dimension_numbers = #tpu.dot_dimension_numbers<[1], [0], [0], [1], [0, 0, 1, 1], [], []>} : vector<64x8xbf16>, vector<8x8xbf16>, vector<64x8xf32> -> vector<64x8xf32>
    %144 = arith.addf %138, %143 : vector<64x8xf32>
    %145 = vector.extract_strided_slice %114 {offsets = [1, 2, 0], sizes = [8, 8, 8], strides = [1, 1, 1]} : vector<10x10x8xbf16> to vector<8x8x8xbf16>
    %146 = vector.shape_cast %145 : vector<8x8x8xbf16> to vector<64x8xbf16>
    %c2_150 = arith.constant 2 : index
    %c1_151 = arith.constant 1 : index
    %c2_152 = arith.constant 2 : index
    %c0_153 = arith.constant 0 : index
    %c0_154 = arith.constant 0 : index
    %147 = vector.load %arg5[%c2_150, %c1_151, %c2_152, %c0_153, %c0_154] : memref<3x3x3x8x8xbf16, #tpu.memory_space<vmem>>, vector<1x1x1x8x8xbf16>
    %148 = vector.shape_cast %147 : vector<1x1x1x8x8xbf16> to vector<8x8xbf16>
    %cst_155 = arith.constant dense<0.000000e+00> : vector<64x8xf32>
    %149 = tpu.matmul %146, %148, %cst_155 {dimension_numbers = #tpu.dot_dimension_numbers<[1], [0], [0], [1], [0, 0, 1, 1], [], []>} : vector<64x8xbf16>, vector<8x8xbf16>, vector<64x8xf32> -> vector<64x8xf32>
    %150 = arith.addf %144, %149 : vector<64x8xf32>
    %151 = vector.extract_strided_slice %114 {offsets = [2, 0, 0], sizes = [8, 8, 8], strides = [1, 1, 1]} : vector<10x10x8xbf16> to vector<8x8x8xbf16>
    %152 = vector.shape_cast %151 : vector<8x8x8xbf16> to vector<64x8xbf16>
    %c2_156 = arith.constant 2 : index
    %c2_157 = arith.constant 2 : index
    %c0_158 = arith.constant 0 : index
    %c0_159 = arith.constant 0 : index
    %c0_160 = arith.constant 0 : index
    %153 = vector.load %arg5[%c2_156, %c2_157, %c0_158, %c0_159, %c0_160] : memref<3x3x3x8x8xbf16, #tpu.memory_space<vmem>>, vector<1x1x1x8x8xbf16>
    %154 = vector.shape_cast %153 : vector<1x1x1x8x8xbf16> to vector<8x8xbf16>
    %cst_161 = arith.constant dense<0.000000e+00> : vector<64x8xf32>
    %155 = tpu.matmul %152, %154, %cst_161 {dimension_numbers = #tpu.dot_dimension_numbers<[1], [0], [0], [1], [0, 0, 1, 1], [], []>} : vector<64x8xbf16>, vector<8x8xbf16>, vector<64x8xf32> -> vector<64x8xf32>
    %156 = arith.addf %150, %155 : vector<64x8xf32>
    %157 = vector.extract_strided_slice %114 {offsets = [2, 1, 0], sizes = [8, 8, 8], strides = [1, 1, 1]} : vector<10x10x8xbf16> to vector<8x8x8xbf16>
    %158 = vector.shape_cast %157 : vector<8x8x8xbf16> to vector<64x8xbf16>
    %c2_162 = arith.constant 2 : index
    %c2_163 = arith.constant 2 : index
    %c1_164 = arith.constant 1 : index
    %c0_165 = arith.constant 0 : index
    %c0_166 = arith.constant 0 : index
    %159 = vector.load %arg5[%c2_162, %c2_163, %c1_164, %c0_165, %c0_166] : memref<3x3x3x8x8xbf16, #tpu.memory_space<vmem>>, vector<1x1x1x8x8xbf16>
    %160 = vector.shape_cast %159 : vector<1x1x1x8x8xbf16> to vector<8x8xbf16>
    %cst_167 = arith.constant dense<0.000000e+00> : vector<64x8xf32>
    %161 = tpu.matmul %158, %160, %cst_167 {dimension_numbers = #tpu.dot_dimension_numbers<[1], [0], [0], [1], [0, 0, 1, 1], [], []>} : vector<64x8xbf16>, vector<8x8xbf16>, vector<64x8xf32> -> vector<64x8xf32>
    %162 = arith.addf %156, %161 : vector<64x8xf32>
    %163 = vector.extract_strided_slice %114 {offsets = [2, 2, 0], sizes = [8, 8, 8], strides = [1, 1, 1]} : vector<10x10x8xbf16> to vector<8x8x8xbf16>
    %164 = vector.shape_cast %163 : vector<8x8x8xbf16> to vector<64x8xbf16>
    %c2_168 = arith.constant 2 : index
    %c2_169 = arith.constant 2 : index
    %c2_170 = arith.constant 2 : index
    %c0_171 = arith.constant 0 : index
    %c0_172 = arith.constant 0 : index
    %165 = vector.load %arg5[%c2_168, %c2_169, %c2_170, %c0_171, %c0_172] : memref<3x3x3x8x8xbf16, #tpu.memory_space<vmem>>, vector<1x1x1x8x8xbf16>
    %166 = vector.shape_cast %165 : vector<1x1x1x8x8xbf16> to vector<8x8xbf16>
    %cst_173 = arith.constant dense<0.000000e+00> : vector<64x8xf32>
    %167 = tpu.matmul %164, %166, %cst_173 {dimension_numbers = #tpu.dot_dimension_numbers<[1], [0], [0], [1], [0, 0, 1, 1], [], []>} : vector<64x8xbf16>, vector<8x8xbf16>, vector<64x8xf32> -> vector<64x8xf32>
    %168 = arith.addf %162, %167 : vector<64x8xf32>
    %c0_174 = arith.constant 0 : index
    %c0_175 = arith.constant 0 : index
    %c0_176 = arith.constant 0 : index
    %c0_177 = arith.constant 0 : index
    %169 = vector.load %arg6[%c0_174, %c0_175, %c0_176, %c0_177] : memref<1x1x64x8xf32, #tpu.memory_space<vmem>>, vector<1x1x64x8xf32>
    %170 = vector.shape_cast %169 : vector<1x1x64x8xf32> to vector<64x8xf32>
    %171 = vector.shape_cast %168 : vector<64x8xf32> to vector<1x1x64x8xf32>
    tpu.vector_store %arg6[%c0_174, %c0_175, %c0_176, %c0_177], %171 {strides = array<i32>} : memref<1x1x64x8xf32, #tpu.memory_space<vmem>>, vector<1x1x64x8xf32>,
    %cst_178 = arith.constant dense<0.000000e+00> : vector<8xf32>
    %172 = vector.multi_reduction <add>, %168, %cst_178 [0] : vector<64x8xf32> to vector<8xf32>
    %173 = vector.shape_cast %172 : vector<8xf32> to vector<1x8xf32>
    %c0_179 = arith.constant 0 : index
    %c0_180 = arith.constant 0 : index
    %c0_181 = arith.constant 0 : index
    %c0_182 = arith.constant 0 : index
    %174 = vector.load %arg7[%c0_179, %c0_180, %c0_181, %c0_182] : memref<1x1x1x8xf32, #tpu.memory_space<vmem>>, vector<1x1x1x8xf32>
    %175 = vector.shape_cast %174 : vector<1x1x1x8xf32> to vector<1x8xf32>
    %176 = vector.shape_cast %173 : vector<1x8xf32> to vector<1x1x1x8xf32>
    tpu.vector_store %arg7[%c0_179, %c0_180, %c0_181, %c0_182], %176 {strides = array<i32>} : memref<1x1x1x8xf32, #tpu.memory_space<vmem>>, vector<1x1x1x8xf32>,
    %177 = arith.mulf %168, %168 : vector<64x8xf32>
    %cst_183 = arith.constant dense<0.000000e+00> : vector<8xf32>
    %178 = vector.multi_reduction <add>, %177, %cst_183 [0] : vector<64x8xf32> to vector<8xf32>
    %179 = vector.shape_cast %178 : vector<8xf32> to vector<1x8xf32>
    %c0_184 = arith.constant 0 : index
    %c0_185 = arith.constant 0 : index
    %c0_186 = arith.constant 0 : index
    %c0_187 = arith.constant 0 : index
    %180 = vector.load %arg8[%c0_184, %c0_185, %c0_186, %c0_187] : memref<1x1x1x8xf32, #tpu.memory_space<vmem>>, vector<1x1x1x8xf32>
    %181 = vector.shape_cast %180 : vector<1x1x1x8xf32> to vector<1x8xf32>
    %182 = vector.shape_cast %179 : vector<1x8xf32> to vector<1x1x1x8xf32>
    tpu.vector_store %arg8[%c0_184, %c0_185, %c0_186, %c0_187], %182 {strides = array<i32>} : memref<1x1x1x8xf32, #tpu.memory_space<vmem>>, vector<1x1x1x8xf32>,
    return
  }
  func.func @transform_0(%arg0: i32, %arg1: i32) -> (i32, i32, i32, i32, i32) {
    %c1_i32 = arith.constant 1 : i32
    %0 = arith.muli %arg1, %c1_i32 : i32
    %c0_i32 = arith.constant 0 : i32
    %1 = arith.addi %0, %c0_i32 : i32
    %c0_i32_0 = arith.constant 0 : i32
    %c0_i32_1 = arith.constant 0 : i32
    %c0_i32_2 = arith.constant 0 : i32
    %c0_i32_3 = arith.constant 0 : i32
    return %arg0, %1, %c0_i32_0, %c0_i32_1, %c0_i32_2 : i32, i32, i32, i32, i32
  }
  func.func @transform_1(%arg0: i32, %arg1: i32) -> (i32, i32, i32, i32, i32) {
    %c1_i32 = arith.constant 1 : i32
    %0 = arith.muli %arg1, %c1_i32 : i32
    %c1_i32_0 = arith.constant 1 : i32
    %1 = arith.addi %0, %c1_i32_0 : i32
    %c0_i32 = arith.constant 0 : i32
    %c0_i32_1 = arith.constant 0 : i32
    %c0_i32_2 = arith.constant 0 : i32
    %c0_i32_3 = arith.constant 0 : i32
    return %arg0, %1, %c0_i32, %c0_i32_1, %c0_i32_2 : i32, i32, i32, i32, i32
  }
  func.func @transform_2(%arg0: i32, %arg1: i32) -> (i32, i32, i32, i32, i32) {
    %c1_i32 = arith.constant 1 : i32
    %0 = arith.muli %arg1, %c1_i32 : i32
    %c2_i32 = arith.constant 2 : i32
    %1 = arith.addi %0, %c2_i32 : i32
    %c0_i32 = arith.constant 0 : i32
    %c0_i32_0 = arith.constant 0 : i32
    %c0_i32_1 = arith.constant 0 : i32
    %c0_i32_2 = arith.constant 0 : i32
    return %arg0, %1, %c0_i32, %c0_i32_0, %c0_i32_1 : i32, i32, i32, i32, i32
  }
  func.func @transform_3(%arg0: i32, %arg1: i32) -> (i32, i32, i32, i32, i32) {
    %c0_i32 = arith.constant 0 : i32
    %c0_i32_0 = arith.constant 0 : i32
    %c0_i32_1 = arith.constant 0 : i32
    %c0_i32_2 = arith.constant 0 : i32
    %c0_i32_3 = arith.constant 0 : i32
    %c0_i32_4 = arith.constant 0 : i32
    return %c0_i32, %c0_i32_0, %c0_i32_1, %c0_i32_2, %c0_i32_3 : i32, i32, i32, i32, i32
  }
  func.func @transform_4(%arg0: i32, %arg1: i32) -> (i32, i32, i32, i32) {
    %c0_i32 = arith.constant 0 : i32
    %c0_i32_0 = arith.constant 0 : i32
    %c0_i32_1 = arith.constant 0 : i32
    return %arg0, %arg1, %c0_i32, %c0_i32_0 : i32, i32, i32, i32
  }
  func.func @transform_5(%arg0: i32, %arg1: i32) -> (i32, i32, i32, i32) {
    %c0_i32 = arith.constant 0 : i32
    %c0_i32_0 = arith.constant 0 : i32
    %c0_i32_1 = arith.constant 0 : i32
    return %arg0, %arg1, %c0_i32, %c0_i32_0 : i32, i32, i32, i32
  }
  func.func @transform_6(%arg0: i32, %arg1: i32) -> (i32, i32, i32, i32) {
    %c0_i32 = arith.constant 0 : i32
    %c0_i32_0 = arith.constant 0 : i32
    %c0_i32_1 = arith.constant 0 : i32
    return %arg0, %arg1, %c0_i32, %c0_i32_0 : i32, i32, i32, i32
  }
}

module attributes {stable_mosaic.version = 11 : i64} {
  func.func @kernel(%arg0: i32, %arg1: memref<512x4xbf16, #tpu.memory_space<vmem>>, %arg2: memref<4x8xbf16, #tpu.memory_space<vmem>>, %arg3: memref<1x1x8xf32, #tpu.memory_space<vmem>>, %arg4: memref<1x1x8xf32, #tpu.memory_space<vmem>>) attributes {dimension_semantics = [#tpu.dimension_semantics<parallel>], iteration_bounds = array<i64: 2>, scalar_prefetch = 0 : i64, scratch_operands = 0 : i64, tpu.core_type = #tpu.core_type<tc>, window_params = [{transform_indices = @transform_0, window_bounds = array<i64: 512, 4>}, {pipeline_mode = #tpu.pipeline_mode<synchronous>, transform_indices = @transform_1, window_bounds = array<i64: 4, 8>}, {transform_indices = @transform_2, window_bounds = array<i64: 1, 1, 8>}, {transform_indices = @transform_3, window_bounds = array<i64: 1, 1, 8>}]} {
    %c0 = arith.constant 0 : index
    %c0_0 = arith.constant 0 : index
    %0 = vector.load %arg1[%c0, %c0_0] : memref<512x4xbf16, #tpu.memory_space<vmem>>, vector<512x4xbf16>
    %c0_1 = arith.constant 0 : index
    %c0_2 = arith.constant 0 : index
    %1 = vector.load %arg2[%c0_1, %c0_2] : memref<4x8xbf16, #tpu.memory_space<vmem>>, vector<4x8xbf16>
    %cst = arith.constant dense<0.000000e+00> : vector<512x8xf32>
    %2 = tpu.matmul %0, %1, %cst {dimension_numbers = #tpu.dot_dimension_numbers<[1], [0], [0], [1], [0, 0, 1, 1], [], []>} : vector<512x4xbf16>, vector<4x8xbf16>, vector<512x8xf32> -> vector<512x8xf32>
    %cst_3 = arith.constant dense<0.000000e+00> : vector<8xf32>
    %3 = vector.multi_reduction <add>, %2, %cst_3 [0] : vector<512x8xf32> to vector<8xf32>
    %4 = vector.shape_cast %3 : vector<8xf32> to vector<1x8xf32>
    %c0_4 = arith.constant 0 : index
    %c0_5 = arith.constant 0 : index
    %c0_6 = arith.constant 0 : index
    %5 = vector.load %arg3[%c0_4, %c0_5, %c0_6] : memref<1x1x8xf32, #tpu.memory_space<vmem>>, vector<1x1x8xf32>
    %6 = vector.shape_cast %5 : vector<1x1x8xf32> to vector<1x8xf32>
    %7 = vector.shape_cast %4 : vector<1x8xf32> to vector<1x1x8xf32>
    tpu.vector_store %arg3[%c0_4, %c0_5, %c0_6], %7 {strides = array<i32>} : memref<1x1x8xf32, #tpu.memory_space<vmem>>, vector<1x1x8xf32>,
    %8 = arith.mulf %2, %2 : vector<512x8xf32>
    %cst_7 = arith.constant dense<0.000000e+00> : vector<8xf32>
    %9 = vector.multi_reduction <add>, %8, %cst_7 [0] : vector<512x8xf32> to vector<8xf32>
    %10 = vector.shape_cast %9 : vector<8xf32> to vector<1x8xf32>
    %c0_8 = arith.constant 0 : index
    %c0_9 = arith.constant 0 : index
    %c0_10 = arith.constant 0 : index
    %11 = vector.load %arg4[%c0_8, %c0_9, %c0_10] : memref<1x1x8xf32, #tpu.memory_space<vmem>>, vector<1x1x8xf32>
    %12 = vector.shape_cast %11 : vector<1x1x8xf32> to vector<1x8xf32>
    %13 = vector.shape_cast %10 : vector<1x8xf32> to vector<1x1x8xf32>
    tpu.vector_store %arg4[%c0_8, %c0_9, %c0_10], %13 {strides = array<i32>} : memref<1x1x8xf32, #tpu.memory_space<vmem>>, vector<1x1x8xf32>,
    return
  }
  func.func @transform_0(%arg0: i32) -> (i32, i32) {
    %c0_i32 = arith.constant 0 : i32
    %c0_i32_0 = arith.constant 0 : i32
    return %arg0, %c0_i32 : i32, i32
  }
  func.func @transform_1(%arg0: i32) -> (i32, i32) {
    %c0_i32 = arith.constant 0 : i32
    %c0_i32_0 = arith.constant 0 : i32
    %c0_i32_1 = arith.constant 0 : i32
    return %c0_i32, %c0_i32_0 : i32, i32
  }
  func.func @transform_2(%arg0: i32) -> (i32, i32, i32) {
    %c0_i32 = arith.constant 0 : i32
    %c0_i32_0 = arith.constant 0 : i32
    %c0_i32_1 = arith.constant 0 : i32
    return %arg0, %c0_i32, %c0_i32_0 : i32, i32, i32
  }
  func.func @transform_3(%arg0: i32) -> (i32, i32, i32) {
    %c0_i32 = arith.constant 0 : i32
    %c0_i32_0 = arith.constant 0 : i32
    %c0_i32_1 = arith.constant 0 : i32
    return %arg0, %c0_i32, %c0_i32_0 : i32, i32, i32
  }
}

module attributes {stable_mosaic.version = 11 : i64} {
  func.func @kernel(%arg0: i32, %arg1: memref<512x8xf32, #tpu.memory_space<vmem>>, %arg2: memref<1x8xf32, #tpu.memory_space<vmem>>, %arg3: memref<1x8xf32, #tpu.memory_space<vmem>>, %arg4: memref<512x4xbf16, #tpu.memory_space<vmem>>, %arg5: memref<4x8xbf16, #tpu.memory_space<vmem>>, %arg6: memref<1x8xf32, #tpu.memory_space<vmem>>, %arg7: memref<1x8xf32, #tpu.memory_space<vmem>>, %arg8: memref<512x8xf32, #tpu.memory_space<vmem>>) attributes {dimension_semantics = [#tpu.dimension_semantics<parallel>], iteration_bounds = array<i64: 2>, scalar_prefetch = 0 : i64, scratch_operands = 0 : i64, tpu.core_type = #tpu.core_type<tc>, window_params = [{transform_indices = @transform_0, window_bounds = array<i64: 512, 8>}, {pipeline_mode = #tpu.pipeline_mode<synchronous>, transform_indices = @transform_1, window_bounds = array<i64: 1, 8>}, {pipeline_mode = #tpu.pipeline_mode<synchronous>, transform_indices = @transform_2, window_bounds = array<i64: 1, 8>}, {transform_indices = @transform_3, window_bounds = array<i64: 512, 4>}, {pipeline_mode = #tpu.pipeline_mode<synchronous>, transform_indices = @transform_4, window_bounds = array<i64: 4, 8>}, {pipeline_mode = #tpu.pipeline_mode<synchronous>, transform_indices = @transform_5, window_bounds = array<i64: 1, 8>}, {pipeline_mode = #tpu.pipeline_mode<synchronous>, transform_indices = @transform_6, window_bounds = array<i64: 1, 8>}, {transform_indices = @transform_7, window_bounds = array<i64: 512, 8>}]} {
    %c0 = arith.constant 0 : index
    %c0_0 = arith.constant 0 : index
    %0 = vector.load %arg1[%c0, %c0_0] : memref<512x8xf32, #tpu.memory_space<vmem>>, vector<512x8xf32>
    %c0_1 = arith.constant 0 : index
    %c0_2 = arith.constant 0 : index
    %1 = vector.load %arg2[%c0_1, %c0_2] : memref<1x8xf32, #tpu.memory_space<vmem>>, vector<1x8xf32>
    %2 = vector.broadcast %1 : vector<1x8xf32> to vector<512x8xf32>
    %3 = arith.mulf %0, %2 : vector<512x8xf32>
    %c0_3 = arith.constant 0 : index
    %c0_4 = arith.constant 0 : index
    %4 = vector.load %arg3[%c0_3, %c0_4] : memref<1x8xf32, #tpu.memory_space<vmem>>, vector<1x8xf32>
    %5 = vector.broadcast %4 : vector<1x8xf32> to vector<512x8xf32>
    %6 = arith.addf %3, %5 : vector<512x8xf32>
    %c0_5 = arith.constant 0 : index
    %c0_6 = arith.constant 0 : index
    %7 = vector.load %arg4[%c0_5, %c0_6] : memref<512x4xbf16, #tpu.memory_space<vmem>>, vector<512x4xbf16>
    %c0_7 = arith.constant 0 : index
    %c0_8 = arith.constant 0 : index
    %8 = vector.load %arg5[%c0_7, %c0_8] : memref<4x8xbf16, #tpu.memory_space<vmem>>, vector<4x8xbf16>
    %cst = arith.constant dense<0.000000e+00> : vector<512x8xf32>
    %9 = tpu.matmul %7, %8, %cst {dimension_numbers = #tpu.dot_dimension_numbers<[1], [0], [0], [1], [0, 0, 1, 1], [], []>} : vector<512x4xbf16>, vector<4x8xbf16>, vector<512x8xf32> -> vector<512x8xf32>
    %c0_9 = arith.constant 0 : index
    %c0_10 = arith.constant 0 : index
    %10 = vector.load %arg6[%c0_9, %c0_10] : memref<1x8xf32, #tpu.memory_space<vmem>>, vector<1x8xf32>
    %11 = vector.broadcast %10 : vector<1x8xf32> to vector<512x8xf32>
    %12 = arith.mulf %9, %11 : vector<512x8xf32>
    %c0_11 = arith.constant 0 : index
    %c0_12 = arith.constant 0 : index
    %13 = vector.load %arg7[%c0_11, %c0_12] : memref<1x8xf32, #tpu.memory_space<vmem>>, vector<1x8xf32>
    %14 = vector.broadcast %13 : vector<1x8xf32> to vector<512x8xf32>
    %15 = arith.addf %12, %14 : vector<512x8xf32>
    %16 = arith.addf %6, %15 : vector<512x8xf32>
    %cst_13 = arith.constant 0.000000e+00 : f32
    %17 = vector.broadcast %cst_13 : f32 to vector<512x8xf32>
    %18 = arith.maximumf %16, %17 : vector<512x8xf32>
    %c0_14 = arith.constant 0 : index
    %c0_15 = arith.constant 0 : index
    %19 = vector.load %arg8[%c0_14, %c0_15] : memref<512x8xf32, #tpu.memory_space<vmem>>, vector<512x8xf32>
    tpu.vector_store %arg8[%c0_14, %c0_15], %18 {strides = array<i32>} : memref<512x8xf32, #tpu.memory_space<vmem>>, vector<512x8xf32>,
    return
  }
  func.func @transform_0(%arg0: i32) -> (i32, i32) {
    %c0_i32 = arith.constant 0 : i32
    %c0_i32_0 = arith.constant 0 : i32
    return %arg0, %c0_i32 : i32, i32
  }
  func.func @transform_1(%arg0: i32) -> (i32, i32) {
    %c0_i32 = arith.constant 0 : i32
    %c0_i32_0 = arith.constant 0 : i32
    %c0_i32_1 = arith.constant 0 : i32
    return %c0_i32, %c0_i32_0 : i32, i32
  }
  func.func @transform_2(%arg0: i32) -> (i32, i32) {
    %c0_i32 = arith.constant 0 : i32
    %c0_i32_0 = arith.constant 0 : i32
    %c0_i32_1 = arith.constant 0 : i32
    return %c0_i32, %c0_i32_0 : i32, i32
  }
  func.func @transform_3(%arg0: i32) -> (i32, i32) {
    %c0_i32 = arith.constant 0 : i32
    %c0_i32_0 = arith.constant 0 : i32
    return %arg0, %c0_i32 : i32, i32
  }
  func.func @transform_4(%arg0: i32) -> (i32, i32) {
    %c0_i32 = arith.constant 0 : i32
    %c0_i32_0 = arith.constant 0 : i32
    %c0_i32_1 = arith.constant 0 : i32
    return %c0_i32, %c0_i32_0 : i32, i32
  }
  func.func @transform_5(%arg0: i32) -> (i32, i32) {
    %c0_i32 = arith.constant 0 : i32
    %c0_i32_0 = arith.constant 0 : i32
    %c0_i32_1 = arith.constant 0 : i32
    return %c0_i32, %c0_i32_0 : i32, i32
  }
  func.func @transform_6(%arg0: i32) -> (i32, i32) {
    %c0_i32 = arith.constant 0 : i32
    %c0_i32_0 = arith.constant 0 : i32
    %c0_i32_1 = arith.constant 0 : i32
    return %c0_i32, %c0_i32_0 : i32, i32
  }
  func.func @transform_7(%arg0: i32) -> (i32, i32) {
    %c0_i32 = arith.constant 0 : i32
    %c0_i32_0 = arith.constant 0 : i32
    return %arg0, %c0_i32 : i32, i32
  }
}

</mosaic_0001>

<bundles_post_ra>
// kernel: residual_block_forward.6
= control target key start
LH: loop header
LB: loop body
LE: loop exit
PB: predicated region body
PF: predicated region fallthrough
CT: control target
= control target key end

     0   :  { %s207_s0 = inlined_call_operand.vmem [shape: f32[64,128], index: 0, kind: input, shape index: {}]   ;;  %s208_s1 = inlined_call_operand.vmem [shape: f32[1,128], index: 1, kind: input, shape index: {}]   ;;  %s209_s2 = inlined_call_operand.vmem [shape: f32[1,128], index: 2, kind: input, shape index: {}]   ;;  %s210_s3 = inlined_call_operand.vmem [shape: bf16[64,128], index: 3, kind: output, shape index: {}]  }
   0x1   :  { %v14_v0 = vld [vmem:[%s207_s0] sm:$0xff]  ;;  %v15_v1 = vld [vmem:[%s207_s0 + $0x8] sm:$0xff]  ;;  %v16_v6 = vld [vmem:[%s207_s0 + $0x10] sm:$0xff] }
   0x2   :  { %v104_v2 = vld [vmem:[%s208_s1] ss:$0 sm:$0xff]  ;;  %v17_v7 = vld [vmem:[%s207_s0 + $0x18] sm:$0xff]  ;;  %v19_v11 = vld [vmem:[%s207_s0 + $0x28] sm:$0xff] }
   0x3   :  { %v29_v3 = vmul.f32 %v104_v2, %v14_v0  ;;  %v30_v4 = vmul.f32 %v104_v2, %v15_v1  ;;  %v105_v5 = vld [vmem:[%s209_s2] ss:$0 sm:$0xff]  ;;  %v31_v8 = vmul.f32 %v104_v2, %v16_v6  ;;  %v32_v9 = vmul.f32 %v104_v2, %v17_v7  ;;  %v20_v12 = vld [vmem:[%s207_s0 + $0x30] sm:$0xff]  ;;  %v21_v17 = vld [vmem:[%s207_s0 + $0x38] sm:$0xff] }
   0x4   :  { %v18_v10 = vld [vmem:[%s207_s0 + $0x20] sm:$0xff]  ;;  %v34_v16 = vmul.f32 %v104_v2, %v19_v11  ;;  %v35_v20 = vmul.f32 %v104_v2, %v20_v12  ;;  %v36_v21 = vmul.f32 %v104_v2, %v21_v17 }
   0x5   :  { %v44_v13 = vadd.f32 %v105_v5, %v29_v3  ;;  %v45_v14 = vadd.f32 %v105_v5, %v30_v4  ;;  %v33_v15 = vmul.f32 %v104_v2, %v18_v10  ;;  %v46_v18 = vadd.f32 %v105_v5, %v31_v8 }
   0x6   :  { %v47_v19 = vadd.f32 %v105_v5, %v32_v9  ;;  %v49_v25 = vadd.f32 %v105_v5, %v34_v16  ;;  %v50_v28 = vadd.f32 %v105_v5, %v35_v20  ;;  %v51_v29 = vadd.f32 %v105_v5, %v36_v21 }
   0x7   :  { %v52_v22 = vmax.f32 %v44_v13, 0.0  ;;  %v53_v23 = vmax.f32 %v45_v14, 0.0  ;;  %v48_v24 = vadd.f32 %v105_v5, %v33_v15  ;;  %v54_v26 = vmax.f32 %v46_v18, 0.0 }
   0x8   :  { %v55_v27 = vmax.f32 %v47_v19, 0.0  ;;  %v57_v32 = vmax.f32 %v49_v25, 0.0  ;;  %v58_v34 = vmax.f32 %v50_v28, 0.0  ;;  %v59_v35 = vmax.f32 %v51_v29, 0.0 }
   0x9   :  { %v125_v30 = vpack.c.bf16 %v53_v23, %v52_v22  ;;  %v56_v31 = vmax.f32 %v48_v24, 0.0 }
   0xa   :  { %v130_v33 = vpack.c.bf16 %v55_v27, %v54_v26  ;;  %v140_v37 = vpack.c.bf16 %v59_v35, %v58_v34 }
   0xb   :  { %126 = vst [vmem:[%s210_s3] sm:$0xff] %v125_v30   ;;  %v135_v36 = vpack.c.bf16 %v57_v32, %v56_v31 }
   0xc   :  { %142 = vst [vmem:[%s210_s3 + $0x8] sm:$0xff] %v130_v33   ;;  %144 = vst [vmem:[%s210_s3 + $0x18] sm:$0xff] %v140_v37  }
   0xd   :  { %143 = vst [vmem:[%s210_s3 + $0x10] sm:$0xff] %v135_v36  }

// kernel: residual_block_forward.5
= control target key start
LH: loop header
LB: loop body
LE: loop exit
PB: predicated region body
PF: predicated region fallthrough
CT: control target
= control target key end

     0   :  { %s4920_s21 = smov 0   ;;  %s4922_s22 = smov 0   ;;  %s6125_s0 = inlined_call_operand.vmem [shape: bf16[2,10,10,10,4], index: 0, kind: input, shape index: {}, may-alias: {0,1,2}]   ;;  %s6126_s1 = inlined_call_operand.vmem [shape: bf16[2,10,10,10,4], index: 1, kind: input, shape index: {}, may-alias: {0,1,2}]   ;;  %s6127_s2 = inlined_call_operand.vmem [shape: bf16[2,10,10,10,4], index: 2, kind: input, shape index: {}, may-alias: {0,1,2}]   ;;  %s6128_s3 = inlined_call_operand.vmem [shape: bf16[3,3,3,4,8], index: 3, kind: input, shape index: {}]   ;;  %s6129_s4 = inlined_call_operand.vmem [shape: f32[2,8,64,8], index: 4, kind: output, shape index: {0}]   ;;  %s6130_s5 = inlined_call_operand.vmem [shape: f32[2,8,1,8], index: 5, kind: output, shape index: {1}]   ;;  %s6131_s6 = inlined_call_operand.vmem [shape: f32[2,8,1,8], index: 6, kind: output, shape index: {2}]  }
   0x1   :  { %s4924_s23 = smov 0   ;;  %s4926_s24 = smov 0  }
   0x2   :  { %s4928_s25 = smov 0  }
   0x3 LB: > { %s26_s26 = sadd.s32 1, %s4875_s23  ;;  %s29_s27 = sadd.s32 1, %s4879_s24  ;;  %s4883_s25 = sphi %s4928_s25, %s17_s25   ;;  %s4879_s24 = sphi %s4926_s24, %s6206_s24   ;;  %s4875_s23 = sphi %s4924_s23, %s6205_s23   ;;  %s4871_s22 = sphi %s4922_s22, %s6204_s22   ;;  %s4867_s21 = sphi %s4920_s21, %s6203_s21  }
   0x4   : > { %p27_p0 = scmp.ge.s32.totalorder %s26_s26, 8  ;;  %p3864_p1 = scmp.ge.s32.totalorder %s4883_s25, 1 }
   0x5   : > { %p281_p2 = scmp.lt.s32.totalorder %s4883_s25, 17 }
   0x6   : > { %s6208_s26 = smov (%p27_p0, %s26_s26), 0  ;;  %s6210_s27 = smov (!%p27_p0, %s29_s27), %s4879_s24 }
   0x7   : > { %p282_p3 = pnand %p3864_p1, %p281_p2  ;;  %p31_p4 = scmp.ge.s32.totalorder %s6210_s27, 2 }
   0x9   : > { %s6212_s27 = smov (%p31_p4, %s6210_s27), 0  ;;  %285 = sbr.rel (%p282_p3) target bundleno = 510 (0x1fe), region = 36 }
  0x10   : > { %v3873_v0 = vld [vmem:[%s6128_s3 + $0x2] sm:$0x3]  ;;  %vm571_vm0 = vcmask 1041408   ;;  %v3998_v1 = vld [vmem:[%s6128_s3 + $0x1a] sm:$0x3]  ;;  %p353_p5 = scmp.lt.s32.totalorder %s4871_s22, 1 }
  0x11   : > { %4735 = vmatprep.subr.msk.bf16.mxu1 %vm571_vm0, %v3873_v0  ;;  %4748 = vmatprep.subr.msk.bf16.mxu0 %vm571_vm0, %v3998_v1  ;;  %v573_v2 = vsel %vm571_vm0, %v3873_v0, 0  ;;  %v4962_v3 = vsel %vm571_vm0, %v3998_v1, 0  ;;  %p355_p6 = scmp.lt.s32.totalorder %s4867_s21, 9  ;;  %v4972_v4 = vld [vmem:[%s6128_s3] sm:$0x3]  ;;  %s362_s15 = sadd.s32 1, %s4867_s21 }
  0x12   : > { %6152 = vst [vmem:[#allocation2_spill] sm:$0xff] %v4962_v3  ;;  %4256 = vmatpush3.bf16.msra.mxu1 %v573_v2  ;;  %4386 = vmatpush3.bf16.msra.mxu0 %v4962_v3  ;;  %s6214_s22 = smov (!%p353_p5, %s4871_s22), 1  ;;  %v4977_v5 = vld [vmem:[%s6128_s3 + $0x1c] sm:$0x3]  ;;  %p4993_p7 = scmp.lt.s32.totalorder %s362_s15, 9  ;;  %vm558_vm4 = vcmask 31744  }
  0x13   : > { %s356_s8 = scalar_select %p355_p6, %s4867_s21, 9  ;;  %4736 = vmatprep.subr.msk.bf16.mxu1 %vm571_vm0, %v4972_v4  ;;  %4750 = vmatprep.subr.msk.bf16.mxu0 %vm571_vm0, %v4977_v5  ;;  %vm429_vm1 = vsmask.f32 3328  ;;  %vm430_vm2 = vsmask.f32 7440  ;;  %v673_v56 = vsel %vm571_vm0, %v4972_v4, 0 }
  0x14   : > { %s4980_s13 = smul.u32 200, %s6214_s22  ;;  %s6216_s15 = smov (!%p4993_p7, %s362_s15), 9  ;;  %vm5041_vm3 = vmor %vm429_vm1, %vm430_vm2  ;;  %vm748_vm5 = vcmask 1042432   ;;  %vm749_vm6 = vcmask 1046532   ;;  %vm3579_vm8 = vcmask 64512   ;;  %vm3609_vm9 = vcmask 57344  }
  0x15   : > { %s4763_s14 = smul.u32 20, %s356_s8  ;;  %vm5190_vm7 = vmor %vm748_vm5, %vm749_vm6  ;;  %p386_p9 = scmp.lt.s32.totalorder %s4867_s21, 7 }
  0x16   : > { %s4765_s29 = smul.u32 20, %s6216_s15 }
  0x17   : > { %s359_s16 = sadd.s32 %s4980_s13, %s4763_s14 }
  0x18   : > { %s3865_s17 = sshll.u32 %s359_s16, 2  ;;  %s369_s30 = sadd.s32 %s4765_s29, %s4980_s13 }
  0x19   : > { %s4991_s20 = scalar_lea.vmem %s6125_s0, %s3865_s17  ;;  %s3866_s7 = sshll.u32 %s369_s30, 2 }
  0x1a   : > { %v4998_v6 = vld [vmem:[%s4991_s20] sm:$0xf]  ;;  %v5001_v7 = vld [vmem:[%s4991_s20 + $0x4] sm:$0x1]  ;;  %v5004_v8 = vld [vmem:[%s4991_s20 + $0x8] sm:$0xf]  ;;  %s5058_s10 = scalar_lea.vmem %s6126_s1, %s3866_s7 }
  0x1b   : > { %v5007_v9 = vld [vmem:[%s4991_s20 + $0xc] sm:$0x1]  ;;  %v5010_v10 = vld [vmem:[%s4991_s20 + $0x10] sm:$0xf]  ;;  %v5013_v11 = vld [vmem:[%s4991_s20 + $0x14] sm:$0x1] }
  0x1c   : > { %v5018_v13 = vld [vmem:[%s4991_s20 + $0x18] sm:$0xf]  ;;  %v433_v14 = vshrl.u32 %v4998_v6, 16  ;;  %v436_v15 = vshll.u32 %v4998_v6, 16  ;;  %v442_v16 = vshll.u32 %v5001_v7, 16  ;;  %v447_v17 = vshrl.u32 %v5004_v8, 16 }
  0x1d   : > { %v450_v18 = vshll.u32 %v5004_v8, 16  ;;  %v456_v19 = vshll.u32 %v5007_v9, 16  ;;  %v461_v20 = vshrl.u32 %v5010_v10, 16  ;;  %v464_v21 = vshll.u32 %v5010_v10, 16  ;;  %v5031_v22 = vld [vmem:[%s4991_s20 + $0x1c] sm:$0x1] }
  0x1e   : > { %v435_v23 = vrot.slane %v433_v14, 4  ;;  %v438_v24 = vrot.slane %v436_v15, 5  ;;  %v449_v25 = vrot.slane %v447_v17, 4  ;;  %v444_v26 = vrot.slane %v442_v16, 5  ;;  %v5037_v34 = vld [vmem:[%s4991_s20 + $0x20] sm:$0xf] }
  0x1f   : > { %v452_v27 = vrot.slane %v450_v18, 5  ;;  %v463_v28 = vrot.slane %v461_v20, 4  ;;  %v466_v29 = vrot.slane %v464_v21, 5  ;;  %v470_v31 = vshll.u32 %v5013_v11, 16  ;;  %v5066_v55 = vld [vmem:[%s4991_s20 + $0x24] sm:$0x1] }
  0x20   : > { %v439_v30 = vor.u32 %v438_v24, %v435_v23  ;;  %v475_v32 = vshrl.u32 %v5018_v13, 16  ;;  %v478_v33 = vshll.u32 %v5018_v13, 16  ;;  %v458_v37 = vrot.slane %v456_v19, 5  ;;  %v1460_v59 = vld [vmem:[%s5058_s10 + $0x4] sm:$0x1]  ;;  %s373_s30 = sadd.s32 2, %s4867_s21 }
  0x21   : > { %v453_v36 = vor.u32 %v452_v27, %v449_v25  ;;  %v467_v38 = vor.u32 %v466_v29, %v463_v28  ;;  %v484_v39 = vshll.u32 %v5031_v22, 16  ;;  %v472_v41 = vrot.slane %v470_v31, 5  ;;  %v5079_v60 = vld [vmem:[%s5058_s10 + $0x8] sm:$0xf]  ;;  %v5082_v61 = vld [vmem:[%s5058_s10 + $0xc] sm:$0x1] }
  0x22   : > { %v440_v40 = vrot.slane %v439_v30, 4  ;;  %v477_v42 = vrot.slane %v475_v32, 4  ;;  %v480_v43 = vrot.slane %v478_v33, 5  ;;  %v489_v50 = vshrl.u32 %v5037_v34, 16  ;;  %v1459_v1 = vld [vmem:[%s5058_s10] sm:$0xf] }
  0x23   : > { %v454_v44 = vrot.slane %v453_v36, 4  ;;  %v468_v45 = vrot.slane %v467_v38, 4  ;;  %v486_v48 = vrot.slane %v484_v39, 5  ;;  %v492_v51 = vshll.u32 %v5037_v34, 16  ;;  %v5090_v2 = vld [vmem:[%s5058_s10 + $0x10] sm:$0xf] }
  0x24   : > { %v445_v46 = vsel %vm5041_vm3, %v440_v40, %v444_v26  ;;  %v481_v47 = vor.u32 %v480_v43, %v477_v42  ;;  %v491_v62 = vrot.slane %v489_v50, 4  ;;  %v5093_v4 = vld [vmem:[%s5058_s10 + $0x14] sm:$0x1]  ;;  %v1590_v14 = vshrl.u32 %v1459_v1, 16  ;;  %v5098_v16 = vld [vmem:[%s6128_s3 + $0x4] sm:$0x3] }
  0x25   : > { %v5051_v49 = vsel %vm5041_vm3, %v454_v44, %v458_v37  ;;  %v5062_v52 = vsel %vm5041_vm3, %v468_v45, %v472_v41  ;;  %v494_v63 = vrot.slane %v492_v51, 5  ;;  %v1593_v15 = vshll.u32 %v1459_v1, 16  ;;  %v5103_v17 = vld [vmem:[%s5058_s10 + $0x18] sm:$0xf]  ;;  %v5110_v24 = vld [vmem:[%s5058_s10 + $0x1c] sm:$0x1] }
  0x26   : > { %v482_v53 = vrot.slane %v481_v47, 4  ;;  %v3874_v54 = vcombine.low %v445_v46, %v5051_v49  ;;  %v1599_v18 = vshll.u32 %v1460_v59, 16  ;;  %v1604_v19 = vshrl.u32 %v5079_v60, 16  ;;  %v5114_v29 = vld [vmem:[%s5058_s10 + $0x20] sm:$0xf]  ;;  %p376_p8 = scmp.lt.s32.totalorder %s373_s30, 9 }
  0x27   : > { %v1607_v20 = vshll.u32 %v5079_v60, 16  ;;  %v1613_v21 = vshll.u32 %v5082_v61, 16  ;;  %v498_v23 = vshll.u32 %v5066_v55, 16  ;;  %v1592_v25 = vrot.slane %v1590_v14, 4  ;;  %v5123_v43 = vld [vmem:[%s5058_s10 + $0x24] sm:$0x1] }
  0x28   : > { %v5072_v57 = vsel %vm5041_vm3, %v482_v53, %v486_v48  ;;  %4257 = vmatprep.mubr.msk.bf16.mxu1 %vm558_vm4, %v3874_v54  ;;  %v1595_v26 = vrot.slane %v1593_v15, 5  ;;  %v1618_v27 = vshrl.u32 %v5090_v2, 16  ;;  %v495_v28 = vor.u32 %v494_v63, %v491_v62  ;;  %s6218_s30 = smov (!%p376_p8, %s373_s30), 9  ;;  %v4843_v35 = vld [vmem:[%s5058_s10 + $0x38] sm:$0xf]  ;;  %s6220_s21 = smov (!%p386_p9, %s4867_s21), 7 }
  0x29   : > { %v5086_v0 = vcombine.low %v5062_v52, %v5072_v57  ;;  %v1601_v30 = vrot.slane %v1599_v18, 5  ;;  %v1606_v31 = vrot.slane %v1604_v19, 4  ;;  %v1609_v32 = vrot.slane %v1607_v20, 5  ;;  %s4766_s12 = smul.u32 20, %s6218_s30 }
  0x2a   : > { %v1596_v33 = vor.u32 %v1595_v26, %v1592_v25  ;;  %v1615_v36 = vrot.slane %v1613_v21, 5  ;;  %v1620_v37 = vrot.slane %v1618_v27, 4  ;;  %v1621_v38 = vshll.u32 %v5090_v2, 16  ;;  %v5140_v27 = vld [vmem:[%s4991_s20 + $0x28] sm:$0xf] }
  0x2b   : > { %6156 = vst [vmem:[#allocation3_spill] sm:$0xff] %v5086_v0  ;;  %4258 = vmatmul.mubr.msk.bf16.vlgmr.msra.gmra.mrb[0].mxu1 %vm558_vm4, %v5086_v0  ;;  %v1610_v39 = vor.u32 %v1609_v32, %v1606_v31  ;;  %v1627_v40 = vshll.u32 %v5093_v4, 16  ;;  %v1632_v41 = vshrl.u32 %v5103_v17, 16  ;;  %v1635_v42 = vshll.u32 %v5103_v17, 16  ;;  %v5143_v31 = vld [vmem:[%s4991_s20 + $0x2c] sm:$0x1]  ;;  %s380_s14 = sadd.s32 %s4766_s12, %s4980_s13 }
  0x2c   : > { %4266 = vmatpush3.bf16.msra.mxu1 %v673_v56  ;;  %v1597_v44 = vrot.slane %v1596_v33, 4  ;;  %v1623_v45 = vrot.slane %v1621_v38, 5  ;;  %v1641_v46 = vshll.u32 %v5110_v24, 16  ;;  %v1646_v47 = vshrl.u32 %v5114_v29, 16  ;;  %v5146_v32 = vld [vmem:[%s4991_s20 + $0x30] sm:$0xf] }
  0x2d   : > { %4737 = vmatprep.subr.msk.bf16.mxu1 %vm571_vm0, %v5098_v16  ;;  %v1611_v48 = vrot.slane %v1610_v39, 4  ;;  %v1634_v50 = vrot.slane %v1632_v41, 4  ;;  %v1637_v51 = vrot.slane %v1635_v42, 5  ;;  %v500_v53 = vrot.slane %v498_v23, 5  ;;  %v5159_v38 = vld [vmem:[%s4991_s20 + $0x34] sm:$0x1] }
  0x2e   : > { %v1602_v54 = vsel %vm5041_vm3, %v1597_v44, %v1601_v30  ;;  %v1624_v56 = vor.u32 %v1623_v45, %v1620_v37  ;;  %v1629_v59 = vrot.slane %v1627_v40, 5  ;;  %v1648_v63 = vrot.slane %v1646_v47, 4  ;;  %v5168_v47 = vld [vmem:[%s4991_s20 + $0x38] sm:$0xf]  ;;  %s3867_s17 = sshll.u32 %s380_s14, 2  ;;  %s3871_s12 = sshll.u32 %s6214_s22, 3 }
  0x2f   : > { %v1638_v62 = vor.u32 %v1637_v51, %v1634_v50  ;;  %v1649_v1 = vshll.u32 %v5114_v29, 16  ;;  %v1655_v14 = vshll.u32 %v5123_v43, 16  ;;  %v496_v15 = vrot.slane %v495_v28, 4  ;;  %v5177_v50 = vld [vmem:[%s4991_s20 + $0x3c] sm:$0x1]  ;;  %s5544_s19 = scalar_lea.vmem %s6127_s2, %s3867_s17  ;;  %s398_s14 = sadd.s32 %s3871_s12, %s6220_s21 }
  0x30   : > { %v1616_v18 = vsel %vm5041_vm3, %v1611_v48, %v1615_v36  ;;  %v1625_v19 = vrot.slane %v1624_v56, 4  ;;  %v1643_v20 = vrot.slane %v1641_v46, 5  ;;  %v2175_v37 = vsel %vm571_vm0, %v4977_v5, 0  ;;  %s399_s17 = scalar_lea.vmem %s6130_s5, %s398_s14 }
  0x31   : > { %v1639_v21 = vrot.slane %v1638_v62, 4  ;;  %v1651_v23 = vrot.slane %v1649_v1, 5  ;;  %v5133_v25 = vcombine.low %v1602_v54, %v1616_v18  ;;  %v1657_v28 = vrot.slane %v1655_v14, 5 }
  0x32   : > { %v5137_v26 = vsel %vm5041_vm3, %v1625_v19, %v1629_v59  ;;  %v5150_v33 = vsel %vm5041_vm3, %v496_v15, %v500_v53  ;;  %v1817_v40 = vrot.slane %v5082_v61, 5  ;;  %v503_v42 = vshrl.u32 %v5140_v27, 16  ;;  %v4017_v15 = vld [vmem:[%s6128_s3 + $0x1e] sm:$0x3] }
  0x33   : > { %6157 = vst [vmem:[#allocation4_spill] sm:$0xff] %v5133_v25  ;;  %v1652_v30 = vor.u32 %v1651_v23, %v1648_v63  ;;  %v5154_v36 = vsel %vm5041_vm3, %v1639_v21, %v1643_v20  ;;  %v3999_v41 = vcombine.low %v1616_v18, %v5137_v26  ;;  %v1821_v44 = vrot.slane %v5093_v4, 5  ;;  %v5199_v21 = vld [vmem:[%s5058_s10 + $0x28] sm:$0xf] }
  0x34   : > { %v506_v45 = vshll.u32 %v5140_v27, 16  ;;  %v512_v46 = vshll.u32 %v5143_v31, 16  ;;  %v517_v48 = vshrl.u32 %v5146_v32, 16  ;;  %v505_v61 = vrot.slane %v503_v42, 4 }
  0x35   : > { %v1653_v39 = vrot.slane %v1652_v30, 4  ;;  %4387 = vmatprep.mubr.msk.bf16.mxu0 %vm558_vm4, %v3999_v41  ;;  %v520_v51 = vshll.u32 %v5146_v32, 16  ;;  %v526_v4 = vshll.u32 %v5159_v38, 16  ;;  %v1825_v53 = vrot.slane %v5110_v24, 5  ;;  %v5205_v41 = vld [vmem:[%s5058_s10 + $0x2c] sm:$0x1] }
  0x36   : > { %v1829_v54 = vrot.slane %v5123_v43, 5  ;;  %v508_v59 = vrot.slane %v506_v45, 5  ;;  %v514_v62 = vrot.slane %v512_v46, 5  ;;  %v519_v63 = vrot.slane %v517_v48, 4 }
  0x37   : > { %v5173_v5 = vsel %vm5041_vm3, %v1653_v39, %v1657_v28  ;;  %v522_v1 = vrot.slane %v520_v51, 5  ;;  %v528_v14 = vrot.slane %v526_v4, 5  ;;  %v531_v43 = vshrl.u32 %v5168_v47, 16  ;;  %v5221_v4 = vld [vmem:[%s5058_s10 + $0x30] sm:$0xf] }
  0x38   : > { %v4000_v56 = vcombine.low %v5154_v36, %v5173_v5  ;;  %v509_v24 = vor.u32 %v508_v59, %v505_v61  ;;  %v534_v19 = vshll.u32 %v5168_v47, 16  ;;  %v540_v20 = vshll.u32 %v5177_v50, 16 }
  0x39   : > { %v523_v23 = vor.u32 %v522_v1, %v519_v63  ;;  %v3973_v30 = vrot.slane %v5079_v60, 9  ;;  %v3974_v28 = vrot.slane %v5090_v2, 9  ;;  %v3975_v39 = vrot.slane %v5103_v17, 9  ;;  %v5234_v1 = vld [vmem:[%s5058_s10 + $0x38] sm:$0xf] }
  0x3a   : > { %4388 = vmatmul.mubr.msk.bf16.vlgmr.msra.gmra.mrb[0].mxu0 %vm558_vm4, %v4000_v56  ;;  %v510_v42 = vrot.slane %v509_v24, 4  ;;  %v533_v45 = vrot.slane %v531_v43, 4  ;;  %v536_v46 = vrot.slane %v534_v19, 5  ;;  %v542_v48 = vrot.slane %v540_v20, 5  ;;  %v5224_v56 = vld [vmem:[%s5058_s10 + $0x34] sm:$0x1] }
  0x3b   : > { %4396 = vmatpush3.bf16.msra.mxu0 %v2175_v37  ;;  %v524_v61 = vrot.slane %v523_v23, 4  ;;  %v5210_v37 = vsel %vm5190_vm7, %v3973_v30, %v1817_v40  ;;  %v5214_v60 = vsel %vm5190_vm7, %v3974_v28, %v1821_v44  ;;  %v5218_v51 = vsel %vm5190_vm7, %v3975_v39, %v1825_v53  ;;  %v5247_v19 = vld [vmem:[%s5058_s10 + $0x3c] sm:$0x1]  ;;  %v5250_v20 = vld [vmem:[%s5058_s10 + $0x40] sm:$0xf] }
  0x3c   : > { %4751 = vmatprep.subr.msk.bf16.mxu0 %vm571_vm0, %v4017_v15  ;;  %6160 = vst [vmem:[#allocation5_spill] sm:$0xff] %v5210_v37  ;;  %v5228_v59 = vsel %vm5041_vm3, %v510_v42, %v514_v62  ;;  %v537_v63 = vor.u32 %v536_v46, %v533_v45  ;;  %v4009_v40 = vcombine.low %v5210_v37, %v5214_v60  ;;  %v3976_v44 = vrot.slane %v5114_v29, 9  ;;  %v5260_v39 = vld [vmem:[%s5058_s10 + $0x44] sm:$0x1] }
  0x3d   : > { %v5238_v53 = vcombine.low %v5150_v33, %v5228_v59  ;;  %v5242_v24 = vsel %vm5041_vm3, %v524_v61, %v528_v14  ;;  %v3977_v62 = vrot.slane %v5199_v21, 9  ;;  %v1833_v43 = vrot.slane %v5205_v41, 5 }
  0x3e   : > { %v538_v23 = vrot.slane %v537_v63, 4  ;;  %4397 = vmatprep.mubr.msk.bf16.mxu0 %vm558_vm4, %v4009_v40  ;;  %v5255_v30 = vsel %vm5190_vm7, %v3976_v44, %v1829_v54  ;;  %v3978_v28 = vrot.slane %v5221_v4, 9  ;;  %v1837_v14 = vrot.slane %v5224_v56, 5 }
  0x3f   : > { %6161 = vst [vmem:[#allocation6_spill] sm:$0xff] %v5238_v53  ;;  %4261 = vmatprep.mubr.msk.bf16.mxu1 %vm558_vm4, %v5238_v53  ;;  %v4010_v42 = vcombine.low %v5218_v51, %v5255_v30  ;;  %v3882_v45 = vcombine.low %v4998_v6, %v5004_v8  ;;  %v5270_v46 = vsel %vm5190_vm7, %v3977_v62, %v1833_v43  ;;  %v3979_v63 = vrot.slane %v5234_v1, 9 }
  0x40   : > { %v5274_v54 = vsel %vm5041_vm3, %v538_v23, %v542_v48  ;;  %v5278_v61 = vsel %vm5190_vm7, %v3978_v28, %v1837_v14  ;;  %v1841_v40 = vrot.slane %v5247_v19, 5  ;;  %v4007_v43 = vrot.slane %v5250_v20, 9  ;;  %v4023_v28 = vld [vmem:[%s6128_s3 + $0x20] sm:$0x3] }
  0x41   : > { %v5284_v44 = vcombine.low %v5242_v24, %v5274_v54  ;;  %v4011_v62 = vcombine.low %v5270_v46, %v5278_v61  ;;  %v2153_v48 = vrot.slane %v5260_v39, 5  ;;  %v2259_v23 = vsel %vm571_vm0, %v4017_v15, 0 }
  0x42   : > { %v3892_v14 = vrot.slane %v5010_v10, 9  ;;  %v761_v58 = vrot.slane %v5013_v11, 5  ;;  %v5303_v15 = vsel %vm5190_vm7, %v3979_v63, %v1841_v40  ;;  %v3893_v3 = vrot.slane %v5018_v13, 9 }
  0x43   : > { %6162 = vst [vmem:[#allocation7_spill] sm:$0xff] %v5284_v44  ;;  %4262 = vmatmul.mubr.msk.bf16.gmra.mrb[4].mxu1 %vm558_vm4, %v5284_v44  ;;  %v5307_v12 = vsel %vm5190_vm7, %v4007_v43, %v2153_v48  ;;  %v765_v11 = vrot.slane %v5031_v22, 5  ;;  %v5319_v63 = vcombine.low %v5010_v10, %v5018_v13  ;;  %v3890_v40 = vrot.slane %v4998_v6, 9 }
  0x44   : > { %4267 = vmatprep.mubr.msk.bf16.mxu1 %vm558_vm4, %v3882_v45  ;;  %v753_v45 = vrot.slane %v5001_v7, 5  ;;  %v3891_v43 = vrot.slane %v5004_v8, 9  ;;  %v810_v48 = vsel %vm571_vm0, %v5098_v16, 0  ;;  %v4012_v7 = vcombine.low %v5303_v15, %v5307_v12 }
  0x45   : > { %6163 = vst [vmem:[#allocation8_spill] sm:$0xff] %v5319_v63  ;;  %v2356_v22 = vsel %vm571_vm0, %v4023_v28, 0  ;;  %v1660_v37 = vshrl.u32 %v5199_v21, 16  ;;  %v5338_v6 = vcombine.low %v5037_v34, %v5140_v27  ;;  %v5342_v16 = vcombine.low %v5090_v2, %v5103_v17 }
  0x46   : > { %4398 = vmatmul.mubr.msk.bf16.vlgmr.msra.gmra.mrb[0].mxu0 %vm558_vm4, %v4010_v42  ;;  %v3907_v42 = vld [vmem:[%s6128_s3 + $0x6] sm:$0x3]  ;;  %v1663_v25 = vshll.u32 %v5199_v21, 16  ;;  %v1688_v44 = vshrl.u32 %v5234_v1, 16  ;;  %v1697_v17 = vshll.u32 %v5247_v19, 16  ;;  %v2045_v0 = vshll.u32 %v5250_v20, 16 }
  0x47   : > { %4406 = vmatpush3.bf16.msra.mxu0 %v2259_v23  ;;  %4401 = vmatprep.mubr.msk.bf16.mxu0 %vm558_vm4, %v4011_v62  ;;  %v757_v62 = vrot.slane %v5007_v9, 5  ;;  %v5329_v23 = vsel %vm571_vm0, %v3907_v42, 0  ;;  %v5333_v9 = vsel %vm5190_vm7, %v3892_v14, %v761_v58  ;;  %6164 = vst [vmem:[#allocation9_spill] sm:$0xff] %v5338_v6  ;;  %6165 = vst [vmem:[#allocation10_spill] sm:$0xff] %v5342_v16  ;;  %v1691_v58 = vshll.u32 %v5234_v1, 16 }
  0x48   : > { %4752 = vmatprep.subr.msk.bf16.mxu0 %vm571_vm0, %v4023_v28  ;;  %v5346_v28 = vsel %vm5190_vm7, %v3893_v3, %v765_v11  ;;  %v754_v14 = vsel %vm5190_vm7, %v3890_v40, %v753_v45  ;;  %v2042_v3 = vshrl.u32 %v5250_v20, 16  ;;  %v1690_v11 = vrot.slane %v1688_v44, 4 }
  0x49   : > { %6166 = vst [vmem:[#allocation11_spill] sm:$0xff] %v5346_v28  ;;  %v5357_v2 = vsel %vm5190_vm7, %v3891_v43, %v757_v62  ;;  %v1693_v53 = vrot.slane %v1691_v58, 5  ;;  %v5366_v45 = vcombine.low %v5333_v9, %v5346_v28  ;;  %v1662_v62 = vrot.slane %v1660_v37, 4 }
  0x4a   : > { %6167 = vst [vmem:[#allocation12_spill] sm:$0xff] %v5357_v2  ;;  %v1669_v40 = vshll.u32 %v5205_v41, 16  ;;  %v2044_v19 = vrot.slane %v2042_v3, 4  ;;  %v1674_v44 = vshrl.u32 %v5221_v4, 16  ;;  %v5378_v41 = vcombine.low %v5146_v32, %v5168_v47 }
  0x4b   : > { %4268 = vmatmul.mubr.msk.bf16.vlgmr.msra.gmra.mrb[0].mxu1 %vm558_vm4, %v5319_v63  ;;  %v2051_v63 = vshll.u32 %v5260_v39, 16  ;;  %v1677_v39 = vshll.u32 %v5221_v4, 16  ;;  %v1694_v43 = vor.u32 %v1693_v53, %v1690_v11  ;;  %v5382_v37 = vcombine.low %v5114_v29, %v5199_v21  ;;  %v5396_v21 = vld [vmem:[%s4991_s20 + $0x44] sm:$0x1] }
  0x4c   : > { %4276 = vmatpush3.bf16.msra.mxu1 %v810_v48  ;;  %4271 = vmatprep.mubr.msk.bf16.mxu1 %vm558_vm4, %v5338_v6  ;;  %v2047_v48 = vrot.slane %v2045_v0, 5  ;;  %v3899_v58 = vcombine.low %v754_v14, %v5357_v2  ;;  %v5390_v0 = vcombine.low %v5221_v4, %v5234_v1  ;;  %v769_v53 = vrot.slane %v5066_v55, 5  ;;  %v4030_v55 = vld [vmem:[%s6128_s3 + $0x22] sm:$0x3] }
  0x4d   : > { %4738 = vmatprep.subr.msk.bf16.mxu1 %vm571_vm0, %v3907_v42  ;;  %v5386_v42 = vld [vmem:[%s5058_s10 + $0x48] sm:$0xf]  ;;  %v1695_v3 = vrot.slane %v1694_v43, 4  ;;  %v2053_v28 = vrot.slane %v2051_v63, 5  ;;  %v3895_v29 = vrot.slane %v5140_v27, 9  ;;  %v773_v14 = vrot.slane %v5143_v31, 5 }
  0x4e   : > { %4402 = vmatmul.mubr.msk.bf16.gmra.mrb[4].mxu0 %vm558_vm4, %v4012_v7  ;;  %v1665_v7 = vrot.slane %v1663_v25, 5  ;;  %v2048_v6 = vor.u32 %v2047_v48, %v2044_v19  ;;  %6168 = vst [vmem:[#allocation13_spill] sm:$0xff] %v5390_v0  ;;  %v3894_v25 = vrot.slane %v5037_v34, 9  ;;  %v1676_v11 = vrot.slane %v1674_v44, 4 }
  0x4f   : > { %4407 = vmatprep.mubr.msk.bf16.mxu0 %vm558_vm4, %v5342_v16  ;;  %v1699_v16 = vrot.slane %v1697_v17, 5  ;;  %v1679_v2 = vrot.slane %v1677_v39, 5  ;;  %v5400_v17 = vld [vmem:[%s4991_s20 + $0x40] sm:$0xf]  ;;  %v1671_v19 = vrot.slane %v1669_v40, 5  ;;  %v2335_v4 = vshrl.u32 %v5386_v42, 16 }
  0x50   : > { %v2049_v43 = vrot.slane %v2048_v6, 4  ;;  %v1666_v63 = vor.u32 %v1665_v7, %v1662_v62  ;;  %v982_v1 = vshrl.u32 %v5400_v17, 16  ;;  %v985_v62 = vshll.u32 %v5400_v17, 16 }
  0x51   : > { %v5414_v31 = vsel %vm5041_vm3, %v1695_v3, %v1699_v16  ;;  %v991_v40 = vshll.u32 %v5396_v21, 16  ;;  %v2338_v44 = vshll.u32 %v5386_v42, 16  ;;  %v5427_v39 = vsel %vm5190_vm7, %v3894_v25, %v769_v53 }
  0x52   : > { %6169 = vst [vmem:[#allocation14_spill] sm:$0xff] %v5414_v31  ;;  %v5418_v6 = vsel %vm5041_vm3, %v2049_v43, %v2053_v28  ;;  %v984_v48 = vrot.slane %v982_v1, 4  ;;  %v5433_v28 = vsel %vm5190_vm7, %v3895_v29, %v773_v14  ;;  %v1683_v7 = vshll.u32 %v5224_v56, 16 }
  0x53   : > { %4272 = vmatmul.mubr.msk.bf16.gmra.mrb[4].mxu1 %vm558_vm4, %v5378_v41  ;;  %6170 = vst [vmem:[#allocation15_spill] sm:$0xff] %v5418_v6  ;;  %v5439_v3 = vcombine.low %v5137_v26, %v5154_v36  ;;  %v4018_v25 = vcombine.low %v5250_v20, %v5386_v42  ;;  %v3896_v53 = vrot.slane %v5146_v32, 9  ;;  %v777_v29 = vrot.slane %v5159_v38, 5  ;;  %v5452_v20 = vld [vmem:[%s5058_s10 + $0x4c] sm:$0x1] }
  0x54   : > { %4277 = vmatprep.mubr.msk.bf16.mxu1 %vm558_vm4, %v3899_v58  ;;  %v987_v58 = vrot.slane %v985_v62, 5  ;;  %v3897_v14 = vrot.slane %v5168_v47, 9  ;;  %v993_v56 = vrot.slane %v991_v40, 5  ;;  %v1667_v43 = vrot.slane %v1666_v63, 4  ;;  %v3916_v38 = vld [vmem:[%s6128_s3 + $0x8] sm:$0x3] }
  0x55   : > { %v5449_v1 = vcombine.low %v5427_v39, %v5433_v28  ;;  %v2337_v26 = vrot.slane %v2335_v4, 4  ;;  %v2340_v36 = vrot.slane %v2338_v44, 5  ;;  %v1685_v16 = vrot.slane %v1683_v7, 5 }
  0x56   : > { %4408 = vmatmul.mubr.msk.bf16.vlgmr.msra.gmra.mrb[0].mxu0 %vm558_vm4, %v5382_v37  ;;  %v5476_v40 = vsel %vm5041_vm3, %v1667_v43, %v1671_v19  ;;  %v2344_v44 = vshll.u32 %v5452_v20, 16 }
  0x57   : > { %4416 = vmatpush3.bf16.msra.mxu0 %v2356_v22  ;;  %4411 = vmatprep.mubr.msk.bf16.mxu0 %vm558_vm4, %v5390_v0  ;;  %v1680_v22 = vor.u32 %v1679_v2, %v1676_v11  ;;  %v781_v2 = vrot.slane %v5177_v50, 5  ;;  %v988_v11 = vor.u32 %v987_v58, %v984_v48  ;;  %v5464_v50 = vsel %vm5190_vm7, %v3896_v53, %v777_v29 }
  0x58   : > { %4753 = vmatprep.subr.msk.bf16.mxu0 %vm571_vm0, %v4030_v55  ;;  %6171 = vst [vmem:[#allocation16_spill] sm:$0xff] %v5476_v40  ;;  %v2444_v53 = vsel %vm571_vm0, %v4030_v55, 0  ;;  %v3909_v29 = vcombine.low %v5018_v13, %v5037_v34  ;;  %v3911_v13 = vcombine.low %v5168_v47, %v5400_v17  ;;  %v5548_v34 = vcombine.low %v5255_v30, %v5270_v46 }
  0x59   : > { %v1681_v62 = vrot.slane %v1680_v22, 4  ;;  %v989_v0 = vrot.slane %v988_v11, 4  ;;  %v5468_v63 = vsel %vm5190_vm7, %v3897_v14, %v781_v2  ;;  %v5496_v22 = vcombine.low %v5173_v5, %v5476_v40  ;;  %v3926_v11 = vld [vmem:[%s6128_s3 + $0xa] sm:$0x3] }
  0x5a   : > { %v5492_v19 = vcombine.low %v5464_v50, %v5468_v63  ;;  %v6174_v5 = vcombine.low %v5004_v8, %v5010_v10  ;;  %v1015_v2 = vsel %vm571_vm0, %v3916_v38, 0  ;;  %v3910_v8 = vcombine.low %v5140_v27, %v5146_v32  ;;  %6176 = vst [vmem:[#allocation20_spill] sm:$0xff] %v5548_v34 }
  0x5b   : > { %4278 = vmatmul.mubr.msk.bf16.vlgmr.msra.gmra.mrb[0].mxu1 %vm558_vm4, %v5366_v45  ;;  %v5472_v4 = vsel %vm5041_vm3, %v989_v0, %v993_v56  ;;  %v5488_v0 = vsel %vm5041_vm3, %v1681_v62, %v1685_v16  ;;  %v4036_v16 = vld [vmem:[%s6128_s3 + $0x24] sm:$0x3]  ;;  %v5527_v10 = vcombine.low %v5214_v60, %v5218_v51  ;;  %v5552_v27 = vcombine.low %v5278_v61, %v5303_v15  ;;  %v5558_v51 = vld [vmem:[%s5544_s19] sm:$0xf]  ;;  %v5562_v56 = vld [vmem:[%s5544_s19 + $0x8] sm:$0xf] }
  0x5c   : > { %4286 = vmatpush3.bf16.msra.mxu1 %v5329_v23  ;;  %4281 = vmatprep.mubr.msk.bf16.mxu1 %vm558_vm4, %v5449_v1  ;;  %v2341_v23 = vor.u32 %v2340_v36, %v2337_v26  ;;  %6172 = vst [vmem:[#allocation17_spill] sm:$0xff] %v5488_v0  ;;  %v5500_v7 = vcombine.low %v5488_v0, %v5414_v31  ;;  %v4029_v32 = vrot.slane %v5386_v42, 9  ;;  %v2434_v60 = vrot.slane %v5452_v20, 5  ;;  %v4045_v61 = vld [vmem:[%s6128_s3 + $0x26] sm:$0x3] }
  0x5d   : > { %4739 = vmatprep.subr.msk.bf16.mxu1 %vm571_vm0, %v3916_v38  ;;  %6175 = vst [vmem:[#allocation19_spill] sm:$0xff] %v5527_v10  ;;  %6177 = vst [vmem:[#allocation21_spill] sm:$0xff] %v5552_v27  ;;  %v2574_v47 = vsel %vm571_vm0, %v4036_v16, 0  ;;  %v2650_v30 = vshrl.u32 %v5558_v51, 16  ;;  %v2653_v46 = vshll.u32 %v5558_v51, 16  ;;  %v6178_v15 = vcombine.low %v5051_v49, %v5062_v52 }
  0x5e   : > { %4412 = vmatmul.mubr.msk.bf16.gmra.mrb[4].mxu0 %vm558_vm4, %v4018_v25  ;;  %6173 = vst [vmem:[#allocation18_spill] sm:$0xff] %v5500_v7  ;;  %v2342_v58 = vrot.slane %v2341_v23, 4  ;;  %v2346_v25 = vrot.slane %v2344_v44, 5  ;;  %v2664_v42 = vshrl.u32 %v5562_v56, 16  ;;  %v2667_v43 = vshll.u32 %v5562_v56, 16 }
  0x5f   : > { %4417 = vmatprep.mubr.msk.bf16.mxu0 %vm558_vm4, %v5439_v3  ;;  %v2435_v26 = vsel %vm5190_vm7, %v4029_v32, %v2434_v60  ;;  %v3918_v49 = vcombine.low %v5072_v57, %v5150_v33  ;;  %v2652_v52 = vrot.slane %v2650_v30, 4  ;;  %v2655_v36 = vrot.slane %v2653_v46, 5  ;;  %v5586_v20 = vld [vmem:[%s5544_s19 + $0x4] sm:$0x1]  ;;  %v5589_v38 = vld [vmem:[%s5544_s19 + $0xc] sm:$0x1] }
  0x60   : > { %v2347_v55 = vsel %vm5041_vm3, %v2342_v58, %v2346_v25  ;;  %v4031_v62 = vcombine.low %v5307_v12, %v2435_v26  ;;  %v2666_v23 = vrot.slane %v2664_v42, 4  ;;  %v2669_v44 = vrot.slane %v2667_v43, 5  ;;  %v5600_v57 = vld [vmem:[%s5544_s19 + $0x18] sm:$0xf]  ;;  %v3935_v12 = vld [vmem:[%s6128_s3 + $0xc] sm:$0x3] }
  0x61   : > { %v4024_v14 = vcombine.low %v5418_v6, %v2347_v55  ;;  %v1115_v58 = vsel %vm571_vm0, %v3926_v11, 0  ;;  %v3919_v25 = vcombine.low %v5228_v59, %v5242_v24  ;;  %v2656_v33 = vor.u32 %v2655_v36, %v2652_v52  ;;  %v5622_v32 = vld [vmem:[%s5544_s19 + $0x20] sm:$0xf]  ;;  %v5625_v60 = vld [vmem:[%s5544_s19 + $0x28] sm:$0xf] }
  0x62   : > { %v2673_v59 = vshll.u32 %v5589_v38, 16  ;;  %v2670_v55 = vor.u32 %v2669_v44, %v2666_v23  ;;  %v2706_v30 = vshrl.u32 %v5622_v32, 16  ;;  %v2709_v46 = vshll.u32 %v5622_v32, 16  ;;  %v5636_v43 = vld [vmem:[%s5544_s19 + $0x38] sm:$0xf] }
  0x63   : > { %4282 = vmatmul.mubr.msk.bf16.gmra.mrb[4].mxu1 %vm558_vm4, %v5492_v19  ;;  %v2723_v42 = vshll.u32 %v5625_v60, 16  ;;  %v5646_v48 = vcombine.low %v5622_v32, %v5625_v60 }
  0x64   : > { %4287 = vmatprep.mubr.msk.bf16.mxu1 %vm558_vm4, %v6174_v5  ;;  %v2659_v5 = vshll.u32 %v5586_v20, 16  ;;  %v2671_v36 = vrot.slane %v2670_v55, 4 }
  0x66   : > { %4418 = vmatmul.mubr.msk.bf16.vlgmr.msra.gmra.mrb[0].mxu0 %vm558_vm4, %v5496_v22  ;;  %v2661_v26 = vrot.slane %v2659_v5, 5  ;;  %v5654_v5 = vld [vmem:[%s6128_s3 + $0x28] sm:$0x3] }
  0x67   : > { %4426 = vmatpush3.bf16.msra.mxu0 %v2444_v53  ;;  %4421 = vmatprep.mubr.msk.bf16.mxu0 %vm558_vm4, %v5500_v7  ;;  %v4037_v53 = vcombine.low %v5558_v51, %v5562_v56  ;;  %v5701_v7 = vld [vmem:[%s5544_s19 + $0x3c] sm:$0x1] }
  0x68   : > { %4754 = vmatprep.subr.msk.bf16.mxu0 %vm571_vm0, %v4036_v16  ;;  %v5597_v16 = vld [vmem:[%s5544_s19 + $0x10] sm:$0xf] }
  0x69   : > { %v2678_v24 = vshrl.u32 %v5597_v16, 16 }
  0x6b   : > { %4288 = vmatmul.mubr.msk.bf16.vlgmr.msra.gmra.mrb[0].mxu1 %vm558_vm4, %v3909_v29  ;;  %v2681_v29 = vshll.u32 %v5597_v16, 16  ;;  %v2680_v52 = vrot.slane %v2678_v24, 4  ;;  %v2711_v24 = vrot.slane %v2709_v46, 5  ;;  %v5672_v46 = vld [vmem:[%s5544_s19 + $0x2c] sm:$0x1] }
  0x6c   : > { %4296 = vmatpush3.bf16.msra.mxu1 %v1015_v2  ;;  %4291 = vmatprep.mubr.msk.bf16.mxu1 %vm558_vm4, %v3910_v8  ;;  %v2695_v2 = vshll.u32 %v5600_v57, 16  ;;  %v5617_v8 = vcombine.low %v5597_v16, %v5600_v57 }
  0x6d   : > { %4740 = vmatprep.subr.msk.bf16.mxu1 %vm571_vm0, %v3926_v11  ;;  %v6179_v11 = vld [vmem:[#allocation12_spill] sm:$0xff]  ;;  %v2683_v23 = vrot.slane %v2681_v29, 5  ;;  %v2725_v29 = vrot.slane %v2723_v42, 5 }
  0x6e   : > { %4422 = vmatmul.mubr.msk.bf16.gmra.mrb[4].mxu0 %vm558_vm4, %v4024_v14  ;;  %v2692_v14 = vshrl.u32 %v5600_v57, 16  ;;  %6181 = vst [vmem:[#allocation12_spill] sm:$0xff] %v5646_v48 }
  0x6f   : > { %4427 = vmatprep.mubr.msk.bf16.mxu0 %vm558_vm4, %v5527_v10 }
  0x70   : > { %v2694_v44 = vrot.slane %v2692_v14, 4 }
  0x73   : > { %4292 = vmatmul.mubr.msk.bf16.gmra.mrb[4].mxu1 %vm558_vm4, %v3911_v13  ;;  %v3927_v13 = vcombine.low %v6179_v11, %v5333_v9  ;;  %v2657_v9 = vrot.slane %v2656_v33, 4  ;;  %v2788_v11 = vsel %vm571_vm0, %v4045_v61, 0  ;;  %v5649_v33 = vld [vmem:[%s5544_s19 + $0x1c] sm:$0x1] }
  0x74   : > { %4297 = vmatprep.mubr.msk.bf16.mxu1 %vm558_vm4, %v6178_v15  ;;  %v2720_v15 = vshrl.u32 %v5625_v60, 16  ;;  %v2701_v42 = vshll.u32 %v5649_v33, 16 }
  0x76   : > { %4428 = vmatmul.mubr.msk.bf16.vlgmr.msra.gmra.mrb[0].mxu0 %vm558_vm4, %v5548_v34  ;;  %v2722_v55 = vrot.slane %v2720_v15, 4 }
  0x77   : > { %4436 = vmatpush3.bf16.msra.mxu0 %v2574_v47  ;;  %4431 = vmatprep.mubr.msk.bf16.mxu0 %vm558_vm4, %v5552_v27  ;;  %v5629_v47 = vld [vmem:[%s5544_s19 + $0x30] sm:$0xf]  ;;  %v2703_v27 = vrot.slane %v2701_v42, 5  ;;  %v2757_v42 = vshll.u32 %v5701_v7, 16 }
  0x78   : > { %4755 = vmatprep.subr.msk.bf16.mxu0 %vm571_vm0, %v4045_v61  ;;  %v1199_v61 = vsel %vm571_vm0, %v3935_v12, 0  ;;  %v5663_v14 = vcombine.low %v5629_v47, %v5636_v43 }
  0x7b   : > { %4298 = vmatmul.mubr.msk.bf16.vlgmr.msra.gmra.mrb[0].mxu1 %vm558_vm4, %v3918_v49  ;;  %v2675_v49 = vrot.slane %v2673_v59, 5  ;;  %v2708_v59 = vrot.slane %v2706_v30, 4  ;;  %v5669_v30 = vld [vmem:[%s5544_s19 + $0x24] sm:$0x1] }
  0x7c   : > { %4306 = vmatpush3.bf16.msra.mxu1 %v1115_v58  ;;  %4301 = vmatprep.mubr.msk.bf16.mxu1 %vm558_vm4, %v3919_v25  ;;  %v2697_v58 = vrot.slane %v2695_v2, 5  ;;  %v6180_v25 = vld [vmem:[#allocation11_spill] sm:$0xff]  ;;  %v2662_v2 = vsel %vm5041_vm3, %v2657_v9, %v2661_v26  ;;  %v2734_v9 = vshrl.u32 %v5629_v47, 16  ;;  %v2737_v26 = vshll.u32 %v5629_v47, 16 }
  0x7d   : > { %4741 = vmatprep.subr.msk.bf16.mxu1 %vm571_vm0, %v3935_v12  ;;  %v2684_v12 = vor.u32 %v2683_v23, %v2680_v52  ;;  %v2715_v52 = vshll.u32 %v5669_v30, 16  ;;  %v2729_v23 = vshll.u32 %v5672_v46, 16 }
  0x7e   : > { %4432 = vmatmul.mubr.msk.bf16.gmra.mrb[4].mxu0 %vm558_vm4, %v4031_v62  ;;  %v5639_v62 = vld [vmem:[%s5544_s19 + $0x14] sm:$0x1]  ;;  %v2698_v15 = vor.u32 %v2697_v58, %v2694_v44  ;;  %v3929_v44 = vcombine.low %v5433_v28, %v5464_v50  ;;  %v3925_v58 = vrot.slane %v5400_v17, 9 }
  0x7f   : > { %4437 = vmatprep.mubr.msk.bf16.mxu0 %vm558_vm4, %v4037_v53  ;;  %v3928_v53 = vcombine.low %v6180_v25, %v5427_v39  ;;  %v6182_v39 = vcombine.low %v5274_v54, %v5472_v4  ;;  %v2687_v25 = vshll.u32 %v5639_v62, 16  ;;  %v5679_v54 = vsel %vm5041_vm3, %v2671_v36, %v2675_v49 }
  0x80   : > { %v2712_v49 = vor.u32 %v2711_v24, %v2708_v59  ;;  %v2726_v36 = vor.u32 %v2725_v29, %v2722_v55  ;;  %v4046_v31 = vcombine.low %v2662_v2, %v5679_v54  ;;  %v2685_v40 = vrot.slane %v2684_v12, 4  ;;  %v5698_v59 = vld [vmem:[%s5544_s19 + $0x34] sm:$0x1] }
  0x81   : > { %v2689_v6 = vrot.slane %v2687_v25, 5  ;;  %v2699_v0 = vrot.slane %v2698_v15, 4  ;;  %v2736_v24 = vrot.slane %v2734_v9, 4  ;;  %v2739_v55 = vrot.slane %v2737_v26, 5 }
  0x82   : > { %v2713_v10 = vrot.slane %v2712_v49, 4  ;;  %v2727_v28 = vrot.slane %v2726_v36, 4  ;;  %v2731_v50 = vrot.slane %v2729_v23, 5  ;;  %v2743_v12 = vshll.u32 %v5698_v59, 16 }
  0x83   : > { %4302 = vmatmul.mubr.msk.bf16.gmra.mrb[4].mxu1 %vm558_vm4, %v6182_v39  ;;  %v2748_v39 = vshrl.u32 %v5636_v43, 16  ;;  %v5715_v25 = vsel %vm5041_vm3, %v2685_v40, %v2689_v6  ;;  %v2759_v26 = vrot.slane %v2757_v42, 5  ;;  %v2877_v49 = vrot.slane %v5589_v38, 5 }
  0x84   : > { %4307 = vmatprep.mubr.msk.bf16.mxu1 %vm558_vm4, %v3927_v13  ;;  %v2751_v13 = vshll.u32 %v5636_v43, 16  ;;  %v5732_v40 = vsel %vm5041_vm3, %v2727_v28, %v2731_v50  ;;  %v4058_v28 = vrot.slane %v5622_v32, 9  ;;  %v2889_v50 = vrot.slane %v5669_v30, 5 }
  0x85   : > { %v2750_v29 = vrot.slane %v2748_v39, 4  ;;  %v4054_v39 = vrot.slane %v5558_v51, 9 }
  0x86   : > { %4438 = vmatmul.mubr.msk.bf16.vlgmr.msra.gmra.mrb[0].mxu0 %vm558_vm4, %v5617_v8  ;;  %v2753_v34 = vrot.slane %v2751_v13, 5  ;;  %v2873_v13 = vrot.slane %v5586_v20, 5 }
  0x87   : > { %4446 = vmatpush3.bf16.msra.mxu0 %v2788_v11  ;;  %4441 = vmatprep.mubr.msk.bf16.mxu0 %vm558_vm4, %v5646_v48  ;;  %v1093_v11 = vrot.slane %v5396_v21, 5  ;;  %v2717_v48 = vrot.slane %v2715_v52, 5  ;;  %v3941_v21 = vld [vmem:[%s6128_s3 + $0xe] sm:$0x3]  ;;  %v6183_v52 = vld [vmem:[#allocation8_spill] sm:$0xff] }
  0x88   : > { %4756 = vmatprep.subr.msk.bf16.mxu0 %vm571_vm0, %v5654_v5  ;;  %v2754_v15 = vor.u32 %v2753_v34, %v2750_v29  ;;  %v2930_v34 = vsel %vm571_vm0, %v5654_v5, 0  ;;  %v4071_v5 = vld [vmem:[%s6128_s3 + $0x2a] sm:$0x3]  ;;  %v2874_v38 = vsel %vm5190_vm7, %v4054_v39, %v2873_v13  ;;  %v1296_v23 = vsel %vm571_vm0, %v3941_v21, 0 }
  0x89   : > { %v5711_v2 = vsel %vm5190_vm7, %v3925_v58, %v1093_v11  ;;  %v5728_v6 = vsel %vm5041_vm3, %v2713_v10, %v2717_v48  ;;  %v4056_v58 = vrot.slane %v5597_v16, 9  ;;  %v2885_v29 = vrot.slane %v5649_v33, 5 }
  0x8a   : > { %v5744_v9 = vcombine.low %v5728_v6, %v5732_v40  ;;  %v2755_v10 = vrot.slane %v2754_v15, 4  ;;  %v5792_v15 = vld [vmem:[%s4991_s20 + $0x48] sm:$0xf]  ;;  %v2897_v13 = vrot.slane %v5698_v59, 5 }
  0x8b   : > { %4308 = vmatmul.mubr.msk.bf16.vlgmr.msra.gmra.mrb[0].mxu1 %vm558_vm4, %v3928_v53  ;;  %v5722_v53 = vsel %vm5041_vm3, %v2699_v0, %v2703_v27  ;;  %v2745_v27 = vrot.slane %v2743_v12, 5  ;;  %v2893_v12 = vrot.slane %v5672_v46, 5  ;;  %v1275_v33 = vshrl.u32 %v5792_v15, 16 }
  0x8c   : > { %4316 = vmatpush3.bf16.msra.mxu1 %v1199_v61  ;;  %4311 = vmatprep.mubr.msk.bf16.mxu1 %vm558_vm4, %v3929_v44  ;;  %v2740_v61 = vor.u32 %v2739_v55, %v2736_v24  ;;  %v5738_v0 = vcombine.low %v5715_v25, %v5722_v53  ;;  %v5766_v20 = vsel %vm5041_vm3, %v2755_v10, %v2759_v26  ;;  %v2881_v24 = vrot.slane %v5639_v62, 5  ;;  %v3948_v62 = vld [vmem:[%s6128_s3 + $0x10] sm:$0x3] }
  0x8d   : > { %4742 = vmatprep.subr.msk.bf16.mxu1 %vm571_vm0, %v3941_v21  ;;  %v4057_v55 = vrot.slane %v5600_v57, 9  ;;  %v4059_v21 = vrot.slane %v5625_v60, 9  ;;  %v1278_v30 = vshll.u32 %v5792_v15, 16  ;;  %v1277_v10 = vrot.slane %v1275_v33, 4 }
  0x8e   : > { %4442 = vmatmul.mubr.msk.bf16.gmra.mrb[4].mxu0 %vm558_vm4, %v5663_v14  ;;  %v2741_v48 = vrot.slane %v2740_v61, 4  ;;  %v6184_v61 = vld [vmem:[#allocation9_spill] sm:$0xff]  ;;  %v5806_v46 = vsel %vm5190_vm7, %v4056_v58, %v2881_v24 }
  0x8f   : > { %4447 = vmatprep.mubr.msk.bf16.mxu0 %vm558_vm4, %v4046_v31  ;;  %v3930_v31 = vcombine.low %v5468_v63, %v5711_v2  ;;  %v4055_v63 = vrot.slane %v5562_v56, 9  ;;  %v5810_v42 = vsel %vm5190_vm7, %v4057_v55, %v2885_v29  ;;  %v1280_v26 = vrot.slane %v1278_v30, 5  ;;  %v4090_v30 = vld [vmem:[%s6128_s3 + $0x2e] sm:$0x3] }
  0x90   : > { %v5762_v51 = vsel %vm5041_vm3, %v2741_v48, %v2745_v27  ;;  %v5825_v27 = vcombine.low %v5806_v46, %v5810_v42  ;;  %v4060_v48 = vrot.slane %v5629_v47, 9  ;;  %v1384_v29 = vsel %vm571_vm0, %v3948_v62, 0 }
  0x91   : > { %v5772_v36 = vsel %vm5190_vm7, %v4055_v63, %v2877_v49  ;;  %v5778_v44 = vcombine.low %v5762_v51, %v5766_v20  ;;  %v4061_v63 = vrot.slane %v5636_v43, 9  ;;  %v2901_v49 = vrot.slane %v5701_v7, 5 }
  0x92   : > { %v4063_v11 = vcombine.low %v2874_v38, %v5772_v36  ;;  %v4080_v38 = vld [vmem:[%s6128_s3 + $0x2c] sm:$0x3]  ;;  %v1281_v59 = vor.u32 %v1280_v26, %v1277_v10  ;;  %v5849_v7 = vsel %vm5190_vm7, %v4060_v48, %v2897_v13  ;;  %v2536_v13 = vld [vmem:[%s5544_s19 + $0x44] sm:$0x1] }
  0x93   : > { %4312 = vmatmul.mubr.msk.bf16.gmra.mrb[4].mxu1 %vm558_vm4, %v3930_v31  ;;  %v5815_v31 = vsel %vm5190_vm7, %v4058_v28, %v2889_v50  ;;  %v4072_v28 = vcombine.low %v5562_v56, %v5597_v16  ;;  %v6186_v50 = vld [vmem:[#allocation6_spill] sm:$0xff]  ;;  %v4073_v16 = vcombine.low %v5600_v57, %v5622_v32  ;;  %v3135_v33 = vsel %vm571_vm0, %v4080_v38, 0 }
  0x94   : > { %4317 = vmatprep.mubr.msk.bf16.mxu1 %vm558_vm4, %v6183_v52  ;;  %v427_v52 = vld [vmem:[%s4991_s20 + $0x4c] sm:$0x1]  ;;  %v1282_v24 = vrot.slane %v1281_v59, 4  ;;  %v3235_v59 = vsel %vm571_vm0, %v4090_v30, 0  ;;  %s406_s20 = scalar_lea.vmem %s6131_s6, %s398_s14 }
  0x95   : > { %v1284_v58 = vshll.u32 %v427_v52, 16 }
  0x96   : > { %4448 = vmatmul.mubr.msk.bf16.vlgmr.msra.gmra.mrb[0].mxu0 %vm558_vm4, %v5738_v0 }
  0x97   : > { %4456 = vmatpush3.bf16.msra.mxu0 %v2930_v34  ;;  %4451 = vmatprep.mubr.msk.bf16.mxu0 %vm558_vm4, %v5744_v9  ;;  %v3936_v34 = vcombine.low %v5400_v17, %v5792_v15  ;;  %v3026_v17 = vsel %vm571_vm0, %v4071_v5, 0  ;;  %v1286_v55 = vrot.slane %v1284_v58, 5  ;;  %v6188_v58 = vld [vmem:[#allocation10_spill] sm:$0xff] }
  0x98   : > { %4757 = vmatprep.subr.msk.bf16.mxu0 %vm571_vm0, %v4071_v5  ;;  %v5853_v5 = vsel %vm5190_vm7, %v4061_v63, %v2901_v49  ;;  %v4082_v63 = vcombine.low %v5722_v53, %v5728_v6  ;;  %v5919_v49 = vld [vmem:[%s5058_s10 + $0x8] sm:$0xf] }
  0x9b   : > { %4318 = vmatmul.mubr.msk.bf16.vlgmr.msra.gmra.mrb[0].mxu1 %vm558_vm4, %v6184_v61  ;;  %v6187_v61 = vld [vmem:[#allocation7_spill] sm:$0xff] }
  0x9c   : > { %4326 = vmatpush3.bf16.msra.mxu1 %v1296_v23  ;;  %4321 = vmatprep.mubr.msk.bf16.mxu1 %vm558_vm4, %v5378_v41  ;;  %v5819_v41 = vsel %vm5190_vm7, %v4059_v21, %v2893_v12  ;;  %v6185_v23 = vld [vmem:[#allocation3_spill] sm:$0xff]  ;;  %v3954_v21 = vld [vmem:[%s6128_s3 + $0x12] sm:$0x3]  ;;  %v1287_v12 = vsel %vm5041_vm3, %v1282_v24, %v1286_v55  ;;  %v3980_v24 = vld [vmem:[%s6128_s3 + $0x16] sm:$0x3]  ;;  %v3213_v55 = vrot.slane %v2536_v13, 5 }
  0x9d   : > { %4743 = vmatprep.subr.msk.bf16.mxu1 %vm571_vm0, %v3948_v62  ;;  %v5830_v39 = vcombine.low %v5815_v31, %v5819_v41  ;;  %v3942_v56 = vcombine.low %v5472_v4, %v1287_v12  ;;  %v4074_v62 = vcombine.low %v5625_v60, %v5629_v47  ;;  %v5890_v4 = vld [vmem:[%s5544_s19 + $0x40] sm:$0xf]  ;;  %v3947_v47 = vrot.slane %v5792_v15, 9 }
  0x9e   : > { %4452 = vmatmul.mubr.msk.bf16.gmra.mrb[4].mxu0 %vm558_vm4, %v5778_v44  ;;  %v3102_v57 = vshrl.u32 %v5890_v4, 16  ;;  %v3105_v32 = vshll.u32 %v5890_v4, 16  ;;  %v4075_v60 = vcombine.low %v5636_v43, %v5890_v4  ;;  %v1514_v48 = vsel %vm571_vm0, %v3954_v21, 0  ;;  %v3963_v43 = vld [vmem:[%s6128_s3 + $0x14] sm:$0x3] }
  0x9f   : > { %4457 = vmatprep.mubr.msk.bf16.mxu0 %vm558_vm4, %v4063_v11  ;;  %v5858_v11 = vcombine.low %v5849_v7, %v5853_v5 }
  0xa0   : > { %v3104_v10 = vrot.slane %v3102_v57, 4  ;;  %v3107_v26 = vrot.slane %v3105_v32, 5 }
  0xa3   : > { %4322 = vmatmul.mubr.msk.bf16.gmra.mrb[4].mxu1 %vm558_vm4, %v3936_v34  ;;  %v1374_v34 = vrot.slane %v427_v52, 5  ;;  %v4835_v52 = vld [vmem:[%s5058_s10] sm:$0xf] }
  0xa4   : > { %4327 = vmatprep.mubr.msk.bf16.mxu1 %vm558_vm4, %v6185_v23  ;;  %v3972_v12 = vrot.slane %v4835_v52, 9 }
  0xa5   : > { %v1375_v15 = vsel %vm5190_vm7, %v3947_v47, %v1374_v34 }
  0xa6   : > { %4458 = vmatmul.mubr.msk.bf16.vlgmr.msra.gmra.mrb[0].mxu0 %vm558_vm4, %v5825_v27 }
  0xa7   : > { %4466 = vmatpush3.bf16.msra.mxu0 %v3026_v17  ;;  %4461 = vmatprep.mubr.msk.bf16.mxu0 %vm558_vm4, %v5830_v39  ;;  %v3955_v17 = vcombine.low %v4835_v52, %v5919_v49 }
  0xa8   : > { %4758 = vmatprep.subr.msk.bf16.mxu0 %vm571_vm0, %v4080_v38  ;;  %v4083_v38 = vcombine.low %v5732_v40, %v5762_v51  ;;  %v1728_v40 = vsel %vm571_vm0, %v3963_v43, 0  ;;  %v4091_v51 = vcombine.low %v5772_v36, %v5806_v46  ;;  %v4093_v36 = vcombine.low %v5819_v41, %v5849_v7  ;;  %v4836_v41 = vld [vmem:[%s5058_s10 + $0x4] sm:$0x1] }
  0xa9   : > { %v4089_v46 = vrot.slane %v5890_v4, 9  ;;  %v1813_v7 = vrot.slane %v4836_v41, 5 }
  0xab   : > { %4328 = vmatmul.mubr.msk.bf16.vlgmr.msra.gmra.mrb[0].mxu1 %vm558_vm4, %v6186_v50  ;;  %v6190_v50 = vld [vmem:[#allocation4_spill] sm:$0xff] }
  0xac   : > { %4336 = vmatpush3.bf16.msra.mxu1 %v1384_v29  ;;  %4331 = vmatprep.mubr.msk.bf16.mxu1 %vm558_vm4, %v6187_v61  ;;  %v3989_v61 = vld [vmem:[%s6128_s3 + $0x18] sm:$0x3] }
  0xad   : > { %4744 = vmatprep.subr.msk.bf16.mxu1 %vm571_vm0, %v3954_v21  ;;  %v1870_v21 = vsel %vm571_vm0, %v3980_v24, 0 }
  0xae   : > { %4462 = vmatmul.mubr.msk.bf16.gmra.mrb[4].mxu0 %vm558_vm4, %v5858_v11 }
  0xaf   : > { %4467 = vmatprep.mubr.msk.bf16.mxu0 %vm558_vm4, %v4072_v28  ;;  %v6189_v28 = vld [vmem:[#allocation13_spill] sm:$0xff] }
  0xb3   : > { %4332 = vmatmul.mubr.msk.bf16.gmra.mrb[4].mxu1 %vm558_vm4, %v3942_v56  ;;  %v6191_v56 = vld [vmem:[#allocation5_spill] sm:$0xff] }
  0xb4   : > { %4337 = vmatprep.mubr.msk.bf16.mxu1 %vm558_vm4, %v5366_v45  ;;  %v4081_v45 = vcombine.low %v5679_v54, %v5715_v25  ;;  %v3108_v54 = vor.u32 %v3107_v26, %v3104_v10  ;;  %v3111_v25 = vshll.u32 %v2536_v13, 16  ;;  %v6195_v10 = vld [vmem:[#allocation20_spill] sm:$0xff]  ;;  %v4837_v26 = vld [vmem:[%s6128_s3 + $0x1a] sm:$0x3] }
  0xb5   : > { %v4838_v13 = vld [vmem:[%s5058_s10 + $0x10] sm:$0xf] }
  0xb6   : > { %4468 = vmatmul.mubr.msk.bf16.vlgmr.msra.gmra.mrb[0].mxu0 %vm558_vm4, %v4073_v16  ;;  %v3113_v23 = vrot.slane %v3111_v25, 5 }
  0xb7   : > { %4476 = vmatpush3.bf16.msra.mxu0 %v3135_v33  ;;  %4471 = vmatprep.mubr.msk.bf16.mxu0 %vm558_vm4, %v4074_v62  ;;  %v6192_v62 = vld [vmem:[#allocation18_spill] sm:$0xff]  ;;  %v6193_v33 = vld [vmem:[#allocation12_spill] sm:$0xff] }
  0xb8   : > { %4759 = vmatprep.subr.msk.bf16.mxu0 %vm571_vm0, %v4090_v30 }
  0xbb   : > { %4338 = vmatmul.mubr.msk.bf16.vlgmr.msra.gmra.mrb[0].mxu1 %vm558_vm4, %v5449_v1  ;;  %v3949_v1 = vcombine.low %v5711_v2, %v1375_v15  ;;  %v4099_v2 = vld [vmem:[%s6128_s3 + $0x30] sm:$0x3] }
  0xbc   : > { %4346 = vmatpush3.bf16.msra.mxu1 %v1514_v48  ;;  %4341 = vmatprep.mubr.msk.bf16.mxu1 %vm558_vm4, %v5492_v19  ;;  %v3109_v19 = vrot.slane %v3108_v54, 4  ;;  %v3319_v29 = vsel %vm571_vm0, %v4099_v2, 0  ;;  %v2538_v48 = vld [vmem:[%s5544_s19 + $0x4c] sm:$0x1] }
  0xbd   : > { %4745 = vmatprep.subr.msk.bf16.mxu1 %vm571_vm0, %v3963_v43  ;;  %v3990_v43 = vcombine.low %v5919_v49, %v4838_v13  ;;  %v4840_v49 = vld [vmem:[%s5058_s10 + $0x20] sm:$0xf] }
  0xbe   : > { %4472 = vmatmul.mubr.msk.bf16.gmra.mrb[4].mxu0 %vm558_vm4, %v4075_v60  ;;  %v5935_v53 = vsel %vm5041_vm3, %v3109_v19, %v3113_v23  ;;  %v1966_v60 = vsel %vm571_vm0, %v3989_v61, 0  ;;  %v4842_v19 = vld [vmem:[%s5058_s10 + $0x30] sm:$0xf] }
  0xbf   : > { %4477 = vmatprep.mubr.msk.bf16.mxu0 %vm558_vm4, %v4081_v45  ;;  %v4084_v6 = vcombine.low %v5766_v20, %v5935_v53  ;;  %v4092_v20 = vcombine.low %v5810_v42, %v5815_v31  ;;  %v5970_v42 = vsel %vm5190_vm7, %v4089_v46, %v3213_v55  ;;  %v6194_v45 = vld [vmem:[#allocation19_spill] sm:$0xff] }
  0xc0   : > { %v4094_v31 = vcombine.low %v5853_v5, %v5970_v42  ;;  %v1814_v5 = vsel %vm5190_vm7, %v3972_v12, %v1813_v7 }
  0xc3   : > { %4342 = vmatmul.mubr.msk.bf16.gmra.mrb[4].mxu1 %vm558_vm4, %v3949_v1 }
  0xc4   : > { %4347 = vmatprep.mubr.msk.bf16.mxu1 %vm558_vm4, %v3955_v17 }
  0xc6   : > { %4478 = vmatmul.mubr.msk.bf16.vlgmr.msra.gmra.mrb[0].mxu0 %vm558_vm4, %v4082_v63  ;;  %v4839_v63 = vld [vmem:[%s5058_s10 + $0x18] sm:$0xf] }
  0xc7   : > { %4486 = vmatpush3.bf16.msra.mxu0 %v3235_v59  ;;  %4481 = vmatprep.mubr.msk.bf16.mxu0 %vm558_vm4, %v4083_v38  ;;  %v3991_v52 = vcombine.low %v4839_v63, %v4840_v49  ;;  %v4841_v38 = vld [vmem:[%s5058_s10 + $0x28] sm:$0xf] }
  0xc8   : > { %4760 = vmatprep.subr.msk.bf16.mxu0 %vm571_vm0, %v4099_v2  ;;  %v3992_v23 = vcombine.low %v4841_v38, %v4842_v19  ;;  %v6198_v2 = vld [vmem:[#allocation17_spill] sm:$0xff] }
  0xcb   : > { %4348 = vmatmul.mubr.msk.bf16.vlgmr.msra.gmra.mrb[0].mxu1 %vm558_vm4, %v6188_v58 }
  0xcc   : > { %4356 = vmatpush3.bf16.msra.mxu1 %v1728_v40  ;;  %4351 = vmatprep.mubr.msk.bf16.mxu1 %vm558_vm4, %v5382_v37  ;;  %v4105_v37 = vld [vmem:[%s6128_s3 + $0x32] sm:$0x3] }
  0xcd   : > { %4746 = vmatprep.subr.msk.bf16.mxu1 %vm571_vm0, %v3980_v24  ;;  %v3416_v16 = vsel %vm571_vm0, %v4105_v37, 0  ;;  %v6200_v24 = vld [vmem:[#allocation14_spill] sm:$0xff] }
  0xce   : > { %4482 = vmatmul.mubr.msk.bf16.gmra.mrb[4].mxu0 %vm558_vm4, %v4084_v6 }
  0xcf   : > { %4487 = vmatprep.mubr.msk.bf16.mxu0 %vm558_vm4, %v4091_v51  ;;  %v3494_v51 = vrot.slane %v2538_v48, 5 }
  0xd3   : > { %4352 = vmatmul.mubr.msk.bf16.gmra.mrb[4].mxu1 %vm558_vm4, %v6189_v28 }
  0xd4   : > { %4357 = vmatprep.mubr.msk.bf16.mxu1 %vm558_vm4, %v6190_v50 }
  0xd6   : > { %4488 = vmatmul.mubr.msk.bf16.vlgmr.msra.gmra.mrb[0].mxu0 %vm558_vm4, %v4092_v20  ;;  %v6201_v20 = vld [vmem:[#allocation15_spill] sm:$0xff] }
  0xd7   : > { %4496 = vmatpush3.bf16.msra.mxu0 %v3319_v29  ;;  %4491 = vmatprep.mubr.msk.bf16.mxu0 %vm558_vm4, %v4093_v36  ;;  %v6202_v36 = vcombine.low %v6200_v24, %v6201_v20 }
  0xd8   : > { %4761 = vmatprep.subr.msk.bf16.mxu0 %vm571_vm0, %v4105_v37 }
  0xdb   : > { %4358 = vmatmul.mubr.msk.bf16.vlgmr.msra.gmra.mrb[0].mxu1 %vm558_vm4, %v5439_v3  ;;  %v3981_v3 = vcombine.low %v1814_v5, %v6191_v56 }
  0xdc   : > { %4366 = vmatpush3.bf16.msra.mxu1 %v1870_v21  ;;  %4361 = vmatprep.mubr.msk.bf16.mxu1 %vm558_vm4, %v5496_v22  ;;  %v4112_v22 = vld [vmem:[%s6128_s3 + $0x34] sm:$0x3] }
  0xdd   : > { %4747 = vmatprep.subr.msk.bf16.mxu1 %vm571_vm0, %v3989_v61  ;;  %v3504_v25 = vsel %vm571_vm0, %v4112_v22, 0 }
  0xde   : > { %4492 = vmatmul.mubr.msk.bf16.gmra.mrb[4].mxu0 %vm558_vm4, %v4094_v31 }
  0xdf   : > { %4497 = vmatprep.mubr.msk.bf16.mxu0 %vm558_vm4, %v5617_v8  ;;  %v2537_v8 = vld [vmem:[%s5544_s19 + $0x48] sm:$0xf]  ;;  %s3869_s19 = sshll.u32 %s6214_s22, 6 }
  0xe0   : > { %v3395_v30 = vshrl.u32 %v2537_v8, 16  ;;  %v3398_v57 = vshll.u32 %v2537_v8, 16  ;;  %v4100_v32 = vcombine.low %v5890_v4, %v2537_v8  ;;  %v3404_v4 = vshll.u32 %v2538_v48, 16 }
  0xe1   : > { %v4111_v40 = vrot.slane %v2537_v8, 9 }
  0xe2   : > { %v3397_v47 = vrot.slane %v3395_v30, 4  ;;  %v3400_v34 = vrot.slane %v3398_v57, 5  ;;  %v3406_v54 = vrot.slane %v3404_v4, 5 }
  0xe3   : > { %4362 = vmatmul.mubr.msk.bf16.gmra.mrb[4].mxu1 %vm558_vm4, %v6192_v62 }
  0xe4   : > { %4367 = vmatprep.mubr.msk.bf16.mxu1 %vm558_vm4, %v3981_v3 }
  0xe6   : > { %4498 = vmatmul.mubr.msk.bf16.vlgmr.msra.gmra.mrb[0].mxu0 %vm558_vm4, %v6193_v33 }
  0xe7   : > { %4506 = vmatpush3.bf16.msra.mxu0 %v3416_v16  ;;  %4501 = vmatprep.mubr.msk.bf16.mxu0 %vm558_vm4, %v5663_v14  ;;  %v3401_v14 = vor.u32 %v3400_v34, %v3397_v47 }
  0xe8   : > { %4762 = vmatprep.subr.msk.bf16.mxu0 %vm571_vm0, %v4112_v22 }
  0xe9   : > { %v3402_v15 = vrot.slane %v3401_v14, 4 }
  0xeb   : > { %4368 = vmatmul.mubr.msk.bf16.vlgmr.msra.gmra.mrb[0].mxu1 %vm558_vm4, %v6194_v45  ;;  %v3407_v1 = vsel %vm5041_vm3, %v3402_v15, %v3406_v54 }
  0xec   : > { %4376 = vmatpush3.bf16.msra.mxu1 %v1966_v60  ;;  %4371 = vmatprep.mubr.msk.bf16.mxu1 %vm558_vm4, %v6195_v10  ;;  %v4106_v17 = vcombine.low %v5935_v53, %v3407_v1  ;;  %v6199_v53 = vld [vmem:[#allocation16_spill] sm:$0xff] }
  0xed   : > { %4749 = vmatprep.subr.msk.bf16.mxu1 %vm571_vm0, %v4837_v26  ;;  %v4001_v6 = vcombine.low %v6199_v53, %v6198_v2 }
  0xee   : > { %4502 = vmatmul.mubr.msk.bf16.gmra.mrb[4].mxu0 %vm558_vm4, %v4100_v32 }
  0xef   : > { %4507 = vmatprep.mubr.msk.bf16.mxu0 %vm558_vm4, %v5738_v0  ;;  %v6196_v0 = vld [vmem:[#allocation21_spill] sm:$0xff] }
  0xf3   : > { %4372 = vmatmul.mubr.msk.bf16.gmra.mrb[4].mxu1 %vm558_vm4, %v6196_v0 }
  0xf4   : > { %4377 = vmatprep.mubr.msk.bf16.mxu1 %vm558_vm4, %v3990_v43 }
  0xf6   : > { %4508 = vmatmul.mubr.msk.bf16.vlgmr.msra.gmra.mrb[0].mxu0 %vm558_vm4, %v5744_v9  ;;  %v6197_v9 = vld [vmem:[#allocation2_spill] sm:$0xff] }
  0xf7   : > { %4516 = vmatpush3.bf16.msra.mxu0 %v3504_v25  ;;  %4511 = vmatprep.mubr.msk.bf16.mxu0 %vm558_vm4, %v5778_v44  ;;  %v4844_v44 = vld [vmem:[%s5058_s10 + $0x40] sm:$0xf]  ;;  %s3868_s10 = sshll.u32 %s6220_s21, 3 }
  0xf8   : > { %v3993_v59 = vcombine.low %v4843_v35, %v4844_v44  ;;  %s390_s30 = sadd.s32 %s3869_s19, %s3868_s10 }
  0xf9   : > { %s3870_s7 = sshll.u32 %s390_s30, 3 }
  0xfa   : > { %s6068_s11 = scalar_lea.vmem %s6129_s4, %s3870_s7 }
  0xfb   : > { %4378 = vmatmul.mubr.msk.bf16.vlgmr.msra.gmra.mrb[0].mxu1 %vm558_vm4, %v3991_v52 }
  0xfc   : > { %4526 = vmatpush3.bf16.msra.mxu1 %v6197_v9  ;;  %4381 = vmatprep.mubr.msk.bf16.mxu1 %vm558_vm4, %v3992_v23 }
  0xfe   : > { %4512 = vmatmul.mubr.msk.bf16.gmra.mrb[4].mxu0 %vm558_vm4, %v4106_v17 }
  0xff   : > { %4517 = vmatprep.mubr.msk.bf16.mxu0 %vm558_vm4, %v5825_v27  ;;  %v3495_v27 = vsel %vm5190_vm7, %v4111_v40, %v3494_v51 }
 0x100   : > { %v4113_v58 = vcombine.low %v5970_v42, %v3495_v27 }
 0x103   : > { %4382 = vmatmul.mubr.msk.bf16.gmra.mrb[4].mxu1 %vm558_vm4, %v3993_v59 }
 0x104   : > { %4391 = vmatprep.mubr.msk.bf16.mxu1 %vm558_vm4, %v4001_v6 }
 0x106   : > { %4518 = vmatmul.mubr.msk.bf16.vlgmr.msra.gmra.mrb[0].mxu0 %vm558_vm4, %v5830_v39 }
 0x107   : > { %4521 = vmatprep.mubr.msk.bf16.mxu0 %vm558_vm4, %v5858_v11 }
 0x10e   : > { %4522 = vmatmul.mubr.msk.bf16.gmra.mrb[4].mxu0 %vm558_vm4, %v4113_v58 }
 0x10f   : > { %4392 = vmatmul.mubr.msk.bf16.vlgmr.msra.gmra.mrb[4].mxu1 %vm558_vm4, %v6202_v36 }
 0x1ce   : > { %v4379_v39 = vpop.f32.mrb[0].mxu1 }
 0x1cf   : > { %v2002_v11 = vpop.f32.mrb[1].mxu1 }
 0x1d0   : > { %v4380_v46 = vpop.f32.mrb[2].mxu1 }
 0x1d1   : > { %v2005_v18 = vpop.f32.mrb[3].mxu1 }
 0x1d9   : > { %v4519_v55 = vpop.f32.mrb[0].mxu0 }
 0x1da   : > { %v4527_v29 = vadd.f32 %v4519_v55, %v4379_v39  ;;  %v3540_v28 = vpop.f32.mrb[1].mxu0 }
 0x1db   : > { %v4528_v37 = vadd.f32 %v3540_v28, %v2002_v11  ;;  %v4520_v50 = vpop.f32.mrb[2].mxu0 }
 0x1dc   : > { %3582 = vst.msk [vmem:[%s6068_s11 + $0x10] sm:$0xff] %vm3579_vm8, %v4527_v29  ;;  %v4529_v42 = vadd.f32 %v4520_v50, %v4380_v46  ;;  %v3543_v31 = vpop.f32.mrb[3].mxu0  ;;  %v3613_v21 = vmul.f32 %v4527_v29, %v4527_v29  ;;  %v3591_v3 = vsel %vm3579_vm8, %v4527_v29, 0.0 }
 0x1dd   : > { %3580 = vst.msk [vmem:[%s6068_s11] sm:$0xff] %vm3579_vm8, %v4528_v37  ;;  %v3611_v41 = vmul.f32 %v4528_v37, %v4528_v37  ;;  %v4530_v7 = vadd.f32 %v3543_v31, %v2005_v18  ;;  %v3588_v12 = vsel %vm3579_vm8, %v4528_v37, 0.0 }
 0x1de   : > { %3583 = vst.msk [vmem:[%s6068_s11 + $0x18] sm:$0xff] %vm3579_vm8, %v4529_v42  ;;  %v3614_v62 = vmul.f32 %v4529_v42, %v4529_v42  ;;  %v3622_v32 = vsel %vm3579_vm8, %v3613_v21, 0.0  ;;  %v3593_v60 = vsel %vm3579_vm8, %v4529_v42, 0.0 }
 0x1df   : > { %3581 = vst.msk [vmem:[%s6068_s11 + $0x8] sm:$0xff] %vm3579_vm8, %v4530_v7  ;;  %v3589_v61 = vsel %vm3579_vm8, %v4530_v7, 0.0  ;;  %v3612_v5 = vmul.f32 %v4530_v7, %v4530_v7  ;;  %v3619_v16 = vsel %vm3579_vm8, %v3611_v41, 0.0 }
 0x1e0   : > { %v3590_v56 = vadd.f32 %v3589_v61, %v3588_v12  ;;  %v3624_v14 = vsel %vm3579_vm8, %v3614_v62, 0.0 }
 0x1e1   : > { %v3620_v22 = vsel %vm3579_vm8, %v3612_v5, 0.0  ;;  %v4523_v33 = vpop.f32.mrb[4].mxu0 }
 0x1e2   : > { %v3592_v8 = vadd.f32 %v3591_v3, %v3590_v56  ;;  %v3621_v30 = vadd.f32 %v3620_v22, %v3619_v16  ;;  %v3556_v57 = vpop.f32.mrb[5].mxu0  ;;  %v4393_v48 = vpop.f32.mrb[4].mxu1 }
 0x1e3   : > { %v4524_v47 = vpop.f32.mrb[6].mxu0  ;;  %v2127_v4 = vpop.f32.mrb[5].mxu1  ;;  %v4531_v26 = vadd.f32 %v4523_v33, %v4393_v48 }
 0x1e4   : > { %v3623_v34 = vadd.f32 %v3622_v32, %v3621_v30  ;;  %v3594_v45 = vadd.f32 %v3593_v60, %v3592_v8  ;;  %v3559_v10 = vpop.f32.mrb[7].mxu0  ;;  %v4394_v13 = vpop.f32.mrb[6].mxu1  ;;  %v4532_v43 = vadd.f32 %v3556_v57, %v2127_v4 }
 0x1e5   : > { %3586 = vst.msk [vmem:[%s6068_s11 + $0x30] sm:$0xff] %vm3579_vm8, %v4531_v26  ;;  %v2130_v54 = vpop.f32.mrb[7].mxu1  ;;  %v4533_v25 = vadd.f32 %v4524_v47, %v4394_v13  ;;  %v3617_v52 = vmul.f32 %v4531_v26, %v4531_v26  ;;  %v3599_v35 = vsel %vm3579_vm8, %v4531_v26, 0.0 }
 0x1e6   : > { %v3625_v15 = vadd.f32 %v3624_v14, %v3623_v34  ;;  %3584 = vst.msk [vmem:[%s6068_s11 + $0x20] sm:$0xff] %vm3579_vm8, %v4532_v43  ;;  %v3595_v0 = vsel %vm3579_vm8, %v4532_v43, 0.0  ;;  %v3615_v1 = vmul.f32 %v4532_v43, %v4532_v43  ;;  %v4534_v63 = vadd.f32 %v3559_v10, %v2130_v54 }
 0x1e7   : > { %v3596_v49 = vadd.f32 %v3595_v0, %v3594_v45  ;;  %3587 = vst.msk [vmem:[%s6068_s11 + $0x38] sm:$0xff] %vm3579_vm8, %v4533_v25  ;;  %v3618_v44 = vmul.f32 %v4533_v25, %v4533_v25  ;;  %v3630_v6 = vsel %vm3579_vm8, %v3617_v52, 0.0  ;;  %v3601_v40 = vsel %vm3579_vm8, %v4533_v25, 0.0 }
 0x1e8   : > { %v3626_v17 = vsel %vm3579_vm8, %v3615_v1, 0.0  ;;  %3585 = vst.msk [vmem:[%s6068_s11 + $0x28] sm:$0xff] %vm3579_vm8, %v4534_v63  ;;  %v3597_v38 = vsel %vm3579_vm8, %v4534_v63, 0.0  ;;  %v3616_v19 = vmul.f32 %v4534_v63, %v4534_v63 }
 0x1e9   : > { %v3627_v23 = vadd.f32 %v3626_v17, %v3625_v15  ;;  %v3598_v9 = vadd.f32 %v3597_v38, %v3596_v49  ;;  %v3632_v58 = vsel %vm3579_vm8, %v3618_v44, 0.0 }
 0x1ea   : > { %v3628_v59 = vsel %vm3579_vm8, %v3616_v19, 0.0 }
 0x1eb   : > { %v3600_v2 = vadd.f32 %v3599_v35, %v3598_v9  ;;  %v3629_v53 = vadd.f32 %v3628_v59, %v3627_v23 }
 0x1ed   : > { %v3602_v51 = vadd.f32 %v3601_v40, %v3600_v2  ;;  %v3631_v27 = vadd.f32 %v3630_v6, %v3629_v53 }
 0x1ef   : > { %v3603_v24 = vrot.slane %v3602_v51, 4  ;;  %v3633_v20 = vadd.f32 %v3632_v58, %v3631_v27 }
 0x1f1   : > { %v3604_v36 = vadd.f32 %v3603_v24, %v3602_v51  ;;  %v3634_v39 = vrot.slane %v3633_v20, 4 }
 0x1f3   : > { %v3605_v11 = vrot.slane %v3604_v36, 2  ;;  %v3635_v46 = vadd.f32 %v3634_v39, %v3633_v20 }
 0x1f5   : > { %v3606_v18 = vadd.f32 %v3605_v11, %v3604_v36  ;;  %v3636_v55 = vrot.slane %v3635_v46, 2 }
 0x1f7   : > { %v3607_v29 = vrot.slane %v3606_v18, 1  ;;  %v3637_v28 = vadd.f32 %v3636_v55, %v3635_v46 }
 0x1f9   : > { %v3608_v37 = vadd.f32 %v3607_v29, %v3606_v18  ;;  %v3638_v50 = vrot.slane %v3637_v28, 1 }
 0x1fb   : > { %3610 = vst.msk [vmem:[%s399_s17] sm:$0x1] %vm3609_vm9, %v3608_v37  ;;  %v3639_v42 = vadd.f32 %v3638_v50, %v3637_v28 }
 0x1fd   : > { %3640 = vst.msk [vmem:[%s406_s20] sm:$0x1] %vm3609_vm9, %v3639_v42 }
 0x1fe PF: > { %s17_s25 = sadd.s32 1, %s4883_s25   ;;  %s6203_s21 = smov %s4875_s23 }
 0x1ff   : > { %p14_p10 = scmp.ge.s32.totalorder %s17_s25, 18   ;;  %s6204_s22 = smov %s4879_s24 }
 0x200   : > { %s6205_s23 = smov %s6208_s26  ;;  %s6206_s24 = smov %s6212_s27 }
 0x201   :  { %16 = sbr.rel (!%p14_p10) target bundleno = 3 (0x3), region = 122 }

// kernel: residual_block_forward.8
= control target key start
LH: loop header
LB: loop body
LE: loop exit
PB: predicated region body
PF: predicated region fallthrough
CT: control target
= control target key end

     0   :  { %s1444_s12 = smov 0   ;;  %s1826_s0 = inlined_call_operand.vmem [shape: bf16[1024,4], index: 0, kind: input, shape index: {}]   ;;  %s1827_s1 = inlined_call_operand.vmem [shape: bf16[4,8], index: 1, kind: input, shape index: {}]   ;;  %s1828_s2 = inlined_call_operand.vmem [shape: f32[2,1,8], index: 2, kind: output, shape index: {0}]   ;;  %s1829_s3 = inlined_call_operand.vmem [shape: f32[2,1,8], index: 3, kind: output, shape index: {1}]  }
   0x1 LB: > { %s1450_s13 = sadd.s32 4294967295, %s1422_s12   ;;  %p1204_p0 = scmp.ge.s32.totalorder %s1422_s12, 1  ;;  %s1422_s12 = sphi %s1444_s12, %s14_s12  }
   0x2   : > { %p141_p1 = scmp.lt.s32.totalorder %s1422_s12, 3 }
   0x4   : > { %p142_p2 = pnand %p1204_p0, %p141_p1 }
   0x5   : > { %v243_v0 = vld [vmem:[%s1827_s1] sm:$0x3] (!%p142_p2)  ;;  %vm501_vm0 = vcmask (!%p142_p2), 1041408   ;;  %s1205_s16 = sshll.u32 (!%p142_p2), %s1450_s13, 6  ;;  %vm404_vm1 = vcmask (!%p142_p2), 31744   ;;  %vm794_vm2 = vcmask (!%p142_p2), 64512  }
   0x6   : > { %145 = sbr.rel (%p142_p2) target bundleno = 375 (0x177), region = 28  ;;  %1374 = vmatprep.subr.msk.bf16.mxu0 (!%p142_p2), %vm501_vm0, %v243_v0  ;;  %v503_v1 = vsel (!%p142_p2), %vm501_vm0, %v243_v0, 0  ;;  %p167_p3 = scmp.lt.s32.totalorder (!%p142_p2), %s1205_s16, 127  ;;  %1375 = vmatprep.subr.msk.bf16.mxu1 (!%p142_p2), %vm501_vm0, %v243_v0  ;;  %vm928_vm3 = vcmask (!%p142_p2), 57344  }
   0x7   : > { %1307 = vmatpush3.bf16.msra.mxu0 (!%p142_p2), %v503_v1  ;;  %1373 = vmatpush3.bf16.msra.mxu1 (!%p142_p2), %v503_v1  ;;  %p172_p4 = scmp.lt.s32.totalorder (!%p142_p2), %s1450_s13, 1 }
   0xd   : > { %s1831_s16 = smov (!%p167_p3, %s1205_s16), 127  ;;  %s1833_s13 = smov (!%p172_p4, %s1450_s13), 1 }
   0xe   : > { %s1206_s17 = sshll.u32 %s1831_s16, 2  ;;  %s174_s23 = scalar_lea.vmem %s1828_s2, %s1833_s13 }
   0xf   : > { %s1461_s20 = scalar_lea.vmem %s1826_s0, %s1206_s17  ;;  %s177_s26 = scalar_lea.vmem %s1829_s3, %s1833_s13 }
  0x10   : > { %v1384_v2 = vld [vmem:[%s1461_s20] sm:$0xff]   ;;  %v1385_v3 = vld [vmem:[%s1461_s20 + $0x8] sm:$0xff]   ;;  %v1386_v4 = vld [vmem:[%s1461_s20 + $0x10] sm:$0xff]  }
  0x11   : > { %1308 = vmatprep.mubr.msk.bf16.mxu0 %vm404_vm1, %v1384_v2  ;;  %v1387_v5 = vld [vmem:[%s1461_s20 + $0x18] sm:$0xff]   ;;  %v1388_v6 = vld [vmem:[%s1461_s20 + $0x20] sm:$0xff]   ;;  %v1389_v7 = vld [vmem:[%s1461_s20 + $0x28] sm:$0xff]  }
  0x12   : > { %1309 = vmatmul.mubr.msk.bf16.vlgmr.msra.gmra.mrb[0].mxu0 %vm404_vm1, %v1385_v3  ;;  %v1390_v8 = vld [vmem:[%s1461_s20 + $0x30] sm:$0xff]   ;;  %v1400_v9 = vld [vmem:[%s1461_s20 + $0x80] sm:$0xff]   ;;  %v1401_v10 = vld [vmem:[%s1461_s20 + $0x88] sm:$0xff]  }
  0x13   : > { %1312 = vmatprep.mubr.msk.bf16.mxu0 %vm404_vm1, %v1386_v4  ;;  %1340 = vmatprep.mubr.msk.bf16.mxu1 %vm404_vm1, %v1400_v9  ;;  %v1402_v11 = vld [vmem:[%s1461_s20 + $0x90] sm:$0xff]   ;;  %v1391_v12 = vld [vmem:[%s1461_s20 + $0x38] sm:$0xff]   ;;  %v1392_v13 = vld [vmem:[%s1461_s20 + $0x40] sm:$0xff]  }
  0x14   : > { %1341 = vmatmul.mubr.msk.bf16.vlgmr.msra.gmra.mrb[0].mxu1 %vm404_vm1, %v1401_v10  ;;  %v1403_v14 = vld [vmem:[%s1461_s20 + $0x98] sm:$0xff]   ;;  %v1404_v15 = vld [vmem:[%s1461_s20 + $0xa0] sm:$0xff]   ;;  %v1393_v16 = vld [vmem:[%s1461_s20 + $0x48] sm:$0xff]  }
  0x15   : > { %1344 = vmatprep.mubr.msk.bf16.mxu1 %vm404_vm1, %v1402_v11  ;;  %v1405_v17 = vld [vmem:[%s1461_s20 + $0xa8] sm:$0xff]   ;;  %v1394_v18 = vld [vmem:[%s1461_s20 + $0x50] sm:$0xff]   ;;  %v1395_v20 = vld [vmem:[%s1461_s20 + $0x58] sm:$0xff]  }
  0x16   : > { %v1406_v19 = vld [vmem:[%s1461_s20 + $0xb0] sm:$0xff]   ;;  %v1407_v21 = vld [vmem:[%s1461_s20 + $0xb8] sm:$0xff]   ;;  %v1396_v22 = vld [vmem:[%s1461_s20 + $0x60] sm:$0xff]  }
  0x17   : > { %v1408_v23 = vld [vmem:[%s1461_s20 + $0xc0] sm:$0xff]   ;;  %v1397_v24 = vld [vmem:[%s1461_s20 + $0x68] sm:$0xff]   ;;  %v1398_v26 = vld [vmem:[%s1461_s20 + $0x70] sm:$0xff]  }
  0x18   : > { %v1409_v25 = vld [vmem:[%s1461_s20 + $0xc8] sm:$0xff]   ;;  %v1410_v27 = vld [vmem:[%s1461_s20 + $0xd0] sm:$0xff]   ;;  %v1399_v28 = vld [vmem:[%s1461_s20 + $0x78] sm:$0xff]  }
  0x19   : > { %v1411_v29 = vld [vmem:[%s1461_s20 + $0xd8] sm:$0xff]   ;;  %v1412_v30 = vld [vmem:[%s1461_s20 + $0xe0] sm:$0xff]   ;;  %v1413_v31 = vld [vmem:[%s1461_s20 + $0xe8] sm:$0xff]  }
  0x1a   : > { %1313 = vmatmul.mubr.msk.bf16.gmra.mrb[4].mxu0 %vm404_vm1, %v1387_v5  ;;  %v1414_v32 = vld [vmem:[%s1461_s20 + $0xf0] sm:$0xff]   ;;  %v1415_v33 = vld [vmem:[%s1461_s20 + $0xf8] sm:$0xff]  }
  0x1b   : > { %1316 = vmatprep.mubr.msk.bf16.mxu0 %vm404_vm1, %v1388_v6 }
  0x1c   : > { %1345 = vmatmul.mubr.msk.bf16.gmra.mrb[4].mxu1 %vm404_vm1, %v1403_v14 }
  0x1d   : > { %1348 = vmatprep.mubr.msk.bf16.mxu1 %vm404_vm1, %v1404_v15 }
  0x22   : > { %1317 = vmatmul.mubr.msk.bf16.gmra.mrb[8].mxu0 %vm404_vm1, %v1389_v7 }
  0x23   : > { %1320 = vmatprep.mubr.msk.bf16.mxu0 %vm404_vm1, %v1390_v8 }
  0x24   : > { %1349 = vmatmul.mubr.msk.bf16.gmra.mrb[8].mxu1 %vm404_vm1, %v1405_v17 }
  0x25   : > { %1352 = vmatprep.mubr.msk.bf16.mxu1 %vm404_vm1, %v1406_v19 }
  0x2a   : > { %1321 = vmatmul.mubr.msk.bf16.gmra.mrb[12].mxu0 %vm404_vm1, %v1391_v12 }
  0x2b   : > { %1324 = vmatprep.mubr.msk.bf16.mxu0 %vm404_vm1, %v1392_v13 }
  0x2c   : > { %1353 = vmatmul.mubr.msk.bf16.gmra.mrb[12].mxu1 %vm404_vm1, %v1407_v21 }
  0x2d   : > { %1356 = vmatprep.mubr.msk.bf16.mxu1 %vm404_vm1, %v1408_v23 }
  0x32   : > { %1325 = vmatmul.mubr.msk.bf16.gmra.mrb[16].mxu0 %vm404_vm1, %v1393_v16 }
  0x33   : > { %1328 = vmatprep.mubr.msk.bf16.mxu0 %vm404_vm1, %v1394_v18 }
  0x34   : > { %1357 = vmatmul.mubr.msk.bf16.gmra.mrb[16].mxu1 %vm404_vm1, %v1409_v25 }
  0x35   : > { %1360 = vmatprep.mubr.msk.bf16.mxu1 %vm404_vm1, %v1410_v27 }
  0x3a   : > { %1329 = vmatmul.mubr.msk.bf16.gmra.mrb[20].mxu0 %vm404_vm1, %v1395_v20 }
  0x3b   : > { %1332 = vmatprep.mubr.msk.bf16.mxu0 %vm404_vm1, %v1396_v22 }
  0x3c   : > { %1361 = vmatmul.mubr.msk.bf16.gmra.mrb[20].mxu1 %vm404_vm1, %v1411_v29 }
  0x3d   : > { %1364 = vmatprep.mubr.msk.bf16.mxu1 %vm404_vm1, %v1412_v30 }
  0x42   : > { %1333 = vmatmul.mubr.msk.bf16.gmra.mrb[24].mxu0 %vm404_vm1, %v1397_v24 }
  0x43   : > { %1336 = vmatprep.mubr.msk.bf16.mxu0 %vm404_vm1, %v1398_v26 }
  0x44   : > { %1365 = vmatmul.mubr.msk.bf16.gmra.mrb[24].mxu1 %vm404_vm1, %v1413_v31 }
  0x45   : > { %1368 = vmatprep.mubr.msk.bf16.mxu1 %vm404_vm1, %v1414_v32 }
  0x4a   : > { %1337 = vmatmul.mubr.msk.bf16.gmra.mrb[28].mxu0 %vm404_vm1, %v1399_v28 }
  0x4c   : > { %1369 = vmatmul.mubr.msk.bf16.gmra.mrb[28].mxu1 %vm404_vm1, %v1415_v33 }
  0xe5   : > { %v1310_v34 = vpop.f32.mrb[0].mxu0 }
  0xe6   : > { %v539_v35 = vpop.f32.mrb[1].mxu0  ;;  %v932_v39 = vmul.f32 %v1310_v34, %v1310_v34  ;;  %v798_v44 = vsel %vm794_vm2, %v1310_v34, 0.0 }
  0xe7   : > { %v930_v36 = vmul.f32 %v539_v35, %v539_v35  ;;  %v1311_v37 = vpop.f32.mrb[2].mxu0  ;;  %v795_v40 = vsel %vm794_vm2, %v539_v35, 0.0  ;;  %v1542_v13 = vpop.f32.mrb[0].mxu1 }
  0xe8   : > { %v542_v38 = vpop.f32.mrb[3].mxu0  ;;  %v933_v46 = vmul.f32 %v1311_v37, %v1311_v37  ;;  %v997_v50 = vsel %vm794_vm2, %v932_v39, 0.0  ;;  %v800_v51 = vsel %vm794_vm2, %v1311_v37, 0.0  ;;  %v1544_v17 = vpop.f32.mrb[1].mxu1 }
  0xe9   : > { %v796_v41 = vsel %vm794_vm2, %v542_v38, 0.0  ;;  %v931_v42 = vmul.f32 %v542_v38, %v542_v38  ;;  %v994_v45 = vsel %vm794_vm2, %v930_v36, 0.0  ;;  %v1548_v22 = vpop.f32.mrb[2].mxu1 }
  0xea   : > { %v797_v43 = vadd.f32 %v796_v41, %v795_v40  ;;  %v999_v56 = vsel %vm794_vm2, %v933_v46, 0.0  ;;  %v1550_v26 = vpop.f32.mrb[3].mxu1 }
  0xeb   : > { %v995_v47 = vsel %vm794_vm2, %v931_v42, 0.0 }
  0xec   : > { %v799_v48 = vadd.f32 %v798_v44, %v797_v43  ;;  %v996_v49 = vadd.f32 %v995_v47, %v994_v45 }
  0xed   : > { %v1314_v52 = vpop.f32.mrb[4].mxu0 }
  0xee   : > { %v998_v53 = vadd.f32 %v997_v50, %v996_v49  ;;  %v555_v54 = vpop.f32.mrb[5].mxu0  ;;  %v801_v55 = vadd.f32 %v800_v51, %v799_v48  ;;  %v936_v63 = vmul.f32 %v1314_v52, %v1314_v52  ;;  %v806_v5 = vsel %vm794_vm2, %v1314_v52, 0.0 }
  0xef   : > { %v802_v57 = vsel %vm794_vm2, %v555_v54, 0.0  ;;  %v934_v58 = vmul.f32 %v555_v54, %v555_v54  ;;  %v1315_v59 = vpop.f32.mrb[6].mxu0  ;;  %v1558_v41 = vpop.f32.mrb[4].mxu1 }
  0xf0   : > { %v803_v60 = vadd.f32 %v802_v57, %v801_v55  ;;  %v1000_v61 = vadd.f32 %v999_v56, %v998_v53  ;;  %v558_v62 = vpop.f32.mrb[7].mxu0  ;;  %v937_v6 = vmul.f32 %v1315_v59, %v1315_v59  ;;  %v1005_v10 = vsel %vm794_vm2, %v936_v63, 0.0  ;;  %v1560_v45 = vpop.f32.mrb[5].mxu1 }
  0xf1   : > { %v1001_v0 = vsel %vm794_vm2, %v934_v58, 0.0  ;;  %v804_v1 = vsel %vm794_vm2, %v558_v62, 0.0  ;;  %v935_v2 = vmul.f32 %v558_v62, %v558_v62  ;;  %v808_v11 = vsel %vm794_vm2, %v1315_v59, 0.0  ;;  %v1564_v50 = vpop.f32.mrb[6].mxu1 }
  0xf2   : > { %v1002_v3 = vadd.f32 %v1001_v0, %v1000_v61  ;;  %v805_v4 = vadd.f32 %v804_v1, %v803_v60  ;;  %v1007_v18 = vsel %vm794_vm2, %v937_v6, 0.0  ;;  %v1566_v54 = vpop.f32.mrb[7].mxu1 }
  0xf3   : > { %v1003_v7 = vsel %vm794_vm2, %v935_v2, 0.0 }
  0xf4   : > { %v807_v8 = vadd.f32 %v806_v5, %v805_v4  ;;  %v1004_v9 = vadd.f32 %v1003_v7, %v1002_v3 }
  0xf5   : > { %v1318_v12 = vpop.f32.mrb[8].mxu0 }
  0xf6   : > { %v1006_v14 = vadd.f32 %v1005_v10, %v1004_v9  ;;  %v571_v15 = vpop.f32.mrb[9].mxu0  ;;  %v809_v16 = vadd.f32 %v808_v11, %v807_v8  ;;  %v940_v27 = vmul.f32 %v1318_v12, %v1318_v12  ;;  %v814_v33 = vsel %vm794_vm2, %v1318_v12, 0.0 }
  0xf7   : > { %v810_v19 = vsel %vm794_vm2, %v571_v15, 0.0  ;;  %v938_v20 = vmul.f32 %v571_v15, %v571_v15  ;;  %v1319_v21 = vpop.f32.mrb[10].mxu0  ;;  %v1574_v5 = vpop.f32.mrb[8].mxu1 }
  0xf8   : > { %v811_v23 = vadd.f32 %v810_v19, %v809_v16  ;;  %v1008_v24 = vadd.f32 %v1007_v18, %v1006_v14  ;;  %v574_v25 = vpop.f32.mrb[11].mxu0  ;;  %v941_v34 = vmul.f32 %v1319_v21, %v1319_v21  ;;  %v1013_v38 = vsel %vm794_vm2, %v940_v27, 0.0  ;;  %v1576_v9 = vpop.f32.mrb[9].mxu1 }
  0xf9   : > { %v1009_v28 = vsel %vm794_vm2, %v938_v20, 0.0  ;;  %v812_v29 = vsel %vm794_vm2, %v574_v25, 0.0  ;;  %v939_v30 = vmul.f32 %v574_v25, %v574_v25  ;;  %v816_v39 = vsel %vm794_vm2, %v1319_v21, 0.0  ;;  %v1580_v15 = vpop.f32.mrb[10].mxu1 }
  0xfa   : > { %v1010_v31 = vadd.f32 %v1009_v28, %v1008_v24  ;;  %v813_v32 = vadd.f32 %v812_v29, %v811_v23  ;;  %v1015_v46 = vsel %vm794_vm2, %v941_v34, 0.0  ;;  %v1582_v20 = vpop.f32.mrb[11].mxu1 }
  0xfb   : > { %v1011_v35 = vsel %vm794_vm2, %v939_v30, 0.0 }
  0xfc   : > { %v815_v36 = vadd.f32 %v814_v33, %v813_v32  ;;  %v1012_v37 = vadd.f32 %v1011_v35, %v1010_v31 }
  0xfd   : > { %v1322_v40 = vpop.f32.mrb[12].mxu0 }
  0xfe   : > { %v1014_v42 = vadd.f32 %v1013_v38, %v1012_v37  ;;  %v587_v43 = vpop.f32.mrb[13].mxu0  ;;  %v817_v44 = vadd.f32 %v816_v39, %v815_v36  ;;  %v944_v55 = vmul.f32 %v1322_v40, %v1322_v40  ;;  %v822_v61 = vsel %vm794_vm2, %v1322_v40, 0.0 }
  0xff   : > { %v818_v47 = vsel %vm794_vm2, %v587_v43, 0.0  ;;  %v942_v48 = vmul.f32 %v587_v43, %v587_v43  ;;  %v1323_v49 = vpop.f32.mrb[14].mxu0  ;;  %v1590_v37 = vpop.f32.mrb[12].mxu1 }
 0x100   : > { %v819_v51 = vadd.f32 %v818_v47, %v817_v44  ;;  %v1016_v52 = vadd.f32 %v1015_v46, %v1014_v42  ;;  %v590_v53 = vpop.f32.mrb[15].mxu0  ;;  %v945_v62 = vmul.f32 %v1323_v49, %v1323_v49  ;;  %v1021_v2 = vsel %vm794_vm2, %v944_v55, 0.0  ;;  %v1592_v42 = vpop.f32.mrb[13].mxu1 }
 0x101   : > { %v1017_v56 = vsel %vm794_vm2, %v942_v48, 0.0  ;;  %v820_v57 = vsel %vm794_vm2, %v590_v53, 0.0  ;;  %v943_v58 = vmul.f32 %v590_v53, %v590_v53  ;;  %v824_v3 = vsel %vm794_vm2, %v1323_v49, 0.0  ;;  %v1596_v48 = vpop.f32.mrb[14].mxu1 }
 0x102   : > { %v1018_v59 = vadd.f32 %v1017_v56, %v1016_v52  ;;  %v821_v60 = vadd.f32 %v820_v57, %v819_v51  ;;  %v1023_v10 = vsel %vm794_vm2, %v945_v62, 0.0  ;;  %v1598_v53 = vpop.f32.mrb[15].mxu1 }
 0x103   : > { %v1019_v63 = vsel %vm794_vm2, %v943_v58, 0.0 }
 0x104   : > { %v823_v0 = vadd.f32 %v822_v61, %v821_v60  ;;  %v1020_v1 = vadd.f32 %v1019_v63, %v1018_v59 }
 0x105   : > { %v1326_v4 = vpop.f32.mrb[16].mxu0 }
 0x106   : > { %v1022_v6 = vadd.f32 %v1021_v2, %v1020_v1  ;;  %v603_v7 = vpop.f32.mrb[17].mxu0  ;;  %v825_v8 = vadd.f32 %v824_v3, %v823_v0  ;;  %v948_v21 = vmul.f32 %v1326_v4, %v1326_v4  ;;  %v830_v29 = vsel %vm794_vm2, %v1326_v4, 0.0 }
 0x107   : > { %v826_v11 = vsel %vm794_vm2, %v603_v7, 0.0  ;;  %v946_v12 = vmul.f32 %v603_v7, %v603_v7  ;;  %v1327_v14 = vpop.f32.mrb[18].mxu0 }
 0x108   : > { %v827_v16 = vadd.f32 %v826_v11, %v825_v8  ;;  %v1024_v18 = vadd.f32 %v1023_v10, %v1022_v6  ;;  %v606_v19 = vpop.f32.mrb[19].mxu0  ;;  %v949_v30 = vmul.f32 %v1327_v14, %v1327_v14  ;;  %v1029_v34 = vsel %vm794_vm2, %v948_v21, 0.0  ;;  %v1606_v6 = vpop.f32.mrb[16].mxu1 }
 0x109   : > { %v1025_v23 = vsel %vm794_vm2, %v946_v12, 0.0  ;;  %v828_v24 = vsel %vm794_vm2, %v606_v19, 0.0  ;;  %v947_v25 = vmul.f32 %v606_v19, %v606_v19  ;;  %v832_v35 = vsel %vm794_vm2, %v1327_v14, 0.0  ;;  %v1608_v11 = vpop.f32.mrb[17].mxu1 }
 0x10a   : > { %v1026_v27 = vadd.f32 %v1025_v23, %v1024_v18  ;;  %v829_v28 = vadd.f32 %v828_v24, %v827_v16  ;;  %v1031_v43 = vsel %vm794_vm2, %v949_v30, 0.0  ;;  %v1612_v19 = vpop.f32.mrb[18].mxu1 }
 0x10b   : > { %v1027_v31 = vsel %vm794_vm2, %v947_v25, 0.0  ;;  %v1614_v25 = vpop.f32.mrb[19].mxu1 }
 0x10c   : > { %v831_v32 = vadd.f32 %v830_v29, %v829_v28  ;;  %v1028_v33 = vadd.f32 %v1027_v31, %v1026_v27 }
 0x10d   : > { %v1330_v36 = vpop.f32.mrb[20].mxu0 }
 0x10e   : > { %v1030_v38 = vadd.f32 %v1029_v34, %v1028_v33  ;;  %v619_v39 = vpop.f32.mrb[21].mxu0  ;;  %v833_v40 = vadd.f32 %v832_v35, %v831_v32  ;;  %v952_v55 = vmul.f32 %v1330_v36, %v1330_v36  ;;  %v838_v61 = vsel %vm794_vm2, %v1330_v36, 0.0 }
 0x10f   : > { %v834_v44 = vsel %vm794_vm2, %v619_v39, 0.0  ;;  %v950_v46 = vmul.f32 %v619_v39, %v619_v39  ;;  %v1331_v47 = vpop.f32.mrb[22].mxu0 }
 0x110   : > { %v835_v49 = vadd.f32 %v834_v44, %v833_v40  ;;  %v1032_v51 = vadd.f32 %v1031_v43, %v1030_v38  ;;  %v622_v52 = vpop.f32.mrb[23].mxu0  ;;  %v953_v62 = vmul.f32 %v1331_v47, %v1331_v47  ;;  %v1037_v2 = vsel %vm794_vm2, %v952_v55, 0.0  ;;  %v1622_v44 = vpop.f32.mrb[20].mxu1 }
 0x111   : > { %v1033_v56 = vsel %vm794_vm2, %v950_v46, 0.0  ;;  %v836_v57 = vsel %vm794_vm2, %v622_v52, 0.0  ;;  %v951_v58 = vmul.f32 %v622_v52, %v622_v52  ;;  %v840_v3 = vsel %vm794_vm2, %v1331_v47, 0.0 }
 0x112   : > { %v1034_v59 = vadd.f32 %v1033_v56, %v1032_v51  ;;  %v837_v60 = vadd.f32 %v836_v57, %v835_v49  ;;  %v1039_v12 = vsel %vm794_vm2, %v953_v62, 0.0  ;;  %v1624_v51 = vpop.f32.mrb[21].mxu1 }
 0x113   : > { %v1035_v63 = vsel %vm794_vm2, %v951_v58, 0.0  ;;  %v1628_v58 = vpop.f32.mrb[22].mxu1 }
 0x114   : > { %v839_v0 = vadd.f32 %v838_v61, %v837_v60  ;;  %v1036_v1 = vadd.f32 %v1035_v63, %v1034_v59  ;;  %v1630_v62 = vpop.f32.mrb[23].mxu1 }
 0x115   : > { %v1334_v4 = vpop.f32.mrb[24].mxu0 }
 0x116   : > { %v1038_v7 = vadd.f32 %v1037_v2, %v1036_v1  ;;  %v635_v8 = vpop.f32.mrb[25].mxu0  ;;  %v841_v10 = vadd.f32 %v840_v3, %v839_v0  ;;  %v956_v27 = vmul.f32 %v1334_v4, %v1334_v4  ;;  %v846_v33 = vsel %vm794_vm2, %v1334_v4, 0.0 }
 0x117   : > { %v842_v14 = vsel %vm794_vm2, %v635_v8, 0.0  ;;  %v954_v16 = vmul.f32 %v635_v8, %v635_v8  ;;  %v1335_v18 = vpop.f32.mrb[26].mxu0 }
 0x118   : > { %v843_v21 = vadd.f32 %v842_v14, %v841_v10  ;;  %v1040_v23 = vadd.f32 %v1039_v12, %v1038_v7  ;;  %v638_v24 = vpop.f32.mrb[27].mxu0  ;;  %v957_v34 = vmul.f32 %v1335_v18, %v1335_v18  ;;  %v1045_v39 = vsel %vm794_vm2, %v956_v27, 0.0 }
 0x119   : > { %v1041_v28 = vsel %vm794_vm2, %v954_v16, 0.0  ;;  %v844_v29 = vsel %vm794_vm2, %v638_v24, 0.0  ;;  %v955_v30 = vmul.f32 %v638_v24, %v638_v24  ;;  %v848_v40 = vsel %vm794_vm2, %v1335_v18, 0.0  ;;  %v1642_v24 = vpop.f32.mrb[24].mxu1 }
 0x11a   : > { %v1042_v31 = vadd.f32 %v1041_v28, %v1040_v23  ;;  %v845_v32 = vadd.f32 %v844_v29, %v843_v21  ;;  %v1047_v52 = vsel %vm794_vm2, %v957_v34, 0.0  ;;  %v962_v12 = vmul.f32 %v1544_v17, %v1544_v17  ;;  %v1644_v29 = vpop.f32.mrb[25].mxu1 }
 0x11b   : > { %v1043_v35 = vsel %vm794_vm2, %v955_v30, 0.0  ;;  %v858_v23 = vsel %vm794_vm2, %v1544_v17, 0.0  ;;  %v964_v17 = vmul.f32 %v1542_v13, %v1542_v13 }
 0x11c   : > { %v847_v36 = vadd.f32 %v846_v33, %v845_v32  ;;  %v1044_v38 = vadd.f32 %v1043_v35, %v1042_v31  ;;  %v1057_v31 = vsel %vm794_vm2, %v962_v12, 0.0  ;;  %v963_v32 = vmul.f32 %v1550_v26, %v1550_v26  ;;  %v1650_v33 = vpop.f32.mrb[26].mxu1 }
 0x11d   : > { %v1338_v43 = vpop.f32.mrb[28].mxu0  ;;  %v870_v12 = vsel %vm794_vm2, %v1558_v41, 0.0 }
 0x11e   : > { %v1046_v46 = vadd.f32 %v1045_v39, %v1044_v38  ;;  %v651_v47 = vpop.f32.mrb[29].mxu0  ;;  %v849_v49 = vadd.f32 %v848_v40, %v847_v36  ;;  %v960_v63 = vmul.f32 %v1338_v43, %v1338_v43  ;;  %v854_v7 = vsel %vm794_vm2, %v1338_v43, 0.0  ;;  %v1652_v36 = vpop.f32.mrb[27].mxu1 }
 0x11f   : > { %v850_v55 = vsel %vm794_vm2, %v651_v47, 0.0  ;;  %v958_v56 = vmul.f32 %v651_v47, %v651_v47  ;;  %v1339_v57 = vpop.f32.mrb[30].mxu0  ;;  %v860_v38 = vsel %vm794_vm2, %v1550_v26, 0.0  ;;  %v862_v43 = vsel %vm794_vm2, %v1542_v13, 0.0 }
 0x120   : > { %v851_v59 = vadd.f32 %v850_v55, %v849_v49  ;;  %v1048_v60 = vadd.f32 %v1047_v52, %v1046_v46  ;;  %v654_v61 = vpop.f32.mrb[31].mxu0  ;;  %v961_v8 = vmul.f32 %v1339_v57, %v1339_v57  ;;  %v1053_v18 = vsel %vm794_vm2, %v960_v63, 0.0 }
 0x121   : > { %v1049_v0 = vsel %vm794_vm2, %v958_v56, 0.0  ;;  %v852_v1 = vsel %vm794_vm2, %v654_v61, 0.0  ;;  %v959_v2 = vmul.f32 %v654_v61, %v654_v61  ;;  %v856_v21 = vsel %vm794_vm2, %v1339_v57, 0.0 }
 0x122   : > { %v1050_v3 = vadd.f32 %v1049_v0, %v1048_v60  ;;  %v853_v4 = vadd.f32 %v852_v1, %v851_v59  ;;  %v1055_v30 = vsel %vm794_vm2, %v961_v8, 0.0  ;;  %v965_v46 = vmul.f32 %v1548_v22, %v1548_v22  ;;  %v1670_v59 = vpop.f32.mrb[28].mxu1 }
 0x123   : > { %v1051_v10 = vsel %vm794_vm2, %v959_v2, 0.0  ;;  %v1059_v47 = vsel %vm794_vm2, %v963_v32, 0.0  ;;  %v966_v49 = vmul.f32 %v1560_v45, %v1560_v45  ;;  %v1061_v56 = vsel %vm794_vm2, %v964_v17, 0.0  ;;  %v1672_v61 = vpop.f32.mrb[29].mxu1 }
 0x124   : > { %v855_v14 = vadd.f32 %v854_v7, %v853_v4  ;;  %v1052_v16 = vadd.f32 %v1051_v10, %v1050_v3  ;;  %v864_v26 = vsel %vm794_vm2, %v1548_v22, 0.0  ;;  %v866_v57 = vsel %vm794_vm2, %v1560_v45, 0.0  ;;  %v1678_v2 = vpop.f32.mrb[30].mxu1 }
 0x125   : > { %v1063_v63 = vsel %vm794_vm2, %v965_v46, 0.0  ;;  %v1065_v0 = vsel %vm794_vm2, %v966_v49, 0.0  ;;  %v967_v1 = vmul.f32 %v1566_v54, %v1566_v54  ;;  %v1680_v4 = vpop.f32.mrb[31].mxu1  ;;  %v968_v45 = vmul.f32 %v1558_v41, %v1558_v41 }
 0x126   : > { %v1054_v27 = vadd.f32 %v1053_v18, %v1052_v16  ;;  %v857_v28 = vadd.f32 %v856_v21, %v855_v14  ;;  %v868_v7 = vsel %vm794_vm2, %v1566_v54, 0.0  ;;  %v969_v14 = vmul.f32 %v1564_v50, %v1564_v50 }
 0x127   : > { %v1067_v16 = vsel %vm794_vm2, %v967_v1, 0.0  ;;  %v970_v18 = vmul.f32 %v1576_v9, %v1576_v9  ;;  %v872_v54 = vsel %vm794_vm2, %v1564_v50, 0.0  ;;  %v876_v50 = vsel %vm794_vm2, %v1582_v20, 0.0 }
 0x128   : > { %v859_v34 = vadd.f32 %v858_v23, %v857_v28  ;;  %v1056_v35 = vadd.f32 %v1055_v30, %v1054_v27  ;;  %v1069_v27 = vsel %vm794_vm2, %v968_v45, 0.0  ;;  %v874_v28 = vsel %vm794_vm2, %v1576_v9, 0.0 }
 0x129   : > { %v1073_v32 = vsel %vm794_vm2, %v970_v18, 0.0  ;;  %v878_v9 = vsel %vm794_vm2, %v1574_v5, 0.0  ;;  %v976_v1 = vmul.f32 %v1590_v37, %v1590_v37  ;;  %v977_v45 = vmul.f32 %v1596_v48, %v1596_v48 }
 0x12a   : > { %v1058_v39 = vadd.f32 %v1057_v31, %v1056_v35  ;;  %v861_v40 = vadd.f32 %v860_v38, %v859_v34  ;;  %v1071_v31 = vsel %vm794_vm2, %v969_v14, 0.0  ;;  %v971_v34 = vmul.f32 %v1582_v20, %v1582_v20 }
 0x12b   : > { %v972_v38 = vmul.f32 %v1574_v5, %v1574_v5  ;;  %v880_v20 = vsel %vm794_vm2, %v1580_v15, 0.0  ;;  %v1085_v14 = vsel %vm794_vm2, %v976_v1, 0.0 }
 0x12c   : > { %v863_v52 = vadd.f32 %v862_v43, %v861_v40  ;;  %v1060_v55 = vadd.f32 %v1059_v47, %v1058_v39  ;;  %v973_v43 = vmul.f32 %v1580_v15, %v1580_v15  ;;  %v1075_v46 = vsel %vm794_vm2, %v971_v34, 0.0 }
 0x12d   : > { %v974_v47 = vmul.f32 %v1592_v42, %v1592_v42  ;;  %v884_v15 = vsel %vm794_vm2, %v1598_v53, 0.0 }
 0x12e   : > { %v1062_v13 = vadd.f32 %v1061_v56, %v1060_v55  ;;  %v865_v60 = vadd.f32 %v864_v26, %v863_v52  ;;  %v1077_v55 = vsel %vm794_vm2, %v972_v38, 0.0  ;;  %v882_v56 = vsel %vm794_vm2, %v1592_v42, 0.0 }
 0x12f   : > { %v886_v42 = vsel %vm794_vm2, %v1590_v37, 0.0 }
 0x130   : > { %v867_v3 = vadd.f32 %v866_v57, %v865_v60  ;;  %v1064_v22 = vadd.f32 %v1063_v63, %v1062_v13  ;;  %v1079_v57 = vsel %vm794_vm2, %v973_v43, 0.0  ;;  %v1081_v13 = vsel %vm794_vm2, %v974_v47, 0.0 }
 0x131   : > { %v975_v60 = vmul.f32 %v1598_v53, %v1598_v53  ;;  %v888_v53 = vsel %vm794_vm2, %v1596_v48, 0.0  ;;  %v892_v48 = vsel %vm794_vm2, %v1614_v25, 0.0 }
 0x132   : > { %v1066_v8 = vadd.f32 %v1065_v0, %v1064_v22  ;;  %v869_v10 = vadd.f32 %v868_v7, %v867_v3 }
 0x133   : > { %v1083_v7 = vsel %vm794_vm2, %v975_v60, 0.0 }
 0x134   : > { %v871_v21 = vadd.f32 %v870_v12, %v869_v10  ;;  %v1068_v23 = vadd.f32 %v1067_v16, %v1066_v8  ;;  %v978_v8 = vmul.f32 %v1608_v11, %v1608_v11  ;;  %v890_v16 = vsel %vm794_vm2, %v1608_v11, 0.0 }
 0x135   : > { %v894_v11 = vsel %vm794_vm2, %v1606_v6, 0.0 }
 0x136   : > { %v1070_v30 = vadd.f32 %v1069_v27, %v1068_v23  ;;  %v873_v41 = vadd.f32 %v872_v54, %v871_v21  ;;  %v1087_v21 = vsel %vm794_vm2, %v977_v45, 0.0  ;;  %v1089_v23 = vsel %vm794_vm2, %v978_v8, 0.0 }
 0x137   : > { %v979_v27 = vmul.f32 %v1614_v25, %v1614_v25  ;;  %v896_v25 = vsel %vm794_vm2, %v1612_v19, 0.0  ;;  %v988_v45 = vmul.f32 %v1642_v24, %v1642_v24 }
 0x138   : > { %v875_v35 = vadd.f32 %v874_v28, %v873_v41  ;;  %v1072_v17 = vadd.f32 %v1071_v31, %v1070_v30  ;;  %v980_v30 = vmul.f32 %v1606_v6, %v1606_v6 }
 0x139   : > { %v1091_v34 = vsel %vm794_vm2, %v979_v27, 0.0 }
 0x13a   : > { %v1074_v39 = vadd.f32 %v1073_v32, %v1072_v17  ;;  %v877_v40 = vadd.f32 %v876_v50, %v875_v35  ;;  %v981_v32 = vmul.f32 %v1612_v19, %v1612_v19  ;;  %v982_v35 = vmul.f32 %v1624_v51, %v1624_v51 }
 0x13b   : > { %v1093_v50 = vsel %vm794_vm2, %v980_v30, 0.0  ;;  %v900_v19 = vsel %vm794_vm2, %v1630_v62, 0.0 }
 0x13c   : > { %v879_v49 = vadd.f32 %v878_v9, %v877_v40  ;;  %v1076_v52 = vadd.f32 %v1075_v46, %v1074_v39  ;;  %v898_v39 = vsel %vm794_vm2, %v1624_v51, 0.0  ;;  %v1095_v9 = vsel %vm794_vm2, %v981_v32, 0.0 }
 0x13d   : > { %v1097_v43 = vsel %vm794_vm2, %v982_v35, 0.0  ;;  %v983_v46 = vmul.f32 %v1630_v62, %v1630_v62  ;;  %v902_v51 = vsel %vm794_vm2, %v1622_v44, 0.0  ;;  %v904_v62 = vsel %vm794_vm2, %v1628_v58, 0.0 }
 0x13e   : > { %v1078_v26 = vadd.f32 %v1077_v55, %v1076_v52  ;;  %v881_v5 = vadd.f32 %v880_v20, %v879_v49  ;;  %v984_v52 = vmul.f32 %v1622_v44, %v1622_v44 }
 0x140   : > { %v883_v63 = vadd.f32 %v882_v56, %v881_v5  ;;  %v1080_v0 = vadd.f32 %v1079_v57, %v1078_v26  ;;  %v985_v56 = vmul.f32 %v1628_v58, %v1628_v58  ;;  %v1099_v26 = vsel %vm794_vm2, %v983_v46, 0.0 }
 0x141   : > { %v986_v5 = vmul.f32 %v1644_v29, %v1644_v29  ;;  %v1101_v60 = vsel %vm794_vm2, %v984_v52, 0.0  ;;  %v908_v58 = vsel %vm794_vm2, %v1652_v36, 0.0 }
 0x142   : > { %v1082_v3 = vadd.f32 %v1081_v13, %v1080_v0  ;;  %v885_v22 = vadd.f32 %v884_v15, %v883_v63  ;;  %v906_v63 = vsel %vm794_vm2, %v1644_v29, 0.0  ;;  %v1103_v1 = vsel %vm794_vm2, %v985_v56, 0.0 }
 0x143   : > { %v1105_v15 = vsel %vm794_vm2, %v986_v5, 0.0  ;;  %v910_v29 = vsel %vm794_vm2, %v1642_v24, 0.0 }
 0x144   : > { %v887_v10 = vadd.f32 %v886_v42, %v885_v22  ;;  %v1084_v12 = vadd.f32 %v1083_v7, %v1082_v3  ;;  %v987_v3 = vmul.f32 %v1652_v36, %v1652_v36  ;;  %v912_v36 = vsel %vm794_vm2, %v1650_v33, 0.0 }
 0x146   : > { %v1086_v18 = vadd.f32 %v1085_v14, %v1084_v12  ;;  %v889_v37 = vadd.f32 %v888_v53, %v887_v10  ;;  %v989_v10 = vmul.f32 %v1650_v33, %v1650_v33  ;;  %v1107_v12 = vsel %vm794_vm2, %v987_v3, 0.0 }
 0x147   : > { %v990_v14 = vmul.f32 %v1672_v61, %v1672_v61  ;;  %v916_v33 = vsel %vm794_vm2, %v1680_v4, 0.0 }
 0x148   : > { %v891_v54 = vadd.f32 %v890_v16, %v889_v37  ;;  %v1088_v28 = vadd.f32 %v1087_v21, %v1086_v18  ;;  %v1109_v18 = vsel %vm794_vm2, %v988_v45, 0.0  ;;  %v914_v37 = vsel %vm794_vm2, %v1672_v61, 0.0 }
 0x149   : > { %v1113_v27 = vsel %vm794_vm2, %v990_v14, 0.0 }
 0x14a   : > { %v1090_v41 = vadd.f32 %v1089_v23, %v1088_v28  ;;  %v893_v31 = vadd.f32 %v892_v48, %v891_v54  ;;  %v1111_v23 = vsel %vm794_vm2, %v989_v10, 0.0  ;;  %v991_v54 = vmul.f32 %v1680_v4, %v1680_v4 }
 0x14b   : > { %v992_v48 = vmul.f32 %v1670_v59, %v1670_v59 }
 0x14c   : > { %v895_v17 = vadd.f32 %v894_v11, %v893_v31  ;;  %v1092_v38 = vadd.f32 %v1091_v34, %v1090_v41  ;;  %v918_v31 = vsel %vm794_vm2, %v1670_v59, 0.0  ;;  %v993_v11 = vmul.f32 %v1678_v2, %v1678_v2 }
 0x14d   : > { %v1115_v32 = vsel %vm794_vm2, %v991_v54, 0.0 }
 0x14e   : > { %v1094_v40 = vadd.f32 %v1093_v50, %v1092_v38  ;;  %v897_v6 = vadd.f32 %v896_v25, %v895_v17  ;;  %v1117_v17 = vsel %vm794_vm2, %v992_v48, 0.0  ;;  %v920_v38 = vsel %vm794_vm2, %v1678_v2, 0.0 }
 0x14f   : > { %v1119_v25 = vsel %vm794_vm2, %v993_v11, 0.0 }
 0x150   : > { %v899_v47 = vadd.f32 %v898_v39, %v897_v6  ;;  %v1096_v49 = vadd.f32 %v1095_v9, %v1094_v40 }
 0x152   : > { %v1098_v55 = vadd.f32 %v1097_v43, %v1096_v49  ;;  %v901_v20 = vadd.f32 %v900_v19, %v899_v47 }
 0x154   : > { %v903_v57 = vadd.f32 %v902_v51, %v901_v20  ;;  %v1100_v13 = vadd.f32 %v1099_v26, %v1098_v55 }
 0x156   : > { %v1102_v0 = vadd.f32 %v1101_v60, %v1100_v13  ;;  %v905_v44 = vadd.f32 %v904_v62, %v903_v57 }
 0x158   : > { %v907_v22 = vadd.f32 %v906_v63, %v905_v44  ;;  %v1104_v42 = vadd.f32 %v1103_v1, %v1102_v0 }
 0x15a   : > { %v1106_v7 = vadd.f32 %v1105_v15, %v1104_v42  ;;  %v909_v8 = vadd.f32 %v908_v58, %v907_v22 }
 0x15c   : > { %v911_v53 = vadd.f32 %v910_v29, %v909_v8  ;;  %v1108_v16 = vadd.f32 %v1107_v12, %v1106_v7 }
 0x15e   : > { %v1110_v21 = vadd.f32 %v1109_v18, %v1108_v16  ;;  %v913_v24 = vadd.f32 %v912_v36, %v911_v53 }
 0x160   : > { %v915_v28 = vadd.f32 %v914_v37, %v913_v24  ;;  %v1112_v30 = vadd.f32 %v1111_v23, %v1110_v21 }
 0x162   : > { %v1114_v41 = vadd.f32 %v1113_v27, %v1112_v30  ;;  %v917_v61 = vadd.f32 %v916_v33, %v915_v28 }
 0x164   : > { %v919_v34 = vadd.f32 %v918_v31, %v917_v61  ;;  %v1116_v35 = vadd.f32 %v1115_v32, %v1114_v41 }
 0x166   : > { %v921_v50 = vadd.f32 %v920_v38, %v919_v34  ;;  %v1118_v4 = vadd.f32 %v1117_v17, %v1116_v35 }
 0x168   : > { %v922_v39 = vrot.slane %v921_v50, 4  ;;  %v1120_v40 = vadd.f32 %v1119_v25, %v1118_v4 }
 0x16a   : > { %v923_v59 = vadd.f32 %v922_v39, %v921_v50  ;;  %v1121_v6 = vrot.slane %v1120_v40, 4 }
 0x16c   : > { %v924_v9 = vrot.slane %v923_v59, 2  ;;  %v1122_v43 = vadd.f32 %v1121_v6, %v1120_v40 }
 0x16e   : > { %v925_v46 = vadd.f32 %v924_v9, %v923_v59  ;;  %v1123_v47 = vrot.slane %v1122_v43, 2 }
 0x170   : > { %v926_v49 = vrot.slane %v925_v46, 1  ;;  %v1124_v52 = vadd.f32 %v1123_v47, %v1122_v43 }
 0x172   : > { %v927_v2 = vadd.f32 %v926_v49, %v925_v46  ;;  %v1125_v19 = vrot.slane %v1124_v52, 1 }
 0x174   : > { %929 = vst.msk [vmem:[%s174_s23] sm:$0x1] %vm928_vm3, %v927_v2  ;;  %v1126_v55 = vadd.f32 %v1125_v19, %v1124_v52 }
 0x176   : > { %1127 = vst.msk [vmem:[%s177_s26] sm:$0x1] %vm928_vm3, %v1126_v55 }
 0x177 PF: > { %s14_s12 = sadd.s32 1, %s1422_s12  }
 0x178   : > { %p11_p5 = scmp.ge.s32.totalorder %s14_s12, 4  }
 0x17a   :  { %13 = sbr.rel (!%p11_p5) target bundleno = 1 (0x1), region = 70 }

// kernel: residual_block_forward.9
= control target key start
LH: loop header
LB: loop body
LE: loop exit
PB: predicated region body
PF: predicated region fallthrough
CT: control target
= control target key end

     0   :  { %s1801_s24 = smov 0   ;;  %s2562_s0 = inlined_call_operand.vmem [shape: f32[1024,8], index: 0, kind: input, shape index: {}]   ;;  %s2563_s1 = inlined_call_operand.vmem [shape: f32[1,8], index: 1, kind: input, shape index: {}]   ;;  %s2564_s2 = inlined_call_operand.vmem [shape: f32[1,8], index: 2, kind: input, shape index: {}]   ;;  %s2565_s3 = inlined_call_operand.vmem [shape: bf16[1024,4], index: 3, kind: input, shape index: {}]   ;;  %s2566_s4 = inlined_call_operand.vmem [shape: bf16[4,8], index: 4, kind: input, shape index: {}]   ;;  %s2567_s5 = inlined_call_operand.vmem [shape: f32[1,8], index: 5, kind: input, shape index: {}]   ;;  %s2568_s6 = inlined_call_operand.vmem [shape: f32[1,8], index: 6, kind: input, shape index: {}]   ;;  %s2569_s7 = inlined_call_operand.vmem [shape: f32[1024,8], index: 7, kind: output, shape index: {}]  }
   0x1 LB: > { %s1529_s25 = sadd.s32 4294967295, %s1759_s24   ;;  %p1533_p0 = scmp.ge.s32.totalorder %s1759_s24, 1  ;;  %s1759_s24 = sphi %s1801_s24, %s17_s24  }
   0x2   : > { %p249_p1 = scmp.lt.s32.totalorder %s1759_s24, 3 }
   0x4   : > { %p250_p2 = pnand %p1533_p0, %p249_p1 }
   0x6   : > { %253 = sbr.rel (%p250_p2) target bundleno = 303 (0x12f), region = 48 }
   0xd   : > { %v575_v0 = vld [vmem:[%s2566_s4] sm:$0x3]  ;;  %vm833_vm0 = vcmask 1041408   ;;  %s1534_s28 = sshll.u32 %s1529_s25, 6  ;;  %vm736_vm1 = vcmask 31744   ;;  %vm1396_vm2 = vcmask 64512  }
   0xe   : > { %1711 = vmatprep.subr.msk.bf16.mxu0 %vm833_vm0, %v575_v0  ;;  %1712 = vmatprep.subr.msk.bf16.mxu1 %vm833_vm0, %v575_v0  ;;  %v835_v1 = vsel %vm833_vm0, %v575_v0, 0  ;;  %p287_p3 = scmp.lt.s32.totalorder %s1534_s28, 127  ;;  %v1896_v35 = vld [vmem:[%s2563_s1] ss:$0 sm:$0xff] }
   0xf   : > { %1644 = vmatpush3.bf16.msra.mxu0 %v835_v1  ;;  %1710 = vmatpush3.bf16.msra.mxu1 %v835_v1  ;;  %v1904_v39 = vld [vmem:[%s2564_s2] ss:$0 sm:$0xff] }
  0x10   : > { %s2611_s28 = smov (!%p287_p3, %s1534_s28), 127 }
  0x11   : > { %s1537_s29 = sshll.u32 %s2611_s28, 2  ;;  %s1535_s10 = sshll.u32 %s2611_s28, 3 }
  0x12   : > { %s1818_s9 = scalar_lea.vmem %s2565_s3, %s1537_s29  ;;  %s1890_s13 = scalar_lea.vmem %s2562_s0, %s1535_s10 }
  0x13   : > { %v1721_v2 = vld [vmem:[%s1818_s9] sm:$0xff]   ;;  %v1723_v4 = vld [vmem:[%s1818_s9 + $0x8] sm:$0xff]   ;;  %v1725_v6 = vld [vmem:[%s1818_s9 + $0x10] sm:$0xff]   ;;  %s2251_s25 = scalar_lea.vmem %s2569_s7, %s1535_s10 }
  0x14   : > { %v1722_v3 = vld [vmem:[%s1818_s9 + $0x80] sm:$0xff]   ;;  %1645 = vmatprep.mubr.msk.bf16.mxu0 %vm736_vm1, %v1721_v2  ;;  %v1724_v5 = vld [vmem:[%s1818_s9 + $0x88] sm:$0xff]   ;;  %v1726_v7 = vld [vmem:[%s1818_s9 + $0x90] sm:$0xff]  }
  0x15   : > { %1677 = vmatprep.mubr.msk.bf16.mxu1 %vm736_vm1, %v1722_v3  ;;  %1646 = vmatmul.mubr.msk.bf16.vlgmr.msra.gmra.mrb[0].mxu0 %vm736_vm1, %v1723_v4  ;;  %v1727_v8 = vld [vmem:[%s1818_s9 + $0x18] sm:$0xff]   ;;  %v1729_v10 = vld [vmem:[%s1818_s9 + $0x20] sm:$0xff]   ;;  %v1731_v12 = vld [vmem:[%s1818_s9 + $0x28] sm:$0xff]  }
  0x16   : > { %1678 = vmatmul.mubr.msk.bf16.vlgmr.msra.gmra.mrb[0].mxu1 %vm736_vm1, %v1724_v5  ;;  %1649 = vmatprep.mubr.msk.bf16.mxu0 %vm736_vm1, %v1725_v6  ;;  %v1728_v9 = vld [vmem:[%s1818_s9 + $0x98] sm:$0xff]   ;;  %v1730_v11 = vld [vmem:[%s1818_s9 + $0xa0] sm:$0xff]   ;;  %v1732_v13 = vld [vmem:[%s1818_s9 + $0xa8] sm:$0xff]  }
  0x17   : > { %1681 = vmatprep.mubr.msk.bf16.mxu1 %vm736_vm1, %v1726_v7  ;;  %v1733_v14 = vld [vmem:[%s1818_s9 + $0x30] sm:$0xff]   ;;  %v1735_v16 = vld [vmem:[%s1818_s9 + $0x38] sm:$0xff]   ;;  %v1737_v18 = vld [vmem:[%s1818_s9 + $0x40] sm:$0xff]  }
  0x18   : > { %v1734_v15 = vld [vmem:[%s1818_s9 + $0xb0] sm:$0xff]   ;;  %v1736_v17 = vld [vmem:[%s1818_s9 + $0xb8] sm:$0xff]   ;;  %v1738_v19 = vld [vmem:[%s1818_s9 + $0xc0] sm:$0xff]  }
  0x19   : > { %v1739_v20 = vld [vmem:[%s1818_s9 + $0x48] sm:$0xff]   ;;  %v1741_v22 = vld [vmem:[%s1818_s9 + $0x50] sm:$0xff]   ;;  %v1743_v24 = vld [vmem:[%s1818_s9 + $0x58] sm:$0xff]  }
  0x1a   : > { %v1740_v21 = vld [vmem:[%s1818_s9 + $0xc8] sm:$0xff]   ;;  %v1742_v23 = vld [vmem:[%s1818_s9 + $0xd0] sm:$0xff]   ;;  %v1744_v25 = vld [vmem:[%s1818_s9 + $0xd8] sm:$0xff]  }
  0x1b   : > { %v1745_v26 = vld [vmem:[%s1818_s9 + $0x60] sm:$0xff]   ;;  %v1747_v28 = vld [vmem:[%s1818_s9 + $0x68] sm:$0xff]   ;;  %v1749_v30 = vld [vmem:[%s1818_s9 + $0x70] sm:$0xff]  }
  0x1c   : > { %v1746_v27 = vld [vmem:[%s1818_s9 + $0xe0] sm:$0xff]   ;;  %v1748_v29 = vld [vmem:[%s1818_s9 + $0xe8] sm:$0xff]   ;;  %v1750_v31 = vld [vmem:[%s1818_s9 + $0xf0] sm:$0xff]  }
  0x1d   : > { %1650 = vmatmul.mubr.msk.bf16.gmra.mrb[4].mxu0 %vm736_vm1, %v1727_v8  ;;  %v1751_v32 = vld [vmem:[%s1818_s9 + $0x78] sm:$0xff]   ;;  %v307_v34 = vld [vmem:[%s1890_s13 + $0x10] sm:$0xff]  ;;  %v305_v37 = vld [vmem:[%s1890_s13] sm:$0xff] }
  0x1e   : > { %1682 = vmatmul.mubr.msk.bf16.gmra.mrb[4].mxu1 %vm736_vm1, %v1728_v9  ;;  %1653 = vmatprep.mubr.msk.bf16.mxu0 %vm736_vm1, %v1729_v10  ;;  %v1752_v33 = vld [vmem:[%s1818_s9 + $0xf8] sm:$0xff]   ;;  %v339_v36 = vld [vmem:[%s1890_s13 + $0x110] sm:$0xff]  ;;  %v337_v38 = vld [vmem:[%s1890_s13 + $0x100] sm:$0xff]  ;;  %v378_v43 = vmul.f32 %v1896_v35, %v307_v34  ;;  %v376_v48 = vmul.f32 %v1896_v35, %v305_v37 }
  0x1f   : > { %1685 = vmatprep.mubr.msk.bf16.mxu1 %vm736_vm1, %v1730_v11  ;;  %v308_v40 = vld [vmem:[%s1890_s13 + $0x18] sm:$0xff]  ;;  %v306_v42 = vld [vmem:[%s1890_s13 + $0x8] sm:$0xff]  ;;  %v311_v45 = vld [vmem:[%s1890_s13 + $0x30] sm:$0xff]  ;;  %v410_v47 = vmul.f32 %v1896_v35, %v339_v36  ;;  %v408_v52 = vmul.f32 %v1896_v35, %v337_v38 }
  0x20   : > { %v340_v41 = vld [vmem:[%s1890_s13 + $0x118] sm:$0xff]  ;;  %v338_v44 = vld [vmem:[%s1890_s13 + $0x108] sm:$0xff]  ;;  %v343_v46 = vld [vmem:[%s1890_s13 + $0x130] sm:$0xff]  ;;  %v379_v53 = vmul.f32 %v1896_v35, %v308_v40  ;;  %v377_v57 = vmul.f32 %v1896_v35, %v306_v42  ;;  %v382_v59 = vmul.f32 %v1896_v35, %v311_v45  ;;  %v1929_v62 = vadd.f32 %v1904_v39, %v378_v43 }
  0x21   : > { %v309_v49 = vld [vmem:[%s1890_s13 + $0x20] sm:$0xff]  ;;  %v312_v51 = vld [vmem:[%s1890_s13 + $0x38] sm:$0xff]  ;;  %v411_v54 = vmul.f32 %v1896_v35, %v340_v41  ;;  %v310_v56 = vld [vmem:[%s1890_s13 + $0x28] sm:$0xff]  ;;  %v409_v58 = vmul.f32 %v1896_v35, %v338_v44  ;;  %v414_v60 = vmul.f32 %v1896_v35, %v343_v46  ;;  %v1935_v2 = vadd.f32 %v1904_v39, %v410_v47 }
  0x22   : > { %v341_v50 = vld [vmem:[%s1890_s13 + $0x120] sm:$0xff]  ;;  %v344_v55 = vld [vmem:[%s1890_s13 + $0x138] sm:$0xff]  ;;  %v342_v61 = vld [vmem:[%s1890_s13 + $0x128] sm:$0xff]  ;;  %v380_v63 = vmul.f32 %v1896_v35, %v309_v49  ;;  %v383_v1 = vmul.f32 %v1896_v35, %v312_v51  ;;  %v1938_v3 = vadd.f32 %v1904_v39, %v376_v48  ;;  %v381_v5 = vmul.f32 %v1896_v35, %v310_v56 }
  0x23   : > { %v412_v0 = vmul.f32 %v1896_v35, %v341_v50  ;;  %v415_v4 = vmul.f32 %v1896_v35, %v344_v55  ;;  %v315_v6 = vld [vmem:[%s1890_s13 + $0x50] sm:$0xff]  ;;  %v1944_v7 = vadd.f32 %v1904_v39, %v408_v52  ;;  %v1947_v8 = vadd.f32 %v1904_v39, %v379_v53  ;;  %v320_v34 = vld [vmem:[%s1890_s13 + $0x78] sm:$0xff]  ;;  %v318_v42 = vld [vmem:[%s1890_s13 + $0x68] sm:$0xff] }
  0x24   : > { %v1950_v9 = vadd.f32 %v1904_v39, %v411_v54  ;;  %v413_v10 = vmul.f32 %v1896_v35, %v342_v61  ;;  %v347_v11 = vld [vmem:[%s1890_s13 + $0x150] sm:$0xff]  ;;  %v352_v41 = vld [vmem:[%s1890_s13 + $0x178] sm:$0xff]  ;;  %v350_v47 = vld [vmem:[%s1890_s13 + $0x168] sm:$0xff]  ;;  %v391_v51 = vmul.f32 %v1896_v35, %v320_v34  ;;  %v389_v55 = vmul.f32 %v1896_v35, %v318_v42 }
  0x25   : > { %1654 = vmatmul.mubr.msk.bf16.gmra.mrb[8].mxu0 %vm736_vm1, %v1731_v12  ;;  %v313_v12 = vld [vmem:[%s1890_s13 + $0x40] sm:$0xff]  ;;  %v423_v54 = vmul.f32 %v1896_v35, %v352_v41  ;;  %v323_v56 = vld [vmem:[%s1890_s13 + $0x90] sm:$0xff] }
  0x26   : > { %1686 = vmatmul.mubr.msk.bf16.gmra.mrb[8].mxu1 %vm736_vm1, %v1732_v13  ;;  %1657 = vmatprep.mubr.msk.bf16.mxu0 %vm736_vm1, %v1733_v14  ;;  %v345_v13 = vld [vmem:[%s1890_s13 + $0x140] sm:$0xff]  ;;  %v1957_v14 = vadd.f32 %v1904_v39, %v377_v57  ;;  %v1996_v36 = vadd.f32 %v1904_v39, %v413_v10  ;;  %v355_v61 = vld [vmem:[%s1890_s13 + $0x190] sm:$0xff]  ;;  %v324_v10 = vld [vmem:[%s1890_s13 + $0x98] sm:$0xff] }
  0x27   : > { %1689 = vmatprep.mubr.msk.bf16.mxu1 %vm736_vm1, %v1734_v15  ;;  %v1960_v15 = vadd.f32 %v1904_v39, %v409_v58  ;;  %v416_v37 = vmul.f32 %v1896_v35, %v345_v13  ;;  %v357_v34 = vld [vmem:[%s1890_s13 + $0x1a0] sm:$0xff]  ;;  %v395_v41 = vmul.f32 %v1896_v35, %v324_v10  ;;  %v331_v10 = vld [vmem:[%s1890_s13 + $0xd0] sm:$0xff] }
  0x29   : > { %v2024_v57 = vadd.f32 %v1904_v39, %v416_v37  ;;  %v328_v37 = vld [vmem:[%s1890_s13 + $0xb8] sm:$0xff] }
  0x2d   : > { %1658 = vmatmul.mubr.msk.bf16.gmra.mrb[12].mxu0 %vm736_vm1, %v1735_v16  ;;  %v1963_v16 = vadd.f32 %v1904_v39, %v382_v59 }
  0x2e   : > { %1690 = vmatmul.mubr.msk.bf16.gmra.mrb[12].mxu1 %vm736_vm1, %v1736_v17  ;;  %1661 = vmatprep.mubr.msk.bf16.mxu0 %vm736_vm1, %v1737_v18  ;;  %v1966_v17 = vadd.f32 %v1904_v39, %v414_v60  ;;  %v316_v18 = vld [vmem:[%s1890_s13 + $0x58] sm:$0xff]  ;;  %v421_v60 = vmul.f32 %v1896_v35, %v350_v47 }
  0x2f   : > { %1693 = vmatprep.mubr.msk.bf16.mxu1 %vm736_vm1, %v1738_v19  ;;  %v348_v19 = vld [vmem:[%s1890_s13 + $0x158] sm:$0xff]  ;;  %v387_v38 = vmul.f32 %v1896_v35, %v316_v18 }
  0x30   : > { %v419_v40 = vmul.f32 %v1896_v35, %v348_v19  ;;  %v2058_v19 = vadd.f32 %v1904_v39, %v391_v51 }
  0x31   : > { %v2027_v58 = vadd.f32 %v1904_v39, %v387_v38  ;;  %v2076_v38 = vadd.f32 %v1904_v39, %v421_v60 }
  0x32   : > { %v2030_v59 = vadd.f32 %v1904_v39, %v419_v40 }
  0x35   : > { %1662 = vmatmul.mubr.msk.bf16.gmra.mrb[16].mxu0 %vm736_vm1, %v1739_v20  ;;  %v314_v20 = vld [vmem:[%s1890_s13 + $0x48] sm:$0xff] }
  0x36   : > { %1694 = vmatmul.mubr.msk.bf16.gmra.mrb[16].mxu1 %vm736_vm1, %v1740_v21  ;;  %1665 = vmatprep.mubr.msk.bf16.mxu0 %vm736_vm1, %v1741_v22  ;;  %v1972_v21 = vadd.f32 %v1904_v39, %v380_v63  ;;  %v1975_v22 = vadd.f32 %v1904_v39, %v412_v0  ;;  %v385_v43 = vmul.f32 %v1896_v35, %v314_v20  ;;  %v321_v63 = vld [vmem:[%s1890_s13 + $0x80] sm:$0xff] }
  0x37   : > { %1697 = vmatprep.mubr.msk.bf16.mxu1 %vm736_vm1, %v1742_v23  ;;  %v1978_v23 = vadd.f32 %v1904_v39, %v383_v1  ;;  %v353_v0 = vld [vmem:[%s1890_s13 + $0x180] sm:$0xff]  ;;  %v394_v20 = vmul.f32 %v1896_v35, %v323_v56  ;;  %v399_v56 = vmul.f32 %v1896_v35, %v328_v37 }
  0x38   : > { %v2037_v1 = vadd.f32 %v1904_v39, %v385_v43  ;;  %v424_v40 = vmul.f32 %v1896_v35, %v353_v0  ;;  %v360_v43 = vld [vmem:[%s1890_s13 + $0x1b8] sm:$0xff] }
  0x39   : > { %v2089_v51 = vadd.f32 %v1904_v39, %v394_v20 }
  0x3d   : > { %1666 = vmatmul.mubr.msk.bf16.gmra.mrb[20].mxu0 %vm736_vm1, %v1743_v24  ;;  %v386_v24 = vmul.f32 %v1896_v35, %v315_v6 }
  0x3e   : > { %1698 = vmatmul.mubr.msk.bf16.gmra.mrb[20].mxu1 %vm736_vm1, %v1744_v25  ;;  %1669 = vmatprep.mubr.msk.bf16.mxu0 %vm736_vm1, %v1745_v26  ;;  %v346_v25 = vld [vmem:[%s1890_s13 + $0x148] sm:$0xff]  ;;  %v319_v26 = vld [vmem:[%s1890_s13 + $0x70] sm:$0xff] }
  0x3f   : > { %1701 = vmatprep.mubr.msk.bf16.mxu1 %vm736_vm1, %v1746_v27  ;;  %v351_v27 = vld [vmem:[%s1890_s13 + $0x170] sm:$0xff]  ;;  %v417_v44 = vmul.f32 %v1896_v35, %v346_v25  ;;  %v390_v45 = vmul.f32 %v1896_v35, %v319_v26  ;;  %v2009_v48 = vadd.f32 %v1904_v39, %v386_v24  ;;  %v354_v24 = vld [vmem:[%s1890_s13 + $0x188] sm:$0xff] }
  0x40   : > { %v422_v46 = vmul.f32 %v1896_v35, %v351_v27  ;;  %v327_v25 = vld [vmem:[%s1890_s13 + $0xb0] sm:$0xff]  ;;  %v2065_v27 = vadd.f32 %v1904_v39, %v423_v54 }
  0x41   : > { %v359_v26 = vld [vmem:[%s1890_s13 + $0x1b0] sm:$0xff]  ;;  %v398_v47 = vmul.f32 %v1896_v35, %v327_v25 }
  0x42   : > { %v2046_v6 = vadd.f32 %v1904_v39, %v422_v46  ;;  %v425_v46 = vmul.f32 %v1896_v35, %v354_v24  ;;  %v363_v25 = vld [vmem:[%s1890_s13 + $0x1d0] sm:$0xff] }
  0x45   : > { %1670 = vmatmul.mubr.msk.bf16.gmra.mrb[24].mxu0 %vm736_vm1, %v1747_v28  ;;  %v1985_v28 = vadd.f32 %v1904_v39, %v415_v4  ;;  %v2040_v4 = vadd.f32 %v1904_v39, %v417_v44  ;;  %v326_v44 = vld [vmem:[%s1890_s13 + $0xa8] sm:$0xff] }
  0x46   : > { %1702 = vmatmul.mubr.msk.bf16.gmra.mrb[24].mxu1 %vm736_vm1, %v1748_v29  ;;  %1673 = vmatprep.mubr.msk.bf16.mxu0 %vm736_vm1, %v1749_v30  ;;  %v1988_v29 = vadd.f32 %v1904_v39, %v381_v5  ;;  %v418_v30 = vmul.f32 %v1896_v35, %v347_v11  ;;  %v2043_v5 = vadd.f32 %v1904_v39, %v390_v45  ;;  %v356_v11 = vld [vmem:[%s1890_s13 + $0x198] sm:$0xff] }
  0x47   : > { %1705 = vmatprep.mubr.msk.bf16.mxu1 %vm736_vm1, %v1750_v31  ;;  %v384_v31 = vmul.f32 %v1896_v35, %v313_v12  ;;  %v322_v12 = vld [vmem:[%s1890_s13 + $0x88] sm:$0xff]  ;;  %v427_v42 = vmul.f32 %v1896_v35, %v356_v11  ;;  %v397_v0 = vmul.f32 %v1896_v35, %v326_v44  ;;  %v2104_v11 = vadd.f32 %v1904_v39, %v424_v40  ;;  %v332_v40 = vld [vmem:[%s1890_s13 + $0xd8] sm:$0xff] }
  0x48   : > { %v2015_v52 = vadd.f32 %v1904_v39, %v418_v30  ;;  %v2068_v30 = vadd.f32 %v1904_v39, %v389_v55  ;;  %v393_v45 = vmul.f32 %v1896_v35, %v322_v12  ;;  %v428_v55 = vmul.f32 %v1896_v35, %v357_v34 }
  0x49   : > { %v2018_v53 = vadd.f32 %v1904_v39, %v384_v31  ;;  %v426_v31 = vmul.f32 %v1896_v35, %v355_v61  ;;  %v2107_v12 = vadd.f32 %v1904_v39, %v395_v41  ;;  %v2110_v20 = vadd.f32 %v1904_v39, %v427_v42  ;;  %v364_v41 = vld [vmem:[%s1890_s13 + $0x1d8] sm:$0xff]  ;;  %v330_v42 = vld [vmem:[%s1890_s13 + $0xc8] sm:$0xff] }
  0x4a   : > { %v2123_v34 = vadd.f32 %v1904_v39, %v398_v47  ;;  %v2135_v44 = vadd.f32 %v1904_v39, %v428_v55  ;;  %v362_v47 = vld [vmem:[%s1890_s13 + $0x1c8] sm:$0xff] }
  0x4b   : > { %v2095_v60 = vadd.f32 %v1904_v39, %v426_v31  ;;  %2570 = vst [vmem:[#allocation2_spill] sm:$0xff] %v2110_v20  ;;  %v361_v31 = vld [vmem:[%s1890_s13 + $0x1c0] sm:$0xff]  ;;  %v366_v20 = vld [vmem:[%s1890_s13 + $0x1e8] sm:$0xff] }
  0x4c   : > { %2573 = vst [vmem:[#allocation5_spill] sm:$0xff] %v2123_v34  ;;  %2576 = vst [vmem:[#allocation8_spill] sm:$0xff] %v2135_v44  ;;  %v2148_v34 = vadd.f32 %v1904_v39, %v397_v0  ;;  %v336_v44 = vld [vmem:[%s1890_s13 + $0xf8] sm:$0xff]  ;;  %v334_v0 = vld [vmem:[%s1890_s13 + $0xe8] sm:$0xff] }
  0x4d   : > { %1674 = vmatmul.mubr.msk.bf16.gmra.mrb[28].mxu0 %vm736_vm1, %v1751_v32  ;;  %v317_v32 = vld [vmem:[%s1890_s13 + $0x60] sm:$0xff] }
  0x4e   : > { %1706 = vmatmul.mubr.msk.bf16.gmra.mrb[28].mxu1 %vm736_vm1, %v1752_v33  ;;  %v349_v33 = vld [vmem:[%s1890_s13 + $0x160] sm:$0xff]  ;;  %v388_v49 = vmul.f32 %v1896_v35, %v317_v32  ;;  %v392_v32 = vmul.f32 %v1896_v35, %v321_v63  ;;  %v431_v63 = vmul.f32 %v1896_v35, %v360_v43  ;;  %2579 = vst [vmem:[#allocation11_spill] sm:$0xff] %v2148_v34 }
  0x4f   : > { %v420_v50 = vmul.f32 %v1896_v35, %v349_v33  ;;  %v325_v33 = vld [vmem:[%s1890_s13 + $0xa0] sm:$0xff]  ;;  %v401_v34 = vmul.f32 %v1896_v35, %v330_v42 }
  0x50   : > { %v2052_v13 = vadd.f32 %v1904_v39, %v388_v49  ;;  %v430_v49 = vmul.f32 %v1896_v35, %v359_v26  ;;  %v396_v54 = vmul.f32 %v1896_v35, %v325_v33  ;;  %v2098_v61 = vadd.f32 %v1904_v39, %v392_v32  ;;  %v329_v26 = vld [vmem:[%s1890_s13 + $0xc0] sm:$0xff] }
  0x51   : > { %v2055_v18 = vadd.f32 %v1904_v39, %v420_v50  ;;  %v358_v50 = vld [vmem:[%s1890_s13 + $0x1a8] sm:$0xff]  ;;  %v2117_v32 = vadd.f32 %v1904_v39, %v393_v45  ;;  %v2120_v33 = vadd.f32 %v1904_v39, %v425_v46  ;;  %v2138_v45 = vadd.f32 %v1904_v39, %v399_v56  ;;  %v333_v56 = vld [vmem:[%s1890_s13 + $0xe0] sm:$0xff] }
  0x52   : > { %v429_v24 = vmul.f32 %v1896_v35, %v358_v50  ;;  %v2126_v37 = vadd.f32 %v1904_v39, %v430_v49  ;;  %v2132_v43 = vadd.f32 %v1904_v39, %v396_v54  ;;  %v402_v46 = vmul.f32 %v1896_v35, %v331_v10  ;;  %v335_v49 = vld [vmem:[%s1890_s13 + $0xf0] sm:$0xff]  ;;  %v2177_v42 = vld [vmem:[%s2567_s5] ss:$0 sm:$0xff] }
  0x53   : > { %2571 = vst [vmem:[#allocation3_spill] sm:$0xff] %v2117_v32  ;;  %2572 = vst [vmem:[#allocation4_spill] sm:$0xff] %v2120_v33  ;;  %v367_v50 = vld [vmem:[%s1890_s13 + $0x1f0] sm:$0xff]  ;;  %v434_v54 = vmul.f32 %v1896_v35, %v363_v25  ;;  %v400_v55 = vmul.f32 %v1896_v35, %v329_v26  ;;  %v403_v33 = vmul.f32 %v1896_v35, %v332_v40 }
  0x54   : > { %2574 = vst [vmem:[#allocation6_spill] sm:$0xff] %v2126_v37  ;;  %2575 = vst [vmem:[#allocation7_spill] sm:$0xff] %v2132_v43  ;;  %v2145_v37 = vadd.f32 %v1904_v39, %v431_v63  ;;  %v2156_v10 = vadd.f32 %v1904_v39, %v429_v24  ;;  %v432_v43 = vmul.f32 %v1896_v35, %v361_v31 }
  0x55   : > { %2577 = vst [vmem:[#allocation9_spill] sm:$0xff] %v2138_v45  ;;  %v365_v45 = vld [vmem:[%s1890_s13 + $0x1e0] sm:$0xff]  ;;  %v435_v63 = vmul.f32 %v1896_v35, %v364_v41  ;;  %v433_v25 = vmul.f32 %v1896_v35, %v362_v47  ;;  %v406_v26 = vmul.f32 %v1896_v35, %v335_v49  ;;  %v438_v32 = vmul.f32 %v1896_v35, %v367_v50 }
  0x56   : > { %2578 = vst [vmem:[#allocation10_spill] sm:$0xff] %v2145_v37  ;;  %v368_v37 = vld [vmem:[%s1890_s13 + $0x1f8] sm:$0xff]  ;;  %v2169_v24 = vadd.f32 %v1904_v39, %v402_v46  ;;  %v404_v31 = vmul.f32 %v1896_v35, %v333_v56  ;;  %v436_v40 = vmul.f32 %v1896_v35, %v365_v45  ;;  %v407_v41 = vmul.f32 %v1896_v35, %v336_v44 }
  0x57   : > { %v2180_v47 = vadd.f32 %v1904_v39, %v434_v54  ;;  %v2183_v49 = vadd.f32 %v1904_v39, %v400_v55  ;;  %v439_v46 = vmul.f32 %v1896_v35, %v368_v37  ;;  %v405_v50 = vmul.f32 %v1896_v35, %v334_v0  ;;  %v2200_v55 = vld [vmem:[%s2568_s6] ss:$0 sm:$0xff] }
  0x58   : > { %2580 = vst [vmem:[#allocation12_spill] sm:$0xff] %v2169_v24  ;;  %v2188_v45 = vadd.f32 %v1904_v39, %v432_v43  ;;  %v2191_v44 = vadd.f32 %v1904_v39, %v403_v33  ;;  %v2194_v56 = vadd.f32 %v1904_v39, %v435_v63  ;;  %v437_v24 = vmul.f32 %v1896_v35, %v366_v20 }
  0x59   : > { %v2203_v37 = vadd.f32 %v1904_v39, %v401_v34  ;;  %v2206_v43 = vadd.f32 %v1904_v39, %v433_v25  ;;  %v2209_v33 = vadd.f32 %v1904_v39, %v406_v26  ;;  %v2212_v63 = vadd.f32 %v1904_v39, %v438_v32 }
  0x5a   : > { %2581 = vst [vmem:[#allocation13_spill] sm:$0xff] %v2191_v44  ;;  %2582 = vst [vmem:[#allocation14_spill] sm:$0xff] %v2194_v56  ;;  %v2216_v56 = vadd.f32 %v1904_v39, %v404_v31  ;;  %v2219_v44 = vadd.f32 %v1904_v39, %v436_v40  ;;  %v2222_v34 = vadd.f32 %v1904_v39, %v407_v41 }
  0x5b   : > { %2583 = vst [vmem:[#allocation15_spill] sm:$0xff] %v2209_v33  ;;  %2584 = vst [vmem:[#allocation16_spill] sm:$0xff] %v2212_v63  ;;  %v2227_v63 = vadd.f32 %v1904_v39, %v439_v46 }
  0x5c   : > { %2585 = vst [vmem:[#allocation17_spill] sm:$0xff] %v2216_v56  ;;  %2586 = vst [vmem:[#allocation18_spill] sm:$0xff] %v2219_v44 }
  0x5d   : > { %2587 = vst [vmem:[#allocation19_spill] sm:$0xff] %v2222_v34  ;;  %2588 = vst [vmem:[#allocation20_spill] sm:$0xff] %v2227_v63 }
  0xe8   : > { %v1647_v54 = vpop.f32.mrb[0].mxu0 }
  0xe9   : > { %v1135_v35 = vmul.f32 %v1647_v54, %v2177_v42  ;;  %v1679_v20 = vpop.f32.mrb[0].mxu1  ;;  %v871_v0 = vpop.f32.mrb[1].mxu0  ;;  %v2230_v54 = vadd.f32 %v1904_v39, %v405_v50 }
  0xea   : > { %v1167_v25 = vmul.f32 %v1679_v20, %v2177_v42  ;;  %v1133_v26 = vmul.f32 %v2177_v42, %v871_v0  ;;  %v999_v33 = vpop.f32.mrb[1].mxu1  ;;  %v1648_v32 = vpop.f32.mrb[2].mxu0  ;;  %v2236_v20 = vadd.f32 %v1904_v39, %v437_v24 }
  0xeb   : > { %2589 = vst [vmem:[#allocation21_spill] sm:$0xff] %v2230_v54  ;;  %v1206_v31 = vadd.f32 %v2200_v55, %v1135_v35  ;;  %v1165_v40 = vmul.f32 %v2177_v42, %v999_v33  ;;  %v1136_v41 = vmul.f32 %v1648_v32, %v2177_v42  ;;  %v1680_v34 = vpop.f32.mrb[2].mxu1  ;;  %v874_v44 = vpop.f32.mrb[3].mxu0 }
  0xec   : > { %v1238_v0 = vadd.f32 %v2200_v55, %v1167_v25  ;;  %v1204_v46 = vadd.f32 %v2200_v55, %v1133_v26  ;;  %v1168_v63 = vmul.f32 %v1680_v34, %v2177_v42  ;;  %v1134_v50 = vmul.f32 %v2177_v42, %v874_v44  ;;  %v1002_v54 = vpop.f32.mrb[3].mxu1 }
  0xed   : > { %v1270_v35 = vadd.f32 %v1206_v31, %v1929_v62  ;;  %v1236_v33 = vadd.f32 %v2200_v55, %v1165_v40  ;;  %v1207_v32 = vadd.f32 %v2200_v55, %v1136_v41  ;;  %v1166_v56 = vmul.f32 %v2177_v42, %v1002_v54 }
  0xee   : > { %v1302_v39 = vadd.f32 %v1238_v0, %v1935_v2  ;;  %v1268_v24 = vadd.f32 %v1204_v46, %v1938_v3  ;;  %v1239_v44 = vadd.f32 %v2200_v55, %v1168_v63  ;;  %v1205_v62 = vadd.f32 %v2200_v55, %v1134_v50 }
  0xef   : > { %v1334_v34 = vmax.f32 %v1270_v35, 0.0  ;;  %v1300_v25 = vadd.f32 %v1236_v33, %v1944_v7  ;;  %v1271_v26 = vadd.f32 %v1207_v32, %v1947_v8  ;;  %v1237_v54 = vadd.f32 %v2200_v55, %v1166_v56 }
  0xf0   : > { %v1366_v31 = vmax.f32 %v1302_v39, 0.0  ;;  %v1332_v40 = vmax.f32 %v1268_v24, 0.0  ;;  %v1303_v41 = vadd.f32 %v1239_v44, %v1950_v9  ;;  %v1269_v2 = vadd.f32 %v1205_v62, %v1957_v14  ;;  %v1651_v3 = vpop.f32.mrb[4].mxu0 }
  0xf1   : > { %1399 = vst.msk [vmem:[%s2251_s25 + $0x10] sm:$0xff] %vm1396_vm2, %v1334_v34  ;;  %v1364_v63 = vmax.f32 %v1300_v25, 0.0  ;;  %v1335_v0 = vmax.f32 %v1271_v26, 0.0  ;;  %v1301_v7 = vadd.f32 %v1237_v54, %v1960_v15  ;;  %v1139_v46 = vmul.f32 %v1651_v3, %v2177_v42  ;;  %v1683_v8 = vpop.f32.mrb[4].mxu1  ;;  %v887_v50 = vpop.f32.mrb[5].mxu0 }
  0xf2   : > { %1431 = vst.msk [vmem:[%s2251_s25 + $0x110] sm:$0xff] %vm1396_vm2, %v1366_v31  ;;  %1397 = vst.msk [vmem:[%s2251_s25] sm:$0xff] %vm1396_vm2, %v1332_v40  ;;  %v1367_v9 = vmax.f32 %v1303_v41, 0.0  ;;  %v1333_v14 = vmax.f32 %v1269_v2, 0.0  ;;  %v1171_v56 = vmul.f32 %v1683_v8, %v2177_v42  ;;  %v1137_v35 = vmul.f32 %v2177_v42, %v887_v50  ;;  %v1015_v33 = vpop.f32.mrb[5].mxu1  ;;  %v1652_v32 = vpop.f32.mrb[6].mxu0 }
  0xf3   : > { %1429 = vst.msk [vmem:[%s2251_s25 + $0x100] sm:$0xff] %vm1396_vm2, %v1364_v63  ;;  %1400 = vst.msk [vmem:[%s2251_s25 + $0x18] sm:$0xff] %vm1396_vm2, %v1335_v0  ;;  %v1365_v15 = vmax.f32 %v1301_v7, 0.0  ;;  %v1210_v39 = vadd.f32 %v2200_v55, %v1139_v46  ;;  %v1169_v24 = vmul.f32 %v2177_v42, %v1015_v33  ;;  %v1140_v44 = vmul.f32 %v1652_v32, %v2177_v42  ;;  %v1684_v62 = vpop.f32.mrb[6].mxu1  ;;  %v890_v34 = vpop.f32.mrb[7].mxu0 }
  0xf4   : > { %1432 = vst.msk [vmem:[%s2251_s25 + $0x118] sm:$0xff] %vm1396_vm2, %v1367_v9  ;;  %1398 = vst.msk [vmem:[%s2251_s25 + $0x8] sm:$0xff] %vm1396_vm2, %v1333_v14  ;;  %v1242_v25 = vadd.f32 %v2200_v55, %v1171_v56  ;;  %v1208_v26 = vadd.f32 %v2200_v55, %v1137_v35  ;;  %v1172_v54 = vmul.f32 %v1684_v62, %v2177_v42  ;;  %v1018_v40 = vpop.f32.mrb[7].mxu1 }
  0xf5   : > { %v1138_v31 = vmul.f32 %v2177_v42, %v890_v34  ;;  %1430 = vst.msk [vmem:[%s2251_s25 + $0x108] sm:$0xff] %vm1396_vm2, %v1365_v15  ;;  %v1274_v41 = vadd.f32 %v1210_v39, %v1963_v16  ;;  %v1240_v2 = vadd.f32 %v2200_v55, %v1169_v24  ;;  %v1211_v3 = vadd.f32 %v2200_v55, %v1140_v44 }
  0xf6   : > { %v1170_v63 = vmul.f32 %v2177_v42, %v1018_v40  ;;  %v1306_v0 = vadd.f32 %v1242_v25, %v1966_v17  ;;  %v1272_v7 = vadd.f32 %v1208_v26, %v1972_v21  ;;  %v1243_v46 = vadd.f32 %v2200_v55, %v1172_v54 }
  0xf7   : > { %v1209_v8 = vadd.f32 %v2200_v55, %v1138_v31  ;;  %v1338_v50 = vmax.f32 %v1274_v41, 0.0  ;;  %v1304_v9 = vadd.f32 %v1240_v2, %v1975_v22  ;;  %v1275_v16 = vadd.f32 %v1211_v3, %v1978_v23 }
  0xf8   : > { %v1241_v14 = vadd.f32 %v2200_v55, %v1170_v63  ;;  %v1370_v56 = vmax.f32 %v1306_v0, 0.0  ;;  %v1336_v35 = vmax.f32 %v1272_v7, 0.0  ;;  %v1307_v33 = vadd.f32 %v1243_v46, %v1985_v28  ;;  %v1655_v21 = vpop.f32.mrb[8].mxu0 }
  0xf9   : > { %v1273_v17 = vadd.f32 %v1209_v8, %v1988_v29  ;;  %1403 = vst.msk [vmem:[%s2251_s25 + $0x30] sm:$0xff] %vm1396_vm2, %v1338_v50  ;;  %v1368_v32 = vmax.f32 %v1304_v9, 0.0  ;;  %v1339_v15 = vmax.f32 %v1275_v16, 0.0  ;;  %v1143_v39 = vmul.f32 %v1655_v21, %v2177_v42  ;;  %v1687_v23 = vpop.f32.mrb[8].mxu1  ;;  %v903_v24 = vpop.f32.mrb[9].mxu0 }
  0xfa   : > { %v1305_v22 = vadd.f32 %v1241_v14, %v1996_v36  ;;  %1435 = vst.msk [vmem:[%s2251_s25 + $0x130] sm:$0xff] %vm1396_vm2, %v1370_v56  ;;  %1401 = vst.msk [vmem:[%s2251_s25 + $0x20] sm:$0xff] %vm1396_vm2, %v1336_v35  ;;  %v1371_v28 = vmax.f32 %v1307_v33, 0.0  ;;  %v1175_v44 = vmul.f32 %v1687_v23, %v2177_v42  ;;  %v1141_v62 = vmul.f32 %v2177_v42, %v903_v24  ;;  %v1031_v34 = vpop.f32.mrb[9].mxu1  ;;  %v1656_v25 = vpop.f32.mrb[10].mxu0 }
  0xfb   : > { %v1337_v29 = vmax.f32 %v1273_v17, 0.0  ;;  %1433 = vst.msk [vmem:[%s2251_s25 + $0x120] sm:$0xff] %vm1396_vm2, %v1368_v32  ;;  %1404 = vst.msk [vmem:[%s2251_s25 + $0x38] sm:$0xff] %vm1396_vm2, %v1339_v15  ;;  %v1214_v26 = vadd.f32 %v2200_v55, %v1143_v39  ;;  %v1173_v54 = vmul.f32 %v2177_v42, %v1031_v34  ;;  %v1144_v31 = vmul.f32 %v1656_v25, %v2177_v42  ;;  %v1688_v40 = vpop.f32.mrb[10].mxu1  ;;  %v906_v41 = vpop.f32.mrb[11].mxu0 }
  0xfc   : > { %v1369_v36 = vmax.f32 %v1305_v22, 0.0  ;;  %1436 = vst.msk [vmem:[%s2251_s25 + $0x138] sm:$0xff] %vm1396_vm2, %v1371_v28  ;;  %v1246_v2 = vadd.f32 %v2200_v55, %v1175_v44  ;;  %v1212_v3 = vadd.f32 %v2200_v55, %v1141_v62  ;;  %v1176_v63 = vmul.f32 %v1688_v40, %v2177_v42  ;;  %v1034_v7 = vpop.f32.mrb[11].mxu1 }
  0xfd   : > { %1402 = vst.msk [vmem:[%s2251_s25 + $0x28] sm:$0xff] %vm1396_vm2, %v1337_v29  ;;  %v1142_v0 = vmul.f32 %v2177_v42, %v906_v41  ;;  %v1278_v46 = vadd.f32 %v1214_v26, %v2009_v48  ;;  %v1244_v8 = vadd.f32 %v2200_v55, %v1173_v54  ;;  %v1215_v50 = vadd.f32 %v2200_v55, %v1144_v31 }
  0xfe   : > { %1434 = vst.msk [vmem:[%s2251_s25 + $0x128] sm:$0xff] %vm1396_vm2, %v1369_v36  ;;  %v1174_v9 = vmul.f32 %v2177_v42, %v1034_v7  ;;  %v1310_v16 = vadd.f32 %v1246_v2, %v2015_v52  ;;  %v1276_v14 = vadd.f32 %v1212_v3, %v2018_v53  ;;  %v1247_v56 = vadd.f32 %v2200_v55, %v1176_v63 }
  0xff   : > { %v1213_v35 = vadd.f32 %v2200_v55, %v1142_v0  ;;  %v1342_v33 = vmax.f32 %v1278_v46, 0.0  ;;  %v1308_v17 = vadd.f32 %v1244_v8, %v2024_v57  ;;  %v1279_v48 = vadd.f32 %v1215_v50, %v2027_v58 }
 0x100   : > { %v1245_v21 = vadd.f32 %v2200_v55, %v1174_v9  ;;  %v1374_v32 = vmax.f32 %v1310_v16, 0.0  ;;  %v1340_v15 = vmax.f32 %v1276_v14, 0.0  ;;  %v1311_v22 = vadd.f32 %v1247_v56, %v2030_v59  ;;  %v1659_v53 = vpop.f32.mrb[12].mxu0 }
 0x101   : > { %v1277_v52 = vadd.f32 %v1213_v35, %v2037_v1  ;;  %1407 = vst.msk [vmem:[%s2251_s25 + $0x50] sm:$0xff] %vm1396_vm2, %v1342_v33  ;;  %v1372_v39 = vmax.f32 %v1308_v17, 0.0  ;;  %v1343_v23 = vmax.f32 %v1279_v48, 0.0  ;;  %v1147_v24 = vmul.f32 %v1659_v53, %v2177_v42  ;;  %v1691_v58 = vpop.f32.mrb[12].mxu1  ;;  %v919_v28 = vpop.f32.mrb[13].mxu0 }
 0x102   : > { %v1309_v57 = vadd.f32 %v1245_v21, %v2040_v4  ;;  %1439 = vst.msk [vmem:[%s2251_s25 + $0x150] sm:$0xff] %vm1396_vm2, %v1374_v32  ;;  %1405 = vst.msk [vmem:[%s2251_s25 + $0x40] sm:$0xff] %vm1396_vm2, %v1340_v15  ;;  %v1375_v59 = vmax.f32 %v1311_v22, 0.0  ;;  %v1179_v29 = vmul.f32 %v1691_v58, %v2177_v42  ;;  %v1145_v44 = vmul.f32 %v2177_v42, %v919_v28  ;;  %v1047_v62 = vpop.f32.mrb[13].mxu1  ;;  %v1660_v34 = vpop.f32.mrb[14].mxu0 }
 0x103   : > { %v1341_v1 = vmax.f32 %v1277_v52, 0.0  ;;  %1437 = vst.msk [vmem:[%s2251_s25 + $0x140] sm:$0xff] %vm1396_vm2, %v1372_v39  ;;  %1408 = vst.msk [vmem:[%s2251_s25 + $0x58] sm:$0xff] %vm1396_vm2, %v1343_v23  ;;  %v1218_v25 = vadd.f32 %v2200_v55, %v1147_v24  ;;  %v1177_v36 = vmul.f32 %v2177_v42, %v1047_v62  ;;  %v1148_v26 = vmul.f32 %v1660_v34, %v2177_v42  ;;  %v1692_v54 = vpop.f32.mrb[14].mxu1  ;;  %v922_v31 = vpop.f32.mrb[15].mxu0 }
 0x104   : > { %v1373_v4 = vmax.f32 %v1309_v57, 0.0  ;;  %1440 = vst.msk [vmem:[%s2251_s25 + $0x158] sm:$0xff] %vm1396_vm2, %v1375_v59  ;;  %v1250_v40 = vadd.f32 %v2200_v55, %v1179_v29  ;;  %v1216_v41 = vadd.f32 %v2200_v55, %v1145_v44  ;;  %v1180_v2 = vmul.f32 %v1692_v54, %v2177_v42  ;;  %v1050_v63 = vpop.f32.mrb[15].mxu1 }
 0x105   : > { %1406 = vst.msk [vmem:[%s2251_s25 + $0x48] sm:$0xff] %vm1396_vm2, %v1341_v1  ;;  %v1146_v3 = vmul.f32 %v2177_v42, %v922_v31  ;;  %v1282_v0 = vadd.f32 %v1218_v25, %v2043_v5  ;;  %v1248_v7 = vadd.f32 %v2200_v55, %v1177_v36  ;;  %v1219_v46 = vadd.f32 %v2200_v55, %v1148_v26 }
 0x106   : > { %1438 = vst.msk [vmem:[%s2251_s25 + $0x148] sm:$0xff] %vm1396_vm2, %v1373_v4  ;;  %v1178_v8 = vmul.f32 %v2177_v42, %v1050_v63  ;;  %v1314_v50 = vadd.f32 %v1250_v40, %v2046_v6  ;;  %v1280_v9 = vadd.f32 %v1216_v41, %v2052_v13  ;;  %v1251_v16 = vadd.f32 %v2200_v55, %v1180_v2 }
 0x107   : > { %v1217_v14 = vadd.f32 %v2200_v55, %v1146_v3  ;;  %v1346_v56 = vmax.f32 %v1282_v0, 0.0  ;;  %v1312_v35 = vadd.f32 %v1248_v7, %v2055_v18  ;;  %v1283_v5 = vadd.f32 %v1219_v46, %v2058_v19 }
 0x108   : > { %v1249_v33 = vadd.f32 %v2200_v55, %v1178_v8  ;;  %v1378_v17 = vmax.f32 %v1314_v50, 0.0  ;;  %v1344_v48 = vmax.f32 %v1280_v9, 0.0  ;;  %v1315_v21 = vadd.f32 %v1251_v16, %v2065_v27  ;;  %v1663_v13 = vpop.f32.mrb[16].mxu0  ;;  %v2590_v8 = vld [vmem:[#allocation2_spill] sm:$0xff] }
 0x109   : > { %v1281_v6 = vadd.f32 %v1217_v14, %v2068_v30  ;;  %1411 = vst.msk [vmem:[%s2251_s25 + $0x70] sm:$0xff] %vm1396_vm2, %v1346_v56  ;;  %v1376_v32 = vmax.f32 %v1312_v35, 0.0  ;;  %v1347_v15 = vmax.f32 %v1283_v5, 0.0  ;;  %v1151_v22 = vmul.f32 %v1663_v13, %v2177_v42  ;;  %v1695_v19 = vpop.f32.mrb[16].mxu1  ;;  %v935_v52 = vpop.f32.mrb[17].mxu0  ;;  %v2592_v56 = vld [vmem:[#allocation4_spill] sm:$0xff] }
 0x10a   : > { %v1313_v18 = vadd.f32 %v1249_v33, %v2076_v38  ;;  %1443 = vst.msk [vmem:[%s2251_s25 + $0x170] sm:$0xff] %vm1396_vm2, %v1378_v17  ;;  %1409 = vst.msk [vmem:[%s2251_s25 + $0x60] sm:$0xff] %vm1396_vm2, %v1344_v48  ;;  %v1379_v27 = vmax.f32 %v1315_v21, 0.0  ;;  %v1183_v53 = vmul.f32 %v1695_v19, %v2177_v42  ;;  %v1149_v39 = vmul.f32 %v2177_v42, %v935_v52  ;;  %v1063_v23 = vpop.f32.mrb[17].mxu1  ;;  %v1664_v57 = vpop.f32.mrb[18].mxu0 }
 0x10b   : > { %v1345_v30 = vmax.f32 %v1281_v6, 0.0  ;;  %1441 = vst.msk [vmem:[%s2251_s25 + $0x160] sm:$0xff] %vm1396_vm2, %v1376_v32  ;;  %1412 = vst.msk [vmem:[%s2251_s25 + $0x78] sm:$0xff] %vm1396_vm2, %v1347_v15  ;;  %v1222_v24 = vadd.f32 %v2200_v55, %v1151_v22  ;;  %v1181_v58 = vmul.f32 %v2177_v42, %v1063_v23  ;;  %v1152_v28 = vmul.f32 %v1664_v57, %v2177_v42  ;;  %v1696_v59 = vpop.f32.mrb[18].mxu1  ;;  %v938_v1 = vpop.f32.mrb[19].mxu0  ;;  %v2593_v57 = vld [vmem:[#allocation5_spill] sm:$0xff] }
 0x10c   : > { %v1377_v38 = vmax.f32 %v1313_v18, 0.0  ;;  %1444 = vst.msk [vmem:[%s2251_s25 + $0x178] sm:$0xff] %vm1396_vm2, %v1379_v27  ;;  %v1254_v29 = vadd.f32 %v2200_v55, %v1183_v53  ;;  %v1220_v44 = vadd.f32 %v2200_v55, %v1149_v39  ;;  %v1184_v62 = vmul.f32 %v1696_v59, %v2177_v42  ;;  %v1066_v4 = vpop.f32.mrb[19].mxu1  ;;  %v2594_v59 = vld [vmem:[#allocation6_spill] sm:$0xff] }
 0x10d   : > { %1410 = vst.msk [vmem:[%s2251_s25 + $0x68] sm:$0xff] %vm1396_vm2, %v1345_v30  ;;  %v1150_v34 = vmul.f32 %v2177_v42, %v938_v1  ;;  %v1286_v25 = vadd.f32 %v1222_v24, %v2089_v51  ;;  %v1252_v36 = vadd.f32 %v2200_v55, %v1181_v58  ;;  %v1223_v26 = vadd.f32 %v2200_v55, %v1152_v28 }
 0x10e   : > { %1442 = vst.msk [vmem:[%s2251_s25 + $0x168] sm:$0xff] %vm1396_vm2, %v1377_v38  ;;  %v1182_v54 = vmul.f32 %v2177_v42, %v1066_v4  ;;  %v1318_v31 = vadd.f32 %v1254_v29, %v2095_v60  ;;  %v1284_v40 = vadd.f32 %v1220_v44, %v2098_v61  ;;  %v1255_v41 = vadd.f32 %v2200_v55, %v1184_v62  ;;  %v2591_v60 = vld [vmem:[#allocation3_spill] sm:$0xff] }
 0x10f   : > { %v1221_v2 = vadd.f32 %v2200_v55, %v1150_v34  ;;  %v1350_v3 = vmax.f32 %v1286_v25, 0.0  ;;  %v1316_v63 = vadd.f32 %v1252_v36, %v2104_v11  ;;  %v1287_v51 = vadd.f32 %v1223_v26, %v2107_v12  ;;  %v2595_v29 = vld [vmem:[#allocation7_spill] sm:$0xff]  ;;  %v2596_v25 = vld [vmem:[#allocation8_spill] sm:$0xff]  ;;  %v2597_v26 = vld [vmem:[#allocation9_spill] sm:$0xff] }
 0x110   : > { %v1253_v0 = vadd.f32 %v2200_v55, %v1182_v54  ;;  %v1382_v7 = vmax.f32 %v1318_v31, 0.0  ;;  %v1348_v46 = vmax.f32 %v1284_v40, 0.0  ;;  %v1319_v50 = vadd.f32 %v1255_v41, %v2590_v8  ;;  %v1667_v61 = vpop.f32.mrb[20].mxu0 }
 0x111   : > { %v1285_v9 = vadd.f32 %v1221_v2, %v2591_v60  ;;  %1415 = vst.msk [vmem:[%s2251_s25 + $0x90] sm:$0xff] %vm1396_vm2, %v1350_v3  ;;  %v1380_v16 = vmax.f32 %v1316_v63, 0.0  ;;  %v1351_v14 = vmax.f32 %v1287_v51, 0.0  ;;  %v1155_v35 = vmul.f32 %v1667_v61, %v2177_v42  ;;  %v1699_v12 = vpop.f32.mrb[20].mxu1  ;;  %v951_v5 = vpop.f32.mrb[21].mxu0  ;;  %v2598_v2 = vld [vmem:[#allocation10_spill] sm:$0xff] }
 0x112   : > { %v1317_v11 = vadd.f32 %v1253_v0, %v2592_v56  ;;  %1447 = vst.msk [vmem:[%s2251_s25 + $0x190] sm:$0xff] %vm1396_vm2, %v1382_v7  ;;  %1413 = vst.msk [vmem:[%s2251_s25 + $0x80] sm:$0xff] %vm1396_vm2, %v1348_v46  ;;  %v1383_v33 = vmax.f32 %v1319_v50, 0.0  ;;  %v1187_v48 = vmul.f32 %v1699_v12, %v2177_v42  ;;  %v1153_v21 = vmul.f32 %v2177_v42, %v951_v5  ;;  %v1079_v6 = vpop.f32.mrb[21].mxu1  ;;  %v1668_v13 = vpop.f32.mrb[22].mxu0  ;;  %v2599_v63 = vld [vmem:[#allocation11_spill] sm:$0xff] }
 0x113   : > { %v1349_v17 = vmax.f32 %v1285_v9, 0.0  ;;  %1445 = vst.msk [vmem:[%s2251_s25 + $0x180] sm:$0xff] %vm1396_vm2, %v1380_v16  ;;  %1416 = vst.msk [vmem:[%s2251_s25 + $0x98] sm:$0xff] %vm1396_vm2, %v1351_v14  ;;  %v1226_v15 = vadd.f32 %v2200_v55, %v1155_v35  ;;  %v1185_v18 = vmul.f32 %v2177_v42, %v1079_v6  ;;  %v1156_v22 = vmul.f32 %v1668_v13, %v2177_v42  ;;  %v1700_v19 = vpop.f32.mrb[22].mxu1  ;;  %v954_v52 = vpop.f32.mrb[23].mxu0 }
 0x114   : > { %v1381_v32 = vmax.f32 %v1317_v11, 0.0  ;;  %1448 = vst.msk [vmem:[%s2251_s25 + $0x198] sm:$0xff] %vm1396_vm2, %v1383_v33  ;;  %v1258_v27 = vadd.f32 %v2200_v55, %v1187_v48  ;;  %v1224_v30 = vadd.f32 %v2200_v55, %v1153_v21  ;;  %v1188_v53 = vmul.f32 %v1700_v19, %v2177_v42  ;;  %v1082_v23 = vpop.f32.mrb[23].mxu1 }
 0x115   : > { %1414 = vst.msk [vmem:[%s2251_s25 + $0x88] sm:$0xff] %vm1396_vm2, %v1349_v17  ;;  %v1154_v39 = vmul.f32 %v2177_v42, %v954_v52  ;;  %v1290_v38 = vadd.f32 %v1226_v15, %v2593_v57  ;;  %v1256_v24 = vadd.f32 %v2200_v55, %v1185_v18  ;;  %v1227_v58 = vadd.f32 %v2200_v55, %v1156_v22  ;;  %v2600_v18 = vld [vmem:[#allocation12_spill] sm:$0xff] }
 0x116   : > { %1446 = vst.msk [vmem:[%s2251_s25 + $0x188] sm:$0xff] %vm1396_vm2, %v1381_v32  ;;  %v1186_v28 = vmul.f32 %v2177_v42, %v1082_v23  ;;  %v1322_v1 = vadd.f32 %v1258_v27, %v2594_v59  ;;  %v1288_v44 = vadd.f32 %v1224_v30, %v2595_v29  ;;  %v1259_v62 = vadd.f32 %v2200_v55, %v1188_v53  ;;  %v2602_v29 = vld [vmem:[#allocation14_spill] sm:$0xff] }
 0x117   : > { %v1225_v34 = vadd.f32 %v2200_v55, %v1154_v39  ;;  %v1354_v4 = vmax.f32 %v1290_v38, 0.0  ;;  %v1320_v36 = vadd.f32 %v1256_v24, %v2596_v25  ;;  %v1291_v54 = vadd.f32 %v1227_v58, %v2597_v26  ;;  %v2601_v24 = vld [vmem:[#allocation13_spill] sm:$0xff] }
 0x118   : > { %v1257_v31 = vadd.f32 %v2200_v55, %v1186_v28  ;;  %v1386_v40 = vmax.f32 %v1322_v1, 0.0  ;;  %v1352_v41 = vmax.f32 %v1288_v44, 0.0  ;;  %v1323_v3 = vadd.f32 %v1259_v62, %v2598_v2  ;;  %v1671_v0 = vpop.f32.mrb[24].mxu0 }
 0x119   : > { %v1289_v51 = vadd.f32 %v1225_v34, %v2599_v63  ;;  %1419 = vst.msk [vmem:[%s2251_s25 + $0xb0] sm:$0xff] %vm1396_vm2, %v1354_v4  ;;  %v1384_v7 = vmax.f32 %v1320_v36, 0.0  ;;  %v1355_v46 = vmax.f32 %v1291_v54, 0.0  ;;  %v1159_v50 = vmul.f32 %v1671_v0, %v2177_v42  ;;  %v1703_v60 = vpop.f32.mrb[24].mxu1  ;;  %v967_v9 = vpop.f32.mrb[25].mxu0 }
 0x11a   : > { %v1321_v8 = vadd.f32 %v1257_v31, %v2156_v10  ;;  %1451 = vst.msk [vmem:[%s2251_s25 + $0x1b0] sm:$0xff] %vm1396_vm2, %v1386_v40  ;;  %1417 = vst.msk [vmem:[%s2251_s25 + $0xa0] sm:$0xff] %vm1396_vm2, %v1352_v41  ;;  %v1387_v61 = vmax.f32 %v1323_v3, 0.0  ;;  %v1191_v14 = vmul.f32 %v1703_v60, %v2177_v42  ;;  %v1157_v56 = vmul.f32 %v2177_v42, %v967_v9  ;;  %v1095_v11 = vpop.f32.mrb[25].mxu1  ;;  %v1672_v35 = vpop.f32.mrb[26].mxu0  ;;  %v2603_v9 = vld [vmem:[#allocation15_spill] sm:$0xff] }
 0x11b   : > { %v1353_v16 = vmax.f32 %v1289_v51, 0.0  ;;  %1449 = vst.msk [vmem:[%s2251_s25 + $0x1a0] sm:$0xff] %vm1396_vm2, %v1384_v7  ;;  %1420 = vst.msk [vmem:[%s2251_s25 + $0xb8] sm:$0xff] %vm1396_vm2, %v1355_v46  ;;  %v1230_v12 = vadd.f32 %v2200_v55, %v1159_v50  ;;  %v1189_v5 = vmul.f32 %v2177_v42, %v1095_v11  ;;  %v1160_v33 = vmul.f32 %v1672_v35, %v2177_v42  ;;  %v1704_v17 = vpop.f32.mrb[26].mxu1  ;;  %v970_v48 = vpop.f32.mrb[27].mxu0  ;;  %v2604_v11 = vld [vmem:[#allocation16_spill] sm:$0xff] }
 0x11c   : > { %v1385_v10 = vmax.f32 %v1321_v8, 0.0  ;;  %1452 = vst.msk [vmem:[%s2251_s25 + $0x1b8] sm:$0xff] %vm1396_vm2, %v1387_v61  ;;  %v1262_v21 = vadd.f32 %v2200_v55, %v1191_v14  ;;  %v1228_v6 = vadd.f32 %v2200_v55, %v1157_v56  ;;  %v1192_v13 = vmul.f32 %v1704_v17, %v2177_v42  ;;  %v1098_v15 = vpop.f32.mrb[27].mxu1 }
 0x11d   : > { %1418 = vst.msk [vmem:[%s2251_s25 + $0xa8] sm:$0xff] %vm1396_vm2, %v1353_v16  ;;  %v1158_v32 = vmul.f32 %v2177_v42, %v970_v48  ;;  %v1294_v22 = vadd.f32 %v1230_v12, %v2600_v18  ;;  %v1260_v19 = vadd.f32 %v2200_v55, %v1189_v5  ;;  %v1231_v52 = vadd.f32 %v2200_v55, %v1160_v33  ;;  %v2606_v48 = vld [vmem:[#allocation18_spill] sm:$0xff]  ;;  %v2608_v18 = vld [vmem:[#allocation20_spill] sm:$0xff] }
 0x11e   : > { %1450 = vst.msk [vmem:[%s2251_s25 + $0x1a8] sm:$0xff] %vm1396_vm2, %v1385_v10  ;;  %v1190_v27 = vmul.f32 %v2177_v42, %v1098_v15  ;;  %v1326_v30 = vadd.f32 %v1262_v21, %v2180_v47  ;;  %v1292_v53 = vadd.f32 %v1228_v6, %v2183_v49  ;;  %v1263_v39 = vadd.f32 %v2200_v55, %v1192_v13  ;;  %v2605_v10 = vld [vmem:[#allocation17_spill] sm:$0xff]  ;;  %v2607_v6 = vld [vmem:[#allocation19_spill] sm:$0xff] }
 0x11f   : > { %v1229_v23 = vadd.f32 %v2200_v55, %v1158_v32  ;;  %v1358_v57 = vmax.f32 %v1294_v22, 0.0  ;;  %v1324_v38 = vadd.f32 %v1260_v19, %v2188_v45  ;;  %v1295_v58 = vadd.f32 %v1231_v52, %v2601_v24  ;;  %v2609_v19 = vld [vmem:[#allocation21_spill] sm:$0xff] }
 0x120   : > { %v1261_v28 = vadd.f32 %v2200_v55, %v1190_v27  ;;  %v1390_v59 = vmax.f32 %v1326_v30, 0.0  ;;  %v1356_v1 = vmax.f32 %v1292_v53, 0.0  ;;  %v1327_v44 = vadd.f32 %v1263_v39, %v2602_v29  ;;  %v1675_v49 = vpop.f32.mrb[28].mxu0 }
 0x121   : > { %v1293_v47 = vadd.f32 %v1229_v23, %v2203_v37  ;;  %1423 = vst.msk [vmem:[%s2251_s25 + $0xd0] sm:$0xff] %vm1396_vm2, %v1358_v57  ;;  %v1388_v62 = vmax.f32 %v1324_v38, 0.0  ;;  %v1359_v34 = vmax.f32 %v1295_v58, 0.0  ;;  %v1163_v4 = vmul.f32 %v1675_v49, %v2177_v42  ;;  %v1707_v25 = vpop.f32.mrb[28].mxu1  ;;  %v983_v36 = vpop.f32.mrb[29].mxu0 }
 0x122   : > { %v1325_v45 = vadd.f32 %v1261_v28, %v2206_v43  ;;  %1455 = vst.msk [vmem:[%s2251_s25 + $0x1d0] sm:$0xff] %vm1396_vm2, %v1390_v59  ;;  %1421 = vst.msk [vmem:[%s2251_s25 + $0xc0] sm:$0xff] %vm1396_vm2, %v1356_v1  ;;  %v1391_v37 = vmax.f32 %v1327_v44, 0.0  ;;  %v1195_v54 = vmul.f32 %v1707_v25, %v2177_v42  ;;  %v1161_v31 = vmul.f32 %v2177_v42, %v983_v36  ;;  %v1111_v40 = vpop.f32.mrb[29].mxu1  ;;  %v1676_v41 = vpop.f32.mrb[30].mxu0 }
 0x123   : > { %v1357_v26 = vmax.f32 %v1293_v47, 0.0  ;;  %1453 = vst.msk [vmem:[%s2251_s25 + $0x1c0] sm:$0xff] %vm1396_vm2, %v1388_v62  ;;  %1424 = vst.msk [vmem:[%s2251_s25 + $0xd8] sm:$0xff] %vm1396_vm2, %v1359_v34  ;;  %v1234_v2 = vadd.f32 %v2200_v55, %v1163_v4  ;;  %v1193_v3 = vmul.f32 %v2177_v42, %v1111_v40  ;;  %v1164_v63 = vmul.f32 %v1676_v41, %v2177_v42  ;;  %v1708_v51 = vpop.f32.mrb[30].mxu1  ;;  %v986_v0 = vpop.f32.mrb[31].mxu0 }
 0x124   : > { %v1389_v43 = vmax.f32 %v1325_v45, 0.0  ;;  %1456 = vst.msk [vmem:[%s2251_s25 + $0x1d8] sm:$0xff] %vm1396_vm2, %v1391_v37  ;;  %v1266_v7 = vadd.f32 %v2200_v55, %v1195_v54  ;;  %v1232_v46 = vadd.f32 %v2200_v55, %v1161_v31  ;;  %v1196_v8 = vmul.f32 %v1708_v51, %v2177_v42  ;;  %v1114_v60 = vpop.f32.mrb[31].mxu1 }
 0x125   : > { %1422 = vst.msk [vmem:[%s2251_s25 + $0xc8] sm:$0xff] %vm1396_vm2, %v1357_v26  ;;  %v1162_v50 = vmul.f32 %v2177_v42, %v986_v0  ;;  %v1298_v61 = vadd.f32 %v1234_v2, %v2603_v9  ;;  %v1264_v16 = vadd.f32 %v2200_v55, %v1193_v3  ;;  %v1235_v14 = vadd.f32 %v2200_v55, %v1164_v63 }
 0x126   : > { %1454 = vst.msk [vmem:[%s2251_s25 + $0x1c8] sm:$0xff] %vm1396_vm2, %v1389_v43  ;;  %v1194_v56 = vmul.f32 %v2177_v42, %v1114_v60  ;;  %v1330_v35 = vadd.f32 %v1266_v7, %v2604_v11  ;;  %v1296_v12 = vadd.f32 %v1232_v46, %v2605_v10  ;;  %v1267_v5 = vadd.f32 %v2200_v55, %v1196_v8 }
 0x127   : > { %v1233_v33 = vadd.f32 %v2200_v55, %v1162_v50  ;;  %v1362_v17 = vmax.f32 %v1298_v61, 0.0  ;;  %v1328_v21 = vadd.f32 %v1264_v16, %v2606_v48  ;;  %v1299_v13 = vadd.f32 %v1235_v14, %v2607_v6 }
 0x128   : > { %v1265_v32 = vadd.f32 %v2200_v55, %v1194_v56  ;;  %v1394_v42 = vmax.f32 %v1330_v35, 0.0  ;;  %v1360_v15 = vmax.f32 %v1296_v12, 0.0  ;;  %v1331_v22 = vadd.f32 %v1267_v5, %v2608_v18 }
 0x129   : > { %v1297_v52 = vadd.f32 %v1233_v33, %v2609_v19  ;;  %1427 = vst.msk [vmem:[%s2251_s25 + $0xf0] sm:$0xff] %vm1396_vm2, %v1362_v17  ;;  %v1392_v27 = vmax.f32 %v1328_v21, 0.0  ;;  %v1363_v30 = vmax.f32 %v1299_v13, 0.0 }
 0x12a   : > { %v1329_v53 = vadd.f32 %v1265_v32, %v2236_v20  ;;  %1459 = vst.msk [vmem:[%s2251_s25 + $0x1f0] sm:$0xff] %vm1396_vm2, %v1394_v42  ;;  %1425 = vst.msk [vmem:[%s2251_s25 + $0xe0] sm:$0xff] %vm1396_vm2, %v1360_v15  ;;  %v1395_v55 = vmax.f32 %v1331_v22, 0.0 }
 0x12b   : > { %v1361_v39 = vmax.f32 %v1297_v52, 0.0  ;;  %1457 = vst.msk [vmem:[%s2251_s25 + $0x1e0] sm:$0xff] %vm1396_vm2, %v1392_v27  ;;  %1428 = vst.msk [vmem:[%s2251_s25 + $0xf8] sm:$0xff] %vm1396_vm2, %v1363_v30 }
 0x12c   : > { %v1393_v23 = vmax.f32 %v1329_v53, 0.0  ;;  %1460 = vst.msk [vmem:[%s2251_s25 + $0x1f8] sm:$0xff] %vm1396_vm2, %v1395_v55 }
 0x12d   : > { %1426 = vst.msk [vmem:[%s2251_s25 + $0xe8] sm:$0xff] %vm1396_vm2, %v1361_v39 }
 0x12e   : > { %1458 = vst.msk [vmem:[%s2251_s25 + $0x1e8] sm:$0xff] %vm1396_vm2, %v1393_v23 }
 0x12f PF: > { %s17_s24 = sadd.s32 1, %s1759_s24  }
 0x130   : > { %p14_p4 = scmp.ge.s32.totalorder %s17_s24, 4  }
 0x132   :  { %16 = sbr.rel (!%p14_p4) target bundleno = 1 (0x1), region = 81 }

// kernel: residual_block_forward.7
= control target key start
LH: loop header
LB: loop body
LE: loop exit
PB: predicated region body
PF: predicated region fallthrough
CT: control target
= control target key end

     0   :  { %s4919_s21 = smov 0   ;;  %s4921_s22 = smov 0   ;;  %s6124_s0 = inlined_call_operand.vmem [shape: bf16[2,10,10,10,8], index: 0, kind: input, shape index: {}, may-alias: {0,1,2}]   ;;  %s6125_s1 = inlined_call_operand.vmem [shape: bf16[2,10,10,10,8], index: 1, kind: input, shape index: {}, may-alias: {0,1,2}]   ;;  %s6126_s2 = inlined_call_operand.vmem [shape: bf16[2,10,10,10,8], index: 2, kind: input, shape index: {}, may-alias: {0,1,2}]   ;;  %s6127_s3 = inlined_call_operand.vmem [shape: bf16[3,3,3,8,8], index: 3, kind: input, shape index: {}]   ;;  %s6128_s4 = inlined_call_operand.vmem [shape: f32[2,8,64,8], index: 4, kind: output, shape index: {0}]   ;;  %s6129_s5 = inlined_call_operand.vmem [shape: f32[2,8,1,8], index: 5, kind: output, shape index: {1}]   ;;  %s6130_s6 = inlined_call_operand.vmem [shape: f32[2,8,1,8], index: 6, kind: output, shape index: {2}]  }
   0x1   :  { %s4923_s23 = smov 0   ;;  %s4925_s24 = smov 0  }
   0x2   :  { %s4927_s25 = smov 0  }
   0x3 LB: > { %s26_s26 = sadd.s32 1, %s4874_s23  ;;  %s29_s27 = sadd.s32 1, %s4878_s24  ;;  %s4882_s25 = sphi %s4927_s25, %s17_s25   ;;  %s4878_s24 = sphi %s4925_s24, %s6205_s24   ;;  %s4874_s23 = sphi %s4923_s23, %s6204_s23   ;;  %s4870_s22 = sphi %s4921_s22, %s6203_s22   ;;  %s4866_s21 = sphi %s4919_s21, %s6202_s21  }
   0x4   : > { %p27_p0 = scmp.ge.s32.totalorder %s26_s26, 8  ;;  %p3863_p1 = scmp.ge.s32.totalorder %s4882_s25, 1 }
   0x5   : > { %p281_p2 = scmp.lt.s32.totalorder %s4882_s25, 17 }
   0x6   : > { %s6207_s26 = smov (%p27_p0, %s26_s26), 0  ;;  %s6209_s27 = smov (!%p27_p0, %s29_s27), %s4878_s24 }
   0x7   : > { %p282_p3 = pnand %p3863_p1, %p281_p2  ;;  %p31_p4 = scmp.ge.s32.totalorder %s6209_s27, 2 }
   0x9   : > { %s6211_s27 = smov (%p31_p4, %s6209_s27), 0  ;;  %285 = sbr.rel (%p282_p3) target bundleno = 510 (0x1fe), region = 36 }
  0x10   : > { %v3872_v0 = vld [vmem:[%s6127_s3 + $0x4] sm:$0xf]  ;;  %vm571_vm0 = vcmask 1043456   ;;  %v3997_v1 = vld [vmem:[%s6127_s3 + $0x34] sm:$0xf]  ;;  %p353_p5 = scmp.lt.s32.totalorder %s4870_s22, 1 }
  0x11   : > { %4734 = vmatprep.subr.msk.bf16.mxu1 %vm571_vm0, %v3872_v0  ;;  %4747 = vmatprep.subr.msk.bf16.mxu0 %vm571_vm0, %v3997_v1  ;;  %v573_v2 = vsel %vm571_vm0, %v3872_v0, 0  ;;  %v4961_v3 = vsel %vm571_vm0, %v3997_v1, 0  ;;  %p355_p6 = scmp.lt.s32.totalorder %s4866_s21, 9  ;;  %v4971_v4 = vld [vmem:[%s6127_s3] sm:$0xf]  ;;  %s362_s15 = sadd.s32 1, %s4866_s21 }
  0x12   : > { %6151 = vst [vmem:[#allocation2_spill] sm:$0xff] %v4961_v3  ;;  %4255 = vmatpush3.bf16.msra.mxu1 %v573_v2  ;;  %4385 = vmatpush3.bf16.msra.mxu0 %v4961_v3  ;;  %s6213_s22 = smov (!%p353_p5, %s4870_s22), 1  ;;  %v4976_v5 = vld [vmem:[%s6127_s3 + $0x38] sm:$0xf]  ;;  %p4992_p7 = scmp.lt.s32.totalorder %s362_s15, 9  ;;  %vm558_vm4 = vcmask 64512  }
  0x13   : > { %s356_s8 = scalar_select %p355_p6, %s4866_s21, 9  ;;  %4735 = vmatprep.subr.msk.bf16.mxu1 %vm571_vm0, %v4971_v4  ;;  %4749 = vmatprep.subr.msk.bf16.mxu0 %vm571_vm0, %v4976_v5  ;;  %vm429_vm1 = vsmask.f32 3328  ;;  %vm430_vm2 = vsmask.f32 7440  ;;  %v673_v56 = vsel %vm571_vm0, %v4971_v4, 0 }
  0x14   : > { %s4979_s13 = smul.u32 200, %s6213_s22  ;;  %s6215_s15 = smov (!%p4992_p7, %s362_s15), 9  ;;  %vm5040_vm3 = vmor %vm429_vm1, %vm430_vm2  ;;  %vm748_vm5 = vcmask 1042432   ;;  %vm749_vm6 = vcmask 1046532   ;;  %vm3608_vm8 = vcmask 57344  }
  0x15   : > { %s4762_s14 = smul.u32 20, %s356_s8  ;;  %vm5189_vm7 = vmor %vm748_vm5, %vm749_vm6  ;;  %p386_p9 = scmp.lt.s32.totalorder %s4866_s21, 7 }
  0x16   : > { %s4764_s29 = smul.u32 20, %s6215_s15 }
  0x17   : > { %s359_s16 = sadd.s32 %s4979_s13, %s4762_s14 }
  0x18   : > { %s3864_s17 = sshll.u32 %s359_s16, 2  ;;  %s369_s30 = sadd.s32 %s4764_s29, %s4979_s13 }
  0x19   : > { %s4990_s20 = scalar_lea.vmem %s6124_s0, %s3864_s17  ;;  %s3865_s7 = sshll.u32 %s369_s30, 2 }
  0x1a   : > { %v4997_v6 = vld [vmem:[%s4990_s20] sm:$0xf]  ;;  %v5000_v7 = vld [vmem:[%s4990_s20 + $0x4] sm:$0x1]  ;;  %v5003_v8 = vld [vmem:[%s4990_s20 + $0x8] sm:$0xf]  ;;  %s5057_s10 = scalar_lea.vmem %s6125_s1, %s3865_s7 }
  0x1b   : > { %v5006_v9 = vld [vmem:[%s4990_s20 + $0xc] sm:$0x1]  ;;  %v5009_v10 = vld [vmem:[%s4990_s20 + $0x10] sm:$0xf]  ;;  %v5012_v11 = vld [vmem:[%s4990_s20 + $0x14] sm:$0x1] }
  0x1c   : > { %v5017_v13 = vld [vmem:[%s4990_s20 + $0x18] sm:$0xf]  ;;  %v433_v14 = vshrl.u32 %v4997_v6, 16  ;;  %v436_v15 = vshll.u32 %v4997_v6, 16  ;;  %v442_v16 = vshll.u32 %v5000_v7, 16  ;;  %v447_v17 = vshrl.u32 %v5003_v8, 16 }
  0x1d   : > { %v450_v18 = vshll.u32 %v5003_v8, 16  ;;  %v456_v19 = vshll.u32 %v5006_v9, 16  ;;  %v461_v20 = vshrl.u32 %v5009_v10, 16  ;;  %v464_v21 = vshll.u32 %v5009_v10, 16  ;;  %v5030_v22 = vld [vmem:[%s4990_s20 + $0x1c] sm:$0x1] }
  0x1e   : > { %v435_v23 = vrot.slane %v433_v14, 4  ;;  %v438_v24 = vrot.slane %v436_v15, 5  ;;  %v449_v25 = vrot.slane %v447_v17, 4  ;;  %v444_v26 = vrot.slane %v442_v16, 5  ;;  %v5036_v34 = vld [vmem:[%s4990_s20 + $0x20] sm:$0xf] }
  0x1f   : > { %v452_v27 = vrot.slane %v450_v18, 5  ;;  %v463_v28 = vrot.slane %v461_v20, 4  ;;  %v466_v29 = vrot.slane %v464_v21, 5  ;;  %v470_v31 = vshll.u32 %v5012_v11, 16  ;;  %v5065_v55 = vld [vmem:[%s4990_s20 + $0x24] sm:$0x1] }
  0x20   : > { %v439_v30 = vor.u32 %v438_v24, %v435_v23  ;;  %v475_v32 = vshrl.u32 %v5017_v13, 16  ;;  %v478_v33 = vshll.u32 %v5017_v13, 16  ;;  %v458_v37 = vrot.slane %v456_v19, 5  ;;  %v1460_v59 = vld [vmem:[%s5057_s10 + $0x4] sm:$0x1]  ;;  %s373_s30 = sadd.s32 2, %s4866_s21 }
  0x21   : > { %v453_v36 = vor.u32 %v452_v27, %v449_v25  ;;  %v467_v38 = vor.u32 %v466_v29, %v463_v28  ;;  %v484_v39 = vshll.u32 %v5030_v22, 16  ;;  %v472_v41 = vrot.slane %v470_v31, 5  ;;  %v5078_v60 = vld [vmem:[%s5057_s10 + $0x8] sm:$0xf]  ;;  %v5081_v61 = vld [vmem:[%s5057_s10 + $0xc] sm:$0x1] }
  0x22   : > { %v440_v40 = vrot.slane %v439_v30, 4  ;;  %v477_v42 = vrot.slane %v475_v32, 4  ;;  %v480_v43 = vrot.slane %v478_v33, 5  ;;  %v489_v50 = vshrl.u32 %v5036_v34, 16  ;;  %v1459_v1 = vld [vmem:[%s5057_s10] sm:$0xf] }
  0x23   : > { %v454_v44 = vrot.slane %v453_v36, 4  ;;  %v468_v45 = vrot.slane %v467_v38, 4  ;;  %v486_v48 = vrot.slane %v484_v39, 5  ;;  %v492_v51 = vshll.u32 %v5036_v34, 16  ;;  %v5089_v2 = vld [vmem:[%s5057_s10 + $0x10] sm:$0xf] }
  0x24   : > { %v445_v46 = vsel %vm5040_vm3, %v440_v40, %v444_v26  ;;  %v481_v47 = vor.u32 %v480_v43, %v477_v42  ;;  %v491_v62 = vrot.slane %v489_v50, 4  ;;  %v5092_v4 = vld [vmem:[%s5057_s10 + $0x14] sm:$0x1]  ;;  %v1590_v14 = vshrl.u32 %v1459_v1, 16  ;;  %v5097_v16 = vld [vmem:[%s6127_s3 + $0x8] sm:$0xf] }
  0x25   : > { %v5050_v49 = vsel %vm5040_vm3, %v454_v44, %v458_v37  ;;  %v5061_v52 = vsel %vm5040_vm3, %v468_v45, %v472_v41  ;;  %v494_v63 = vrot.slane %v492_v51, 5  ;;  %v1593_v15 = vshll.u32 %v1459_v1, 16  ;;  %v5102_v17 = vld [vmem:[%s5057_s10 + $0x18] sm:$0xf]  ;;  %v5109_v24 = vld [vmem:[%s5057_s10 + $0x1c] sm:$0x1] }
  0x26   : > { %v482_v53 = vrot.slane %v481_v47, 4  ;;  %v3873_v54 = vcombine.low %v445_v46, %v5050_v49  ;;  %v1599_v18 = vshll.u32 %v1460_v59, 16  ;;  %v1604_v19 = vshrl.u32 %v5078_v60, 16  ;;  %v5113_v29 = vld [vmem:[%s5057_s10 + $0x20] sm:$0xf]  ;;  %p376_p8 = scmp.lt.s32.totalorder %s373_s30, 9 }
  0x27   : > { %v1607_v20 = vshll.u32 %v5078_v60, 16  ;;  %v1613_v21 = vshll.u32 %v5081_v61, 16  ;;  %v498_v23 = vshll.u32 %v5065_v55, 16  ;;  %v1592_v25 = vrot.slane %v1590_v14, 4  ;;  %v5122_v43 = vld [vmem:[%s5057_s10 + $0x24] sm:$0x1] }
  0x28   : > { %v5071_v57 = vsel %vm5040_vm3, %v482_v53, %v486_v48  ;;  %4256 = vmatprep.mubr.msk.bf16.mxu1 %vm558_vm4, %v3873_v54  ;;  %v1595_v26 = vrot.slane %v1593_v15, 5  ;;  %v1618_v27 = vshrl.u32 %v5089_v2, 16  ;;  %v495_v28 = vor.u32 %v494_v63, %v491_v62  ;;  %s6217_s30 = smov (!%p376_p8, %s373_s30), 9  ;;  %v4842_v35 = vld [vmem:[%s5057_s10 + $0x38] sm:$0xf]  ;;  %s6219_s21 = smov (!%p386_p9, %s4866_s21), 7 }
  0x29   : > { %v5085_v0 = vcombine.low %v5061_v52, %v5071_v57  ;;  %v1601_v30 = vrot.slane %v1599_v18, 5  ;;  %v1606_v31 = vrot.slane %v1604_v19, 4  ;;  %v1609_v32 = vrot.slane %v1607_v20, 5  ;;  %s4765_s12 = smul.u32 20, %s6217_s30 }
  0x2a   : > { %v1596_v33 = vor.u32 %v1595_v26, %v1592_v25  ;;  %v1615_v36 = vrot.slane %v1613_v21, 5  ;;  %v1620_v37 = vrot.slane %v1618_v27, 4  ;;  %v1621_v38 = vshll.u32 %v5089_v2, 16  ;;  %v5139_v27 = vld [vmem:[%s4990_s20 + $0x28] sm:$0xf] }
  0x2b   : > { %6155 = vst [vmem:[#allocation3_spill] sm:$0xff] %v5085_v0  ;;  %4257 = vmatmul.mubr.msk.bf16.vlgmr.msra.gmra.mrb[0].mxu1 %vm558_vm4, %v5085_v0  ;;  %v1610_v39 = vor.u32 %v1609_v32, %v1606_v31  ;;  %v1627_v40 = vshll.u32 %v5092_v4, 16  ;;  %v1632_v41 = vshrl.u32 %v5102_v17, 16  ;;  %v1635_v42 = vshll.u32 %v5102_v17, 16  ;;  %v5142_v31 = vld [vmem:[%s4990_s20 + $0x2c] sm:$0x1]  ;;  %s380_s14 = sadd.s32 %s4765_s12, %s4979_s13 }
  0x2c   : > { %4265 = vmatpush3.bf16.msra.mxu1 %v673_v56  ;;  %v1597_v44 = vrot.slane %v1596_v33, 4  ;;  %v1623_v45 = vrot.slane %v1621_v38, 5  ;;  %v1641_v46 = vshll.u32 %v5109_v24, 16  ;;  %v1646_v47 = vshrl.u32 %v5113_v29, 16  ;;  %v5145_v32 = vld [vmem:[%s4990_s20 + $0x30] sm:$0xf] }
  0x2d   : > { %4736 = vmatprep.subr.msk.bf16.mxu1 %vm571_vm0, %v5097_v16  ;;  %v1611_v48 = vrot.slane %v1610_v39, 4  ;;  %v1634_v50 = vrot.slane %v1632_v41, 4  ;;  %v1637_v51 = vrot.slane %v1635_v42, 5  ;;  %v500_v53 = vrot.slane %v498_v23, 5  ;;  %v5158_v38 = vld [vmem:[%s4990_s20 + $0x34] sm:$0x1] }
  0x2e   : > { %v1602_v54 = vsel %vm5040_vm3, %v1597_v44, %v1601_v30  ;;  %v1624_v56 = vor.u32 %v1623_v45, %v1620_v37  ;;  %v1629_v59 = vrot.slane %v1627_v40, 5  ;;  %v1648_v63 = vrot.slane %v1646_v47, 4  ;;  %v5167_v47 = vld [vmem:[%s4990_s20 + $0x38] sm:$0xf]  ;;  %s3866_s17 = sshll.u32 %s380_s14, 2  ;;  %s3870_s12 = sshll.u32 %s6213_s22, 3 }
  0x2f   : > { %v1638_v62 = vor.u32 %v1637_v51, %v1634_v50  ;;  %v1649_v1 = vshll.u32 %v5113_v29, 16  ;;  %v1655_v14 = vshll.u32 %v5122_v43, 16  ;;  %v496_v15 = vrot.slane %v495_v28, 4  ;;  %v5176_v50 = vld [vmem:[%s4990_s20 + $0x3c] sm:$0x1]  ;;  %s5543_s19 = scalar_lea.vmem %s6126_s2, %s3866_s17  ;;  %s398_s14 = sadd.s32 %s3870_s12, %s6219_s21 }
  0x30   : > { %v1616_v18 = vsel %vm5040_vm3, %v1611_v48, %v1615_v36  ;;  %v1625_v19 = vrot.slane %v1624_v56, 4  ;;  %v1643_v20 = vrot.slane %v1641_v46, 5  ;;  %v2175_v37 = vsel %vm571_vm0, %v4976_v5, 0  ;;  %s399_s17 = scalar_lea.vmem %s6129_s5, %s398_s14 }
  0x31   : > { %v1639_v21 = vrot.slane %v1638_v62, 4  ;;  %v1651_v23 = vrot.slane %v1649_v1, 5  ;;  %v5132_v25 = vcombine.low %v1602_v54, %v1616_v18  ;;  %v1657_v28 = vrot.slane %v1655_v14, 5 }
  0x32   : > { %v5136_v26 = vsel %vm5040_vm3, %v1625_v19, %v1629_v59  ;;  %v5149_v33 = vsel %vm5040_vm3, %v496_v15, %v500_v53  ;;  %v1817_v40 = vrot.slane %v5081_v61, 5  ;;  %v503_v42 = vshrl.u32 %v5139_v27, 16  ;;  %v4016_v15 = vld [vmem:[%s6127_s3 + $0x3c] sm:$0xf] }
  0x33   : > { %6156 = vst [vmem:[#allocation4_spill] sm:$0xff] %v5132_v25  ;;  %v1652_v30 = vor.u32 %v1651_v23, %v1648_v63  ;;  %v5153_v36 = vsel %vm5040_vm3, %v1639_v21, %v1643_v20  ;;  %v3998_v41 = vcombine.low %v1616_v18, %v5136_v26  ;;  %v1821_v44 = vrot.slane %v5092_v4, 5  ;;  %v5198_v21 = vld [vmem:[%s5057_s10 + $0x28] sm:$0xf] }
  0x34   : > { %v506_v45 = vshll.u32 %v5139_v27, 16  ;;  %v512_v46 = vshll.u32 %v5142_v31, 16  ;;  %v517_v48 = vshrl.u32 %v5145_v32, 16  ;;  %v505_v61 = vrot.slane %v503_v42, 4 }
  0x35   : > { %v1653_v39 = vrot.slane %v1652_v30, 4  ;;  %4386 = vmatprep.mubr.msk.bf16.mxu0 %vm558_vm4, %v3998_v41  ;;  %v520_v51 = vshll.u32 %v5145_v32, 16  ;;  %v526_v4 = vshll.u32 %v5158_v38, 16  ;;  %v1825_v53 = vrot.slane %v5109_v24, 5  ;;  %v5204_v41 = vld [vmem:[%s5057_s10 + $0x2c] sm:$0x1] }
  0x36   : > { %v1829_v54 = vrot.slane %v5122_v43, 5  ;;  %v508_v59 = vrot.slane %v506_v45, 5  ;;  %v514_v62 = vrot.slane %v512_v46, 5  ;;  %v519_v63 = vrot.slane %v517_v48, 4 }
  0x37   : > { %v5172_v5 = vsel %vm5040_vm3, %v1653_v39, %v1657_v28  ;;  %v522_v1 = vrot.slane %v520_v51, 5  ;;  %v528_v14 = vrot.slane %v526_v4, 5  ;;  %v531_v43 = vshrl.u32 %v5167_v47, 16  ;;  %v5220_v4 = vld [vmem:[%s5057_s10 + $0x30] sm:$0xf] }
  0x38   : > { %v3999_v56 = vcombine.low %v5153_v36, %v5172_v5  ;;  %v509_v24 = vor.u32 %v508_v59, %v505_v61  ;;  %v534_v19 = vshll.u32 %v5167_v47, 16  ;;  %v540_v20 = vshll.u32 %v5176_v50, 16 }
  0x39   : > { %v523_v23 = vor.u32 %v522_v1, %v519_v63  ;;  %v3972_v30 = vrot.slane %v5078_v60, 9  ;;  %v3973_v28 = vrot.slane %v5089_v2, 9  ;;  %v3974_v39 = vrot.slane %v5102_v17, 9  ;;  %v5233_v1 = vld [vmem:[%s5057_s10 + $0x38] sm:$0xf] }
  0x3a   : > { %4387 = vmatmul.mubr.msk.bf16.vlgmr.msra.gmra.mrb[0].mxu0 %vm558_vm4, %v3999_v56  ;;  %v510_v42 = vrot.slane %v509_v24, 4  ;;  %v533_v45 = vrot.slane %v531_v43, 4  ;;  %v536_v46 = vrot.slane %v534_v19, 5  ;;  %v542_v48 = vrot.slane %v540_v20, 5  ;;  %v5223_v56 = vld [vmem:[%s5057_s10 + $0x34] sm:$0x1] }
  0x3b   : > { %4395 = vmatpush3.bf16.msra.mxu0 %v2175_v37  ;;  %v524_v61 = vrot.slane %v523_v23, 4  ;;  %v5209_v37 = vsel %vm5189_vm7, %v3972_v30, %v1817_v40  ;;  %v5213_v60 = vsel %vm5189_vm7, %v3973_v28, %v1821_v44  ;;  %v5217_v51 = vsel %vm5189_vm7, %v3974_v39, %v1825_v53  ;;  %v5246_v19 = vld [vmem:[%s5057_s10 + $0x3c] sm:$0x1]  ;;  %v5249_v20 = vld [vmem:[%s5057_s10 + $0x40] sm:$0xf] }
  0x3c   : > { %4750 = vmatprep.subr.msk.bf16.mxu0 %vm571_vm0, %v4016_v15  ;;  %6159 = vst [vmem:[#allocation5_spill] sm:$0xff] %v5209_v37  ;;  %v5227_v59 = vsel %vm5040_vm3, %v510_v42, %v514_v62  ;;  %v537_v63 = vor.u32 %v536_v46, %v533_v45  ;;  %v4008_v40 = vcombine.low %v5209_v37, %v5213_v60  ;;  %v3975_v44 = vrot.slane %v5113_v29, 9  ;;  %v5259_v39 = vld [vmem:[%s5057_s10 + $0x44] sm:$0x1] }
  0x3d   : > { %v5237_v53 = vcombine.low %v5149_v33, %v5227_v59  ;;  %v5241_v24 = vsel %vm5040_vm3, %v524_v61, %v528_v14  ;;  %v3976_v62 = vrot.slane %v5198_v21, 9  ;;  %v1833_v43 = vrot.slane %v5204_v41, 5 }
  0x3e   : > { %v538_v23 = vrot.slane %v537_v63, 4  ;;  %4396 = vmatprep.mubr.msk.bf16.mxu0 %vm558_vm4, %v4008_v40  ;;  %v5254_v30 = vsel %vm5189_vm7, %v3975_v44, %v1829_v54  ;;  %v3977_v28 = vrot.slane %v5220_v4, 9  ;;  %v1837_v14 = vrot.slane %v5223_v56, 5 }
  0x3f   : > { %6160 = vst [vmem:[#allocation6_spill] sm:$0xff] %v5237_v53  ;;  %4260 = vmatprep.mubr.msk.bf16.mxu1 %vm558_vm4, %v5237_v53  ;;  %v4009_v42 = vcombine.low %v5217_v51, %v5254_v30  ;;  %v3881_v45 = vcombine.low %v4997_v6, %v5003_v8  ;;  %v5269_v46 = vsel %vm5189_vm7, %v3976_v62, %v1833_v43  ;;  %v3978_v63 = vrot.slane %v5233_v1, 9 }
  0x40   : > { %v5273_v54 = vsel %vm5040_vm3, %v538_v23, %v542_v48  ;;  %v5277_v61 = vsel %vm5189_vm7, %v3977_v28, %v1837_v14  ;;  %v1841_v40 = vrot.slane %v5246_v19, 5  ;;  %v4006_v43 = vrot.slane %v5249_v20, 9  ;;  %v4022_v28 = vld [vmem:[%s6127_s3 + $0x40] sm:$0xf] }
  0x41   : > { %v5283_v44 = vcombine.low %v5241_v24, %v5273_v54  ;;  %v4010_v62 = vcombine.low %v5269_v46, %v5277_v61  ;;  %v2153_v48 = vrot.slane %v5259_v39, 5  ;;  %v2259_v23 = vsel %vm571_vm0, %v4016_v15, 0 }
  0x42   : > { %v3891_v14 = vrot.slane %v5009_v10, 9  ;;  %v761_v58 = vrot.slane %v5012_v11, 5  ;;  %v5302_v15 = vsel %vm5189_vm7, %v3978_v63, %v1841_v40  ;;  %v3892_v3 = vrot.slane %v5017_v13, 9 }
  0x43   : > { %6161 = vst [vmem:[#allocation7_spill] sm:$0xff] %v5283_v44  ;;  %4261 = vmatmul.mubr.msk.bf16.gmra.mrb[4].mxu1 %vm558_vm4, %v5283_v44  ;;  %v5306_v12 = vsel %vm5189_vm7, %v4006_v43, %v2153_v48  ;;  %v765_v11 = vrot.slane %v5030_v22, 5  ;;  %v5318_v63 = vcombine.low %v5009_v10, %v5017_v13  ;;  %v3889_v40 = vrot.slane %v4997_v6, 9 }
  0x44   : > { %4266 = vmatprep.mubr.msk.bf16.mxu1 %vm558_vm4, %v3881_v45  ;;  %v753_v45 = vrot.slane %v5000_v7, 5  ;;  %v3890_v43 = vrot.slane %v5003_v8, 9  ;;  %v810_v48 = vsel %vm571_vm0, %v5097_v16, 0  ;;  %v4011_v7 = vcombine.low %v5302_v15, %v5306_v12 }
  0x45   : > { %6162 = vst [vmem:[#allocation8_spill] sm:$0xff] %v5318_v63  ;;  %v2356_v22 = vsel %vm571_vm0, %v4022_v28, 0  ;;  %v1660_v37 = vshrl.u32 %v5198_v21, 16  ;;  %v5337_v6 = vcombine.low %v5036_v34, %v5139_v27  ;;  %v5341_v16 = vcombine.low %v5089_v2, %v5102_v17 }
  0x46   : > { %4397 = vmatmul.mubr.msk.bf16.vlgmr.msra.gmra.mrb[0].mxu0 %vm558_vm4, %v4009_v42  ;;  %v3906_v42 = vld [vmem:[%s6127_s3 + $0xc] sm:$0xf]  ;;  %v1663_v25 = vshll.u32 %v5198_v21, 16  ;;  %v1688_v44 = vshrl.u32 %v5233_v1, 16  ;;  %v1697_v17 = vshll.u32 %v5246_v19, 16  ;;  %v2045_v0 = vshll.u32 %v5249_v20, 16 }
  0x47   : > { %4405 = vmatpush3.bf16.msra.mxu0 %v2259_v23  ;;  %4400 = vmatprep.mubr.msk.bf16.mxu0 %vm558_vm4, %v4010_v62  ;;  %v757_v62 = vrot.slane %v5006_v9, 5  ;;  %v5328_v23 = vsel %vm571_vm0, %v3906_v42, 0  ;;  %v5332_v9 = vsel %vm5189_vm7, %v3891_v14, %v761_v58  ;;  %6163 = vst [vmem:[#allocation9_spill] sm:$0xff] %v5337_v6  ;;  %6164 = vst [vmem:[#allocation10_spill] sm:$0xff] %v5341_v16  ;;  %v1691_v58 = vshll.u32 %v5233_v1, 16 }
  0x48   : > { %4751 = vmatprep.subr.msk.bf16.mxu0 %vm571_vm0, %v4022_v28  ;;  %v5345_v28 = vsel %vm5189_vm7, %v3892_v3, %v765_v11  ;;  %v754_v14 = vsel %vm5189_vm7, %v3889_v40, %v753_v45  ;;  %v2042_v3 = vshrl.u32 %v5249_v20, 16  ;;  %v1690_v11 = vrot.slane %v1688_v44, 4 }
  0x49   : > { %6165 = vst [vmem:[#allocation11_spill] sm:$0xff] %v5345_v28  ;;  %v5356_v2 = vsel %vm5189_vm7, %v3890_v43, %v757_v62  ;;  %v1693_v53 = vrot.slane %v1691_v58, 5  ;;  %v5365_v45 = vcombine.low %v5332_v9, %v5345_v28  ;;  %v1662_v62 = vrot.slane %v1660_v37, 4 }
  0x4a   : > { %6166 = vst [vmem:[#allocation12_spill] sm:$0xff] %v5356_v2  ;;  %v1669_v40 = vshll.u32 %v5204_v41, 16  ;;  %v2044_v19 = vrot.slane %v2042_v3, 4  ;;  %v1674_v44 = vshrl.u32 %v5220_v4, 16  ;;  %v5377_v41 = vcombine.low %v5145_v32, %v5167_v47 }
  0x4b   : > { %4267 = vmatmul.mubr.msk.bf16.vlgmr.msra.gmra.mrb[0].mxu1 %vm558_vm4, %v5318_v63  ;;  %v2051_v63 = vshll.u32 %v5259_v39, 16  ;;  %v1677_v39 = vshll.u32 %v5220_v4, 16  ;;  %v1694_v43 = vor.u32 %v1693_v53, %v1690_v11  ;;  %v5381_v37 = vcombine.low %v5113_v29, %v5198_v21  ;;  %v5395_v21 = vld [vmem:[%s4990_s20 + $0x44] sm:$0x1] }
  0x4c   : > { %4275 = vmatpush3.bf16.msra.mxu1 %v810_v48  ;;  %4270 = vmatprep.mubr.msk.bf16.mxu1 %vm558_vm4, %v5337_v6  ;;  %v2047_v48 = vrot.slane %v2045_v0, 5  ;;  %v3898_v58 = vcombine.low %v754_v14, %v5356_v2  ;;  %v5389_v0 = vcombine.low %v5220_v4, %v5233_v1  ;;  %v769_v53 = vrot.slane %v5065_v55, 5  ;;  %v4029_v55 = vld [vmem:[%s6127_s3 + $0x44] sm:$0xf] }
  0x4d   : > { %4737 = vmatprep.subr.msk.bf16.mxu1 %vm571_vm0, %v3906_v42  ;;  %v5385_v42 = vld [vmem:[%s5057_s10 + $0x48] sm:$0xf]  ;;  %v1695_v3 = vrot.slane %v1694_v43, 4  ;;  %v2053_v28 = vrot.slane %v2051_v63, 5  ;;  %v3894_v29 = vrot.slane %v5139_v27, 9  ;;  %v773_v14 = vrot.slane %v5142_v31, 5 }
  0x4e   : > { %4401 = vmatmul.mubr.msk.bf16.gmra.mrb[4].mxu0 %vm558_vm4, %v4011_v7  ;;  %v1665_v7 = vrot.slane %v1663_v25, 5  ;;  %v2048_v6 = vor.u32 %v2047_v48, %v2044_v19  ;;  %6167 = vst [vmem:[#allocation13_spill] sm:$0xff] %v5389_v0  ;;  %v3893_v25 = vrot.slane %v5036_v34, 9  ;;  %v1676_v11 = vrot.slane %v1674_v44, 4 }
  0x4f   : > { %4406 = vmatprep.mubr.msk.bf16.mxu0 %vm558_vm4, %v5341_v16  ;;  %v1699_v16 = vrot.slane %v1697_v17, 5  ;;  %v1679_v2 = vrot.slane %v1677_v39, 5  ;;  %v5399_v17 = vld [vmem:[%s4990_s20 + $0x40] sm:$0xf]  ;;  %v1671_v19 = vrot.slane %v1669_v40, 5  ;;  %v2335_v4 = vshrl.u32 %v5385_v42, 16 }
  0x50   : > { %v2049_v43 = vrot.slane %v2048_v6, 4  ;;  %v1666_v63 = vor.u32 %v1665_v7, %v1662_v62  ;;  %v982_v1 = vshrl.u32 %v5399_v17, 16  ;;  %v985_v62 = vshll.u32 %v5399_v17, 16 }
  0x51   : > { %v5413_v31 = vsel %vm5040_vm3, %v1695_v3, %v1699_v16  ;;  %v991_v40 = vshll.u32 %v5395_v21, 16  ;;  %v2338_v44 = vshll.u32 %v5385_v42, 16  ;;  %v5426_v39 = vsel %vm5189_vm7, %v3893_v25, %v769_v53 }
  0x52   : > { %6168 = vst [vmem:[#allocation14_spill] sm:$0xff] %v5413_v31  ;;  %v5417_v6 = vsel %vm5040_vm3, %v2049_v43, %v2053_v28  ;;  %v984_v48 = vrot.slane %v982_v1, 4  ;;  %v5432_v28 = vsel %vm5189_vm7, %v3894_v29, %v773_v14  ;;  %v1683_v7 = vshll.u32 %v5223_v56, 16 }
  0x53   : > { %4271 = vmatmul.mubr.msk.bf16.gmra.mrb[4].mxu1 %vm558_vm4, %v5377_v41  ;;  %6169 = vst [vmem:[#allocation15_spill] sm:$0xff] %v5417_v6  ;;  %v5438_v3 = vcombine.low %v5136_v26, %v5153_v36  ;;  %v4017_v25 = vcombine.low %v5249_v20, %v5385_v42  ;;  %v3895_v53 = vrot.slane %v5145_v32, 9  ;;  %v777_v29 = vrot.slane %v5158_v38, 5  ;;  %v5451_v20 = vld [vmem:[%s5057_s10 + $0x4c] sm:$0x1] }
  0x54   : > { %4276 = vmatprep.mubr.msk.bf16.mxu1 %vm558_vm4, %v3898_v58  ;;  %v987_v58 = vrot.slane %v985_v62, 5  ;;  %v3896_v14 = vrot.slane %v5167_v47, 9  ;;  %v993_v56 = vrot.slane %v991_v40, 5  ;;  %v1667_v43 = vrot.slane %v1666_v63, 4  ;;  %v3915_v38 = vld [vmem:[%s6127_s3 + $0x10] sm:$0xf] }
  0x55   : > { %v5448_v1 = vcombine.low %v5426_v39, %v5432_v28  ;;  %v2337_v26 = vrot.slane %v2335_v4, 4  ;;  %v2340_v36 = vrot.slane %v2338_v44, 5  ;;  %v1685_v16 = vrot.slane %v1683_v7, 5 }
  0x56   : > { %4407 = vmatmul.mubr.msk.bf16.vlgmr.msra.gmra.mrb[0].mxu0 %vm558_vm4, %v5381_v37  ;;  %v5475_v40 = vsel %vm5040_vm3, %v1667_v43, %v1671_v19  ;;  %v2344_v44 = vshll.u32 %v5451_v20, 16 }
  0x57   : > { %4415 = vmatpush3.bf16.msra.mxu0 %v2356_v22  ;;  %4410 = vmatprep.mubr.msk.bf16.mxu0 %vm558_vm4, %v5389_v0  ;;  %v1680_v22 = vor.u32 %v1679_v2, %v1676_v11  ;;  %v781_v2 = vrot.slane %v5176_v50, 5  ;;  %v988_v11 = vor.u32 %v987_v58, %v984_v48  ;;  %v5463_v50 = vsel %vm5189_vm7, %v3895_v53, %v777_v29 }
  0x58   : > { %4752 = vmatprep.subr.msk.bf16.mxu0 %vm571_vm0, %v4029_v55  ;;  %6170 = vst [vmem:[#allocation16_spill] sm:$0xff] %v5475_v40  ;;  %v2444_v53 = vsel %vm571_vm0, %v4029_v55, 0  ;;  %v3908_v29 = vcombine.low %v5017_v13, %v5036_v34  ;;  %v3910_v13 = vcombine.low %v5167_v47, %v5399_v17  ;;  %v5547_v34 = vcombine.low %v5254_v30, %v5269_v46 }
  0x59   : > { %v1681_v62 = vrot.slane %v1680_v22, 4  ;;  %v989_v0 = vrot.slane %v988_v11, 4  ;;  %v5467_v63 = vsel %vm5189_vm7, %v3896_v14, %v781_v2  ;;  %v5495_v22 = vcombine.low %v5172_v5, %v5475_v40  ;;  %v3925_v11 = vld [vmem:[%s6127_s3 + $0x14] sm:$0xf] }
  0x5a   : > { %v5491_v19 = vcombine.low %v5463_v50, %v5467_v63  ;;  %v6173_v5 = vcombine.low %v5003_v8, %v5009_v10  ;;  %v1015_v2 = vsel %vm571_vm0, %v3915_v38, 0  ;;  %v3909_v8 = vcombine.low %v5139_v27, %v5145_v32  ;;  %6175 = vst [vmem:[#allocation20_spill] sm:$0xff] %v5547_v34 }
  0x5b   : > { %4277 = vmatmul.mubr.msk.bf16.vlgmr.msra.gmra.mrb[0].mxu1 %vm558_vm4, %v5365_v45  ;;  %v5471_v4 = vsel %vm5040_vm3, %v989_v0, %v993_v56  ;;  %v5487_v0 = vsel %vm5040_vm3, %v1681_v62, %v1685_v16  ;;  %v4035_v16 = vld [vmem:[%s6127_s3 + $0x48] sm:$0xf]  ;;  %v5526_v10 = vcombine.low %v5213_v60, %v5217_v51  ;;  %v5551_v27 = vcombine.low %v5277_v61, %v5302_v15  ;;  %v5557_v51 = vld [vmem:[%s5543_s19] sm:$0xf]  ;;  %v4044_v61 = vld [vmem:[%s6127_s3 + $0x4c] sm:$0xf] }
  0x5c   : > { %4285 = vmatpush3.bf16.msra.mxu1 %v5328_v23  ;;  %4280 = vmatprep.mubr.msk.bf16.mxu1 %vm558_vm4, %v5448_v1  ;;  %v2341_v23 = vor.u32 %v2340_v36, %v2337_v26  ;;  %6171 = vst [vmem:[#allocation17_spill] sm:$0xff] %v5487_v0  ;;  %v5499_v7 = vcombine.low %v5487_v0, %v5413_v31  ;;  %v4028_v32 = vrot.slane %v5385_v42, 9  ;;  %v2434_v60 = vrot.slane %v5451_v20, 5  ;;  %v5561_v56 = vld [vmem:[%s5543_s19 + $0x8] sm:$0xf] }
  0x5d   : > { %4738 = vmatprep.subr.msk.bf16.mxu1 %vm571_vm0, %v3915_v38  ;;  %6174 = vst [vmem:[#allocation19_spill] sm:$0xff] %v5526_v10  ;;  %6176 = vst [vmem:[#allocation21_spill] sm:$0xff] %v5551_v27  ;;  %v2574_v47 = vsel %vm571_vm0, %v4035_v16, 0  ;;  %v2650_v30 = vshrl.u32 %v5557_v51, 16  ;;  %v2653_v46 = vshll.u32 %v5557_v51, 16  ;;  %v6177_v15 = vcombine.low %v5050_v49, %v5061_v52 }
  0x5e   : > { %4411 = vmatmul.mubr.msk.bf16.gmra.mrb[4].mxu0 %vm558_vm4, %v4017_v25  ;;  %6172 = vst [vmem:[#allocation18_spill] sm:$0xff] %v5499_v7  ;;  %v2342_v58 = vrot.slane %v2341_v23, 4  ;;  %v2346_v25 = vrot.slane %v2344_v44, 5  ;;  %v2664_v42 = vshrl.u32 %v5561_v56, 16  ;;  %v2667_v43 = vshll.u32 %v5561_v56, 16 }
  0x5f   : > { %4416 = vmatprep.mubr.msk.bf16.mxu0 %vm558_vm4, %v5438_v3  ;;  %v2435_v26 = vsel %vm5189_vm7, %v4028_v32, %v2434_v60  ;;  %v3917_v49 = vcombine.low %v5071_v57, %v5149_v33  ;;  %v2652_v52 = vrot.slane %v2650_v30, 4  ;;  %v2655_v36 = vrot.slane %v2653_v46, 5  ;;  %v5585_v20 = vld [vmem:[%s5543_s19 + $0x4] sm:$0x1]  ;;  %v5588_v38 = vld [vmem:[%s5543_s19 + $0xc] sm:$0x1] }
  0x60   : > { %v2347_v55 = vsel %vm5040_vm3, %v2342_v58, %v2346_v25  ;;  %v4030_v62 = vcombine.low %v5306_v12, %v2435_v26  ;;  %v2666_v23 = vrot.slane %v2664_v42, 4  ;;  %v2669_v44 = vrot.slane %v2667_v43, 5  ;;  %v5599_v57 = vld [vmem:[%s5543_s19 + $0x18] sm:$0xf]  ;;  %v5621_v32 = vld [vmem:[%s5543_s19 + $0x20] sm:$0xf] }
  0x61   : > { %v4023_v14 = vcombine.low %v5417_v6, %v2347_v55  ;;  %v1115_v58 = vsel %vm571_vm0, %v3925_v11, 0  ;;  %v3918_v25 = vcombine.low %v5227_v59, %v5241_v24  ;;  %v3934_v12 = vld [vmem:[%s6127_s3 + $0x18] sm:$0xf]  ;;  %v2656_v33 = vor.u32 %v2655_v36, %v2652_v52  ;;  %v5624_v60 = vld [vmem:[%s5543_s19 + $0x28] sm:$0xf] }
  0x62   : > { %v2673_v59 = vshll.u32 %v5588_v38, 16  ;;  %v2670_v55 = vor.u32 %v2669_v44, %v2666_v23  ;;  %v2706_v30 = vshrl.u32 %v5621_v32, 16  ;;  %v2709_v46 = vshll.u32 %v5621_v32, 16  ;;  %v5635_v43 = vld [vmem:[%s5543_s19 + $0x38] sm:$0xf] }
  0x63   : > { %4281 = vmatmul.mubr.msk.bf16.gmra.mrb[4].mxu1 %vm558_vm4, %v5491_v19  ;;  %v2723_v42 = vshll.u32 %v5624_v60, 16  ;;  %v5645_v48 = vcombine.low %v5621_v32, %v5624_v60 }
  0x64   : > { %4286 = vmatprep.mubr.msk.bf16.mxu1 %vm558_vm4, %v6173_v5  ;;  %v2659_v5 = vshll.u32 %v5585_v20, 16  ;;  %v2671_v36 = vrot.slane %v2670_v55, 4 }
  0x66   : > { %4417 = vmatmul.mubr.msk.bf16.vlgmr.msra.gmra.mrb[0].mxu0 %vm558_vm4, %v5495_v22  ;;  %v2661_v26 = vrot.slane %v2659_v5, 5  ;;  %v5653_v5 = vld [vmem:[%s6127_s3 + $0x50] sm:$0xf] }
  0x67   : > { %4425 = vmatpush3.bf16.msra.mxu0 %v2444_v53  ;;  %4420 = vmatprep.mubr.msk.bf16.mxu0 %vm558_vm4, %v5499_v7  ;;  %v4036_v53 = vcombine.low %v5557_v51, %v5561_v56  ;;  %v5700_v7 = vld [vmem:[%s5543_s19 + $0x3c] sm:$0x1] }
  0x68   : > { %4753 = vmatprep.subr.msk.bf16.mxu0 %vm571_vm0, %v4035_v16  ;;  %v5596_v16 = vld [vmem:[%s5543_s19 + $0x10] sm:$0xf] }
  0x69   : > { %v2678_v24 = vshrl.u32 %v5596_v16, 16 }
  0x6b   : > { %4287 = vmatmul.mubr.msk.bf16.vlgmr.msra.gmra.mrb[0].mxu1 %vm558_vm4, %v3908_v29  ;;  %v2681_v29 = vshll.u32 %v5596_v16, 16  ;;  %v2680_v52 = vrot.slane %v2678_v24, 4  ;;  %v2711_v24 = vrot.slane %v2709_v46, 5  ;;  %v5671_v46 = vld [vmem:[%s5543_s19 + $0x2c] sm:$0x1] }
  0x6c   : > { %4295 = vmatpush3.bf16.msra.mxu1 %v1015_v2  ;;  %4290 = vmatprep.mubr.msk.bf16.mxu1 %vm558_vm4, %v3909_v8  ;;  %v2695_v2 = vshll.u32 %v5599_v57, 16  ;;  %v5616_v8 = vcombine.low %v5596_v16, %v5599_v57 }
  0x6d   : > { %4739 = vmatprep.subr.msk.bf16.mxu1 %vm571_vm0, %v3925_v11  ;;  %v6178_v11 = vld [vmem:[#allocation12_spill] sm:$0xff]  ;;  %v2683_v23 = vrot.slane %v2681_v29, 5  ;;  %v2725_v29 = vrot.slane %v2723_v42, 5 }
  0x6e   : > { %4421 = vmatmul.mubr.msk.bf16.gmra.mrb[4].mxu0 %vm558_vm4, %v4023_v14  ;;  %v2692_v14 = vshrl.u32 %v5599_v57, 16  ;;  %6180 = vst [vmem:[#allocation12_spill] sm:$0xff] %v5645_v48 }
  0x6f   : > { %4426 = vmatprep.mubr.msk.bf16.mxu0 %vm558_vm4, %v5526_v10 }
  0x70   : > { %v2694_v44 = vrot.slane %v2692_v14, 4 }
  0x73   : > { %4291 = vmatmul.mubr.msk.bf16.gmra.mrb[4].mxu1 %vm558_vm4, %v3910_v13  ;;  %v3926_v13 = vcombine.low %v6178_v11, %v5332_v9  ;;  %v2657_v9 = vrot.slane %v2656_v33, 4  ;;  %v2788_v11 = vsel %vm571_vm0, %v4044_v61, 0  ;;  %v5648_v33 = vld [vmem:[%s5543_s19 + $0x1c] sm:$0x1] }
  0x74   : > { %4296 = vmatprep.mubr.msk.bf16.mxu1 %vm558_vm4, %v6177_v15  ;;  %v2720_v15 = vshrl.u32 %v5624_v60, 16  ;;  %v2701_v42 = vshll.u32 %v5648_v33, 16 }
  0x76   : > { %4427 = vmatmul.mubr.msk.bf16.vlgmr.msra.gmra.mrb[0].mxu0 %vm558_vm4, %v5547_v34  ;;  %v2722_v55 = vrot.slane %v2720_v15, 4 }
  0x77   : > { %4435 = vmatpush3.bf16.msra.mxu0 %v2574_v47  ;;  %4430 = vmatprep.mubr.msk.bf16.mxu0 %vm558_vm4, %v5551_v27  ;;  %v5628_v47 = vld [vmem:[%s5543_s19 + $0x30] sm:$0xf]  ;;  %v2703_v27 = vrot.slane %v2701_v42, 5  ;;  %v2757_v42 = vshll.u32 %v5700_v7, 16 }
  0x78   : > { %4754 = vmatprep.subr.msk.bf16.mxu0 %vm571_vm0, %v4044_v61  ;;  %v1199_v61 = vsel %vm571_vm0, %v3934_v12, 0  ;;  %v5662_v14 = vcombine.low %v5628_v47, %v5635_v43 }
  0x7b   : > { %4297 = vmatmul.mubr.msk.bf16.vlgmr.msra.gmra.mrb[0].mxu1 %vm558_vm4, %v3917_v49  ;;  %v2675_v49 = vrot.slane %v2673_v59, 5  ;;  %v2708_v59 = vrot.slane %v2706_v30, 4  ;;  %v5668_v30 = vld [vmem:[%s5543_s19 + $0x24] sm:$0x1] }
  0x7c   : > { %4305 = vmatpush3.bf16.msra.mxu1 %v1115_v58  ;;  %4300 = vmatprep.mubr.msk.bf16.mxu1 %vm558_vm4, %v3918_v25  ;;  %v2697_v58 = vrot.slane %v2695_v2, 5  ;;  %v6179_v25 = vld [vmem:[#allocation11_spill] sm:$0xff]  ;;  %v2662_v2 = vsel %vm5040_vm3, %v2657_v9, %v2661_v26  ;;  %v2734_v9 = vshrl.u32 %v5628_v47, 16  ;;  %v2737_v26 = vshll.u32 %v5628_v47, 16 }
  0x7d   : > { %4740 = vmatprep.subr.msk.bf16.mxu1 %vm571_vm0, %v3934_v12  ;;  %v2684_v12 = vor.u32 %v2683_v23, %v2680_v52  ;;  %v2715_v52 = vshll.u32 %v5668_v30, 16  ;;  %v2729_v23 = vshll.u32 %v5671_v46, 16 }
  0x7e   : > { %4431 = vmatmul.mubr.msk.bf16.gmra.mrb[4].mxu0 %vm558_vm4, %v4030_v62  ;;  %v5638_v62 = vld [vmem:[%s5543_s19 + $0x14] sm:$0x1]  ;;  %v2698_v15 = vor.u32 %v2697_v58, %v2694_v44  ;;  %v3928_v44 = vcombine.low %v5432_v28, %v5463_v50  ;;  %v3924_v58 = vrot.slane %v5399_v17, 9 }
  0x7f   : > { %4436 = vmatprep.mubr.msk.bf16.mxu0 %vm558_vm4, %v4036_v53  ;;  %v3927_v53 = vcombine.low %v6179_v25, %v5426_v39  ;;  %v6181_v39 = vcombine.low %v5273_v54, %v5471_v4  ;;  %v2687_v25 = vshll.u32 %v5638_v62, 16  ;;  %v5678_v54 = vsel %vm5040_vm3, %v2671_v36, %v2675_v49 }
  0x80   : > { %v2712_v49 = vor.u32 %v2711_v24, %v2708_v59  ;;  %v2726_v36 = vor.u32 %v2725_v29, %v2722_v55  ;;  %v4045_v31 = vcombine.low %v2662_v2, %v5678_v54  ;;  %v2685_v40 = vrot.slane %v2684_v12, 4  ;;  %v5697_v59 = vld [vmem:[%s5543_s19 + $0x34] sm:$0x1] }
  0x81   : > { %v2689_v6 = vrot.slane %v2687_v25, 5  ;;  %v2699_v0 = vrot.slane %v2698_v15, 4  ;;  %v2736_v24 = vrot.slane %v2734_v9, 4  ;;  %v2739_v55 = vrot.slane %v2737_v26, 5 }
  0x82   : > { %v2713_v10 = vrot.slane %v2712_v49, 4  ;;  %v2727_v28 = vrot.slane %v2726_v36, 4  ;;  %v2731_v50 = vrot.slane %v2729_v23, 5  ;;  %v2743_v12 = vshll.u32 %v5697_v59, 16 }
  0x83   : > { %4301 = vmatmul.mubr.msk.bf16.gmra.mrb[4].mxu1 %vm558_vm4, %v6181_v39  ;;  %v2748_v39 = vshrl.u32 %v5635_v43, 16  ;;  %v5714_v25 = vsel %vm5040_vm3, %v2685_v40, %v2689_v6  ;;  %v2759_v26 = vrot.slane %v2757_v42, 5  ;;  %v2877_v49 = vrot.slane %v5588_v38, 5 }
  0x84   : > { %4306 = vmatprep.mubr.msk.bf16.mxu1 %vm558_vm4, %v3926_v13  ;;  %v2751_v13 = vshll.u32 %v5635_v43, 16  ;;  %v5731_v40 = vsel %vm5040_vm3, %v2727_v28, %v2731_v50  ;;  %v4057_v28 = vrot.slane %v5621_v32, 9  ;;  %v2889_v50 = vrot.slane %v5668_v30, 5 }
  0x85   : > { %v2750_v29 = vrot.slane %v2748_v39, 4  ;;  %v4053_v39 = vrot.slane %v5557_v51, 9 }
  0x86   : > { %4437 = vmatmul.mubr.msk.bf16.vlgmr.msra.gmra.mrb[0].mxu0 %vm558_vm4, %v5616_v8  ;;  %v2753_v34 = vrot.slane %v2751_v13, 5  ;;  %v2873_v13 = vrot.slane %v5585_v20, 5 }
  0x87   : > { %4445 = vmatpush3.bf16.msra.mxu0 %v2788_v11  ;;  %4440 = vmatprep.mubr.msk.bf16.mxu0 %vm558_vm4, %v5645_v48  ;;  %v1093_v11 = vrot.slane %v5395_v21, 5  ;;  %v2717_v48 = vrot.slane %v2715_v52, 5  ;;  %v3940_v21 = vld [vmem:[%s6127_s3 + $0x1c] sm:$0xf]  ;;  %v6182_v52 = vld [vmem:[#allocation8_spill] sm:$0xff] }
  0x88   : > { %4755 = vmatprep.subr.msk.bf16.mxu0 %vm571_vm0, %v5653_v5  ;;  %v2754_v15 = vor.u32 %v2753_v34, %v2750_v29  ;;  %v2930_v34 = vsel %vm571_vm0, %v5653_v5, 0  ;;  %v4070_v5 = vld [vmem:[%s6127_s3 + $0x54] sm:$0xf]  ;;  %v2874_v38 = vsel %vm5189_vm7, %v4053_v39, %v2873_v13  ;;  %v1296_v23 = vsel %vm571_vm0, %v3940_v21, 0 }
  0x89   : > { %v5710_v2 = vsel %vm5189_vm7, %v3924_v58, %v1093_v11  ;;  %v5727_v6 = vsel %vm5040_vm3, %v2713_v10, %v2717_v48  ;;  %v4055_v58 = vrot.slane %v5596_v16, 9  ;;  %v2885_v29 = vrot.slane %v5648_v33, 5 }
  0x8a   : > { %v5743_v9 = vcombine.low %v5727_v6, %v5731_v40  ;;  %v2755_v10 = vrot.slane %v2754_v15, 4  ;;  %v5791_v15 = vld [vmem:[%s4990_s20 + $0x48] sm:$0xf]  ;;  %v2897_v13 = vrot.slane %v5697_v59, 5 }
  0x8b   : > { %4307 = vmatmul.mubr.msk.bf16.vlgmr.msra.gmra.mrb[0].mxu1 %vm558_vm4, %v3927_v53  ;;  %v5721_v53 = vsel %vm5040_vm3, %v2699_v0, %v2703_v27  ;;  %v2745_v27 = vrot.slane %v2743_v12, 5  ;;  %v2893_v12 = vrot.slane %v5671_v46, 5  ;;  %v1275_v33 = vshrl.u32 %v5791_v15, 16 }
  0x8c   : > { %4315 = vmatpush3.bf16.msra.mxu1 %v1199_v61  ;;  %4310 = vmatprep.mubr.msk.bf16.mxu1 %vm558_vm4, %v3928_v44  ;;  %v2740_v61 = vor.u32 %v2739_v55, %v2736_v24  ;;  %v5737_v0 = vcombine.low %v5714_v25, %v5721_v53  ;;  %v5765_v20 = vsel %vm5040_vm3, %v2755_v10, %v2759_v26  ;;  %v2881_v24 = vrot.slane %v5638_v62, 5  ;;  %v3947_v62 = vld [vmem:[%s6127_s3 + $0x20] sm:$0xf] }
  0x8d   : > { %4741 = vmatprep.subr.msk.bf16.mxu1 %vm571_vm0, %v3940_v21  ;;  %v4056_v55 = vrot.slane %v5599_v57, 9  ;;  %v4058_v21 = vrot.slane %v5624_v60, 9  ;;  %v1278_v30 = vshll.u32 %v5791_v15, 16  ;;  %v1277_v10 = vrot.slane %v1275_v33, 4 }
  0x8e   : > { %4441 = vmatmul.mubr.msk.bf16.gmra.mrb[4].mxu0 %vm558_vm4, %v5662_v14  ;;  %v2741_v48 = vrot.slane %v2740_v61, 4  ;;  %v6183_v61 = vld [vmem:[#allocation9_spill] sm:$0xff]  ;;  %v5805_v46 = vsel %vm5189_vm7, %v4055_v58, %v2881_v24 }
  0x8f   : > { %4446 = vmatprep.mubr.msk.bf16.mxu0 %vm558_vm4, %v4045_v31  ;;  %v3929_v31 = vcombine.low %v5467_v63, %v5710_v2  ;;  %v4054_v63 = vrot.slane %v5561_v56, 9  ;;  %v5809_v42 = vsel %vm5189_vm7, %v4056_v55, %v2885_v29  ;;  %v1280_v26 = vrot.slane %v1278_v30, 5  ;;  %v4089_v30 = vld [vmem:[%s6127_s3 + $0x5c] sm:$0xf] }
  0x90   : > { %v5761_v51 = vsel %vm5040_vm3, %v2741_v48, %v2745_v27  ;;  %v5824_v27 = vcombine.low %v5805_v46, %v5809_v42  ;;  %v4059_v48 = vrot.slane %v5628_v47, 9  ;;  %v1384_v29 = vsel %vm571_vm0, %v3947_v62, 0 }
  0x91   : > { %v5771_v36 = vsel %vm5189_vm7, %v4054_v63, %v2877_v49  ;;  %v5777_v44 = vcombine.low %v5761_v51, %v5765_v20  ;;  %v4060_v63 = vrot.slane %v5635_v43, 9  ;;  %v2901_v49 = vrot.slane %v5700_v7, 5 }
  0x92   : > { %v4062_v11 = vcombine.low %v2874_v38, %v5771_v36  ;;  %v4079_v38 = vld [vmem:[%s6127_s3 + $0x58] sm:$0xf]  ;;  %v1281_v59 = vor.u32 %v1280_v26, %v1277_v10  ;;  %v5848_v7 = vsel %vm5189_vm7, %v4059_v48, %v2897_v13  ;;  %v2536_v13 = vld [vmem:[%s5543_s19 + $0x44] sm:$0x1] }
  0x93   : > { %4311 = vmatmul.mubr.msk.bf16.gmra.mrb[4].mxu1 %vm558_vm4, %v3929_v31  ;;  %v5814_v31 = vsel %vm5189_vm7, %v4057_v28, %v2889_v50  ;;  %v4071_v28 = vcombine.low %v5561_v56, %v5596_v16  ;;  %v6185_v50 = vld [vmem:[#allocation6_spill] sm:$0xff]  ;;  %v4072_v16 = vcombine.low %v5599_v57, %v5621_v32  ;;  %v3135_v33 = vsel %vm571_vm0, %v4079_v38, 0 }
  0x94   : > { %4316 = vmatprep.mubr.msk.bf16.mxu1 %vm558_vm4, %v6182_v52  ;;  %v427_v52 = vld [vmem:[%s4990_s20 + $0x4c] sm:$0x1]  ;;  %v1282_v24 = vrot.slane %v1281_v59, 4  ;;  %v3235_v59 = vsel %vm571_vm0, %v4089_v30, 0  ;;  %s406_s20 = scalar_lea.vmem %s6130_s6, %s398_s14 }
  0x95   : > { %v1284_v58 = vshll.u32 %v427_v52, 16 }
  0x96   : > { %4447 = vmatmul.mubr.msk.bf16.vlgmr.msra.gmra.mrb[0].mxu0 %vm558_vm4, %v5737_v0 }
  0x97   : > { %4455 = vmatpush3.bf16.msra.mxu0 %v2930_v34  ;;  %4450 = vmatprep.mubr.msk.bf16.mxu0 %vm558_vm4, %v5743_v9  ;;  %v3935_v34 = vcombine.low %v5399_v17, %v5791_v15  ;;  %v3026_v17 = vsel %vm571_vm0, %v4070_v5, 0  ;;  %v1286_v55 = vrot.slane %v1284_v58, 5  ;;  %v6187_v58 = vld [vmem:[#allocation10_spill] sm:$0xff] }
  0x98   : > { %4756 = vmatprep.subr.msk.bf16.mxu0 %vm571_vm0, %v4070_v5  ;;  %v5852_v5 = vsel %vm5189_vm7, %v4060_v63, %v2901_v49  ;;  %v4081_v63 = vcombine.low %v5721_v53, %v5727_v6  ;;  %v5918_v49 = vld [vmem:[%s5057_s10 + $0x8] sm:$0xf] }
  0x9b   : > { %4317 = vmatmul.mubr.msk.bf16.vlgmr.msra.gmra.mrb[0].mxu1 %vm558_vm4, %v6183_v61  ;;  %v6186_v61 = vld [vmem:[#allocation7_spill] sm:$0xff] }
  0x9c   : > { %4325 = vmatpush3.bf16.msra.mxu1 %v1296_v23  ;;  %4320 = vmatprep.mubr.msk.bf16.mxu1 %vm558_vm4, %v5377_v41  ;;  %v5818_v41 = vsel %vm5189_vm7, %v4058_v21, %v2893_v12  ;;  %v6184_v23 = vld [vmem:[#allocation3_spill] sm:$0xff]  ;;  %v3953_v21 = vld [vmem:[%s6127_s3 + $0x24] sm:$0xf]  ;;  %v1287_v12 = vsel %vm5040_vm3, %v1282_v24, %v1286_v55  ;;  %v3213_v55 = vrot.slane %v2536_v13, 5 }
  0x9d   : > { %4742 = vmatprep.subr.msk.bf16.mxu1 %vm571_vm0, %v3947_v62  ;;  %v5829_v39 = vcombine.low %v5814_v31, %v5818_v41  ;;  %v3941_v56 = vcombine.low %v5471_v4, %v1287_v12  ;;  %v4073_v62 = vcombine.low %v5624_v60, %v5628_v47  ;;  %v5889_v4 = vld [vmem:[%s5543_s19 + $0x40] sm:$0xf]  ;;  %v3946_v47 = vrot.slane %v5791_v15, 9  ;;  %v3979_v24 = vld [vmem:[%s6127_s3 + $0x2c] sm:$0xf] }
  0x9e   : > { %4451 = vmatmul.mubr.msk.bf16.gmra.mrb[4].mxu0 %vm558_vm4, %v5777_v44  ;;  %v3102_v57 = vshrl.u32 %v5889_v4, 16  ;;  %v3105_v32 = vshll.u32 %v5889_v4, 16  ;;  %v4074_v60 = vcombine.low %v5635_v43, %v5889_v4  ;;  %v1514_v48 = vsel %vm571_vm0, %v3953_v21, 0  ;;  %v3962_v43 = vld [vmem:[%s6127_s3 + $0x28] sm:$0xf] }
  0x9f   : > { %4456 = vmatprep.mubr.msk.bf16.mxu0 %vm558_vm4, %v4062_v11  ;;  %v5857_v11 = vcombine.low %v5848_v7, %v5852_v5 }
  0xa0   : > { %v3104_v10 = vrot.slane %v3102_v57, 4  ;;  %v3107_v26 = vrot.slane %v3105_v32, 5 }
  0xa3   : > { %4321 = vmatmul.mubr.msk.bf16.gmra.mrb[4].mxu1 %vm558_vm4, %v3935_v34  ;;  %v1374_v34 = vrot.slane %v427_v52, 5  ;;  %v4834_v52 = vld [vmem:[%s5057_s10] sm:$0xf] }
  0xa4   : > { %4326 = vmatprep.mubr.msk.bf16.mxu1 %vm558_vm4, %v6184_v23  ;;  %v3971_v12 = vrot.slane %v4834_v52, 9 }
  0xa5   : > { %v1375_v15 = vsel %vm5189_vm7, %v3946_v47, %v1374_v34 }
  0xa6   : > { %4457 = vmatmul.mubr.msk.bf16.vlgmr.msra.gmra.mrb[0].mxu0 %vm558_vm4, %v5824_v27 }
  0xa7   : > { %4465 = vmatpush3.bf16.msra.mxu0 %v3026_v17  ;;  %4460 = vmatprep.mubr.msk.bf16.mxu0 %vm558_vm4, %v5829_v39  ;;  %v3954_v17 = vcombine.low %v4834_v52, %v5918_v49 }
  0xa8   : > { %4757 = vmatprep.subr.msk.bf16.mxu0 %vm571_vm0, %v4079_v38  ;;  %v4082_v38 = vcombine.low %v5731_v40, %v5761_v51  ;;  %v1728_v40 = vsel %vm571_vm0, %v3962_v43, 0  ;;  %v4090_v51 = vcombine.low %v5771_v36, %v5805_v46  ;;  %v4092_v36 = vcombine.low %v5818_v41, %v5848_v7  ;;  %v4835_v41 = vld [vmem:[%s5057_s10 + $0x4] sm:$0x1] }
  0xa9   : > { %v4088_v46 = vrot.slane %v5889_v4, 9  ;;  %v1813_v7 = vrot.slane %v4835_v41, 5 }
  0xab   : > { %4327 = vmatmul.mubr.msk.bf16.vlgmr.msra.gmra.mrb[0].mxu1 %vm558_vm4, %v6185_v50  ;;  %v6189_v50 = vld [vmem:[#allocation4_spill] sm:$0xff] }
  0xac   : > { %4335 = vmatpush3.bf16.msra.mxu1 %v1384_v29  ;;  %4330 = vmatprep.mubr.msk.bf16.mxu1 %vm558_vm4, %v6186_v61  ;;  %v3988_v61 = vld [vmem:[%s6127_s3 + $0x30] sm:$0xf] }
  0xad   : > { %4743 = vmatprep.subr.msk.bf16.mxu1 %vm571_vm0, %v3953_v21  ;;  %v1870_v21 = vsel %vm571_vm0, %v3979_v24, 0 }
  0xae   : > { %4461 = vmatmul.mubr.msk.bf16.gmra.mrb[4].mxu0 %vm558_vm4, %v5857_v11 }
  0xaf   : > { %4466 = vmatprep.mubr.msk.bf16.mxu0 %vm558_vm4, %v4071_v28  ;;  %v6188_v28 = vld [vmem:[#allocation13_spill] sm:$0xff] }
  0xb3   : > { %4331 = vmatmul.mubr.msk.bf16.gmra.mrb[4].mxu1 %vm558_vm4, %v3941_v56  ;;  %v6190_v56 = vld [vmem:[#allocation5_spill] sm:$0xff] }
  0xb4   : > { %4336 = vmatprep.mubr.msk.bf16.mxu1 %vm558_vm4, %v5365_v45  ;;  %v4080_v45 = vcombine.low %v5678_v54, %v5714_v25  ;;  %v3108_v54 = vor.u32 %v3107_v26, %v3104_v10  ;;  %v3111_v25 = vshll.u32 %v2536_v13, 16  ;;  %v6194_v10 = vld [vmem:[#allocation20_spill] sm:$0xff] }
  0xb5   : > { %v4836_v26 = vld [vmem:[%s6127_s3 + $0x34] sm:$0xf]  ;;  %v4837_v13 = vld [vmem:[%s5057_s10 + $0x10] sm:$0xf] }
  0xb6   : > { %4467 = vmatmul.mubr.msk.bf16.vlgmr.msra.gmra.mrb[0].mxu0 %vm558_vm4, %v4072_v16  ;;  %v3113_v23 = vrot.slane %v3111_v25, 5 }
  0xb7   : > { %4475 = vmatpush3.bf16.msra.mxu0 %v3135_v33  ;;  %4470 = vmatprep.mubr.msk.bf16.mxu0 %vm558_vm4, %v4073_v62  ;;  %v6191_v62 = vld [vmem:[#allocation18_spill] sm:$0xff]  ;;  %v6192_v33 = vld [vmem:[#allocation12_spill] sm:$0xff] }
  0xb8   : > { %4758 = vmatprep.subr.msk.bf16.mxu0 %vm571_vm0, %v4089_v30 }
  0xbb   : > { %4337 = vmatmul.mubr.msk.bf16.vlgmr.msra.gmra.mrb[0].mxu1 %vm558_vm4, %v5448_v1  ;;  %v3948_v1 = vcombine.low %v5710_v2, %v1375_v15  ;;  %v4098_v2 = vld [vmem:[%s6127_s3 + $0x60] sm:$0xf] }
  0xbc   : > { %4345 = vmatpush3.bf16.msra.mxu1 %v1514_v48  ;;  %4340 = vmatprep.mubr.msk.bf16.mxu1 %vm558_vm4, %v5491_v19  ;;  %v3109_v19 = vrot.slane %v3108_v54, 4  ;;  %v3319_v29 = vsel %vm571_vm0, %v4098_v2, 0  ;;  %v2538_v48 = vld [vmem:[%s5543_s19 + $0x4c] sm:$0x1] }
  0xbd   : > { %4744 = vmatprep.subr.msk.bf16.mxu1 %vm571_vm0, %v3962_v43  ;;  %v3989_v43 = vcombine.low %v5918_v49, %v4837_v13  ;;  %v4839_v49 = vld [vmem:[%s5057_s10 + $0x20] sm:$0xf] }
  0xbe   : > { %4471 = vmatmul.mubr.msk.bf16.gmra.mrb[4].mxu0 %vm558_vm4, %v4074_v60  ;;  %v5934_v53 = vsel %vm5040_vm3, %v3109_v19, %v3113_v23  ;;  %v1966_v60 = vsel %vm571_vm0, %v3988_v61, 0  ;;  %v4841_v19 = vld [vmem:[%s5057_s10 + $0x30] sm:$0xf] }
  0xbf   : > { %4476 = vmatprep.mubr.msk.bf16.mxu0 %vm558_vm4, %v4080_v45  ;;  %v4083_v6 = vcombine.low %v5765_v20, %v5934_v53  ;;  %v4091_v20 = vcombine.low %v5809_v42, %v5814_v31  ;;  %v5969_v42 = vsel %vm5189_vm7, %v4088_v46, %v3213_v55  ;;  %v6193_v45 = vld [vmem:[#allocation19_spill] sm:$0xff] }
  0xc0   : > { %v4093_v31 = vcombine.low %v5852_v5, %v5969_v42  ;;  %v1814_v5 = vsel %vm5189_vm7, %v3971_v12, %v1813_v7 }
  0xc3   : > { %4341 = vmatmul.mubr.msk.bf16.gmra.mrb[4].mxu1 %vm558_vm4, %v3948_v1 }
  0xc4   : > { %4346 = vmatprep.mubr.msk.bf16.mxu1 %vm558_vm4, %v3954_v17 }
  0xc6   : > { %4477 = vmatmul.mubr.msk.bf16.vlgmr.msra.gmra.mrb[0].mxu0 %vm558_vm4, %v4081_v63  ;;  %v4838_v63 = vld [vmem:[%s5057_s10 + $0x18] sm:$0xf] }
  0xc7   : > { %4485 = vmatpush3.bf16.msra.mxu0 %v3235_v59  ;;  %4480 = vmatprep.mubr.msk.bf16.mxu0 %vm558_vm4, %v4082_v38  ;;  %v3990_v52 = vcombine.low %v4838_v63, %v4839_v49  ;;  %v4840_v38 = vld [vmem:[%s5057_s10 + $0x28] sm:$0xf] }
  0xc8   : > { %4759 = vmatprep.subr.msk.bf16.mxu0 %vm571_vm0, %v4098_v2  ;;  %v3991_v23 = vcombine.low %v4840_v38, %v4841_v19  ;;  %v6197_v2 = vld [vmem:[#allocation17_spill] sm:$0xff] }
  0xcb   : > { %4347 = vmatmul.mubr.msk.bf16.vlgmr.msra.gmra.mrb[0].mxu1 %vm558_vm4, %v6187_v58 }
  0xcc   : > { %4355 = vmatpush3.bf16.msra.mxu1 %v1728_v40  ;;  %4350 = vmatprep.mubr.msk.bf16.mxu1 %vm558_vm4, %v5381_v37  ;;  %v4104_v37 = vld [vmem:[%s6127_s3 + $0x64] sm:$0xf] }
  0xcd   : > { %4745 = vmatprep.subr.msk.bf16.mxu1 %vm571_vm0, %v3979_v24  ;;  %v3416_v16 = vsel %vm571_vm0, %v4104_v37, 0  ;;  %v6199_v24 = vld [vmem:[#allocation14_spill] sm:$0xff] }
  0xce   : > { %4481 = vmatmul.mubr.msk.bf16.gmra.mrb[4].mxu0 %vm558_vm4, %v4083_v6 }
  0xcf   : > { %4486 = vmatprep.mubr.msk.bf16.mxu0 %vm558_vm4, %v4090_v51  ;;  %v3494_v51 = vrot.slane %v2538_v48, 5 }
  0xd3   : > { %4351 = vmatmul.mubr.msk.bf16.gmra.mrb[4].mxu1 %vm558_vm4, %v6188_v28 }
  0xd4   : > { %4356 = vmatprep.mubr.msk.bf16.mxu1 %vm558_vm4, %v6189_v50 }
  0xd6   : > { %4487 = vmatmul.mubr.msk.bf16.vlgmr.msra.gmra.mrb[0].mxu0 %vm558_vm4, %v4091_v20  ;;  %v6200_v20 = vld [vmem:[#allocation15_spill] sm:$0xff] }
  0xd7   : > { %4495 = vmatpush3.bf16.msra.mxu0 %v3319_v29  ;;  %4490 = vmatprep.mubr.msk.bf16.mxu0 %vm558_vm4, %v4092_v36  ;;  %v6201_v36 = vcombine.low %v6199_v24, %v6200_v20 }
  0xd8   : > { %4760 = vmatprep.subr.msk.bf16.mxu0 %vm571_vm0, %v4104_v37 }
  0xdb   : > { %4357 = vmatmul.mubr.msk.bf16.vlgmr.msra.gmra.mrb[0].mxu1 %vm558_vm4, %v5438_v3  ;;  %v3980_v3 = vcombine.low %v1814_v5, %v6190_v56 }
  0xdc   : > { %4365 = vmatpush3.bf16.msra.mxu1 %v1870_v21  ;;  %4360 = vmatprep.mubr.msk.bf16.mxu1 %vm558_vm4, %v5495_v22  ;;  %v4111_v22 = vld [vmem:[%s6127_s3 + $0x68] sm:$0xf] }
  0xdd   : > { %4746 = vmatprep.subr.msk.bf16.mxu1 %vm571_vm0, %v3988_v61  ;;  %v3504_v25 = vsel %vm571_vm0, %v4111_v22, 0 }
  0xde   : > { %4491 = vmatmul.mubr.msk.bf16.gmra.mrb[4].mxu0 %vm558_vm4, %v4093_v31 }
  0xdf   : > { %4496 = vmatprep.mubr.msk.bf16.mxu0 %vm558_vm4, %v5616_v8  ;;  %v2537_v8 = vld [vmem:[%s5543_s19 + $0x48] sm:$0xf]  ;;  %s3868_s19 = sshll.u32 %s6213_s22, 6 }
  0xe0   : > { %v3395_v30 = vshrl.u32 %v2537_v8, 16  ;;  %v3398_v57 = vshll.u32 %v2537_v8, 16  ;;  %v4099_v32 = vcombine.low %v5889_v4, %v2537_v8  ;;  %v3404_v4 = vshll.u32 %v2538_v48, 16 }
  0xe1   : > { %v4110_v40 = vrot.slane %v2537_v8, 9 }
  0xe2   : > { %v3397_v47 = vrot.slane %v3395_v30, 4  ;;  %v3400_v34 = vrot.slane %v3398_v57, 5  ;;  %v3406_v54 = vrot.slane %v3404_v4, 5 }
  0xe3   : > { %4361 = vmatmul.mubr.msk.bf16.gmra.mrb[4].mxu1 %vm558_vm4, %v6191_v62 }
  0xe4   : > { %4366 = vmatprep.mubr.msk.bf16.mxu1 %vm558_vm4, %v3980_v3 }
  0xe6   : > { %4497 = vmatmul.mubr.msk.bf16.vlgmr.msra.gmra.mrb[0].mxu0 %vm558_vm4, %v6192_v33 }
  0xe7   : > { %4505 = vmatpush3.bf16.msra.mxu0 %v3416_v16  ;;  %4500 = vmatprep.mubr.msk.bf16.mxu0 %vm558_vm4, %v5662_v14  ;;  %v3401_v14 = vor.u32 %v3400_v34, %v3397_v47 }
  0xe8   : > { %4761 = vmatprep.subr.msk.bf16.mxu0 %vm571_vm0, %v4111_v22 }
  0xe9   : > { %v3402_v15 = vrot.slane %v3401_v14, 4 }
  0xeb   : > { %4367 = vmatmul.mubr.msk.bf16.vlgmr.msra.gmra.mrb[0].mxu1 %vm558_vm4, %v6193_v45  ;;  %v3407_v1 = vsel %vm5040_vm3, %v3402_v15, %v3406_v54 }
  0xec   : > { %4375 = vmatpush3.bf16.msra.mxu1 %v1966_v60  ;;  %4370 = vmatprep.mubr.msk.bf16.mxu1 %vm558_vm4, %v6194_v10  ;;  %v4105_v17 = vcombine.low %v5934_v53, %v3407_v1  ;;  %v6198_v53 = vld [vmem:[#allocation16_spill] sm:$0xff] }
  0xed   : > { %4748 = vmatprep.subr.msk.bf16.mxu1 %vm571_vm0, %v4836_v26  ;;  %v4000_v6 = vcombine.low %v6198_v53, %v6197_v2 }
  0xee   : > { %4501 = vmatmul.mubr.msk.bf16.gmra.mrb[4].mxu0 %vm558_vm4, %v4099_v32 }
  0xef   : > { %4506 = vmatprep.mubr.msk.bf16.mxu0 %vm558_vm4, %v5737_v0  ;;  %v6195_v0 = vld [vmem:[#allocation21_spill] sm:$0xff] }
  0xf3   : > { %4371 = vmatmul.mubr.msk.bf16.gmra.mrb[4].mxu1 %vm558_vm4, %v6195_v0 }
  0xf4   : > { %4376 = vmatprep.mubr.msk.bf16.mxu1 %vm558_vm4, %v3989_v43 }
  0xf6   : > { %4507 = vmatmul.mubr.msk.bf16.vlgmr.msra.gmra.mrb[0].mxu0 %vm558_vm4, %v5743_v9  ;;  %v6196_v9 = vld [vmem:[#allocation2_spill] sm:$0xff] }
  0xf7   : > { %4515 = vmatpush3.bf16.msra.mxu0 %v3504_v25  ;;  %4510 = vmatprep.mubr.msk.bf16.mxu0 %vm558_vm4, %v5777_v44  ;;  %v4843_v44 = vld [vmem:[%s5057_s10 + $0x40] sm:$0xf]  ;;  %s3867_s10 = sshll.u32 %s6219_s21, 3 }
  0xf8   : > { %v3992_v59 = vcombine.low %v4842_v35, %v4843_v44  ;;  %s390_s30 = sadd.s32 %s3868_s19, %s3867_s10 }
  0xf9   : > { %s3869_s7 = sshll.u32 %s390_s30, 3 }
  0xfa   : > { %s6067_s11 = scalar_lea.vmem %s6128_s4, %s3869_s7 }
  0xfb   : > { %4377 = vmatmul.mubr.msk.bf16.vlgmr.msra.gmra.mrb[0].mxu1 %vm558_vm4, %v3990_v52 }
  0xfc   : > { %4525 = vmatpush3.bf16.msra.mxu1 %v6196_v9  ;;  %4380 = vmatprep.mubr.msk.bf16.mxu1 %vm558_vm4, %v3991_v23 }
  0xfe   : > { %4511 = vmatmul.mubr.msk.bf16.gmra.mrb[4].mxu0 %vm558_vm4, %v4105_v17 }
  0xff   : > { %4516 = vmatprep.mubr.msk.bf16.mxu0 %vm558_vm4, %v5824_v27  ;;  %v3495_v27 = vsel %vm5189_vm7, %v4110_v40, %v3494_v51 }
 0x100   : > { %v4112_v58 = vcombine.low %v5969_v42, %v3495_v27 }
 0x103   : > { %4381 = vmatmul.mubr.msk.bf16.gmra.mrb[4].mxu1 %vm558_vm4, %v3992_v59 }
 0x104   : > { %4390 = vmatprep.mubr.msk.bf16.mxu1 %vm558_vm4, %v4000_v6 }
 0x106   : > { %4517 = vmatmul.mubr.msk.bf16.vlgmr.msra.gmra.mrb[0].mxu0 %vm558_vm4, %v5829_v39 }
 0x107   : > { %4520 = vmatprep.mubr.msk.bf16.mxu0 %vm558_vm4, %v5857_v11 }
 0x10e   : > { %4521 = vmatmul.mubr.msk.bf16.gmra.mrb[4].mxu0 %vm558_vm4, %v4112_v58 }
 0x10f   : > { %4391 = vmatmul.mubr.msk.bf16.vlgmr.msra.gmra.mrb[4].mxu1 %vm558_vm4, %v6201_v36 }
 0x1ce   : > { %v4378_v39 = vpop.f32.mrb[0].mxu1 }
 0x1cf   : > { %v2002_v11 = vpop.f32.mrb[1].mxu1 }
 0x1d0   : > { %v4379_v46 = vpop.f32.mrb[2].mxu1 }
 0x1d1   : > { %v2005_v18 = vpop.f32.mrb[3].mxu1 }
 0x1d9   : > { %v4518_v55 = vpop.f32.mrb[0].mxu0 }
 0x1da   : > { %v4526_v29 = vadd.f32 %v4518_v55, %v4378_v39  ;;  %v3540_v28 = vpop.f32.mrb[1].mxu0 }
 0x1db   : > { %v4527_v37 = vadd.f32 %v3540_v28, %v2002_v11  ;;  %v4519_v50 = vpop.f32.mrb[2].mxu0 }
 0x1dc   : > { %3581 = vst.msk [vmem:[%s6067_s11 + $0x10] sm:$0xff] %vm558_vm4, %v4526_v29  ;;  %v4528_v42 = vadd.f32 %v4519_v50, %v4379_v46  ;;  %v3543_v31 = vpop.f32.mrb[3].mxu0  ;;  %v3612_v21 = vmul.f32 %v4526_v29, %v4526_v29  ;;  %v3590_v3 = vsel %vm558_vm4, %v4526_v29, 0.0 }
 0x1dd   : > { %3579 = vst.msk [vmem:[%s6067_s11] sm:$0xff] %vm558_vm4, %v4527_v37  ;;  %v3610_v41 = vmul.f32 %v4527_v37, %v4527_v37  ;;  %v4529_v7 = vadd.f32 %v3543_v31, %v2005_v18  ;;  %v3587_v12 = vsel %vm558_vm4, %v4527_v37, 0.0 }
 0x1de   : > { %3582 = vst.msk [vmem:[%s6067_s11 + $0x18] sm:$0xff] %vm558_vm4, %v4528_v42  ;;  %v3613_v62 = vmul.f32 %v4528_v42, %v4528_v42  ;;  %v3621_v32 = vsel %vm558_vm4, %v3612_v21, 0.0  ;;  %v3592_v60 = vsel %vm558_vm4, %v4528_v42, 0.0 }
 0x1df   : > { %3580 = vst.msk [vmem:[%s6067_s11 + $0x8] sm:$0xff] %vm558_vm4, %v4529_v7  ;;  %v3588_v61 = vsel %vm558_vm4, %v4529_v7, 0.0  ;;  %v3611_v5 = vmul.f32 %v4529_v7, %v4529_v7  ;;  %v3618_v16 = vsel %vm558_vm4, %v3610_v41, 0.0 }
 0x1e0   : > { %v3589_v56 = vadd.f32 %v3588_v61, %v3587_v12  ;;  %v3623_v14 = vsel %vm558_vm4, %v3613_v62, 0.0 }
 0x1e1   : > { %v3619_v22 = vsel %vm558_vm4, %v3611_v5, 0.0  ;;  %v4522_v33 = vpop.f32.mrb[4].mxu0 }
 0x1e2   : > { %v3591_v8 = vadd.f32 %v3590_v3, %v3589_v56  ;;  %v3620_v30 = vadd.f32 %v3619_v22, %v3618_v16  ;;  %v3556_v57 = vpop.f32.mrb[5].mxu0  ;;  %v4392_v48 = vpop.f32.mrb[4].mxu1 }
 0x1e3   : > { %v4523_v47 = vpop.f32.mrb[6].mxu0  ;;  %v2127_v4 = vpop.f32.mrb[5].mxu1  ;;  %v4530_v26 = vadd.f32 %v4522_v33, %v4392_v48 }
 0x1e4   : > { %v3622_v34 = vadd.f32 %v3621_v32, %v3620_v30  ;;  %v3593_v45 = vadd.f32 %v3592_v60, %v3591_v8  ;;  %v3559_v10 = vpop.f32.mrb[7].mxu0  ;;  %v4393_v13 = vpop.f32.mrb[6].mxu1  ;;  %v4531_v43 = vadd.f32 %v3556_v57, %v2127_v4 }
 0x1e5   : > { %3585 = vst.msk [vmem:[%s6067_s11 + $0x30] sm:$0xff] %vm558_vm4, %v4530_v26  ;;  %v2130_v54 = vpop.f32.mrb[7].mxu1  ;;  %v4532_v25 = vadd.f32 %v4523_v47, %v4393_v13  ;;  %v3616_v52 = vmul.f32 %v4530_v26, %v4530_v26  ;;  %v3598_v35 = vsel %vm558_vm4, %v4530_v26, 0.0 }
 0x1e6   : > { %v3624_v15 = vadd.f32 %v3623_v14, %v3622_v34  ;;  %3583 = vst.msk [vmem:[%s6067_s11 + $0x20] sm:$0xff] %vm558_vm4, %v4531_v43  ;;  %v3594_v0 = vsel %vm558_vm4, %v4531_v43, 0.0  ;;  %v3614_v1 = vmul.f32 %v4531_v43, %v4531_v43  ;;  %v4533_v63 = vadd.f32 %v3559_v10, %v2130_v54 }
 0x1e7   : > { %v3595_v49 = vadd.f32 %v3594_v0, %v3593_v45  ;;  %3586 = vst.msk [vmem:[%s6067_s11 + $0x38] sm:$0xff] %vm558_vm4, %v4532_v25  ;;  %v3617_v44 = vmul.f32 %v4532_v25, %v4532_v25  ;;  %v3629_v6 = vsel %vm558_vm4, %v3616_v52, 0.0  ;;  %v3600_v40 = vsel %vm558_vm4, %v4532_v25, 0.0 }
 0x1e8   : > { %v3625_v17 = vsel %vm558_vm4, %v3614_v1, 0.0  ;;  %3584 = vst.msk [vmem:[%s6067_s11 + $0x28] sm:$0xff] %vm558_vm4, %v4533_v63  ;;  %v3596_v38 = vsel %vm558_vm4, %v4533_v63, 0.0  ;;  %v3615_v19 = vmul.f32 %v4533_v63, %v4533_v63 }
 0x1e9   : > { %v3626_v23 = vadd.f32 %v3625_v17, %v3624_v15  ;;  %v3597_v9 = vadd.f32 %v3596_v38, %v3595_v49  ;;  %v3631_v58 = vsel %vm558_vm4, %v3617_v44, 0.0 }
 0x1ea   : > { %v3627_v59 = vsel %vm558_vm4, %v3615_v19, 0.0 }
 0x1eb   : > { %v3599_v2 = vadd.f32 %v3598_v35, %v3597_v9  ;;  %v3628_v53 = vadd.f32 %v3627_v59, %v3626_v23 }
 0x1ed   : > { %v3601_v51 = vadd.f32 %v3600_v40, %v3599_v2  ;;  %v3630_v27 = vadd.f32 %v3629_v6, %v3628_v53 }
 0x1ef   : > { %v3602_v24 = vrot.slane %v3601_v51, 4  ;;  %v3632_v20 = vadd.f32 %v3631_v58, %v3630_v27 }
 0x1f1   : > { %v3603_v36 = vadd.f32 %v3602_v24, %v3601_v51  ;;  %v3633_v39 = vrot.slane %v3632_v20, 4 }
 0x1f3   : > { %v3604_v11 = vrot.slane %v3603_v36, 2  ;;  %v3634_v46 = vadd.f32 %v3633_v39, %v3632_v20 }
 0x1f5   : > { %v3605_v18 = vadd.f32 %v3604_v11, %v3603_v36  ;;  %v3635_v55 = vrot.slane %v3634_v46, 2 }
 0x1f7   : > { %v3606_v29 = vrot.slane %v3605_v18, 1  ;;  %v3636_v28 = vadd.f32 %v3635_v55, %v3634_v46 }
 0x1f9   : > { %v3607_v37 = vadd.f32 %v3606_v29, %v3605_v18  ;;  %v3637_v50 = vrot.slane %v3636_v28, 1 }
 0x1fb   : > { %3609 = vst.msk [vmem:[%s399_s17] sm:$0x1] %vm3608_vm8, %v3607_v37  ;;  %v3638_v42 = vadd.f32 %v3637_v50, %v3636_v28 }
 0x1fd   : > { %3639 = vst.msk [vmem:[%s406_s20] sm:$0x1] %vm3608_vm8, %v3638_v42 }
 0x1fe PF: > { %s17_s25 = sadd.s32 1, %s4882_s25   ;;  %s6202_s21 = smov %s4874_s23 }
 0x1ff   : > { %p14_p10 = scmp.ge.s32.totalorder %s17_s25, 18   ;;  %s6203_s22 = smov %s4878_s24 }
 0x200   : > { %s6204_s23 = smov %s6207_s26  ;;  %s6205_s24 = smov %s6211_s27 }
 0x201   :  { %16 = sbr.rel (!%p14_p10) target bundleno = 3 (0x3), region = 122 }

</bundles_post_ra>
